<compile_context>
chip_gen: v7x
topology: tpu7x:2x2x1
jax: 0.10.0
libtpu: 0.0.40
codegen_flags: <defaults>
</compile_context>

<pallas_src>
import jax
import jax.numpy as jnp
from jax.experimental import pallas as pl
from jax.experimental.pallas import tpu as pltpu

C = 256  # fixed by the module (conv3x3(256, 256))


def _res_block_kernel(x_ref, w1_ref, b1_ref, w2_ref, b2_ref, out_ref, pad_ref):
    # x_ref:   (BT, H, W, C)       BT batch elements per grid step
    # w*_ref:  (3, 3, C, C)        HWIO conv weights, bf16
    # b*_ref:  (1, C)              biases, f32
    # pad_ref: (BT, H+2, W, C)     VMEM scratch (f32), zero-padded along H only
    BT, H, W, Cc = x_ref.shape
    M = BT * H * W

    # Zero only the two H-halo rows (tiny: 2*BT*W*C floats).  Done per step
    # (not under pl.when(program_id==0)) so it stays correct when the
    # "parallel" batch axis is megacore-split (per-core scratch).
    zrow = jnp.zeros((BT, 1, W, Cc), jnp.float32)
    pad_ref[:, 0:1, :, :] = zrow
    pad_ref[:, H + 1:H + 2, :, :] = zrow

    # Column masks for the rolled kx = 0 / kx = 2 taps.
    w_idx = jax.lax.broadcasted_iota(jnp.int32, (W, 1), 0)   # (W, 1)
    not_first_col = w_idx > 0
    not_last_col = w_idx < W - 1

    def conv3x3(w_ref):
        # pad_ref interior currently holds the conv input (BT, H, W, C) f32.
        p = pad_ref[...]                                      # (BT, H+2, W, C)
        # kx shifts along W on the XLU (sublane roll, f32) + boundary masking;
        # no misaligned VMEM window copies.
        p_m1 = jnp.where(not_first_col, pltpu.roll(p, 1, axis=2), 0.0)     # x[.., w-1, :]
        p_p1 = jnp.where(not_last_col, pltpu.roll(p, W - 1, axis=2), 0.0)  # x[.., w+1, :]
        taps = (p_m1, p, p_p1)

        acc = None
        for ky in range(3):
            for kx in range(3):
                # Aligned slice along the leading H axis; reshape to (M, C) is
                # a pure f32 retiling, then cast to bf16 so the MXU runs its
                # native bf16 path (f32 accumulate).
                sl = taps[kx][:, ky:ky + H].reshape(M, Cc).astype(jnp.bfloat16)
                d = jnp.dot(sl, w_ref[ky, kx],
                            preferred_element_type=jnp.float32)
                acc = d if acc is None else acc + d
        return acc  # (M, C) float32, bias NOT included

    x32 = x_ref[...].astype(jnp.float32)

    # conv1 + bias + relu; relu result is written straight back into the pad
    # interior (no intermediate materialization / re-pad).
    pad_ref[:, 1:H + 1, :, :] = x32                           # aligned store
    h1 = jnp.maximum(conv3x3(w1_ref) + b1_ref[...].astype(jnp.float32), 0.0)
    pad_ref[:, 1:H + 1, :, :] = h1.reshape(BT, H, W, Cc)

    # conv2 + bias -> *0.1 -> + residual (sum in f32, single cast at the end).
    o = conv3x3(w2_ref) + b2_ref[...].astype(jnp.float32)
    out_ref[...] = (o.reshape(BT, H, W, Cc) * 0.1 + x32).astype(out_ref.dtype)


def _footprint_bytes(bt, H, W, x_itemsize, single_buffer_weights):
    """Rough per-grid-step live-VMEM estimate for batch tile `bt`."""
    m = bt * H * W
    wbuf = 1 if single_buffer_weights else 2
    return (4 * m * C * x_itemsize              # x & out blocks, double-buffered
            + bt * (H + 2) * W * C * 4          # f32 H-padded scratch
            + 3 * bt * (H + 2) * W * C * 4      # f32 rolled taps (p_m1, p, p_p1)
            + 2 * m * C * 4                     # f32 accumulator + live residual
            + wbuf * 2 * 9 * C * C * 2)         # two bf16 3x3x256x256 weights


def _pick_batch_tile(N, H, W, x_itemsize, vmem_cap, single_buffer_weights):
    budget = max(int(0.55 * vmem_cap), 8 << 20)
    # Bigger M amortizes weight-push/drain + per-step overhead; 128 MiB parts
    # (v5e/v6e) can afford ~1024 rows, 64 MiB (v7x) targets ~512.
    target_m = 1024 if vmem_cap >= (96 << 20) else 512
    # Keep the batch grid length >= 2 so v7x's two TensorCores both get work
    # and the x/out block DMAs can pipeline.
    bt_cap = N if N == 1 else max(1, N // 2)
    divisors = [d for d in range(1, bt_cap + 1) if N % d == 0]
    fitting = [d for d in divisors
               if _footprint_bytes(d, H, W, x_itemsize,
                                   single_buffer_weights) <= budget] or [1]
    reach = [d for d in fitting if d * H * W >= target_m]
    return min(reach) if reach else max(fitting)


def _build_res_block(N, H, W, dtype, bt, vmem_limit, single_buffer_weights):
    def const_spec(shape):
        kwargs = {}
        if single_buffer_weights:
            # Constant index_map: one buffer is enough (saves VMEM, no re-DMA).
            kwargs["pipeline_mode"] = pl.Buffered(1)
        return pl.BlockSpec(shape, lambda n: (0,) * len(shape), **kwargs)

    grid_spec = pltpu.PrefetchScalarGridSpec(
        num_scalar_prefetch=0,
        grid=(N // bt,),
        in_specs=[
            pl.BlockSpec((bt, H, W, C), lambda n: (n, 0, 0, 0)),
            const_spec((3, 3, C, C)),
            const_spec((1, C)),
            const_spec((3, 3, C, C)),
            const_spec((1, C)),
        ],
        out_specs=pl.BlockSpec((bt, H, W, C), lambda n: (n, 0, 0, 0)),
        scratch_shapes=[pltpu.VMEM((bt, H + 2, W, C), jnp.float32)],
    )
    return pl.pallas_call(
        _res_block_kernel,
        out_shape=jax.ShapeDtypeStruct((N, H, W, C), dtype),
        grid_spec=grid_spec,
        compiler_params=pltpu.CompilerParams(
            dimension_semantics=("parallel",),
            vmem_limit_bytes=int(vmem_limit),
        ),
    )


def res_block_nhwc(x_nhwc, w1, b1, w2, b2, *, batch_tile=None):
    N, H, W, Cc = x_nhwc.shape
    assert Cc == C

    try:
        vmem_cap = int(pltpu.get_tpu_info().vmem_capacity_bytes)
    except Exception:
        vmem_cap = 64 << 20   # conservative (v7x) fallback

    # Cast weights to bf16 once, outside the kernel, so the weight DMA also
    # moves half the bytes.  Biases stay f32 (added in the f32 epilogue).
    w1b = w1.astype(jnp.bfloat16)
    w2b = w2.astype(jnp.bfloat16)
    b1f = b1.astype(jnp.float32)
    b2f = b2.astype(jnp.float32)

    last_err = None
    for single_buf in (True, False):   # fall back if pl.Buffered(1) is rejected
        try:
            bt = (batch_tile if batch_tile is not None else
                  _pick_batch_tile(N, H, W, x_nhwc.dtype.itemsize, vmem_cap,
                                   single_buf))
            assert N % bt == 0, "batch_tile must divide the batch size"
            fp = _footprint_bytes(bt, H, W, x_nhwc.dtype.itemsize, single_buf)
            vmem_limit = min(int(0.70 * vmem_cap),
                             max(32 << 20, int(1.75 * fp)))
            fn = _build_res_block(N, H, W, x_nhwc.dtype, bt, vmem_limit,
                                  single_buf)
            return fn(x_nhwc, w1b, b1f, w2b, b2f)
        except Exception as e:   # noqa: BLE001 - rebuild without Buffered(1)
            last_err = e
    raise last_err


def conv_relu_res_block_scale01(x_nchw, w1, b1, w2, b2):
    """Matches the PyTorch module's forward. x_nchw: (N, 256, H, W)."""
    # TODO(synk): drop these transposes when the surrounding pipeline is NHWC.
    x_nhwc = jnp.transpose(x_nchw, (0, 2, 3, 1))
    y_nhwc = res_block_nhwc(x_nhwc, w1, b1, w2, b2)
    return jnp.transpose(y_nhwc, (0, 3, 1, 2))


def _reference_nhwc(x, w1, b1, w2, b2):
    dn = ("NHWC", "HWIO", "NHWC")
    h = jax.lax.conv_general_dilated(x, w1, (1, 1), "SAME",
                                     dimension_numbers=dn) + b1[0]
    h = jnp.maximum(h, 0.0)
    o = jax.lax.conv_general_dilated(h, w2, (1, 1), "SAME",
                                     dimension_numbers=dn) + b2[0]
    return o * 0.1 + x


if __name__ == "__main__":
    key = jax.random.PRNGKey(0)
    k_x, k_w1, k_b1, k_w2, k_b2 = jax.random.split(key, 5)

    N, H, W = 2, 8, 8
    # deterministic "parameters" (HWIO layout), small scale like PyTorch init
    scale = 1.0 / (3 * 3 * C) ** 0.5
    x = jax.random.normal(k_x, (N, C, H, W), jnp.float32)       # NCHW input
    w1 = jax.random.normal(k_w1, (3, 3, C, C), jnp.float32) * scale
    b1 = jax.random.normal(k_b1, (1, C), jnp.float32) * scale
    w2 = jax.random.normal(k_w2, (3, 3, C, C), jnp.float32) * scale
    b2 = jax.random.normal(k_b2, (1, C), jnp.float32) * scale

    out = conv_relu_res_block_scale01(x, w1, b1, w2, b2)
    out = jax.block_until_ready(out)

    # correctness check against XLA f32 conv reference.
    # Tolerance is 1e-2 (not 1e-4) because the kernel deliberately feeds the
    # MXU bf16 operands (activations + weights) with f32 accumulation.
    ref = _reference_nhwc(jnp.transpose(x, (0, 2, 3, 1)), w1, b1, w2, b2)
    ref = jnp.transpose(ref, (0, 3, 1, 2))
    assert out.shape == (N, C, H, W)
    assert jnp.allclose(out, ref, rtol=1e-2, atol=1e-2), "mismatch vs reference"

    print("KERNEL_OK")
</pallas_src>

<mosaic_0001>
module attributes {stable_mosaic.version = 11 : i64} {
  func.func @_res_block_kernel(%arg0: i32, %arg1: memref<1x8x8x256xf32, #tpu.memory_space<vmem>>, %arg2: memref<3x3x256x256xbf16, #tpu.memory_space<vmem>>, %arg3: memref<1x256xf32, #tpu.memory_space<vmem>>, %arg4: memref<3x3x256x256xbf16, #tpu.memory_space<vmem>>, %arg5: memref<1x256xf32, #tpu.memory_space<vmem>>, %arg6: memref<1x8x8x256xf32, #tpu.memory_space<vmem>>, %arg7: memref<1x10x8x256xf32, #tpu.memory_space<vmem>>) attributes {dimension_semantics = [#tpu.dimension_semantics<parallel>], iteration_bounds = array<i64: 2>, scalar_prefetch = 0 : i64, scratch_operands = 1 : i64, tpu.core_type = #tpu.core_type<tc>, window_params = [{transform_indices = @transform_0, window_bounds = array<i64: 1, 8, 8, 256>}, {pipeline_mode = #tpu.pipeline_mode<synchronous>, transform_indices = @transform_1, window_bounds = array<i64: 3, 3, 256, 256>}, {pipeline_mode = #tpu.pipeline_mode<synchronous>, transform_indices = @transform_2, window_bounds = array<i64: 1, 256>}, {pipeline_mode = #tpu.pipeline_mode<synchronous>, transform_indices = @transform_3, window_bounds = array<i64: 3, 3, 256, 256>}, {pipeline_mode = #tpu.pipeline_mode<synchronous>, transform_indices = @transform_4, window_bounds = array<i64: 1, 256>}, {transform_indices = @transform_5, window_bounds = array<i64: 1, 8, 8, 256>}]} {
    %cst = arith.constant 0.000000e+00 : f32
    %0 = vector.broadcast %cst : f32 to vector<1x1x8x256xf32>
    %c0 = arith.constant 0 : index
    %c0_0 = arith.constant 0 : index
    %c0_1 = arith.constant 0 : index
    %c0_2 = arith.constant 0 : index
    %1 = vector.load %arg7[%c0, %c0_0, %c0_1, %c0_2] : memref<1x10x8x256xf32, #tpu.memory_space<vmem>>, vector<1x1x8x256xf32>
    tpu.vector_store %arg7[%c0, %c0_0, %c0_1, %c0_2], %0 {strides = array<i32>} : memref<1x10x8x256xf32, #tpu.memory_space<vmem>>, vector<1x1x8x256xf32>,
    %c0_3 = arith.constant 0 : index
    %c9 = arith.constant 9 : index
    %c0_4 = arith.constant 0 : index
    %c0_5 = arith.constant 0 : index
    %2 = vector.load %arg7[%c0_3, %c9, %c0_4, %c0_5] : memref<1x10x8x256xf32, #tpu.memory_space<vmem>>, vector<1x1x8x256xf32>
    tpu.vector_store %arg7[%c0_3, %c9, %c0_4, %c0_5], %0 {strides = array<i32>} : memref<1x10x8x256xf32, #tpu.memory_space<vmem>>, vector<1x1x8x256xf32>,
    %3 = tpu.iota {dimensions = array<i32: 0>} : vector<8x1xi32>
    %c0_i32 = arith.constant 0 : i32
    %4 = vector.broadcast %c0_i32 : i32 to vector<8x1xi32>
    %5 = arith.cmpi sgt, %3, %4 : vector<8x1xi32>
    %c7_i32 = arith.constant 7 : i32
    %6 = vector.broadcast %c7_i32 : i32 to vector<8x1xi32>
    %7 = arith.cmpi slt, %3, %6 : vector<8x1xi32>
    %c0_6 = arith.constant 0 : index
    %c0_7 = arith.constant 0 : index
    %c0_8 = arith.constant 0 : index
    %c0_9 = arith.constant 0 : index
    %8 = vector.load %arg1[%c0_6, %c0_7, %c0_8, %c0_9] : memref<1x8x8x256xf32, #tpu.memory_space<vmem>>, vector<1x8x8x256xf32>
    %c0_10 = arith.constant 0 : index
    %c1 = arith.constant 1 : index
    %c0_11 = arith.constant 0 : index
    %c0_12 = arith.constant 0 : index
    %9 = vector.load %arg7[%c0_10, %c1, %c0_11, %c0_12] : memref<1x10x8x256xf32, #tpu.memory_space<vmem>>, vector<1x8x8x256xf32>
    tpu.vector_store %arg7[%c0_10, %c1, %c0_11, %c0_12], %8 {strides = array<i32>} : memref<1x10x8x256xf32, #tpu.memory_space<vmem>>, vector<1x8x8x256xf32>,
    %c0_13 = arith.constant 0 : index
    %c0_14 = arith.constant 0 : index
    %c0_15 = arith.constant 0 : index
    %c0_16 = arith.constant 0 : index
    %10 = vector.load %arg7[%c0_13, %c0_14, %c0_15, %c0_16] : memref<1x10x8x256xf32, #tpu.memory_space<vmem>>, vector<1x10x8x256xf32>
    %c1_i32 = arith.constant 1 : i32
    %11 = tpu.dynamic_rotate %10 by %c1_i32 dim 2 : vector<1x10x8x256xf32>, i32 -> vector<1x10x8x256xf32>
    %cst_17 = arith.constant 0.000000e+00 : f32
    %12 = vector.shape_cast %5 : vector<8x1xi1> to vector<1x1x8x1xi1>
    %13 = vector.broadcast %12 : vector<1x1x8x1xi1> to vector<1x10x8x256xi1>
    %14 = vector.broadcast %cst_17 : f32 to vector<1x10x8x256xf32>
    %15 = arith.select %13, %11, %14 : vector<1x10x8x256xi1>, vector<1x10x8x256xf32>
    %c7_i32_18 = arith.constant 7 : i32
    %16 = tpu.dynamic_rotate %10 by %c7_i32_18 dim 2 : vector<1x10x8x256xf32>, i32 -> vector<1x10x8x256xf32>
    %cst_19 = arith.constant 0.000000e+00 : f32
    %17 = vector.shape_cast %7 : vector<8x1xi1> to vector<1x1x8x1xi1>
    %18 = vector.broadcast %17 : vector<1x1x8x1xi1> to vector<1x10x8x256xi1>
    %19 = vector.broadcast %cst_19 : f32 to vector<1x10x8x256xf32>
    %20 = arith.select %18, %16, %19 : vector<1x10x8x256xi1>, vector<1x10x8x256xf32>
    %21 = vector.extract_strided_slice %15 {offsets = [0, 0, 0, 0], sizes = [1, 8, 8, 256], strides = [1, 1, 1, 1]} : vector<1x10x8x256xf32> to vector<1x8x8x256xf32>
    %22 = vector.shape_cast %21 : vector<1x8x8x256xf32> to vector<64x256xf32>
    %23 = arith.truncf %22 : vector<64x256xf32> to vector<64x256xbf16>
    %c0_20 = arith.constant 0 : index
    %c0_21 = arith.constant 0 : index
    %c0_22 = arith.constant 0 : index
    %c0_23 = arith.constant 0 : index
    %24 = vector.load %arg2[%c0_20, %c0_21, %c0_22, %c0_23] : memref<3x3x256x256xbf16, #tpu.memory_space<vmem>>, vector<1x1x256x256xbf16>
    %25 = vector.shape_cast %24 : vector<1x1x256x256xbf16> to vector<256x256xbf16>
    %cst_24 = arith.constant dense<0.000000e+00> : vector<64x256xf32>
    %26 = tpu.matmul %23, %25, %cst_24 {dimension_numbers = #tpu.dot_dimension_numbers<[1], [0], [0], [1], [0, 0, 1, 1], [], []>} : vector<64x256xbf16>, vector<256x256xbf16>, vector<64x256xf32> -> vector<64x256xf32>
    %27 = vector.extract_strided_slice %10 {offsets = [0, 0, 0, 0], sizes = [1, 8, 8, 256], strides = [1, 1, 1, 1]} : vector<1x10x8x256xf32> to vector<1x8x8x256xf32>
    %28 = vector.shape_cast %27 : vector<1x8x8x256xf32> to vector<64x256xf32>
    %29 = arith.truncf %28 : vector<64x256xf32> to vector<64x256xbf16>
    %c0_25 = arith.constant 0 : index
    %c1_26 = arith.constant 1 : index
    %c0_27 = arith.constant 0 : index
    %c0_28 = arith.constant 0 : index
    %30 = vector.load %arg2[%c0_25, %c1_26, %c0_27, %c0_28] : memref<3x3x256x256xbf16, #tpu.memory_space<vmem>>, vector<1x1x256x256xbf16>
    %31 = vector.shape_cast %30 : vector<1x1x256x256xbf16> to vector<256x256xbf16>
    %cst_29 = arith.constant dense<0.000000e+00> : vector<64x256xf32>
    %32 = tpu.matmul %29, %31, %cst_29 {dimension_numbers = #tpu.dot_dimension_numbers<[1], [0], [0], [1], [0, 0, 1, 1], [], []>} : vector<64x256xbf16>, vector<256x256xbf16>, vector<64x256xf32> -> vector<64x256xf32>
    %33 = arith.addf %26, %32 : vector<64x256xf32>
    %34 = vector.extract_strided_slice %20 {offsets = [0, 0, 0, 0], sizes = [1, 8, 8, 256], strides = [1, 1, 1, 1]} : vector<1x10x8x256xf32> to vector<1x8x8x256xf32>
    %35 = vector.shape_cast %34 : vector<1x8x8x256xf32> to vector<64x256xf32>
    %36 = arith.truncf %35 : vector<64x256xf32> to vector<64x256xbf16>
    %c0_30 = arith.constant 0 : index
    %c2 = arith.constant 2 : index
    %c0_31 = arith.constant 0 : index
    %c0_32 = arith.constant 0 : index
    %37 = vector.load %arg2[%c0_30, %c2, %c0_31, %c0_32] : memref<3x3x256x256xbf16, #tpu.memory_space<vmem>>, vector<1x1x256x256xbf16>
    %38 = vector.shape_cast %37 : vector<1x1x256x256xbf16> to vector<256x256xbf16>
    %cst_33 = arith.constant dense<0.000000e+00> : vector<64x256xf32>
    %39 = tpu.matmul %36, %38, %cst_33 {dimension_numbers = #tpu.dot_dimension_numbers<[1], [0], [0], [1], [0, 0, 1, 1], [], []>} : vector<64x256xbf16>, vector<256x256xbf16>, vector<64x256xf32> -> vector<64x256xf32>
    %40 = arith.addf %33, %39 : vector<64x256xf32>
    %41 = vector.extract_strided_slice %15 {offsets = [0, 1, 0, 0], sizes = [1, 8, 8, 256], strides = [1, 1, 1, 1]} : vector<1x10x8x256xf32> to vector<1x8x8x256xf32>
    %42 = vector.shape_cast %41 : vector<1x8x8x256xf32> to vector<64x256xf32>
    %43 = arith.truncf %42 : vector<64x256xf32> to vector<64x256xbf16>
    %c1_34 = arith.constant 1 : index
    %c0_35 = arith.constant 0 : index
    %c0_36 = arith.constant 0 : index
    %c0_37 = arith.constant 0 : index
    %44 = vector.load %arg2[%c1_34, %c0_35, %c0_36, %c0_37] : memref<3x3x256x256xbf16, #tpu.memory_space<vmem>>, vector<1x1x256x256xbf16>
    %45 = vector.shape_cast %44 : vector<1x1x256x256xbf16> to vector<256x256xbf16>
    %cst_38 = arith.constant dense<0.000000e+00> : vector<64x256xf32>
    %46 = tpu.matmul %43, %45, %cst_38 {dimension_numbers = #tpu.dot_dimension_numbers<[1], [0], [0], [1], [0, 0, 1, 1], [], []>} : vector<64x256xbf16>, vector<256x256xbf16>, vector<64x256xf32> -> vector<64x256xf32>
    %47 = arith.addf %40, %46 : vector<64x256xf32>
    %48 = vector.extract_strided_slice %10 {offsets = [0, 1, 0, 0], sizes = [1, 8, 8, 256], strides = [1, 1, 1, 1]} : vector<1x10x8x256xf32> to vector<1x8x8x256xf32>
    %49 = vector.shape_cast %48 : vector<1x8x8x256xf32> to vector<64x256xf32>
    %50 = arith.truncf %49 : vector<64x256xf32> to vector<64x256xbf16>
    %c1_39 = arith.constant 1 : index
    %c1_40 = arith.constant 1 : index
    %c0_41 = arith.constant 0 : index
    %c0_42 = arith.constant 0 : index
    %51 = vector.load %arg2[%c1_39, %c1_40, %c0_41, %c0_42] : memref<3x3x256x256xbf16, #tpu.memory_space<vmem>>, vector<1x1x256x256xbf16>
    %52 = vector.shape_cast %51 : vector<1x1x256x256xbf16> to vector<256x256xbf16>
    %cst_43 = arith.constant dense<0.000000e+00> : vector<64x256xf32>
    %53 = tpu.matmul %50, %52, %cst_43 {dimension_numbers = #tpu.dot_dimension_numbers<[1], [0], [0], [1], [0, 0, 1, 1], [], []>} : vector<64x256xbf16>, vector<256x256xbf16>, vector<64x256xf32> -> vector<64x256xf32>
    %54 = arith.addf %47, %53 : vector<64x256xf32>
    %55 = vector.extract_strided_slice %20 {offsets = [0, 1, 0, 0], sizes = [1, 8, 8, 256], strides = [1, 1, 1, 1]} : vector<1x10x8x256xf32> to vector<1x8x8x256xf32>
    %56 = vector.shape_cast %55 : vector<1x8x8x256xf32> to vector<64x256xf32>
    %57 = arith.truncf %56 : vector<64x256xf32> to vector<64x256xbf16>
    %c1_44 = arith.constant 1 : index
    %c2_45 = arith.constant 2 : index
    %c0_46 = arith.constant 0 : index
    %c0_47 = arith.constant 0 : index
    %58 = vector.load %arg2[%c1_44, %c2_45, %c0_46, %c0_47] : memref<3x3x256x256xbf16, #tpu.memory_space<vmem>>, vector<1x1x256x256xbf16>
    %59 = vector.shape_cast %58 : vector<1x1x256x256xbf16> to vector<256x256xbf16>
    %cst_48 = arith.constant dense<0.000000e+00> : vector<64x256xf32>
    %60 = tpu.matmul %57, %59, %cst_48 {dimension_numbers = #tpu.dot_dimension_numbers<[1], [0], [0], [1], [0, 0, 1, 1], [], []>} : vector<64x256xbf16>, vector<256x256xbf16>, vector<64x256xf32> -> vector<64x256xf32>
    %61 = arith.addf %54, %60 : vector<64x256xf32>
    %62 = vector.extract_strided_slice %15 {offsets = [0, 2, 0, 0], sizes = [1, 8, 8, 256], strides = [1, 1, 1, 1]} : vector<1x10x8x256xf32> to vector<1x8x8x256xf32>
    %63 = vector.shape_cast %62 : vector<1x8x8x256xf32> to vector<64x256xf32>
    %64 = arith.truncf %63 : vector<64x256xf32> to vector<64x256xbf16>
    %c2_49 = arith.constant 2 : index
    %c0_50 = arith.constant 0 : index
    %c0_51 = arith.constant 0 : index
    %c0_52 = arith.constant 0 : index
    %65 = vector.load %arg2[%c2_49, %c0_50, %c0_51, %c0_52] : memref<3x3x256x256xbf16, #tpu.memory_space<vmem>>, vector<1x1x256x256xbf16>
    %66 = vector.shape_cast %65 : vector<1x1x256x256xbf16> to vector<256x256xbf16>
    %cst_53 = arith.constant dense<0.000000e+00> : vector<64x256xf32>
    %67 = tpu.matmul %64, %66, %cst_53 {dimension_numbers = #tpu.dot_dimension_numbers<[1], [0], [0], [1], [0, 0, 1, 1], [], []>} : vector<64x256xbf16>, vector<256x256xbf16>, vector<64x256xf32> -> vector<64x256xf32>
    %68 = arith.addf %61, %67 : vector<64x256xf32>
    %69 = vector.extract_strided_slice %10 {offsets = [0, 2, 0, 0], sizes = [1, 8, 8, 256], strides = [1, 1, 1, 1]} : vector<1x10x8x256xf32> to vector<1x8x8x256xf32>
    %70 = vector.shape_cast %69 : vector<1x8x8x256xf32> to vector<64x256xf32>
    %71 = arith.truncf %70 : vector<64x256xf32> to vector<64x256xbf16>
    %c2_54 = arith.constant 2 : index
    %c1_55 = arith.constant 1 : index
    %c0_56 = arith.constant 0 : index
    %c0_57 = arith.constant 0 : index
    %72 = vector.load %arg2[%c2_54, %c1_55, %c0_56, %c0_57] : memref<3x3x256x256xbf16, #tpu.memory_space<vmem>>, vector<1x1x256x256xbf16>
    %73 = vector.shape_cast %72 : vector<1x1x256x256xbf16> to vector<256x256xbf16>
    %cst_58 = arith.constant dense<0.000000e+00> : vector<64x256xf32>
    %74 = tpu.matmul %71, %73, %cst_58 {dimension_numbers = #tpu.dot_dimension_numbers<[1], [0], [0], [1], [0, 0, 1, 1], [], []>} : vector<64x256xbf16>, vector<256x256xbf16>, vector<64x256xf32> -> vector<64x256xf32>
    %75 = arith.addf %68, %74 : vector<64x256xf32>
    %76 = vector.extract_strided_slice %20 {offsets = [0, 2, 0, 0], sizes = [1, 8, 8, 256], strides = [1, 1, 1, 1]} : vector<1x10x8x256xf32> to vector<1x8x8x256xf32>
    %77 = vector.shape_cast %76 : vector<1x8x8x256xf32> to vector<64x256xf32>
    %78 = arith.truncf %77 : vector<64x256xf32> to vector<64x256xbf16>
    %c2_59 = arith.constant 2 : index
    %c2_60 = arith.constant 2 : index
    %c0_61 = arith.constant 0 : index
    %c0_62 = arith.constant 0 : index
    %79 = vector.load %arg2[%c2_59, %c2_60, %c0_61, %c0_62] : memref<3x3x256x256xbf16, #tpu.memory_space<vmem>>, vector<1x1x256x256xbf16>
    %80 = vector.shape_cast %79 : vector<1x1x256x256xbf16> to vector<256x256xbf16>
    %cst_63 = arith.constant dense<0.000000e+00> : vector<64x256xf32>
    %81 = tpu.matmul %78, %80, %cst_63 {dimension_numbers = #tpu.dot_dimension_numbers<[1], [0], [0], [1], [0, 0, 1, 1], [], []>} : vector<64x256xbf16>, vector<256x256xbf16>, vector<64x256xf32> -> vector<64x256xf32>
    %82 = arith.addf %75, %81 : vector<64x256xf32>
    %c0_64 = arith.constant 0 : index
    %c0_65 = arith.constant 0 : index
    %83 = vector.load %arg3[%c0_64, %c0_65] : memref<1x256xf32, #tpu.memory_space<vmem>>, vector<1x256xf32>
    %84 = vector.broadcast %83 : vector<1x256xf32> to vector<64x256xf32>
    %85 = arith.addf %82, %84 : vector<64x256xf32>
    %cst_66 = arith.constant 0.000000e+00 : f32
    %86 = vector.broadcast %cst_66 : f32 to vector<64x256xf32>
    %87 = arith.maximumf %85, %86 : vector<64x256xf32>
    %88 = vector.shape_cast %87 : vector<64x256xf32> to vector<1x8x8x256xf32>
    %c0_67 = arith.constant 0 : index
    %c1_68 = arith.constant 1 : index
    %c0_69 = arith.constant 0 : index
    %c0_70 = arith.constant 0 : index
    %89 = vector.load %arg7[%c0_67, %c1_68, %c0_69, %c0_70] : memref<1x10x8x256xf32, #tpu.memory_space<vmem>>, vector<1x8x8x256xf32>
    tpu.vector_store %arg7[%c0_67, %c1_68, %c0_69, %c0_70], %88 {strides = array<i32>} : memref<1x10x8x256xf32, #tpu.memory_space<vmem>>, vector<1x8x8x256xf32>,
    %c0_71 = arith.constant 0 : index
    %c0_72 = arith.constant 0 : index
    %c0_73 = arith.constant 0 : index
    %c0_74 = arith.constant 0 : index
    %90 = vector.load %arg7[%c0_71, %c0_72, %c0_73, %c0_74] : memref<1x10x8x256xf32, #tpu.memory_space<vmem>>, vector<1x10x8x256xf32>
    %c1_i32_75 = arith.constant 1 : i32
    %91 = tpu.dynamic_rotate %90 by %c1_i32_75 dim 2 : vector<1x10x8x256xf32>, i32 -> vector<1x10x8x256xf32>
    %cst_76 = arith.constant 0.000000e+00 : f32
    %92 = vector.shape_cast %5 : vector<8x1xi1> to vector<1x1x8x1xi1>
    %93 = vector.broadcast %92 : vector<1x1x8x1xi1> to vector<1x10x8x256xi1>
    %94 = vector.broadcast %cst_76 : f32 to vector<1x10x8x256xf32>
    %95 = arith.select %93, %91, %94 : vector<1x10x8x256xi1>, vector<1x10x8x256xf32>
    %c7_i32_77 = arith.constant 7 : i32
    %96 = tpu.dynamic_rotate %90 by %c7_i32_77 dim 2 : vector<1x10x8x256xf32>, i32 -> vector<1x10x8x256xf32>
    %cst_78 = arith.constant 0.000000e+00 : f32
    %97 = vector.shape_cast %7 : vector<8x1xi1> to vector<1x1x8x1xi1>
    %98 = vector.broadcast %97 : vector<1x1x8x1xi1> to vector<1x10x8x256xi1>
    %99 = vector.broadcast %cst_78 : f32 to vector<1x10x8x256xf32>
    %100 = arith.select %98, %96, %99 : vector<1x10x8x256xi1>, vector<1x10x8x256xf32>
    %101 = vector.extract_strided_slice %95 {offsets = [0, 0, 0, 0], sizes = [1, 8, 8, 256], strides = [1, 1, 1, 1]} : vector<1x10x8x256xf32> to vector<1x8x8x256xf32>
    %102 = vector.shape_cast %101 : vector<1x8x8x256xf32> to vector<64x256xf32>
    %103 = arith.truncf %102 : vector<64x256xf32> to vector<64x256xbf16>
    %c0_79 = arith.constant 0 : index
    %c0_80 = arith.constant 0 : index
    %c0_81 = arith.constant 0 : index
    %c0_82 = arith.constant 0 : index
    %104 = vector.load %arg4[%c0_79, %c0_80, %c0_81, %c0_82] : memref<3x3x256x256xbf16, #tpu.memory_space<vmem>>, vector<1x1x256x256xbf16>
    %105 = vector.shape_cast %104 : vector<1x1x256x256xbf16> to vector<256x256xbf16>
    %cst_83 = arith.constant dense<0.000000e+00> : vector<64x256xf32>
    %106 = tpu.matmul %103, %105, %cst_83 {dimension_numbers = #tpu.dot_dimension_numbers<[1], [0], [0], [1], [0, 0, 1, 1], [], []>} : vector<64x256xbf16>, vector<256x256xbf16>, vector<64x256xf32> -> vector<64x256xf32>
    %107 = vector.extract_strided_slice %90 {offsets = [0, 0, 0, 0], sizes = [1, 8, 8, 256], strides = [1, 1, 1, 1]} : vector<1x10x8x256xf32> to vector<1x8x8x256xf32>
    %108 = vector.shape_cast %107 : vector<1x8x8x256xf32> to vector<64x256xf32>
    %109 = arith.truncf %108 : vector<64x256xf32> to vector<64x256xbf16>
    %c0_84 = arith.constant 0 : index
    %c1_85 = arith.constant 1 : index
    %c0_86 = arith.constant 0 : index
    %c0_87 = arith.constant 0 : index
    %110 = vector.load %arg4[%c0_84, %c1_85, %c0_86, %c0_87] : memref<3x3x256x256xbf16, #tpu.memory_space<vmem>>, vector<1x1x256x256xbf16>
    %111 = vector.shape_cast %110 : vector<1x1x256x256xbf16> to vector<256x256xbf16>
    %cst_88 = arith.constant dense<0.000000e+00> : vector<64x256xf32>
    %112 = tpu.matmul %109, %111, %cst_88 {dimension_numbers = #tpu.dot_dimension_numbers<[1], [0], [0], [1], [0, 0, 1, 1], [], []>} : vector<64x256xbf16>, vector<256x256xbf16>, vector<64x256xf32> -> vector<64x256xf32>
    %113 = arith.addf %106, %112 : vector<64x256xf32>
    %114 = vector.extract_strided_slice %100 {offsets = [0, 0, 0, 0], sizes = [1, 8, 8, 256], strides = [1, 1, 1, 1]} : vector<1x10x8x256xf32> to vector<1x8x8x256xf32>
    %115 = vector.shape_cast %114 : vector<1x8x8x256xf32> to vector<64x256xf32>
    %116 = arith.truncf %115 : vector<64x256xf32> to vector<64x256xbf16>
    %c0_89 = arith.constant 0 : index
    %c2_90 = arith.constant 2 : index
    %c0_91 = arith.constant 0 : index
    %c0_92 = arith.constant 0 : index
    %117 = vector.load %arg4[%c0_89, %c2_90, %c0_91, %c0_92] : memref<3x3x256x256xbf16, #tpu.memory_space<vmem>>, vector<1x1x256x256xbf16>
    %118 = vector.shape_cast %117 : vector<1x1x256x256xbf16> to vector<256x256xbf16>
    %cst_93 = arith.constant dense<0.000000e+00> : vector<64x256xf32>
    %119 = tpu.matmul %116, %118, %cst_93 {dimension_numbers = #tpu.dot_dimension_numbers<[1], [0], [0], [1], [0, 0, 1, 1], [], []>} : vector<64x256xbf16>, vector<256x256xbf16>, vector<64x256xf32> -> vector<64x256xf32>
    %120 = arith.addf %113, %119 : vector<64x256xf32>
    %121 = vector.extract_strided_slice %95 {offsets = [0, 1, 0, 0], sizes = [1, 8, 8, 256], strides = [1, 1, 1, 1]} : vector<1x10x8x256xf32> to vector<1x8x8x256xf32>
    %122 = vector.shape_cast %121 : vector<1x8x8x256xf32> to vector<64x256xf32>
    %123 = arith.truncf %122 : vector<64x256xf32> to vector<64x256xbf16>
    %c1_94 = arith.constant 1 : index
    %c0_95 = arith.constant 0 : index
    %c0_96 = arith.constant 0 : index
    %c0_97 = arith.constant 0 : index
    %124 = vector.load %arg4[%c1_94, %c0_95, %c0_96, %c0_97] : memref<3x3x256x256xbf16, #tpu.memory_space<vmem>>, vector<1x1x256x256xbf16>
    %125 = vector.shape_cast %124 : vector<1x1x256x256xbf16> to vector<256x256xbf16>
    %cst_98 = arith.constant dense<0.000000e+00> : vector<64x256xf32>
    %126 = tpu.matmul %123, %125, %cst_98 {dimension_numbers = #tpu.dot_dimension_numbers<[1], [0], [0], [1], [0, 0, 1, 1], [], []>} : vector<64x256xbf16>, vector<256x256xbf16>, vector<64x256xf32> -> vector<64x256xf32>
    %127 = arith.addf %120, %126 : vector<64x256xf32>
    %128 = vector.extract_strided_slice %90 {offsets = [0, 1, 0, 0], sizes = [1, 8, 8, 256], strides = [1, 1, 1, 1]} : vector<1x10x8x256xf32> to vector<1x8x8x256xf32>
    %129 = vector.shape_cast %128 : vector<1x8x8x256xf32> to vector<64x256xf32>
    %130 = arith.truncf %129 : vector<64x256xf32> to vector<64x256xbf16>
    %c1_99 = arith.constant 1 : index
    %c1_100 = arith.constant 1 : index
    %c0_101 = arith.constant 0 : index
    %c0_102 = arith.constant 0 : index
    %131 = vector.load %arg4[%c1_99, %c1_100, %c0_101, %c0_102] : memref<3x3x256x256xbf16, #tpu.memory_space<vmem>>, vector<1x1x256x256xbf16>
    %132 = vector.shape_cast %131 : vector<1x1x256x256xbf16> to vector<256x256xbf16>
    %cst_103 = arith.constant dense<0.000000e+00> : vector<64x256xf32>
    %133 = tpu.matmul %130, %132, %cst_103 {dimension_numbers = #tpu.dot_dimension_numbers<[1], [0], [0], [1], [0, 0, 1, 1], [], []>} : vector<64x256xbf16>, vector<256x256xbf16>, vector<64x256xf32> -> vector<64x256xf32>
    %134 = arith.addf %127, %133 : vector<64x256xf32>
    %135 = vector.extract_strided_slice %100 {offsets = [0, 1, 0, 0], sizes = [1, 8, 8, 256], strides = [1, 1, 1, 1]} : vector<1x10x8x256xf32> to vector<1x8x8x256xf32>
    %136 = vector.shape_cast %135 : vector<1x8x8x256xf32> to vector<64x256xf32>
    %137 = arith.truncf %136 : vector<64x256xf32> to vector<64x256xbf16>
    %c1_104 = arith.constant 1 : index
    %c2_105 = arith.constant 2 : index
    %c0_106 = arith.constant 0 : index
    %c0_107 = arith.constant 0 : index
    %138 = vector.load %arg4[%c1_104, %c2_105, %c0_106, %c0_107] : memref<3x3x256x256xbf16, #tpu.memory_space<vmem>>, vector<1x1x256x256xbf16>
    %139 = vector.shape_cast %138 : vector<1x1x256x256xbf16> to vector<256x256xbf16>
    %cst_108 = arith.constant dense<0.000000e+00> : vector<64x256xf32>
    %140 = tpu.matmul %137, %139, %cst_108 {dimension_numbers = #tpu.dot_dimension_numbers<[1], [0], [0], [1], [0, 0, 1, 1], [], []>} : vector<64x256xbf16>, vector<256x256xbf16>, vector<64x256xf32> -> vector<64x256xf32>
    %141 = arith.addf %134, %140 : vector<64x256xf32>
    %142 = vector.extract_strided_slice %95 {offsets = [0, 2, 0, 0], sizes = [1, 8, 8, 256], strides = [1, 1, 1, 1]} : vector<1x10x8x256xf32> to vector<1x8x8x256xf32>
    %143 = vector.shape_cast %142 : vector<1x8x8x256xf32> to vector<64x256xf32>
    %144 = arith.truncf %143 : vector<64x256xf32> to vector<64x256xbf16>
    %c2_109 = arith.constant 2 : index
    %c0_110 = arith.constant 0 : index
    %c0_111 = arith.constant 0 : index
    %c0_112 = arith.constant 0 : index
    %145 = vector.load %arg4[%c2_109, %c0_110, %c0_111, %c0_112] : memref<3x3x256x256xbf16, #tpu.memory_space<vmem>>, vector<1x1x256x256xbf16>
    %146 = vector.shape_cast %145 : vector<1x1x256x256xbf16> to vector<256x256xbf16>
    %cst_113 = arith.constant dense<0.000000e+00> : vector<64x256xf32>
    %147 = tpu.matmul %144, %146, %cst_113 {dimension_numbers = #tpu.dot_dimension_numbers<[1], [0], [0], [1], [0, 0, 1, 1], [], []>} : vector<64x256xbf16>, vector<256x256xbf16>, vector<64x256xf32> -> vector<64x256xf32>
    %148 = arith.addf %141, %147 : vector<64x256xf32>
    %149 = vector.extract_strided_slice %90 {offsets = [0, 2, 0, 0], sizes = [1, 8, 8, 256], strides = [1, 1, 1, 1]} : vector<1x10x8x256xf32> to vector<1x8x8x256xf32>
    %150 = vector.shape_cast %149 : vector<1x8x8x256xf32> to vector<64x256xf32>
    %151 = arith.truncf %150 : vector<64x256xf32> to vector<64x256xbf16>
    %c2_114 = arith.constant 2 : index
    %c1_115 = arith.constant 1 : index
    %c0_116 = arith.constant 0 : index
    %c0_117 = arith.constant 0 : index
    %152 = vector.load %arg4[%c2_114, %c1_115, %c0_116, %c0_117] : memref<3x3x256x256xbf16, #tpu.memory_space<vmem>>, vector<1x1x256x256xbf16>
    %153 = vector.shape_cast %152 : vector<1x1x256x256xbf16> to vector<256x256xbf16>
    %cst_118 = arith.constant dense<0.000000e+00> : vector<64x256xf32>
    %154 = tpu.matmul %151, %153, %cst_118 {dimension_numbers = #tpu.dot_dimension_numbers<[1], [0], [0], [1], [0, 0, 1, 1], [], []>} : vector<64x256xbf16>, vector<256x256xbf16>, vector<64x256xf32> -> vector<64x256xf32>
    %155 = arith.addf %148, %154 : vector<64x256xf32>
    %156 = vector.extract_strided_slice %100 {offsets = [0, 2, 0, 0], sizes = [1, 8, 8, 256], strides = [1, 1, 1, 1]} : vector<1x10x8x256xf32> to vector<1x8x8x256xf32>
    %157 = vector.shape_cast %156 : vector<1x8x8x256xf32> to vector<64x256xf32>
    %158 = arith.truncf %157 : vector<64x256xf32> to vector<64x256xbf16>
    %c2_119 = arith.constant 2 : index
    %c2_120 = arith.constant 2 : index
    %c0_121 = arith.constant 0 : index
    %c0_122 = arith.constant 0 : index
    %159 = vector.load %arg4[%c2_119, %c2_120, %c0_121, %c0_122] : memref<3x3x256x256xbf16, #tpu.memory_space<vmem>>, vector<1x1x256x256xbf16>
    %160 = vector.shape_cast %159 : vector<1x1x256x256xbf16> to vector<256x256xbf16>
    %cst_123 = arith.constant dense<0.000000e+00> : vector<64x256xf32>
    %161 = tpu.matmul %158, %160, %cst_123 {dimension_numbers = #tpu.dot_dimension_numbers<[1], [0], [0], [1], [0, 0, 1, 1], [], []>} : vector<64x256xbf16>, vector<256x256xbf16>, vector<64x256xf32> -> vector<64x256xf32>
    %162 = arith.addf %155, %161 : vector<64x256xf32>
    %c0_124 = arith.constant 0 : index
    %c0_125 = arith.constant 0 : index
    %163 = vector.load %arg5[%c0_124, %c0_125] : memref<1x256xf32, #tpu.memory_space<vmem>>, vector<1x256xf32>
    %164 = vector.broadcast %163 : vector<1x256xf32> to vector<64x256xf32>
    %165 = arith.addf %162, %164 : vector<64x256xf32>
    %166 = vector.shape_cast %165 : vector<64x256xf32> to vector<1x8x8x256xf32>
    %cst_126 = arith.constant 1.000000e-01 : f32
    %167 = vector.broadcast %cst_126 : f32 to vector<1x8x8x256xf32>
    %168 = arith.mulf %166, %167 : vector<1x8x8x256xf32>
    %169 = arith.addf %168, %8 : vector<1x8x8x256xf32>
    %c0_127 = arith.constant 0 : index
    %c0_128 = arith.constant 0 : index
    %c0_129 = arith.constant 0 : index
    %c0_130 = arith.constant 0 : index
    %170 = vector.load %arg6[%c0_127, %c0_128, %c0_129, %c0_130] : memref<1x8x8x256xf32, #tpu.memory_space<vmem>>, vector<1x8x8x256xf32>
    tpu.vector_store %arg6[%c0_127, %c0_128, %c0_129, %c0_130], %169 {strides = array<i32>} : memref<1x8x8x256xf32, #tpu.memory_space<vmem>>, vector<1x8x8x256xf32>,
    return
  }
  func.func @transform_0(%arg0: i32) -> (i32, i32, i32, i32) {
    %c0_i32 = arith.constant 0 : i32
    %c0_i32_0 = arith.constant 0 : i32
    %c0_i32_1 = arith.constant 0 : i32
    %c0_i32_2 = arith.constant 0 : i32
    return %arg0, %c0_i32, %c0_i32_0, %c0_i32_1 : i32, i32, i32, i32
  }
  func.func @transform_1(%arg0: i32) -> (i32, i32, i32, i32) {
    %c0_i32 = arith.constant 0 : i32
    %c0_i32_0 = arith.constant 0 : i32
    %c0_i32_1 = arith.constant 0 : i32
    %c0_i32_2 = arith.constant 0 : i32
    %c0_i32_3 = arith.constant 0 : i32
    return %c0_i32, %c0_i32_0, %c0_i32_1, %c0_i32_2 : i32, i32, i32, i32
  }
  func.func @transform_2(%arg0: i32) -> (i32, i32) {
    %c0_i32 = arith.constant 0 : i32
    %c0_i32_0 = arith.constant 0 : i32
    %c0_i32_1 = arith.constant 0 : i32
    return %c0_i32, %c0_i32_0 : i32, i32
  }
  func.func @transform_3(%arg0: i32) -> (i32, i32, i32, i32) {
    %c0_i32 = arith.constant 0 : i32
    %c0_i32_0 = arith.constant 0 : i32
    %c0_i32_1 = arith.constant 0 : i32
    %c0_i32_2 = arith.constant 0 : i32
    %c0_i32_3 = arith.constant 0 : i32
    return %c0_i32, %c0_i32_0, %c0_i32_1, %c0_i32_2 : i32, i32, i32, i32
  }
  func.func @transform_4(%arg0: i32) -> (i32, i32) {
    %c0_i32 = arith.constant 0 : i32
    %c0_i32_0 = arith.constant 0 : i32
    %c0_i32_1 = arith.constant 0 : i32
    return %c0_i32, %c0_i32_0 : i32, i32
  }
  func.func @transform_5(%arg0: i32) -> (i32, i32, i32, i32) {
    %c0_i32 = arith.constant 0 : i32
    %c0_i32_0 = arith.constant 0 : i32
    %c0_i32_1 = arith.constant 0 : i32
    %c0_i32_2 = arith.constant 0 : i32
    return %arg0, %c0_i32, %c0_i32_0, %c0_i32_1 : i32, i32, i32, i32
  }
}

module attributes {stable_mosaic.version = 11 : i64} {
  func.func @_res_block_kernel(%arg0: i32, %arg1: memref<1x8x8x256xf32, #tpu.memory_space<vmem>>, %arg2: memref<3x3x256x256xbf16, #tpu.memory_space<vmem>>, %arg3: memref<1x256xf32, #tpu.memory_space<vmem>>, %arg4: memref<3x3x256x256xbf16, #tpu.memory_space<vmem>>, %arg5: memref<1x256xf32, #tpu.memory_space<vmem>>, %arg6: memref<1x8x8x256xf32, #tpu.memory_space<vmem>>, %arg7: memref<1x10x8x256xf32, #tpu.memory_space<vmem>>) attributes {dimension_semantics = [#tpu.dimension_semantics<parallel>], iteration_bounds = array<i64: 2>, scalar_prefetch = 0 : i64, scratch_operands = 1 : i64, tpu.core_type = #tpu.core_type<tc>, window_params = [{transform_indices = @transform_0, window_bounds = array<i64: 1, 8, 8, 256>}, {pipeline_mode = #tpu.pipeline_mode<synchronous>, transform_indices = @transform_1, window_bounds = array<i64: 3, 3, 256, 256>}, {pipeline_mode = #tpu.pipeline_mode<synchronous>, transform_indices = @transform_2, window_bounds = array<i64: 1, 256>}, {pipeline_mode = #tpu.pipeline_mode<synchronous>, transform_indices = @transform_3, window_bounds = array<i64: 3, 3, 256, 256>}, {pipeline_mode = #tpu.pipeline_mode<synchronous>, transform_indices = @transform_4, window_bounds = array<i64: 1, 256>}, {transform_indices = @transform_5, window_bounds = array<i64: 1, 8, 8, 256>}]} {
    %cst = arith.constant 0.000000e+00 : f32
    %0 = vector.broadcast %cst : f32 to vector<1x1x8x256xf32>
    %c0 = arith.constant 0 : index
    %c0_0 = arith.constant 0 : index
    %c0_1 = arith.constant 0 : index
    %c0_2 = arith.constant 0 : index
    %1 = vector.load %arg7[%c0, %c0_0, %c0_1, %c0_2] : memref<1x10x8x256xf32, #tpu.memory_space<vmem>>, vector<1x1x8x256xf32>
    tpu.vector_store %arg7[%c0, %c0_0, %c0_1, %c0_2], %0 {strides = array<i32>} : memref<1x10x8x256xf32, #tpu.memory_space<vmem>>, vector<1x1x8x256xf32>,
    %c0_3 = arith.constant 0 : index
    %c9 = arith.constant 9 : index
    %c0_4 = arith.constant 0 : index
    %c0_5 = arith.constant 0 : index
    %2 = vector.load %arg7[%c0_3, %c9, %c0_4, %c0_5] : memref<1x10x8x256xf32, #tpu.memory_space<vmem>>, vector<1x1x8x256xf32>
    tpu.vector_store %arg7[%c0_3, %c9, %c0_4, %c0_5], %0 {strides = array<i32>} : memref<1x10x8x256xf32, #tpu.memory_space<vmem>>, vector<1x1x8x256xf32>,
    %3 = tpu.iota {dimensions = array<i32: 0>} : vector<8x1xi32>
    %c0_i32 = arith.constant 0 : i32
    %4 = vector.broadcast %c0_i32 : i32 to vector<8x1xi32>
    %5 = arith.cmpi sgt, %3, %4 : vector<8x1xi32>
    %c7_i32 = arith.constant 7 : i32
    %6 = vector.broadcast %c7_i32 : i32 to vector<8x1xi32>
    %7 = arith.cmpi slt, %3, %6 : vector<8x1xi32>
    %c0_6 = arith.constant 0 : index
    %c0_7 = arith.constant 0 : index
    %c0_8 = arith.constant 0 : index
    %c0_9 = arith.constant 0 : index
    %8 = vector.load %arg1[%c0_6, %c0_7, %c0_8, %c0_9] : memref<1x8x8x256xf32, #tpu.memory_space<vmem>>, vector<1x8x8x256xf32>
    %c0_10 = arith.constant 0 : index
    %c1 = arith.constant 1 : index
    %c0_11 = arith.constant 0 : index
    %c0_12 = arith.constant 0 : index
    %9 = vector.load %arg7[%c0_10, %c1, %c0_11, %c0_12] : memref<1x10x8x256xf32, #tpu.memory_space<vmem>>, vector<1x8x8x256xf32>
    tpu.vector_store %arg7[%c0_10, %c1, %c0_11, %c0_12], %8 {strides = array<i32>} : memref<1x10x8x256xf32, #tpu.memory_space<vmem>>, vector<1x8x8x256xf32>,
    %c0_13 = arith.constant 0 : index
    %c0_14 = arith.constant 0 : index
    %c0_15 = arith.constant 0 : index
    %c0_16 = arith.constant 0 : index
    %10 = vector.load %arg7[%c0_13, %c0_14, %c0_15, %c0_16] : memref<1x10x8x256xf32, #tpu.memory_space<vmem>>, vector<1x10x8x256xf32>
    %c1_i32 = arith.constant 1 : i32
    %11 = tpu.dynamic_rotate %10 by %c1_i32 dim 2 : vector<1x10x8x256xf32>, i32 -> vector<1x10x8x256xf32>
    %cst_17 = arith.constant 0.000000e+00 : f32
    %12 = vector.shape_cast %5 : vector<8x1xi1> to vector<1x1x8x1xi1>
    %13 = vector.broadcast %12 : vector<1x1x8x1xi1> to vector<1x10x8x256xi1>
    %14 = vector.broadcast %cst_17 : f32 to vector<1x10x8x256xf32>
    %15 = arith.select %13, %11, %14 : vector<1x10x8x256xi1>, vector<1x10x8x256xf32>
    %c7_i32_18 = arith.constant 7 : i32
    %16 = tpu.dynamic_rotate %10 by %c7_i32_18 dim 2 : vector<1x10x8x256xf32>, i32 -> vector<1x10x8x256xf32>
    %cst_19 = arith.constant 0.000000e+00 : f32
    %17 = vector.shape_cast %7 : vector<8x1xi1> to vector<1x1x8x1xi1>
    %18 = vector.broadcast %17 : vector<1x1x8x1xi1> to vector<1x10x8x256xi1>
    %19 = vector.broadcast %cst_19 : f32 to vector<1x10x8x256xf32>
    %20 = arith.select %18, %16, %19 : vector<1x10x8x256xi1>, vector<1x10x8x256xf32>
    %21 = vector.extract_strided_slice %15 {offsets = [0, 0, 0, 0], sizes = [1, 8, 8, 256], strides = [1, 1, 1, 1]} : vector<1x10x8x256xf32> to vector<1x8x8x256xf32>
    %22 = vector.shape_cast %21 : vector<1x8x8x256xf32> to vector<64x256xf32>
    %23 = arith.truncf %22 : vector<64x256xf32> to vector<64x256xbf16>
    %c0_20 = arith.constant 0 : index
    %c0_21 = arith.constant 0 : index
    %c0_22 = arith.constant 0 : index
    %c0_23 = arith.constant 0 : index
    %24 = vector.load %arg2[%c0_20, %c0_21, %c0_22, %c0_23] : memref<3x3x256x256xbf16, #tpu.memory_space<vmem>>, vector<1x1x256x256xbf16>
    %25 = vector.shape_cast %24 : vector<1x1x256x256xbf16> to vector<256x256xbf16>
    %cst_24 = arith.constant dense<0.000000e+00> : vector<64x256xf32>
    %26 = tpu.matmul %23, %25, %cst_24 {dimension_numbers = #tpu.dot_dimension_numbers<[1], [0], [0], [1], [0, 0, 1, 1], [], []>} : vector<64x256xbf16>, vector<256x256xbf16>, vector<64x256xf32> -> vector<64x256xf32>
    %27 = vector.extract_strided_slice %10 {offsets = [0, 0, 0, 0], sizes = [1, 8, 8, 256], strides = [1, 1, 1, 1]} : vector<1x10x8x256xf32> to vector<1x8x8x256xf32>
    %28 = vector.shape_cast %27 : vector<1x8x8x256xf32> to vector<64x256xf32>
    %29 = arith.truncf %28 : vector<64x256xf32> to vector<64x256xbf16>
    %c0_25 = arith.constant 0 : index
    %c1_26 = arith.constant 1 : index
    %c0_27 = arith.constant 0 : index
    %c0_28 = arith.constant 0 : index
    %30 = vector.load %arg2[%c0_25, %c1_26, %c0_27, %c0_28] : memref<3x3x256x256xbf16, #tpu.memory_space<vmem>>, vector<1x1x256x256xbf16>
    %31 = vector.shape_cast %30 : vector<1x1x256x256xbf16> to vector<256x256xbf16>
    %cst_29 = arith.constant dense<0.000000e+00> : vector<64x256xf32>
    %32 = tpu.matmul %29, %31, %cst_29 {dimension_numbers = #tpu.dot_dimension_numbers<[1], [0], [0], [1], [0, 0, 1, 1], [], []>} : vector<64x256xbf16>, vector<256x256xbf16>, vector<64x256xf32> -> vector<64x256xf32>
    %33 = arith.addf %26, %32 : vector<64x256xf32>
    %34 = vector.extract_strided_slice %20 {offsets = [0, 0, 0, 0], sizes = [1, 8, 8, 256], strides = [1, 1, 1, 1]} : vector<1x10x8x256xf32> to vector<1x8x8x256xf32>
    %35 = vector.shape_cast %34 : vector<1x8x8x256xf32> to vector<64x256xf32>
    %36 = arith.truncf %35 : vector<64x256xf32> to vector<64x256xbf16>
    %c0_30 = arith.constant 0 : index
    %c2 = arith.constant 2 : index
    %c0_31 = arith.constant 0 : index
    %c0_32 = arith.constant 0 : index
    %37 = vector.load %arg2[%c0_30, %c2, %c0_31, %c0_32] : memref<3x3x256x256xbf16, #tpu.memory_space<vmem>>, vector<1x1x256x256xbf16>
    %38 = vector.shape_cast %37 : vector<1x1x256x256xbf16> to vector<256x256xbf16>
    %cst_33 = arith.constant dense<0.000000e+00> : vector<64x256xf32>
    %39 = tpu.matmul %36, %38, %cst_33 {dimension_numbers = #tpu.dot_dimension_numbers<[1], [0], [0], [1], [0, 0, 1, 1], [], []>} : vector<64x256xbf16>, vector<256x256xbf16>, vector<64x256xf32> -> vector<64x256xf32>
    %40 = arith.addf %33, %39 : vector<64x256xf32>
    %41 = vector.extract_strided_slice %15 {offsets = [0, 1, 0, 0], sizes = [1, 8, 8, 256], strides = [1, 1, 1, 1]} : vector<1x10x8x256xf32> to vector<1x8x8x256xf32>
    %42 = vector.shape_cast %41 : vector<1x8x8x256xf32> to vector<64x256xf32>
    %43 = arith.truncf %42 : vector<64x256xf32> to vector<64x256xbf16>
    %c1_34 = arith.constant 1 : index
    %c0_35 = arith.constant 0 : index
    %c0_36 = arith.constant 0 : index
    %c0_37 = arith.constant 0 : index
    %44 = vector.load %arg2[%c1_34, %c0_35, %c0_36, %c0_37] : memref<3x3x256x256xbf16, #tpu.memory_space<vmem>>, vector<1x1x256x256xbf16>
    %45 = vector.shape_cast %44 : vector<1x1x256x256xbf16> to vector<256x256xbf16>
    %cst_38 = arith.constant dense<0.000000e+00> : vector<64x256xf32>
    %46 = tpu.matmul %43, %45, %cst_38 {dimension_numbers = #tpu.dot_dimension_numbers<[1], [0], [0], [1], [0, 0, 1, 1], [], []>} : vector<64x256xbf16>, vector<256x256xbf16>, vector<64x256xf32> -> vector<64x256xf32>
    %47 = arith.addf %40, %46 : vector<64x256xf32>
    %48 = vector.extract_strided_slice %10 {offsets = [0, 1, 0, 0], sizes = [1, 8, 8, 256], strides = [1, 1, 1, 1]} : vector<1x10x8x256xf32> to vector<1x8x8x256xf32>
    %49 = vector.shape_cast %48 : vector<1x8x8x256xf32> to vector<64x256xf32>
    %50 = arith.truncf %49 : vector<64x256xf32> to vector<64x256xbf16>
    %c1_39 = arith.constant 1 : index
    %c1_40 = arith.constant 1 : index
    %c0_41 = arith.constant 0 : index
    %c0_42 = arith.constant 0 : index
    %51 = vector.load %arg2[%c1_39, %c1_40, %c0_41, %c0_42] : memref<3x3x256x256xbf16, #tpu.memory_space<vmem>>, vector<1x1x256x256xbf16>
    %52 = vector.shape_cast %51 : vector<1x1x256x256xbf16> to vector<256x256xbf16>
    %cst_43 = arith.constant dense<0.000000e+00> : vector<64x256xf32>
    %53 = tpu.matmul %50, %52, %cst_43 {dimension_numbers = #tpu.dot_dimension_numbers<[1], [0], [0], [1], [0, 0, 1, 1], [], []>} : vector<64x256xbf16>, vector<256x256xbf16>, vector<64x256xf32> -> vector<64x256xf32>
    %54 = arith.addf %47, %53 : vector<64x256xf32>
    %55 = vector.extract_strided_slice %20 {offsets = [0, 1, 0, 0], sizes = [1, 8, 8, 256], strides = [1, 1, 1, 1]} : vector<1x10x8x256xf32> to vector<1x8x8x256xf32>
    %56 = vector.shape_cast %55 : vector<1x8x8x256xf32> to vector<64x256xf32>
    %57 = arith.truncf %56 : vector<64x256xf32> to vector<64x256xbf16>
    %c1_44 = arith.constant 1 : index
    %c2_45 = arith.constant 2 : index
    %c0_46 = arith.constant 0 : index
    %c0_47 = arith.constant 0 : index
    %58 = vector.load %arg2[%c1_44, %c2_45, %c0_46, %c0_47] : memref<3x3x256x256xbf16, #tpu.memory_space<vmem>>, vector<1x1x256x256xbf16>
    %59 = vector.shape_cast %58 : vector<1x1x256x256xbf16> to vector<256x256xbf16>
    %cst_48 = arith.constant dense<0.000000e+00> : vector<64x256xf32>
    %60 = tpu.matmul %57, %59, %cst_48 {dimension_numbers = #tpu.dot_dimension_numbers<[1], [0], [0], [1], [0, 0, 1, 1], [], []>} : vector<64x256xbf16>, vector<256x256xbf16>, vector<64x256xf32> -> vector<64x256xf32>
    %61 = arith.addf %54, %60 : vector<64x256xf32>
    %62 = vector.extract_strided_slice %15 {offsets = [0, 2, 0, 0], sizes = [1, 8, 8, 256], strides = [1, 1, 1, 1]} : vector<1x10x8x256xf32> to vector<1x8x8x256xf32>
    %63 = vector.shape_cast %62 : vector<1x8x8x256xf32> to vector<64x256xf32>
    %64 = arith.truncf %63 : vector<64x256xf32> to vector<64x256xbf16>
    %c2_49 = arith.constant 2 : index
    %c0_50 = arith.constant 0 : index
    %c0_51 = arith.constant 0 : index
    %c0_52 = arith.constant 0 : index
    %65 = vector.load %arg2[%c2_49, %c0_50, %c0_51, %c0_52] : memref<3x3x256x256xbf16, #tpu.memory_space<vmem>>, vector<1x1x256x256xbf16>
    %66 = vector.shape_cast %65 : vector<1x1x256x256xbf16> to vector<256x256xbf16>
    %cst_53 = arith.constant dense<0.000000e+00> : vector<64x256xf32>
    %67 = tpu.matmul %64, %66, %cst_53 {dimension_numbers = #tpu.dot_dimension_numbers<[1], [0], [0], [1], [0, 0, 1, 1], [], []>} : vector<64x256xbf16>, vector<256x256xbf16>, vector<64x256xf32> -> vector<64x256xf32>
    %68 = arith.addf %61, %67 : vector<64x256xf32>
    %69 = vector.extract_strided_slice %10 {offsets = [0, 2, 0, 0], sizes = [1, 8, 8, 256], strides = [1, 1, 1, 1]} : vector<1x10x8x256xf32> to vector<1x8x8x256xf32>
    %70 = vector.shape_cast %69 : vector<1x8x8x256xf32> to vector<64x256xf32>
    %71 = arith.truncf %70 : vector<64x256xf32> to vector<64x256xbf16>
    %c2_54 = arith.constant 2 : index
    %c1_55 = arith.constant 1 : index
    %c0_56 = arith.constant 0 : index
    %c0_57 = arith.constant 0 : index
    %72 = vector.load %arg2[%c2_54, %c1_55, %c0_56, %c0_57] : memref<3x3x256x256xbf16, #tpu.memory_space<vmem>>, vector<1x1x256x256xbf16>
    %73 = vector.shape_cast %72 : vector<1x1x256x256xbf16> to vector<256x256xbf16>
    %cst_58 = arith.constant dense<0.000000e+00> : vector<64x256xf32>
    %74 = tpu.matmul %71, %73, %cst_58 {dimension_numbers = #tpu.dot_dimension_numbers<[1], [0], [0], [1], [0, 0, 1, 1], [], []>} : vector<64x256xbf16>, vector<256x256xbf16>, vector<64x256xf32> -> vector<64x256xf32>
    %75 = arith.addf %68, %74 : vector<64x256xf32>
    %76 = vector.extract_strided_slice %20 {offsets = [0, 2, 0, 0], sizes = [1, 8, 8, 256], strides = [1, 1, 1, 1]} : vector<1x10x8x256xf32> to vector<1x8x8x256xf32>
    %77 = vector.shape_cast %76 : vector<1x8x8x256xf32> to vector<64x256xf32>
    %78 = arith.truncf %77 : vector<64x256xf32> to vector<64x256xbf16>
    %c2_59 = arith.constant 2 : index
    %c2_60 = arith.constant 2 : index
    %c0_61 = arith.constant 0 : index
    %c0_62 = arith.constant 0 : index
    %79 = vector.load %arg2[%c2_59, %c2_60, %c0_61, %c0_62] : memref<3x3x256x256xbf16, #tpu.memory_space<vmem>>, vector<1x1x256x256xbf16>
    %80 = vector.shape_cast %79 : vector<1x1x256x256xbf16> to vector<256x256xbf16>
    %cst_63 = arith.constant dense<0.000000e+00> : vector<64x256xf32>
    %81 = tpu.matmul %78, %80, %cst_63 {dimension_numbers = #tpu.dot_dimension_numbers<[1], [0], [0], [1], [0, 0, 1, 1], [], []>} : vector<64x256xbf16>, vector<256x256xbf16>, vector<64x256xf32> -> vector<64x256xf32>
    %82 = arith.addf %75, %81 : vector<64x256xf32>
    %c0_64 = arith.constant 0 : index
    %c0_65 = arith.constant 0 : index
    %83 = vector.load %arg3[%c0_64, %c0_65] : memref<1x256xf32, #tpu.memory_space<vmem>>, vector<1x256xf32>
    %84 = vector.broadcast %83 : vector<1x256xf32> to vector<64x256xf32>
    %85 = arith.addf %82, %84 : vector<64x256xf32>
    %cst_66 = arith.constant 0.000000e+00 : f32
    %86 = vector.broadcast %cst_66 : f32 to vector<64x256xf32>
    %87 = arith.maximumf %85, %86 : vector<64x256xf32>
    %88 = vector.shape_cast %87 : vector<64x256xf32> to vector<1x8x8x256xf32>
    %c0_67 = arith.constant 0 : index
    %c1_68 = arith.constant 1 : index
    %c0_69 = arith.constant 0 : index
    %c0_70 = arith.constant 0 : index
    %89 = vector.load %arg7[%c0_67, %c1_68, %c0_69, %c0_70] : memref<1x10x8x256xf32, #tpu.memory_space<vmem>>, vector<1x8x8x256xf32>
    tpu.vector_store %arg7[%c0_67, %c1_68, %c0_69, %c0_70], %88 {strides = array<i32>} : memref<1x10x8x256xf32, #tpu.memory_space<vmem>>, vector<1x8x8x256xf32>,
    %c0_71 = arith.constant 0 : index
    %c0_72 = arith.constant 0 : index
    %c0_73 = arith.constant 0 : index
    %c0_74 = arith.constant 0 : index
    %90 = vector.load %arg7[%c0_71, %c0_72, %c0_73, %c0_74] : memref<1x10x8x256xf32, #tpu.memory_space<vmem>>, vector<1x10x8x256xf32>
    %c1_i32_75 = arith.constant 1 : i32
    %91 = tpu.dynamic_rotate %90 by %c1_i32_75 dim 2 : vector<1x10x8x256xf32>, i32 -> vector<1x10x8x256xf32>
    %cst_76 = arith.constant 0.000000e+00 : f32
    %92 = vector.shape_cast %5 : vector<8x1xi1> to vector<1x1x8x1xi1>
    %93 = vector.broadcast %92 : vector<1x1x8x1xi1> to vector<1x10x8x256xi1>
    %94 = vector.broadcast %cst_76 : f32 to vector<1x10x8x256xf32>
    %95 = arith.select %93, %91, %94 : vector<1x10x8x256xi1>, vector<1x10x8x256xf32>
    %c7_i32_77 = arith.constant 7 : i32
    %96 = tpu.dynamic_rotate %90 by %c7_i32_77 dim 2 : vector<1x10x8x256xf32>, i32 -> vector<1x10x8x256xf32>
    %cst_78 = arith.constant 0.000000e+00 : f32
    %97 = vector.shape_cast %7 : vector<8x1xi1> to vector<1x1x8x1xi1>
    %98 = vector.broadcast %97 : vector<1x1x8x1xi1> to vector<1x10x8x256xi1>
    %99 = vector.broadcast %cst_78 : f32 to vector<1x10x8x256xf32>
    %100 = arith.select %98, %96, %99 : vector<1x10x8x256xi1>, vector<1x10x8x256xf32>
    %101 = vector.extract_strided_slice %95 {offsets = [0, 0, 0, 0], sizes = [1, 8, 8, 256], strides = [1, 1, 1, 1]} : vector<1x10x8x256xf32> to vector<1x8x8x256xf32>
    %102 = vector.shape_cast %101 : vector<1x8x8x256xf32> to vector<64x256xf32>
    %103 = arith.truncf %102 : vector<64x256xf32> to vector<64x256xbf16>
    %c0_79 = arith.constant 0 : index
    %c0_80 = arith.constant 0 : index
    %c0_81 = arith.constant 0 : index
    %c0_82 = arith.constant 0 : index
    %104 = vector.load %arg4[%c0_79, %c0_80, %c0_81, %c0_82] : memref<3x3x256x256xbf16, #tpu.memory_space<vmem>>, vector<1x1x256x256xbf16>
    %105 = vector.shape_cast %104 : vector<1x1x256x256xbf16> to vector<256x256xbf16>
    %cst_83 = arith.constant dense<0.000000e+00> : vector<64x256xf32>
    %106 = tpu.matmul %103, %105, %cst_83 {dimension_numbers = #tpu.dot_dimension_numbers<[1], [0], [0], [1], [0, 0, 1, 1], [], []>} : vector<64x256xbf16>, vector<256x256xbf16>, vector<64x256xf32> -> vector<64x256xf32>
    %107 = vector.extract_strided_slice %90 {offsets = [0, 0, 0, 0], sizes = [1, 8, 8, 256], strides = [1, 1, 1, 1]} : vector<1x10x8x256xf32> to vector<1x8x8x256xf32>
    %108 = vector.shape_cast %107 : vector<1x8x8x256xf32> to vector<64x256xf32>
    %109 = arith.truncf %108 : vector<64x256xf32> to vector<64x256xbf16>
    %c0_84 = arith.constant 0 : index
    %c1_85 = arith.constant 1 : index
    %c0_86 = arith.constant 0 : index
    %c0_87 = arith.constant 0 : index
    %110 = vector.load %arg4[%c0_84, %c1_85, %c0_86, %c0_87] : memref<3x3x256x256xbf16, #tpu.memory_space<vmem>>, vector<1x1x256x256xbf16>
    %111 = vector.shape_cast %110 : vector<1x1x256x256xbf16> to vector<256x256xbf16>
    %cst_88 = arith.constant dense<0.000000e+00> : vector<64x256xf32>
    %112 = tpu.matmul %109, %111, %cst_88 {dimension_numbers = #tpu.dot_dimension_numbers<[1], [0], [0], [1], [0, 0, 1, 1], [], []>} : vector<64x256xbf16>, vector<256x256xbf16>, vector<64x256xf32> -> vector<64x256xf32>
    %113 = arith.addf %106, %112 : vector<64x256xf32>
    %114 = vector.extract_strided_slice %100 {offsets = [0, 0, 0, 0], sizes = [1, 8, 8, 256], strides = [1, 1, 1, 1]} : vector<1x10x8x256xf32> to vector<1x8x8x256xf32>
    %115 = vector.shape_cast %114 : vector<1x8x8x256xf32> to vector<64x256xf32>
    %116 = arith.truncf %115 : vector<64x256xf32> to vector<64x256xbf16>
    %c0_89 = arith.constant 0 : index
    %c2_90 = arith.constant 2 : index
    %c0_91 = arith.constant 0 : index
    %c0_92 = arith.constant 0 : index
    %117 = vector.load %arg4[%c0_89, %c2_90, %c0_91, %c0_92] : memref<3x3x256x256xbf16, #tpu.memory_space<vmem>>, vector<1x1x256x256xbf16>
    %118 = vector.shape_cast %117 : vector<1x1x256x256xbf16> to vector<256x256xbf16>
    %cst_93 = arith.constant dense<0.000000e+00> : vector<64x256xf32>
    %119 = tpu.matmul %116, %118, %cst_93 {dimension_numbers = #tpu.dot_dimension_numbers<[1], [0], [0], [1], [0, 0, 1, 1], [], []>} : vector<64x256xbf16>, vector<256x256xbf16>, vector<64x256xf32> -> vector<64x256xf32>
    %120 = arith.addf %113, %119 : vector<64x256xf32>
    %121 = vector.extract_strided_slice %95 {offsets = [0, 1, 0, 0], sizes = [1, 8, 8, 256], strides = [1, 1, 1, 1]} : vector<1x10x8x256xf32> to vector<1x8x8x256xf32>
    %122 = vector.shape_cast %121 : vector<1x8x8x256xf32> to vector<64x256xf32>
    %123 = arith.truncf %122 : vector<64x256xf32> to vector<64x256xbf16>
    %c1_94 = arith.constant 1 : index
    %c0_95 = arith.constant 0 : index
    %c0_96 = arith.constant 0 : index
    %c0_97 = arith.constant 0 : index
    %124 = vector.load %arg4[%c1_94, %c0_95, %c0_96, %c0_97] : memref<3x3x256x256xbf16, #tpu.memory_space<vmem>>, vector<1x1x256x256xbf16>
    %125 = vector.shape_cast %124 : vector<1x1x256x256xbf16> to vector<256x256xbf16>
    %cst_98 = arith.constant dense<0.000000e+00> : vector<64x256xf32>
    %126 = tpu.matmul %123, %125, %cst_98 {dimension_numbers = #tpu.dot_dimension_numbers<[1], [0], [0], [1], [0, 0, 1, 1], [], []>} : vector<64x256xbf16>, vector<256x256xbf16>, vector<64x256xf32> -> vector<64x256xf32>
    %127 = arith.addf %120, %126 : vector<64x256xf32>
    %128 = vector.extract_strided_slice %90 {offsets = [0, 1, 0, 0], sizes = [1, 8, 8, 256], strides = [1, 1, 1, 1]} : vector<1x10x8x256xf32> to vector<1x8x8x256xf32>
    %129 = vector.shape_cast %128 : vector<1x8x8x256xf32> to vector<64x256xf32>
    %130 = arith.truncf %129 : vector<64x256xf32> to vector<64x256xbf16>
    %c1_99 = arith.constant 1 : index
    %c1_100 = arith.constant 1 : index
    %c0_101 = arith.constant 0 : index
    %c0_102 = arith.constant 0 : index
    %131 = vector.load %arg4[%c1_99, %c1_100, %c0_101, %c0_102] : memref<3x3x256x256xbf16, #tpu.memory_space<vmem>>, vector<1x1x256x256xbf16>
    %132 = vector.shape_cast %131 : vector<1x1x256x256xbf16> to vector<256x256xbf16>
    %cst_103 = arith.constant dense<0.000000e+00> : vector<64x256xf32>
    %133 = tpu.matmul %130, %132, %cst_103 {dimension_numbers = #tpu.dot_dimension_numbers<[1], [0], [0], [1], [0, 0, 1, 1], [], []>} : vector<64x256xbf16>, vector<256x256xbf16>, vector<64x256xf32> -> vector<64x256xf32>
    %134 = arith.addf %127, %133 : vector<64x256xf32>
    %135 = vector.extract_strided_slice %100 {offsets = [0, 1, 0, 0], sizes = [1, 8, 8, 256], strides = [1, 1, 1, 1]} : vector<1x10x8x256xf32> to vector<1x8x8x256xf32>
    %136 = vector.shape_cast %135 : vector<1x8x8x256xf32> to vector<64x256xf32>
    %137 = arith.truncf %136 : vector<64x256xf32> to vector<64x256xbf16>
    %c1_104 = arith.constant 1 : index
    %c2_105 = arith.constant 2 : index
    %c0_106 = arith.constant 0 : index
    %c0_107 = arith.constant 0 : index
    %138 = vector.load %arg4[%c1_104, %c2_105, %c0_106, %c0_107] : memref<3x3x256x256xbf16, #tpu.memory_space<vmem>>, vector<1x1x256x256xbf16>
    %139 = vector.shape_cast %138 : vector<1x1x256x256xbf16> to vector<256x256xbf16>
    %cst_108 = arith.constant dense<0.000000e+00> : vector<64x256xf32>
    %140 = tpu.matmul %137, %139, %cst_108 {dimension_numbers = #tpu.dot_dimension_numbers<[1], [0], [0], [1], [0, 0, 1, 1], [], []>} : vector<64x256xbf16>, vector<256x256xbf16>, vector<64x256xf32> -> vector<64x256xf32>
    %141 = arith.addf %134, %140 : vector<64x256xf32>
    %142 = vector.extract_strided_slice %95 {offsets = [0, 2, 0, 0], sizes = [1, 8, 8, 256], strides = [1, 1, 1, 1]} : vector<1x10x8x256xf32> to vector<1x8x8x256xf32>
    %143 = vector.shape_cast %142 : vector<1x8x8x256xf32> to vector<64x256xf32>
    %144 = arith.truncf %143 : vector<64x256xf32> to vector<64x256xbf16>
    %c2_109 = arith.constant 2 : index
    %c0_110 = arith.constant 0 : index
    %c0_111 = arith.constant 0 : index
    %c0_112 = arith.constant 0 : index
    %145 = vector.load %arg4[%c2_109, %c0_110, %c0_111, %c0_112] : memref<3x3x256x256xbf16, #tpu.memory_space<vmem>>, vector<1x1x256x256xbf16>
    %146 = vector.shape_cast %145 : vector<1x1x256x256xbf16> to vector<256x256xbf16>
    %cst_113 = arith.constant dense<0.000000e+00> : vector<64x256xf32>
    %147 = tpu.matmul %144, %146, %cst_113 {dimension_numbers = #tpu.dot_dimension_numbers<[1], [0], [0], [1], [0, 0, 1, 1], [], []>} : vector<64x256xbf16>, vector<256x256xbf16>, vector<64x256xf32> -> vector<64x256xf32>
    %148 = arith.addf %141, %147 : vector<64x256xf32>
    %149 = vector.extract_strided_slice %90 {offsets = [0, 2, 0, 0], sizes = [1, 8, 8, 256], strides = [1, 1, 1, 1]} : vector<1x10x8x256xf32> to vector<1x8x8x256xf32>
    %150 = vector.shape_cast %149 : vector<1x8x8x256xf32> to vector<64x256xf32>
    %151 = arith.truncf %150 : vector<64x256xf32> to vector<64x256xbf16>
    %c2_114 = arith.constant 2 : index
    %c1_115 = arith.constant 1 : index
    %c0_116 = arith.constant 0 : index
    %c0_117 = arith.constant 0 : index
    %152 = vector.load %arg4[%c2_114, %c1_115, %c0_116, %c0_117] : memref<3x3x256x256xbf16, #tpu.memory_space<vmem>>, vector<1x1x256x256xbf16>
    %153 = vector.shape_cast %152 : vector<1x1x256x256xbf16> to vector<256x256xbf16>
    %cst_118 = arith.constant dense<0.000000e+00> : vector<64x256xf32>
    %154 = tpu.matmul %151, %153, %cst_118 {dimension_numbers = #tpu.dot_dimension_numbers<[1], [0], [0], [1], [0, 0, 1, 1], [], []>} : vector<64x256xbf16>, vector<256x256xbf16>, vector<64x256xf32> -> vector<64x256xf32>
    %155 = arith.addf %148, %154 : vector<64x256xf32>
    %156 = vector.extract_strided_slice %100 {offsets = [0, 2, 0, 0], sizes = [1, 8, 8, 256], strides = [1, 1, 1, 1]} : vector<1x10x8x256xf32> to vector<1x8x8x256xf32>
    %157 = vector.shape_cast %156 : vector<1x8x8x256xf32> to vector<64x256xf32>
    %158 = arith.truncf %157 : vector<64x256xf32> to vector<64x256xbf16>
    %c2_119 = arith.constant 2 : index
    %c2_120 = arith.constant 2 : index
    %c0_121 = arith.constant 0 : index
    %c0_122 = arith.constant 0 : index
    %159 = vector.load %arg4[%c2_119, %c2_120, %c0_121, %c0_122] : memref<3x3x256x256xbf16, #tpu.memory_space<vmem>>, vector<1x1x256x256xbf16>
    %160 = vector.shape_cast %159 : vector<1x1x256x256xbf16> to vector<256x256xbf16>
    %cst_123 = arith.constant dense<0.000000e+00> : vector<64x256xf32>
    %161 = tpu.matmul %158, %160, %cst_123 {dimension_numbers = #tpu.dot_dimension_numbers<[1], [0], [0], [1], [0, 0, 1, 1], [], []>} : vector<64x256xbf16>, vector<256x256xbf16>, vector<64x256xf32> -> vector<64x256xf32>
    %162 = arith.addf %155, %161 : vector<64x256xf32>
    %c0_124 = arith.constant 0 : index
    %c0_125 = arith.constant 0 : index
    %163 = vector.load %arg5[%c0_124, %c0_125] : memref<1x256xf32, #tpu.memory_space<vmem>>, vector<1x256xf32>
    %164 = vector.broadcast %163 : vector<1x256xf32> to vector<64x256xf32>
    %165 = arith.addf %162, %164 : vector<64x256xf32>
    %166 = vector.shape_cast %165 : vector<64x256xf32> to vector<1x8x8x256xf32>
    %cst_126 = arith.constant 1.000000e-01 : f32
    %167 = vector.broadcast %cst_126 : f32 to vector<1x8x8x256xf32>
    %168 = arith.mulf %166, %167 : vector<1x8x8x256xf32>
    %169 = arith.addf %168, %8 : vector<1x8x8x256xf32>
    %c0_127 = arith.constant 0 : index
    %c0_128 = arith.constant 0 : index
    %c0_129 = arith.constant 0 : index
    %c0_130 = arith.constant 0 : index
    %170 = vector.load %arg6[%c0_127, %c0_128, %c0_129, %c0_130] : memref<1x8x8x256xf32, #tpu.memory_space<vmem>>, vector<1x8x8x256xf32>
    tpu.vector_store %arg6[%c0_127, %c0_128, %c0_129, %c0_130], %169 {strides = array<i32>} : memref<1x8x8x256xf32, #tpu.memory_space<vmem>>, vector<1x8x8x256xf32>,
    return
  }
  func.func @transform_0(%arg0: i32) -> (i32, i32, i32, i32) {
    %c0_i32 = arith.constant 0 : i32
    %c0_i32_0 = arith.constant 0 : i32
    %c0_i32_1 = arith.constant 0 : i32
    %c0_i32_2 = arith.constant 0 : i32
    return %arg0, %c0_i32, %c0_i32_0, %c0_i32_1 : i32, i32, i32, i32
  }
  func.func @transform_1(%arg0: i32) -> (i32, i32, i32, i32) {
    %c0_i32 = arith.constant 0 : i32
    %c0_i32_0 = arith.constant 0 : i32
    %c0_i32_1 = arith.constant 0 : i32
    %c0_i32_2 = arith.constant 0 : i32
    %c0_i32_3 = arith.constant 0 : i32
    return %c0_i32, %c0_i32_0, %c0_i32_1, %c0_i32_2 : i32, i32, i32, i32
  }
  func.func @transform_2(%arg0: i32) -> (i32, i32) {
    %c0_i32 = arith.constant 0 : i32
    %c0_i32_0 = arith.constant 0 : i32
    %c0_i32_1 = arith.constant 0 : i32
    return %c0_i32, %c0_i32_0 : i32, i32
  }
  func.func @transform_3(%arg0: i32) -> (i32, i32, i32, i32) {
    %c0_i32 = arith.constant 0 : i32
    %c0_i32_0 = arith.constant 0 : i32
    %c0_i32_1 = arith.constant 0 : i32
    %c0_i32_2 = arith.constant 0 : i32
    %c0_i32_3 = arith.constant 0 : i32
    return %c0_i32, %c0_i32_0, %c0_i32_1, %c0_i32_2 : i32, i32, i32, i32
  }
  func.func @transform_4(%arg0: i32) -> (i32, i32) {
    %c0_i32 = arith.constant 0 : i32
    %c0_i32_0 = arith.constant 0 : i32
    %c0_i32_1 = arith.constant 0 : i32
    return %c0_i32, %c0_i32_0 : i32, i32
  }
  func.func @transform_5(%arg0: i32) -> (i32, i32, i32, i32) {
    %c0_i32 = arith.constant 0 : i32
    %c0_i32_0 = arith.constant 0 : i32
    %c0_i32_1 = arith.constant 0 : i32
    %c0_i32_2 = arith.constant 0 : i32
    return %arg0, %c0_i32, %c0_i32_0, %c0_i32_1 : i32, i32, i32, i32
  }
}

</mosaic_0001>

<bundles_post_ra>
// kernel: tpu_custom_call.1
= control target key start
LH: loop header
LB: loop body
LE: loop exit
PB: predicated region body
PF: predicated region fallthrough
CT: control target
= control target key end

     0   :  { %10 = vsyncpa [#allocation4], 0  ;;  %s9513_s0 = inlined_call_operand.hbm [shape: f32[2,8,8,256], index: 0, kind: input, shape index: {}]   ;;  %s9514_s1 = inlined_call_operand.hbm [shape: bf16[3,3,256,256], index: 1, kind: input, shape index: {}]   ;;  %s9515_s2 = inlined_call_operand.hbm [shape: f32[1,256], index: 2, kind: input, shape index: {}]   ;;  %s9516_s3 = inlined_call_operand.hbm [shape: bf16[3,3,256,256], index: 3, kind: input, shape index: {}]   ;;  %s9517_s4 = inlined_call_operand.hbm [shape: f32[1,256], index: 4, kind: input, shape index: {}]   ;;  %s9518_s5 = inlined_call_operand.hbm [shape: f32[2,8,8,256], index: 5, kind: output, shape index: {}]  }
   0x1   :  { %12 = vsyncpa [#allocation4 + $0x1], 0 }
   0x2   :  { %13 = vsyncpa [#allocation7], 0 }
   0x3   :  { %14 = vsyncpa [#allocation10], 0 }
   0x4   :  { %15 = vsyncpa [#allocation5], 0 }
   0x5   :  { %17 = vsyncpa [#allocation5 + $0x1], 0  ;;  %s8315_s18 = smov 0   ;;  %s8317_s19 = smov 0  }
   0x6   :  { %s8319_s20 = smov 0   ;;  %s8321_s21 = smov 0  }
   0x7 LB: > { %s8336_s22 = sadd.s32 4294967295, %s8270_s21   ;;  %s5922_s23 = sadd.s32 4294967294, %s8270_s21   ;;  %s8270_s21 = sphi %s8321_s21, %s9611_s21   ;;  %s8266_s20 = sphi %s8319_s20, %s9610_s20   ;;  %s8262_s19 = sphi %s8317_s19, %s9609_s19   ;;  %s8258_s18 = sphi %s8315_s18, %s9608_s18  }
   0x8   : > { %p43_p0 = scmp.ne.s32.totalorder %s8262_s19, %s8258_s18  ;;  %p9519_p1 = scmp.eq.s32.totalorder %s8336_s22, 0 }
   0x9   : > { %p157_p3 = scmp.eq.s32.totalorder %s5922_s23, 1  ;;  %p5923_p5 = scmp.ge.s32.totalorder %s8270_s21, 1 }
   0xa   : > { %p8345_p4 = por %p9519_p1, %p43_p0  ;;  %p164_p7 = scmp.lt.s32.totalorder %s8270_s21, 3 }
   0xb   : > { %p8350_p6 = por %p157_p3, %p43_p0  ;;  %s8272_s27 = smov [#allocation6]  }
   0xc   : > { %s9549_s24 = scalar_select %p8345_p4, 1, 0 }
   0xd   : > { %s9550_s25 = scalar_select %p8350_p6, 1, 0 }
   0xe   : > { %p8355_p8 = pnand %p5923_p5, %p164_p7  ;;  %s176_s28 = sshll.u32 %s8272_s27, 4  ;;  %s8359_s28 = int_to_ptr.vmem [resolvable:$true] %s176_s28 }
   0xf   : > { %s8273_s30 = smov [#allocation9]   ;;  %s8274_s7 = smov [#allocation8]  }
  0x10   : > { %s9551_s26 = scalar_select %p8355_p8, 1, 0 }
  0x11   : > { %p7086_p9 = pneg %p8355_p8  ;;  %s200_s6 = sshll.u32 %s8273_s30, 4  ;;  %s8370_s6 = int_to_ptr.vmem [resolvable:$true] %s200_s6 }
  0x12   : > { %s8372_s8 = sshll.u32 %s8274_s7, 4  ;;  %s8054_s11 = scalar_lea.hbm %s9514_s1, 36864  ;;  %s191_s8 = int_to_ptr.vmem [resolvable:$true] %s8372_s8 }
  0x13   : > { %p8366_p11 = pnand %p7086_p9, %p9519_p1  ;;  %p8055_p12 = scmp.ne.s32.totalorder %s9514_s1, %s8054_s11 }
  0x14   : > { %p8061_p5 = scmp.lt.u32.totalorder %s8054_s11, %s9514_s1 }
  0x15   : > { %p8382_p13 = pneg %p8366_p11 }
  0x17   : > { %p8057_p0 = pnand %p8382_p13, %p8055_p12 }
  0x19   : > { %p8058_p3 = pneg %p8057_p0 }
  0x1b   : > { %p8063_p7 = pnand %p8061_p5, %p8058_p3 }
  0x1d   : > { %8066 = shalt.err (!%p8063_p7)
}
  0x1e   : > { %s8067_s17 = scalar_lea.vmem %s8359_s28, 36864  ;;  %p8075_p2 = scmp.lt.s32.totalorder %s8359_s28, %s8359_s28 }
  0x1f   : > { %p8068_p9 = scmp.ne.s32.totalorder %s8359_s28, %s8067_s17  ;;  %p8076_p6 = scmp.lt.s32.totalorder %s8067_s17, %s8067_s17 }
  0x21   : > { %p8070_p10 = pnand %p8068_p9, %p8382_p13  ;;  %p8077_p12 = por %p8076_p6, %p8075_p2 }
  0x23   : > { %p8071_p1 = pneg %p8070_p10 }
  0x25   : > { %p8078_p0 = pnand %p8077_p12, %p8071_p1 }
  0x27   : > { %8081 = shalt.err (!%p8078_p0)
}
  0x28   : > { %s8275_s23 = smov 128   ;;  %s8276_s27 = smov 8  }
  0x29   : > { %7089 = dma.hbm_to_vmem [thread:$0]  (!%p8366_p11), %s9514_s1, 36864, %s8359_s28, [#allocation7], %s8275_s23, %s8275_s23, %s8276_s27  }
  0x2a   : > { %s8082_s11 = scalar_lea.hbm %s9516_s3, 36864 }
  0x2b   : > { %p8083_p2 = scmp.ne.s32.totalorder %s9516_s3, %s8082_s11  ;;  %p8089_p10 = scmp.lt.u32.totalorder %s8082_s11, %s9516_s3 }
  0x2d   : > { %p8085_p1 = pnand %p8083_p2, %p8382_p13 }
  0x2f   : > { %p8086_p6 = pneg %p8085_p1 }
  0x31   : > { %p8091_p3 = pnand %p8089_p10, %p8086_p6 }
  0x33   : > { %8094 = shalt.err (!%p8091_p3)
}
  0x34   : > { %s8095_s28 = scalar_lea.vmem %s8370_s6, 36864  ;;  %p8103_p12 = scmp.lt.s32.totalorder %s8370_s6, %s8370_s6 }
  0x35   : > { %p8096_p5 = scmp.ne.s32.totalorder %s8370_s6, %s8095_s28  ;;  %p8104_p0 = scmp.lt.s32.totalorder %s8095_s28, %s8095_s28 }
  0x37   : > { %p8098_p7 = pnand %p8096_p5, %p8382_p13  ;;  %p8105_p2 = por %p8104_p0, %p8103_p12 }
  0x39   : > { %p8099_p9 = pneg %p8098_p7 }
  0x3b   : > { %p8106_p1 = pnand %p8105_p2, %p8099_p9 }
  0x3d   : > { %8109 = shalt.err (!%p8106_p1)
}
  0x3e   : > { %7095 = dma.hbm_to_vmem [thread:$0]  (!%p8366_p11), %s9516_s3, 36864, %s8370_s6, [#allocation10], %s8275_s23, %s8275_s23, %s8276_s27  }
  0x3f   : > { %s8110_s10 = scalar_lea.hbm %s9515_s2, 32 }
  0x40   : > { %p8111_p6 = scmp.ne.s32.totalorder %s9515_s2, %s8110_s10  ;;  %p8117_p5 = scmp.lt.u32.totalorder %s8110_s10, %s9515_s2 }
  0x42   : > { %p8113_p10 = pnand %p8111_p6, %p8382_p13 }
  0x44   : > { %p8114_p3 = pneg %p8113_p10 }
  0x46   : > { %p8119_p7 = pnand %p8117_p5, %p8114_p3 }
  0x48   : > { %8122 = shalt.err (!%p8119_p7)
}
  0x49   : > { %s8123_s16 = scalar_lea.vmem %s191_s8, 32  ;;  %p8131_p2 = scmp.lt.s32.totalorder %s191_s8, %s191_s8 }
  0x4a   : > { %p8124_p9 = scmp.ne.s32.totalorder %s191_s8, %s8123_s16  ;;  %p8132_p1 = scmp.lt.s32.totalorder %s8123_s16, %s8123_s16 }
  0x4c   : > { %p8126_p12 = pnand %p8124_p9, %p8382_p13  ;;  %p8133_p4 = por %p8132_p1, %p8131_p2 }
  0x4e   : > { %p8127_p0 = pneg %p8126_p12 }
  0x50   : > { %p8134_p8 = pnand %p8133_p4, %p8127_p0 }
  0x52   : > { %8137 = shalt.err (!%p8134_p8)
}
  0x53   : > { %7092 = dma.hbm_to_vmem [thread:$0]  (!%p8366_p11), %s9515_s2, 32, %s191_s8, [#allocation7]  }
  0x54   : > { %s8277_s27 = smov [#allocation11]   ;;  %s8138_s7 = scalar_lea.hbm %s9517_s4, 32 }
  0x55   : > { %s214_s28 = sshll.u32 %s8277_s27, 4  ;;  %p8139_p6 = scmp.ne.s32.totalorder %s9517_s4, %s8138_s7  ;;  %s215_s28 = int_to_ptr.vmem [resolvable:$true] %s214_s28 }
  0x56   : > { %p8145_p10 = scmp.lt.u32.totalorder %s8138_s7, %s9517_s4 }
  0x57   : > { %p8141_p4 = pnand %p8139_p6, %p8382_p13 }
  0x59   : > { %p8142_p8 = pneg %p8141_p4 }
  0x5b   : > { %p8147_p3 = pnand %p8145_p10, %p8142_p8 }
  0x5d   : > { %8150 = shalt.err (!%p8147_p3)
}
  0x5e   : > { %s8151_s8 = scalar_lea.vmem %s215_s28, 32  ;;  %p8159_p12 = scmp.lt.s32.totalorder %s215_s28, %s215_s28 }
  0x5f   : > { %p8152_p5 = scmp.ne.s32.totalorder %s215_s28, %s8151_s8  ;;  %p8160_p0 = scmp.lt.s32.totalorder %s8151_s8, %s8151_s8 }
  0x61   : > { %p8154_p7 = pnand %p8152_p5, %p8382_p13  ;;  %p8161_p2 = por %p8160_p0, %p8159_p12 }
  0x63   : > { %p8155_p9 = pneg %p8154_p7 }
  0x65   : > { %p8162_p1 = pnand %p8161_p2, %p8155_p9 }
  0x67   : > { %8165 = shalt.err (!%p8162_p1)
}
  0x68   : > { %7098 = dma.hbm_to_vmem [thread:$0]  (!%p8366_p11), %s9517_s4, 32, %s215_s28, [#allocation10]  }
  0x69   : > { %s8464_s14 = sadd.s32 1, %s8270_s21   ;;  %s30_s16 = sadd.s32 1, %s8266_s20 }
  0x6a   : > { %s27_s29 = ssub.s32 %s8270_s21, %s8464_s14  ;;  %p37_p13 = scmp.ne.s32.totalorder %s8266_s20, %s8262_s19 }
  0x6b   : > { %p28_p6 = scmp.eq.s32.totalorder %s27_s29, 0  ;;  %p38_p4 = scmp.eq.s32.totalorder %s8270_s21, 0 }
  0x6c   : > { %p9554_p8 = scmp.eq.s32.totalorder %s8336_s22, 1  ;;  %p7111_p3 = scmp.lt.s32.totalorder %s8270_s21, 2 }
  0x6d   : > { %s8480_s23 = scalar_select %p28_p6, %s8266_s20, %s30_s16  }
  0x6e   : > { %p8474_p10 = por %p9554_p8, %p37_p13  ;;  %p39_p5 = por %p38_p4, %p37_p13 }
  0x6f   : > { %s225_s27 = sand.u32 1, %s8266_s20   ;;  %s6808_s28 = sshll.u32 %s8270_s21, 11 }
  0x70   : > { %s5929_s17 = sshll.u32 %s225_s27, 7  ;;  %s8487_s9 = scalar_lea.hbm %s9513_s0, %s6808_s28 }
  0x71   : > { %s229_s10 = scalar_lea.vmem [#allocation3], %s5929_s17  ;;  %p8491_p11 = pnand %p7111_p3, %p39_p5 }
  0x72   : > { %s236_s11 = sshll.u32 %s229_s10, 4  ;;  %s8495_s8 = scalar_lea.sflag [#allocation4], %s225_s27  ;;  %s8489_s11 = int_to_ptr.vmem [resolvable:$true] %s236_s11 }
  0x73   : > { %s8166_s13 = scalar_lea.hbm %s8487_s9, 2048  ;;  %p8168_p9 = pneg %p8491_p11 }
  0x74   : > { %p8167_p7 = scmp.ne.s32.totalorder %s8487_s9, %s8166_s13  ;;  %s8171_s29 = scalar_lea.hbm %s9513_s0, 4096 }
  0x75   : > { %p8172_p2 = scmp.lt.u32.totalorder %s8487_s9, %s9513_s0  ;;  %p8173_p1 = scmp.lt.u32.totalorder %s8171_s29, %s8166_s13 }
  0x76   : > { %p8169_p12 = pnand %p8168_p9, %p8167_p7  ;;  %p8175_p6 = scmp.lt.u32.totalorder %s8166_s13, %s8487_s9 }
  0x77   : > { %p8174_p13 = por %p8173_p1, %p8172_p2 }
  0x78   : > { %p8170_p0 = pneg %p8169_p12 }
  0x79   : > { %p8176_p4 = por %p8175_p6, %p8174_p13 }
  0x7b   : > { %p8177_p8 = pnand %p8176_p4, %p8170_p0 }
  0x7d   : > { %8180 = shalt.err (!%p8177_p8)
}
  0x7e   : > { %s8181_s27 = scalar_lea.vmem %s8489_s11, 2048  ;;  %s8278_s30 = smov [#allocation3]  }
  0x7f   : > { %p8182_p3 = scmp.ne.s32.totalorder %s8489_s11, %s8181_s27  ;;  %s8186_s7 = sshll.u32 %s8278_s30, 4  ;;  %s8187_s7 = int_to_ptr.vmem [resolvable:$false] %s8186_s7 }
  0x80   : > { %s8188_s10 = scalar_lea.vmem %s8187_s7, 4096  ;;  %p8189_p12 = scmp.lt.s32.totalorder %s8489_s11, %s8187_s7 }
  0x81   : > { %p8184_p5 = pnand %p8182_p3, %p8168_p9  ;;  %p8190_p2 = scmp.lt.s32.totalorder %s8188_s10, %s8181_s27 }
  0x83   : > { %p8185_p7 = pneg %p8184_p5  ;;  %p8191_p1 = por %p8190_p2, %p8189_p12 }
  0x85   : > { %p8192_p13 = pnand %p8191_p1, %p8185_p7 }
  0x87   : > { %8195 = shalt.err (!%p8192_p13)
}
  0x88   : > { %s8279_s13 = smov 256   ;;  %s8280_s15 = smov 16  }
  0x89   : > { %7102 = dma.hbm_to_vmem [thread:$0]  (!%p8491_p11), %s8487_s9, 2048, %s8489_s11, %s8495_s8, %s8279_s13, %s8279_s13, %s8280_s15  }
  0x8a   : > { %p9557_p9 = scmp.ne.s32.totalorder %s9551_s26, 0 }
  0x8c   : > { %248 = sbr.rel (%p9557_p9) target bundleno = 1727 (0x6bf), region = 40 }
  0x93   : > { %s8526_s16 = sand.u32 1, %s8262_s19   ;;  %p9558_p0 = scmp.ne.s32.totalorder %s9549_s24, 0 }
  0x94   : > { %s5933_s29 = sshll.u32 %s8526_s16, 7  ;;  %s251_s17 = scalar_lea.sflag [#allocation4], %s8526_s16 }
  0x95   : > { %s8532_s28 = scalar_lea.vmem [#allocation3], %s5933_s29 }
  0x96   : > { %8241 = dma.done.wait (%p9558_p0), %s251_s17, 2048  }
  0x97   : > { %8243 = vsyncadd (%p9558_p0), %s251_s17, 4294965248  ;;  %p9559_p11 = scmp.eq.s32.totalorder %s8336_s22, 0 }
  0x99   : > { %8245 = dma.done.wait (%p9559_p11), [#allocation7], 36896   ;;  %p9560_p6 = pmov %p9559_p11 }
  0x9b   : > { %8247 = vsyncadd (%p9560_p6), [#allocation7], 4294930400  ;;  %p9561_p4 = pmov %p9560_p6 }
  0x9d   : > { %8249 = dma.done.wait (%p9561_p4), [#allocation10], 36896   ;;  %p9562_p8 = pmov %p9561_p4 }
  0x9e   : > { %v7160_v0 = vld [vmem:[#allocation6 + $0x104] ss:$8 sps:$4 sm:$0xff]   ;;  %v7162_v1 = vld [vmem:[#allocation6 + $0x100] ss:$8 sps:$4 sm:$0xff]   ;;  %v7163_v2 = vld [vmem:[#allocation6 + $0x114] ss:$8 sps:$4 sm:$0xff]   ;;  %v302_v52 = vlaneseq }
  0x9f   : > { %8251 = vsyncadd (%p9562_p8), [#allocation10], 4294930400  ;;  %684 = vmatprep.subr.bf16.mxu0 %v7160_v0  ;;  %v7165_v3 = vld [vmem:[#allocation6 + $0x110] ss:$8 sps:$4 sm:$0xff]   ;;  %v7166_v4 = vld [vmem:[#allocation6 + $0x124] ss:$8 sps:$4 sm:$0xff]  }
  0xa0   : > { %685 = vmatpush1.bf16.msra.mxu0 %v7162_v1  ;;  %v7168_v5 = vld [vmem:[#allocation6 + $0x120] ss:$8 sps:$4 sm:$0xff]   ;;  %v7169_v6 = vld [vmem:[#allocation6 + $0x134] ss:$8 sps:$4 sm:$0xff]   ;;  %v7171_v7 = vld [vmem:[#allocation6 + $0x130] ss:$8 sps:$4 sm:$0xff]  }
  0xa1   : > { %686 = vmatprep.subr.bf16.mxu0 %v7163_v2  ;;  %v7172_v8 = vld [vmem:[#allocation6 + $0x144] ss:$8 sps:$4 sm:$0xff]   ;;  %v7174_v9 = vld [vmem:[#allocation6 + $0x140] ss:$8 sps:$4 sm:$0xff]   ;;  %v7175_v10 = vld [vmem:[#allocation6 + $0x154] ss:$8 sps:$4 sm:$0xff]  }
  0xa2   : > { %v7177_v11 = vld [vmem:[#allocation6 + $0x150] ss:$8 sps:$4 sm:$0xff]   ;;  %v7178_v12 = vld [vmem:[#allocation6 + $0x164] ss:$8 sps:$4 sm:$0xff]   ;;  %v9522_v14 = vmov 0.0   ;;  %v8601_v60 = vshrl.u32 %v302_v52, 7 }
  0xa3   : > { %v8547_v13 = vld [vmem:[%s8532_s28 + $0x8] sm:$0xff]  ;;  %v7181_v17 = vld [vmem:[#allocation6 + $0x174] ss:$8 sps:$4 sm:$0xff]   ;;  %v7183_v18 = vld [vmem:[#allocation6 + $0x170] ss:$8 sps:$4 sm:$0xff]   ;;  %s9418_s24 = scalar_lea.vmem [#allocation12], %s5933_s29 }
  0xa4   : > { %687 = vmatpush1.bf16.msra.mxu0 %v7165_v3  ;;  %v484_v15 = vpack.c.bf16 %v8547_v13, %v9522_v14  ;;  %v7180_v16 = vld [vmem:[#allocation6 + $0x160] ss:$8 sps:$4 sm:$0xff]   ;;  %v7184_v19 = vld [vmem:[#allocation6 + $0x184] ss:$8 sps:$4 sm:$0xff]   ;;  %v7187_v21 = vld [vmem:[#allocation6 + $0x194] ss:$8 sps:$4 sm:$0xff]  }
  0xa5   : > { %688 = vmatprep.subr.bf16.mxu0 %v7166_v4  ;;  %v7186_v20 = vld [vmem:[#allocation6 + $0x180] ss:$8 sps:$4 sm:$0xff]   ;;  %v7189_v22 = vld [vmem:[#allocation6 + $0x190] ss:$8 sps:$4 sm:$0xff]   ;;  %v7190_v23 = vld [vmem:[#allocation6 + $0x1a4] ss:$8 sps:$4 sm:$0xff]  }
  0xa6   : > { %716 = vmatprep.mubr.bf16.mxu0 %v484_v15  ;;  %v8552_v24 = vld [vmem:[%s8532_s28] sm:$0xff]  ;;  %v8555_v25 = vld [vmem:[%s8532_s28 + $0x10] sm:$0xff]  ;;  %v8566_v41 = vld [vmem:[%s8532_s28 + $0x18] sm:$0xff]  ;;  %9563 = vst [vmem:[#allocation17_spill] sm:$0xff] %v8601_v60  ;;  %vm304_vm0 = vcmp.gt.s32.totalorder %v8601_v60, 0  ;;  %vm305_vm2 = vcmp.lt.s32.totalorder %v8601_v60, 7 }
  0xa7   : > { %v7192_v26 = vld [vmem:[#allocation6 + $0x1a0] ss:$8 sps:$4 sm:$0xff]   ;;  %v361_v27 = vrot.slane %v8552_v24, 7  ;;  %v363_v28 = vrot.slane %v8555_v25, 7  ;;  %v7193_v29 = vld [vmem:[#allocation6 + $0x1b4] ss:$8 sps:$4 sm:$0xff]   ;;  %v483_v43 = vpack.c.bf16 %v8552_v24, %v9522_v14  ;;  %vm8620_vm1 = vmpackc.low %vm304_vm0, %vm304_vm0 }
  0xa8   : > { %689 = vmatpush1.bf16.msra.mxu0 %v7168_v5  ;;  %v7195_v31 = vld [vmem:[#allocation6 + $0x1b0] ss:$8 sps:$4 sm:$0xff]   ;;  %v7196_v32 = vld [vmem:[#allocation6 + $0x1c4] ss:$8 sps:$4 sm:$0xff]   ;;  %v7198_v33 = vld [vmem:[#allocation6 + $0x1c0] ss:$8 sps:$4 sm:$0xff]  }
  0xa9   : > { %690 = vmatprep.subr.bf16.mxu0 %v7169_v6  ;;  %v8563_v30 = vpack.c.bf16 %v363_v28, %v361_v27  ;;  %v7199_v34 = vld [vmem:[#allocation6 + $0x1d4] ss:$8 sps:$4 sm:$0xff]   ;;  %v7201_v35 = vld [vmem:[#allocation6 + $0x1d0] ss:$8 sps:$4 sm:$0xff]   ;;  %v7202_v36 = vld [vmem:[#allocation6 + $0x1e4] ss:$8 sps:$4 sm:$0xff]  }
  0xaa   : > { %v7204_v37 = vld [vmem:[#allocation6 + $0x1e0] ss:$8 sps:$4 sm:$0xff]   ;;  %v7205_v38 = vld [vmem:[#allocation6 + $0x1f4] ss:$8 sps:$4 sm:$0xff]   ;;  %v7207_v39 = vld [vmem:[#allocation6 + $0x1f0] ss:$8 sps:$4 sm:$0xff]  }
  0xab   : > { %v7210_v40 = vld [vmem:[#allocation6 + $0x4] ss:$8 sps:$4 sm:$0xff]   ;;  %v7208_v44 = vld [vmem:[#allocation6] ss:$8 sps:$4 sm:$0xff]   ;;  %v7213_v46 = vld [vmem:[#allocation6 + $0x14] ss:$8 sps:$4 sm:$0xff]  }
  0xac   : > { %691 = vmatpush1.bf16.msra.mxu0 %v7171_v7  ;;  %v8569_v42 = vld [vmem:[%s8532_s28 + $0x28] sm:$0xff]  ;;  %v7211_v47 = vld [vmem:[#allocation6 + $0x10] ss:$8 sps:$4 sm:$0xff]   ;;  %v8579_v49 = vld [vmem:[%s8532_s28 + $0x20] sm:$0xff]  ;;  %s6809_s26 = sshll.u32 %s8336_s22, 11  ;;  %s5811_s9 = sshll.u32 %s9418_s24, 4  ;;  %s9465_s9 = int_to_ptr.vmem [resolvable:$true] %s5811_s9 }
  0xad   : > { %692 = vmatprep.subr.bf16.mxu0 %v7172_v8  ;;  %v8575_v45 = vpack.c.bf16 %v8569_v42, %v8566_v41  ;;  %v7216_v48 = vld [vmem:[#allocation6 + $0x24] ss:$8 sps:$4 sm:$0xff]   ;;  %v8582_v50 = vld [vmem:[%s8532_s28 + $0x38] sm:$0xff]  ;;  %v8589_v53 = vpack.c.bf16 %v8579_v49, %v8555_v25  ;;  %v7214_v54 = vld [vmem:[#allocation6 + $0x20] ss:$8 sps:$4 sm:$0xff]   ;;  %s9463_s8 = scalar_lea.hbm %s9518_s5, %s6809_s26  ;;  %s5798_s22 = scalar_lea.sflag [#allocation5], %s8526_s16 }
  0xae   : > { %v8585_v51 = vld [vmem:[%s8532_s28 + $0x48] sm:$0xff]  ;;  %v7219_v56 = vld [vmem:[#allocation6 + $0x34] ss:$8 sps:$4 sm:$0xff]   ;;  %v7217_v57 = vld [vmem:[#allocation6 + $0x30] ss:$8 sps:$4 sm:$0xff]   ;;  %s8196_s27 = scalar_lea.vmem %s9465_s9, 2048 }
  0xaf   : > { %v8593_v55 = vpack.c.bf16 %v8585_v51, %v8582_v50  ;;  %v8596_v58 = vld [vmem:[%s8532_s28 + $0x30] sm:$0xff]  ;;  %v8599_v59 = vld [vmem:[%s8532_s28 + $0x40] sm:$0xff]  ;;  %v8606_v62 = vld [vmem:[%s8532_s28 + $0x58] sm:$0xff]  ;;  %p8197_p3 = scmp.ne.s32.totalorder %s9465_s9, %s8196_s27  ;;  %s8282_s30 = smov [#allocation12]  }
  0xb0   : > { %693 = vmatpush1.bf16.msra.mxu0 %v7174_v9  ;;  %v7222_v61 = vld [vmem:[#allocation6 + $0x44] ss:$8 sps:$4 sm:$0xff]   ;;  %v8614_v0 = vpack.c.bf16 %v8599_v59, %v8596_v58  ;;  %v7220_v1 = vld [vmem:[#allocation6 + $0x40] ss:$8 sps:$4 sm:$0xff]   ;;  %v7225_v2 = vld [vmem:[#allocation6 + $0x54] ss:$8 sps:$4 sm:$0xff]  }
  0xb1   : > { %694 = vmatprep.subr.bf16.mxu0 %v7175_v10  ;;  %v8609_v63 = vld [vmem:[%s8532_s28 + $0x68] sm:$0xff]  ;;  %v7223_v5 = vld [vmem:[#allocation6 + $0x50] ss:$8 sps:$4 sm:$0xff]   ;;  %v8630_v8 = vld [vmem:[%s8532_s28 + $0x60] sm:$0xff]  ;;  %v8633_v9 = vrot.slane %v9522_v14, 7  ;;  %v362_v10 = vrot.slane %v8547_v13, 7  ;;  %p8198_p5 = pnand %p8197_p3, %p8474_p10 }
  0xb2   : > { %v8618_v3 = vpack.c.bf16 %v8609_v63, %v8606_v62  ;;  %v7228_v6 = vld [vmem:[#allocation6 + $0x64] ss:$8 sps:$4 sm:$0xff]   ;;  %v8627_v7 = vld [vmem:[%s8532_s28 + $0x50] sm:$0xff]  ;;  %v7256_v52 = vld [vmem:[#allocation6 + $0x200] ss:$8 sps:$4 sm:$0xff]   ;;  %s8200_s7 = sshll.u32 %s8282_s30, 4  ;;  %s8201_s7 = int_to_ptr.vmem [resolvable:$false] %s8200_s7 }
  0xb3   : > { %v7231_v15 = vld [vmem:[#allocation6 + $0x74] ss:$8 sps:$4 sm:$0xff]   ;;  %vm8726_vm3 = vmpackc.low %vm305_vm2, %vm305_vm2  ;;  %p8199_p7 = pneg %p8198_p5  ;;  %s8202_s10 = scalar_lea.vmem %s8201_s7, 4096 }
  0xb4   : > { %695 = vmatpush1.bf16.msra.mxu0 %v7177_v11  ;;  %v8638_v11 = vpack.c.bf16 %v8630_v8, %v8627_v7  ;;  %v7961_v4 = vld [vmem:[#allocation9 + $0x7b0] ss:$8 sps:$4 sm:$0xff]   ;;  %p8203_p12 = scmp.lt.s32.totalorder %s9465_s9, %s8201_s7  ;;  %p8204_p2 = scmp.lt.s32.totalorder %s8202_s10, %s8196_s27 }
  0xb5   : > { %696 = vmatprep.subr.bf16.mxu0 %v7178_v12  ;;  %v7226_v12 = vld [vmem:[#allocation6 + $0x60] ss:$8 sps:$4 sm:$0xff]  }
  0xb6   : > { %p8205_p1 = por %p8204_p2, %p8203_p12 }
  0xb8   : > { %697 = vmatpush1.bf16.msra.mxu0 %v7180_v16  ;;  %v6004_v16 = vpack.c.bf16 %v362_v10, %v8633_v9  ;;  %p8206_p13 = pnand %p8205_p1, %p8199_p7 }
  0xb9   : > { %698 = vmatprep.subr.bf16.mxu0 %v7181_v17  ;;  %v7229_v17 = vld [vmem:[#allocation6 + $0x70] ss:$8 sps:$4 sm:$0xff]  }
  0xbc   : > { %699 = vmatpush1.bf16.msra.mxu0 %v7183_v18  ;;  %v7234_v18 = vld [vmem:[#allocation6 + $0x84] ss:$8 sps:$4 sm:$0xff]  }
  0xbd   : > { %700 = vmatprep.subr.bf16.mxu0 %v7184_v19  ;;  %v7232_v19 = vld [vmem:[#allocation6 + $0x80] ss:$8 sps:$4 sm:$0xff]  }
  0xc0   : > { %701 = vmatpush1.bf16.msra.mxu0 %v7186_v20  ;;  %v7237_v20 = vld [vmem:[#allocation6 + $0x94] ss:$8 sps:$4 sm:$0xff]  }
  0xc1   : > { %702 = vmatprep.subr.bf16.mxu0 %v7187_v21  ;;  %v7235_v21 = vld [vmem:[#allocation6 + $0x90] ss:$8 sps:$4 sm:$0xff]  }
  0xc4   : > { %703 = vmatpush1.bf16.msra.mxu0 %v7189_v22  ;;  %v7240_v22 = vld [vmem:[#allocation6 + $0xa4] ss:$8 sps:$4 sm:$0xff]  }
  0xc5   : > { %704 = vmatprep.subr.bf16.mxu0 %v7190_v23  ;;  %v403_v23 = vrot.slane %v8552_v24, 1  ;;  %v7312_v24 = vld [vmem:[#allocation6 + $0x324] ss:$8 sps:$4 sm:$0xff]  }
  0xc8   : > { %705 = vmatpush1.bf16.msra.mxu0 %v7192_v26  ;;  %v7238_v26 = vld [vmem:[#allocation6 + $0xa0] ss:$8 sps:$4 sm:$0xff]  }
  0xc9   : > { %706 = vmatprep.subr.bf16.mxu0 %v7193_v29  ;;  %v7243_v29 = vld [vmem:[#allocation6 + $0xb4] ss:$8 sps:$4 sm:$0xff]  }
  0xcc   : > { %707 = vmatpush1.bf16.msra.mxu0 %v7195_v31  ;;  %v405_v31 = vrot.slane %v8555_v25, 1  ;;  %v8773_v25 = vld [vmem:[%s8532_s28 + $0x30] sm:$0xff] }
  0xcd   : > { %708 = vmatprep.subr.bf16.mxu0 %v7196_v32 }
  0xce   : > { %v8652_v32 = vpack.c.bf16 %v405_v31, %v403_v23 }
  0xd0   : > { %709 = vmatpush1.bf16.msra.mxu0 %v7198_v33  ;;  %v7241_v33 = vld [vmem:[#allocation6 + $0xb0] ss:$8 sps:$4 sm:$0xff]  }
  0xd1   : > { %710 = vmatprep.subr.bf16.mxu0 %v7199_v34  ;;  %v7246_v34 = vld [vmem:[#allocation6 + $0xc4] ss:$8 sps:$4 sm:$0xff]  }
  0xd4   : > { %711 = vmatpush1.bf16.msra.mxu0 %v7201_v35  ;;  %v7244_v35 = vld [vmem:[#allocation6 + $0xc0] ss:$8 sps:$4 sm:$0xff]  }
  0xd5   : > { %712 = vmatprep.subr.bf16.mxu0 %v7202_v36  ;;  %v7249_v36 = vld [vmem:[#allocation6 + $0xd4] ss:$8 sps:$4 sm:$0xff]  }
  0xd8   : > { %713 = vmatpush1.bf16.msra.mxu0 %v7204_v37  ;;  %v7247_v37 = vld [vmem:[#allocation6 + $0xd0] ss:$8 sps:$4 sm:$0xff]  }
  0xd9   : > { %714 = vmatprep.subr.bf16.mxu0 %v7205_v38  ;;  %v7252_v38 = vld [vmem:[#allocation6 + $0xe4] ss:$8 sps:$4 sm:$0xff]  }
  0xdc   : > { %715 = vmatpush1.bf16.msra.mxu0 %v7207_v39  ;;  %v7250_v39 = vld [vmem:[#allocation6 + $0xe0] ss:$8 sps:$4 sm:$0xff]  }
  0xdd   : > { %917 = vmatprep.subr.bf16.mxu0 %v7210_v40  ;;  %v7255_v40 = vld [vmem:[#allocation6 + $0xf4] ss:$8 sps:$4 sm:$0xff]  }
  0xdf   : > { %717 = vmatmul.mubr.bf16.vlgmr.msra.gmra.mrb[0].mxu0 %v483_v43  ;;  %v364_v43 = vrot.slane %v8566_v41, 7 }
  0xe0   : > { %918 = vmatpush1.bf16.msra.mxu0 %v7208_v44  ;;  %726 = vmatprep.mubr.bf16.mxu0 %v8575_v45  ;;  %v7253_v44 = vld [vmem:[#allocation6 + $0xf0] ss:$8 sps:$4 sm:$0xff]  }
  0xe1   : > { %919 = vmatprep.subr.bf16.mxu0 %v7213_v46  ;;  %v7258_v46 = vld [vmem:[#allocation6 + $0x204] ss:$8 sps:$4 sm:$0xff]  }
  0xe4   : > { %920 = vmatpush1.bf16.msra.mxu0 %v7211_v47  ;;  %v366_v47 = vrot.slane %v8569_v42, 7 }
  0xe5   : > { %921 = vmatprep.subr.bf16.mxu0 %v7216_v48  ;;  %v6007_v48 = vpack.c.bf16 %v361_v27, %v8633_v9  ;;  %v7264_v27 = vld [vmem:[#allocation6 + $0x224] ss:$8 sps:$4 sm:$0xff]  }
  0xe7   : > { %727 = vmatmul.mubr.bf16.gmra.mrb[4].mxu0 %v8589_v53 }
  0xe8   : > { %922 = vmatpush1.bf16.msra.mxu0 %v7214_v54  ;;  %736 = vmatprep.mubr.bf16.mxu0 %v8593_v55  ;;  %v7261_v54 = vld [vmem:[#allocation6 + $0x214] ss:$8 sps:$4 sm:$0xff]  }
  0xe9   : > { %923 = vmatprep.subr.bf16.mxu0 %v7219_v56  ;;  %v8663_v56 = vpack.c.bf16 %v366_v47, %v364_v43 }
  0xec   : > { %924 = vmatpush1.bf16.msra.mxu0 %v7217_v57  ;;  %v365_v57 = vrot.slane %v8579_v49, 7 }
  0xed   : > { %925 = vmatprep.subr.bf16.mxu0 %v7222_v61  ;;  %v368_v61 = vrot.slane %v8582_v50, 7 }
  0xef   : > { %737 = vmatmul.mubr.bf16.gmra.mrb[8].mxu0 %v8614_v0 }
  0xf0   : > { %926 = vmatpush1.bf16.msra.mxu0 %v7220_v1  ;;  %746 = vmatprep.mubr.bf16.mxu0 %v8618_v3  ;;  %v7259_v1 = vld [vmem:[#allocation6 + $0x210] ss:$8 sps:$4 sm:$0xff]  }
  0xf1   : > { %927 = vmatprep.subr.bf16.mxu0 %v7225_v2  ;;  %v370_v2 = vrot.slane %v8585_v51, 7 }
  0xf4   : > { %928 = vmatpush1.bf16.msra.mxu0 %v7223_v5  ;;  %v8677_v5 = vpack.c.bf16 %v365_v57, %v363_v28  ;;  %v369_v28 = vrot.slane %v8599_v59, 7 }
  0xf5   : > { %929 = vmatprep.subr.bf16.mxu0 %v7228_v6  ;;  %v7262_v6 = vld [vmem:[#allocation6 + $0x220] ss:$8 sps:$4 sm:$0xff]  }
  0xf7   : > { %747 = vmatmul.mubr.bf16.gmra.mrb[12].mxu0 %v8638_v11 }
  0xf8   : > { %930 = vmatpush1.bf16.msra.mxu0 %v7226_v12  ;;  %6005 = vmatprep.mubr.msk.bf16.mxu0 %vm8620_vm1, %v6004_v16  ;;  %v7267_v12 = vld [vmem:[#allocation6 + $0x234] ss:$8 sps:$4 sm:$0xff]   ;;  %v7265_v16 = vld [vmem:[#allocation6 + $0x230] ss:$8 sps:$4 sm:$0xff]  }
  0xf9   : > { %931 = vmatprep.subr.bf16.mxu0 %v7231_v15  ;;  %v8683_v15 = vpack.c.bf16 %v370_v2, %v368_v61 }
  0xfc   : > { %932 = vmatpush1.bf16.msra.mxu0 %v7229_v17  ;;  %v367_v17 = vrot.slane %v8596_v58, 7 }
  0xfd   : > { %933 = vmatprep.subr.bf16.mxu0 %v7234_v18  ;;  %v7270_v18 = vld [vmem:[#allocation6 + $0x244] ss:$8 sps:$4 sm:$0xff]  }
 0x100   : > { %934 = vmatpush1.bf16.msra.mxu0 %v7232_v19  ;;  %v372_v19 = vrot.slane %v8606_v62, 7 }
 0x101   : > { %935 = vmatprep.subr.bf16.mxu0 %v7237_v20  ;;  %v374_v20 = vrot.slane %v8609_v63, 7 }
 0x104   : > { %936 = vmatpush1.bf16.msra.mxu0 %v7235_v21  ;;  %v8699_v21 = vpack.c.bf16 %v369_v28, %v367_v17 }
 0x105   : > { %937 = vmatprep.subr.bf16.mxu0 %v7240_v22  ;;  %v7268_v22 = vld [vmem:[#allocation6 + $0x240] ss:$8 sps:$4 sm:$0xff]  }
 0x108   : > { %938 = vmatpush1.bf16.msra.mxu0 %v7238_v26  ;;  %v7273_v26 = vld [vmem:[#allocation6 + $0x254] ss:$8 sps:$4 sm:$0xff]  }
 0x109   : > { %939 = vmatprep.subr.bf16.mxu0 %v7243_v29  ;;  %v8705_v29 = vpack.c.bf16 %v374_v20, %v372_v19 }
 0x10c   : > { %940 = vmatpush1.bf16.msra.mxu0 %v7241_v33  ;;  %v7271_v33 = vld [vmem:[#allocation6 + $0x250] ss:$8 sps:$4 sm:$0xff]  }
 0x10d   : > { %941 = vmatprep.subr.bf16.mxu0 %v7246_v34  ;;  %v371_v34 = vrot.slane %v8627_v7, 7 }
 0x110   : > { %942 = vmatpush1.bf16.msra.mxu0 %v7244_v35  ;;  %v373_v35 = vrot.slane %v8630_v8, 7 }
 0x111   : > { %943 = vmatprep.subr.bf16.mxu0 %v7249_v36  ;;  %v7276_v36 = vld [vmem:[#allocation6 + $0x264] ss:$8 sps:$4 sm:$0xff]  }
 0x114   : > { %944 = vmatpush1.bf16.msra.mxu0 %v7247_v37  ;;  %v8716_v37 = vrot.slane %v9522_v14, 1  ;;  %v7316_v14 = vld [vmem:[#allocation6 + $0x340] ss:$8 sps:$4 sm:$0xff]  }
 0x115   : > { %945 = vmatprep.subr.bf16.mxu0 %v7252_v38  ;;  %v404_v38 = vrot.slane %v8547_v13, 1  ;;  %v7432_v13 = vld [vmem:[#allocation6 + $0x5a4] ss:$8 sps:$4 sm:$0xff]  }
 0x118   : > { %946 = vmatpush1.bf16.msra.mxu0 %v7250_v39  ;;  %v7274_v39 = vld [vmem:[#allocation6 + $0x260] ss:$8 sps:$4 sm:$0xff]  }
 0x119   : > { %947 = vmatprep.subr.bf16.mxu0 %v7255_v40  ;;  %v8724_v40 = vpack.c.bf16 %v373_v35, %v371_v34 }
 0x11c   : > { %948 = vmatpush1.bf16.msra.mxu0 %v7253_v44  ;;  %v7279_v44 = vld [vmem:[#allocation6 + $0x274] ss:$8 sps:$4 sm:$0xff]  }
 0x11d   : > { %1191 = vmatprep.subr.bf16.mxu0 %v7258_v46 }
 0x11f   : > { %6008 = vmatmul.mubr.msk.bf16.vlgmr.msra.gmra.mrb[0].mxu0 %vm8620_vm1, %v6007_v48  ;;  %v6060_v48 = vpack.c.bf16 %v404_v38, %v8716_v37 }
 0x120   : > { %1192 = vmatpush1.bf16.msra.mxu0 %v7256_v52  ;;  %6011 = vmatprep.mubr.msk.bf16.mxu0 %vm8620_vm1, %v8663_v56  ;;  %v7277_v52 = vld [vmem:[#allocation6 + $0x270] ss:$8 sps:$4 sm:$0xff]  }
 0x121   : > { %1193 = vmatprep.subr.bf16.mxu0 %v7261_v54  ;;  %v7282_v54 = vld [vmem:[#allocation6 + $0x284] ss:$8 sps:$4 sm:$0xff]  }
 0x124   : > { %1194 = vmatpush1.bf16.msra.mxu0 %v7259_v1  ;;  %v7280_v1 = vld [vmem:[#allocation6 + $0x280] ss:$8 sps:$4 sm:$0xff]  }
 0x125   : > { %1195 = vmatprep.subr.bf16.mxu0 %v7264_v27  ;;  %v7285_v27 = vld [vmem:[#allocation6 + $0x294] ss:$8 sps:$4 sm:$0xff]  }
 0x127   : > { %6014 = vmatmul.mubr.msk.bf16.gmra.mrb[4].mxu0 %vm8620_vm1, %v8677_v5 }
 0x128   : > { %1196 = vmatpush1.bf16.msra.mxu0 %v7262_v6  ;;  %6017 = vmatprep.mubr.msk.bf16.mxu0 %vm8620_vm1, %v8683_v15  ;;  %v7283_v6 = vld [vmem:[#allocation6 + $0x290] ss:$8 sps:$4 sm:$0xff]  }
 0x129   : > { %1197 = vmatprep.subr.bf16.mxu0 %v7267_v12  ;;  %v7288_v12 = vld [vmem:[#allocation6 + $0x2a4] ss:$8 sps:$4 sm:$0xff]  }
 0x12c   : > { %1198 = vmatpush1.bf16.msra.mxu0 %v7265_v16  ;;  %v7286_v16 = vld [vmem:[#allocation6 + $0x2a0] ss:$8 sps:$4 sm:$0xff]  }
 0x12d   : > { %1199 = vmatprep.subr.bf16.mxu0 %v7270_v18  ;;  %v7291_v18 = vld [vmem:[#allocation6 + $0x2b4] ss:$8 sps:$4 sm:$0xff]  }
 0x12f   : > { %6020 = vmatmul.mubr.msk.bf16.gmra.mrb[8].mxu0 %vm8620_vm1, %v8699_v21 }
 0x130   : > { %1200 = vmatpush1.bf16.msra.mxu0 %v7268_v22  ;;  %6023 = vmatprep.mubr.msk.bf16.mxu0 %vm8620_vm1, %v8705_v29  ;;  %v7289_v22 = vld [vmem:[#allocation6 + $0x2b0] ss:$8 sps:$4 sm:$0xff]  }
 0x131   : > { %1201 = vmatprep.subr.bf16.mxu0 %v7273_v26  ;;  %v7294_v26 = vld [vmem:[#allocation6 + $0x2c4] ss:$8 sps:$4 sm:$0xff]  }
 0x134   : > { %1202 = vmatpush1.bf16.msra.mxu0 %v7271_v33  ;;  %v7292_v33 = vld [vmem:[#allocation6 + $0x2c0] ss:$8 sps:$4 sm:$0xff]  }
 0x135   : > { %1203 = vmatprep.subr.bf16.mxu0 %v7276_v36  ;;  %v7297_v36 = vld [vmem:[#allocation6 + $0x2d4] ss:$8 sps:$4 sm:$0xff]  }
 0x137   : > { %6026 = vmatmul.mubr.msk.bf16.gmra.mrb[12].mxu0 %vm8620_vm1, %v8724_v40 }
 0x138   : > { %1204 = vmatpush1.bf16.msra.mxu0 %v7274_v39  ;;  %6061 = vmatprep.mubr.msk.bf16.mxu0 %vm8726_vm3, %v6060_v48  ;;  %v7295_v39 = vld [vmem:[#allocation6 + $0x2d0] ss:$8 sps:$4 sm:$0xff]   ;;  %v7298_v48 = vld [vmem:[#allocation6 + $0x2e0] ss:$8 sps:$4 sm:$0xff]  }
 0x139   : > { %1205 = vmatprep.subr.bf16.mxu0 %v7279_v44  ;;  %v7300_v44 = vld [vmem:[#allocation6 + $0x2e4] ss:$8 sps:$4 sm:$0xff]  }
 0x13c   : > { %1206 = vmatpush1.bf16.msra.mxu0 %v7277_v52  ;;  %v7303_v52 = vld [vmem:[#allocation6 + $0x2f4] ss:$8 sps:$4 sm:$0xff]  }
 0x13d   : > { %1207 = vmatprep.subr.bf16.mxu0 %v7282_v54  ;;  %v7301_v54 = vld [vmem:[#allocation6 + $0x2f0] ss:$8 sps:$4 sm:$0xff]  }
 0x140   : > { %1208 = vmatpush1.bf16.msra.mxu0 %v7280_v1  ;;  %v7306_v1 = vld [vmem:[#allocation6 + $0x304] ss:$8 sps:$4 sm:$0xff]  }
 0x141   : > { %1209 = vmatprep.subr.bf16.mxu0 %v7285_v27  ;;  %v406_v27 = vrot.slane %v8566_v41, 1  ;;  %v7430_v41 = vld [vmem:[#allocation6 + $0x5a0] ss:$8 sps:$4 sm:$0xff]  }
 0x144   : > { %1210 = vmatpush1.bf16.msra.mxu0 %v7283_v6  ;;  %v9533_v6 = vrot.slane %v8569_v42, 1 }
 0x145   : > { %1211 = vmatprep.subr.bf16.mxu0 %v7288_v12  ;;  %v6063_v12 = vpack.c.bf16 %v403_v23, %v8716_v37  ;;  %v9532_v23 = vrot.slane %v8582_v50, 1 }
 0x148   : > { %1212 = vmatpush1.bf16.msra.mxu0 %v7286_v16  ;;  %v7304_v16 = vld [vmem:[#allocation6 + $0x300] ss:$8 sps:$4 sm:$0xff]  }
 0x149   : > { %1213 = vmatprep.subr.bf16.mxu0 %v7291_v18  ;;  %v7309_v18 = vld [vmem:[#allocation6 + $0x314] ss:$8 sps:$4 sm:$0xff]  }
 0x14c   : > { %1214 = vmatpush1.bf16.msra.mxu0 %v7289_v22  ;;  %v8747_v22 = vpack.c.bf16 %v9533_v6, %v406_v27  ;;  %v7340_v6 = vld [vmem:[#allocation6 + $0x3c0] ss:$8 sps:$4 sm:$0xff]  }
 0x14d   : > { %1215 = vmatprep.subr.bf16.mxu0 %v7294_v26  ;;  %v7307_v26 = vld [vmem:[#allocation6 + $0x310] ss:$8 sps:$4 sm:$0xff]  }
 0x150   : > { %1216 = vmatpush1.bf16.msra.mxu0 %v7292_v33  ;;  %v9525_v33 = vrot.slane %v8579_v49, 1 }
 0x151   : > { %1217 = vmatprep.subr.bf16.mxu0 %v7297_v36  ;;  %v9524_v36 = vrot.slane %v8585_v51, 1 }
 0x154   : > { %1218 = vmatpush1.bf16.msra.mxu0 %v7295_v39  ;;  %v8761_v39 = vpack.c.bf16 %v9525_v33, %v405_v31  ;;  %v9529_v31 = vrot.slane %v8773_v25, 1  ;;  %v9530_v33 = vrot.slane %v8630_v8, 1 }
 0x155   : > { %1219 = vmatprep.subr.bf16.mxu0 %v7300_v44  ;;  %v7310_v44 = vld [vmem:[#allocation6 + $0x320] ss:$8 sps:$4 sm:$0xff]  }
 0x158   : > { %1220 = vmatpush1.bf16.msra.mxu0 %v7298_v48  ;;  %v7315_v48 = vld [vmem:[#allocation6 + $0x334] ss:$8 sps:$4 sm:$0xff]  }
 0x159   : > { %1221 = vmatprep.subr.bf16.mxu0 %v7303_v52  ;;  %v8767_v52 = vpack.c.bf16 %v9524_v36, %v9532_v23  ;;  %v7321_v36 = vld [vmem:[#allocation6 + $0x354] ss:$8 sps:$4 sm:$0xff]   ;;  %v7336_v23 = vld [vmem:[#allocation6 + $0x3a4] ss:$8 sps:$4 sm:$0xff]  }
 0x15c   : > { %1222 = vmatpush1.bf16.msra.mxu0 %v7301_v54  ;;  %v7313_v54 = vld [vmem:[#allocation6 + $0x330] ss:$8 sps:$4 sm:$0xff]  }
 0x15d   : > { %1481 = vmatprep.subr.bf16.mxu0 %v7306_v1  ;;  %v8777_v1 = vld [vmem:[%s8532_s28 + $0x40] sm:$0xff] }
 0x15f   : > { %6064 = vmatmul.mubr.msk.bf16.vlgmr.msra.gmra.mrb[0].mxu0 %vm8726_vm3, %v6063_v12  ;;  %v9526_v12 = vrot.slane %v8777_v1, 1 }
 0x160   : > { %1482 = vmatpush1.bf16.msra.mxu0 %v7304_v16  ;;  %6067 = vmatprep.mubr.msk.bf16.mxu0 %vm8726_vm3, %v8747_v22  ;;  %v7318_v16 = vld [vmem:[#allocation6 + $0x344] ss:$8 sps:$4 sm:$0xff]  }
 0x161   : > { %1483 = vmatprep.subr.bf16.mxu0 %v7309_v18  ;;  %v9528_v18 = vrot.slane %v8606_v62, 1 }
 0x164   : > { %1484 = vmatpush1.bf16.msra.mxu0 %v7307_v26  ;;  %v9527_v26 = vrot.slane %v8609_v63, 1 }
 0x165   : > { %1485 = vmatprep.subr.bf16.mxu0 %v7312_v24  ;;  %v8789_v24 = vpack.c.bf16 %v9526_v12, %v9529_v31  ;;  %v7319_v12 = vld [vmem:[#allocation6 + $0x350] ss:$8 sps:$4 sm:$0xff]   ;;  %v7330_v31 = vld [vmem:[#allocation6 + $0x384] ss:$8 sps:$4 sm:$0xff]  }
 0x167   : > { %6070 = vmatmul.mubr.msk.bf16.gmra.mrb[4].mxu0 %vm8726_vm3, %v8761_v39 }
 0x168   : > { %1486 = vmatpush1.bf16.msra.mxu0 %v7310_v44  ;;  %6073 = vmatprep.mubr.msk.bf16.mxu0 %vm8726_vm3, %v8767_v52  ;;  %v8795_v44 = vpack.c.bf16 %v9527_v26, %v9528_v18  ;;  %v7322_v26 = vld [vmem:[#allocation6 + $0x360] ss:$8 sps:$4 sm:$0xff]   ;;  %v7327_v18 = vld [vmem:[#allocation6 + $0x374] ss:$8 sps:$4 sm:$0xff]  }
 0x169   : > { %1487 = vmatprep.subr.bf16.mxu0 %v7315_v48  ;;  %v9531_v48 = vrot.slane %v8627_v7, 1 }
 0x16c   : > { %1488 = vmatpush1.bf16.msra.mxu0 %v7313_v54  ;;  %v7324_v54 = vld [vmem:[#allocation6 + $0x364] ss:$8 sps:$4 sm:$0xff]  }
 0x16d   : > { %1489 = vmatprep.subr.bf16.mxu0 %v7318_v16  ;;  %v8809_v16 = vpack.c.bf16 %v9530_v33, %v9531_v48  ;;  %v7333_v33 = vld [vmem:[#allocation6 + $0x394] ss:$8 sps:$4 sm:$0xff]   ;;  %v7331_v48 = vld [vmem:[#allocation6 + $0x390] ss:$8 sps:$4 sm:$0xff]  }
 0x16f   : > { %6076 = vmatmul.mubr.msk.bf16.gmra.mrb[8].mxu0 %vm8726_vm3, %v8789_v24 }
 0x170   : > { %1490 = vmatpush1.bf16.msra.mxu0 %v7316_v14  ;;  %6079 = vmatprep.mubr.msk.bf16.mxu0 %vm8726_vm3, %v8795_v44  ;;  %v6116_v14 = vpack.c.bf16 %v364_v43, %v362_v10  ;;  %v7334_v10 = vld [vmem:[#allocation6 + $0x3a0] ss:$8 sps:$4 sm:$0xff]   ;;  %v7339_v43 = vld [vmem:[#allocation6 + $0x3b4] ss:$8 sps:$4 sm:$0xff]  }
 0x171   : > { %1491 = vmatprep.subr.bf16.mxu0 %v7321_v36  ;;  %v7325_v36 = vld [vmem:[#allocation6 + $0x370] ss:$8 sps:$4 sm:$0xff]  }
 0x174   : > { %1492 = vmatpush1.bf16.msra.mxu0 %v7319_v12  ;;  %v7328_v12 = vld [vmem:[#allocation6 + $0x380] ss:$8 sps:$4 sm:$0xff]  }
 0x175   : > { %1493 = vmatprep.subr.bf16.mxu0 %v7324_v54  ;;  %v7342_v54 = vld [vmem:[#allocation6 + $0x3c4] ss:$8 sps:$4 sm:$0xff]  }
 0x177   : > { %6082 = vmatmul.mubr.msk.bf16.gmra.mrb[12].mxu0 %vm8726_vm3, %v8809_v16 }
 0x178   : > { %1494 = vmatpush1.bf16.msra.mxu0 %v7322_v26  ;;  %6117 = vmatprep.mubr.msk.bf16.mxu0 %vm8620_vm1, %v6116_v14  ;;  %v7337_v26 = vld [vmem:[#allocation6 + $0x3b0] ss:$8 sps:$4 sm:$0xff]   ;;  %v7345_v14 = vld [vmem:[#allocation6 + $0x3d4] ss:$8 sps:$4 sm:$0xff]  }
 0x179   : > { %1495 = vmatprep.subr.bf16.mxu0 %v7327_v18  ;;  %v7343_v18 = vld [vmem:[#allocation6 + $0x3d0] ss:$8 sps:$4 sm:$0xff]  }
 0x17c   : > { %1496 = vmatpush1.bf16.msra.mxu0 %v7325_v36  ;;  %v7348_v36 = vld [vmem:[#allocation6 + $0x3e4] ss:$8 sps:$4 sm:$0xff]  }
 0x17d   : > { %1497 = vmatprep.subr.bf16.mxu0 %v7330_v31  ;;  %v7346_v31 = vld [vmem:[#allocation6 + $0x3e0] ss:$8 sps:$4 sm:$0xff]  }
 0x180   : > { %1498 = vmatpush1.bf16.msra.mxu0 %v7328_v12  ;;  %v7351_v12 = vld [vmem:[#allocation6 + $0x3f4] ss:$8 sps:$4 sm:$0xff]  }
 0x181   : > { %1499 = vmatprep.subr.bf16.mxu0 %v7333_v33  ;;  %v7349_v33 = vld [vmem:[#allocation6 + $0x3f0] ss:$8 sps:$4 sm:$0xff]  }
 0x184   : > { %1500 = vmatpush1.bf16.msra.mxu0 %v7331_v48  ;;  %v7354_v48 = vld [vmem:[#allocation6 + $0x404] ss:$8 sps:$4 sm:$0xff]  }
 0x185   : > { %1501 = vmatprep.subr.bf16.mxu0 %v7336_v23  ;;  %v7352_v23 = vld [vmem:[#allocation6 + $0x400] ss:$8 sps:$4 sm:$0xff]  }
 0x188   : > { %1502 = vmatpush1.bf16.msra.mxu0 %v7334_v10  ;;  %v7357_v10 = vld [vmem:[#allocation6 + $0x414] ss:$8 sps:$4 sm:$0xff]  }
 0x189   : > { %1503 = vmatprep.subr.bf16.mxu0 %v7339_v43  ;;  %v7355_v43 = vld [vmem:[#allocation6 + $0x410] ss:$8 sps:$4 sm:$0xff]  }
 0x18c   : > { %1504 = vmatpush1.bf16.msra.mxu0 %v7337_v26  ;;  %v7360_v26 = vld [vmem:[#allocation6 + $0x424] ss:$8 sps:$4 sm:$0xff]  }
 0x18d   : > { %1505 = vmatprep.subr.bf16.mxu0 %v7342_v54  ;;  %v7358_v54 = vld [vmem:[#allocation6 + $0x420] ss:$8 sps:$4 sm:$0xff]  }
 0x190   : > { %1506 = vmatpush1.bf16.msra.mxu0 %v7340_v6  ;;  %v6122_v6 = vpack.c.bf16 %v368_v61, %v366_v47  ;;  %v7363_v47 = vld [vmem:[#allocation6 + $0x434] ss:$8 sps:$4 sm:$0xff]  }
 0x191   : > { %1507 = vmatprep.subr.bf16.mxu0 %v7345_v14  ;;  %v6125_v14 = vpack.c.bf16 %v367_v17, %v365_v57  ;;  %v8838_v61 = vld [vmem:[%s8532_s28 + $0x78] sm:$0xff]  ;;  %v7366_v57 = vld [vmem:[#allocation6 + $0x444] ss:$8 sps:$4 sm:$0xff]   ;;  %v7364_v17 = vld [vmem:[#allocation6 + $0x440] ss:$8 sps:$4 sm:$0xff]  }
 0x192   : > { %v376_v58 = vrot.slane %v8838_v61, 7 }
 0x194   : > { %1508 = vmatpush1.bf16.msra.mxu0 %v7343_v18  ;;  %v7361_v18 = vld [vmem:[#allocation6 + $0x430] ss:$8 sps:$4 sm:$0xff]  }
 0x195   : > { %1509 = vmatprep.subr.bf16.mxu0 %v7348_v36  ;;  %v8854_v36 = vld [vmem:[%s8532_s28 + $0x70] sm:$0xff] }
 0x196   : > { %v375_v59 = vrot.slane %v8854_v36, 7 }
 0x198   : > { %1510 = vmatpush1.bf16.msra.mxu0 %v7346_v31  ;;  %v7369_v31 = vld [vmem:[#allocation6 + $0x454] ss:$8 sps:$4 sm:$0xff]  }
 0x199   : > { %1511 = vmatprep.subr.bf16.mxu0 %v7351_v12  ;;  %v7370_v12 = vld [vmem:[#allocation6 + $0x460] ss:$8 sps:$4 sm:$0xff]  }
 0x19c   : > { %1512 = vmatpush1.bf16.msra.mxu0 %v7349_v33  ;;  %v8026_v33 = vld [vmem:[%s8532_s28 + $0x8] sm:$0xff] }
 0x19d   : > { %1771 = vmatprep.subr.bf16.mxu0 %v7354_v48  ;;  %v8027_v48 = vld [vmem:[%s8532_s28 + $0x18] sm:$0xff] }
 0x19f   : > { %6120 = vmatmul.mubr.msk.bf16.vlgmr.msra.gmra.mrb[0].mxu0 %vm8620_vm1, %v8563_v30  ;;  %v6128_v30 = vpack.c.bf16 %v372_v19, %v370_v2  ;;  %v6131_v2 = vpack.c.bf16 %v371_v34, %v369_v28  ;;  %v6134_v19 = vpack.c.bf16 %v376_v58, %v374_v20  ;;  %v7367_v28 = vld [vmem:[#allocation6 + $0x450] ss:$8 sps:$4 sm:$0xff]   ;;  %v7372_v34 = vld [vmem:[#allocation6 + $0x464] ss:$8 sps:$4 sm:$0xff]   ;;  %v6137_v20 = vpack.c.bf16 %v375_v59, %v373_v35 }
 0x1a0   : > { %1772 = vmatpush1.bf16.msra.mxu0 %v7352_v23  ;;  %6123 = vmatprep.mubr.msk.bf16.mxu0 %vm8620_vm1, %v6122_v6  ;;  %v1571_v23 = vpack.c.bf16 %v8027_v48, %v8026_v33  ;;  %v7373_v6 = vld [vmem:[#allocation6 + $0x470] ss:$8 sps:$4 sm:$0xff]   ;;  %v8028_v33 = vld [vmem:[%s8532_s28] sm:$0xff] }
 0x1a1   : > { %1773 = vmatprep.subr.bf16.mxu0 %v7357_v10  ;;  %v7375_v10 = vld [vmem:[#allocation6 + $0x474] ss:$8 sps:$4 sm:$0xff]   ;;  %v7379_v35 = vld [vmem:[#allocation6 + $0x490] ss:$8 sps:$4 sm:$0xff]  }
 0x1a2   : > { %v8029_v48 = vld [vmem:[%s8532_s28 + $0x10] sm:$0xff] }
 0x1a4   : > { %1774 = vmatpush1.bf16.msra.mxu0 %v7355_v43  ;;  %v7378_v43 = vld [vmem:[#allocation6 + $0x484] ss:$8 sps:$4 sm:$0xff]  }
 0x1a5   : > { %1775 = vmatprep.subr.bf16.mxu0 %v7360_v26  ;;  %v7376_v26 = vld [vmem:[#allocation6 + $0x480] ss:$8 sps:$4 sm:$0xff]  }
 0x1a7   : > { %6126 = vmatmul.mubr.msk.bf16.gmra.mrb[4].mxu0 %vm8620_vm1, %v6125_v14  ;;  %v7384_v14 = vld [vmem:[#allocation6 + $0x4a4] ss:$8 sps:$4 sm:$0xff]  }
 0x1a8   : > { %1776 = vmatpush1.bf16.msra.mxu0 %v7358_v54  ;;  %6129 = vmatprep.mubr.msk.bf16.mxu0 %vm8620_vm1, %v6128_v30  ;;  %v7381_v54 = vld [vmem:[#allocation6 + $0x494] ss:$8 sps:$4 sm:$0xff]  }
 0x1a9   : > { %1777 = vmatprep.subr.bf16.mxu0 %v7363_v47  ;;  %v7382_v47 = vld [vmem:[#allocation6 + $0x4a0] ss:$8 sps:$4 sm:$0xff]   ;;  %v7387_v30 = vld [vmem:[#allocation6 + $0x4b4] ss:$8 sps:$4 sm:$0xff]  }
 0x1ac   : > { %1778 = vmatpush1.bf16.msra.mxu0 %v7361_v18  ;;  %v7385_v18 = vld [vmem:[#allocation6 + $0x4b0] ss:$8 sps:$4 sm:$0xff]  }
 0x1ad   : > { %1779 = vmatprep.subr.bf16.mxu0 %v7366_v57  ;;  %v7390_v57 = vld [vmem:[#allocation6 + $0x4c4] ss:$8 sps:$4 sm:$0xff]  }
 0x1af   : > { %6132 = vmatmul.mubr.msk.bf16.gmra.mrb[8].mxu0 %vm8620_vm1, %v6131_v2  ;;  %v7388_v2 = vld [vmem:[#allocation6 + $0x4c0] ss:$8 sps:$4 sm:$0xff]  }
 0x1b0   : > { %1780 = vmatpush1.bf16.msra.mxu0 %v7364_v17  ;;  %6135 = vmatprep.mubr.msk.bf16.mxu0 %vm8620_vm1, %v6134_v19  ;;  %v7393_v17 = vld [vmem:[#allocation6 + $0x4d4] ss:$8 sps:$4 sm:$0xff]   ;;  %v7391_v19 = vld [vmem:[#allocation6 + $0x4d0] ss:$8 sps:$4 sm:$0xff]  }
 0x1b1   : > { %1781 = vmatprep.subr.bf16.mxu0 %v7369_v31  ;;  %v7396_v31 = vld [vmem:[#allocation6 + $0x4e4] ss:$8 sps:$4 sm:$0xff]  }
 0x1b4   : > { %1782 = vmatpush1.bf16.msra.mxu0 %v7367_v28  ;;  %v7394_v28 = vld [vmem:[#allocation6 + $0x4e0] ss:$8 sps:$4 sm:$0xff]  }
 0x1b5   : > { %1783 = vmatprep.subr.bf16.mxu0 %v7372_v34  ;;  %v7399_v34 = vld [vmem:[#allocation6 + $0x4f4] ss:$8 sps:$4 sm:$0xff]  }
 0x1b7   : > { %6138 = vmatmul.mubr.msk.bf16.gmra.mrb[12].mxu0 %vm8620_vm1, %v6137_v20  ;;  %v7397_v20 = vld [vmem:[#allocation6 + $0x4f0] ss:$8 sps:$4 sm:$0xff]  }
 0x1b8   : > { %1784 = vmatpush1.bf16.msra.mxu0 %v7370_v12  ;;  %1803 = vmatprep.mubr.bf16.mxu0 %v1571_v23  ;;  %v7402_v12 = vld [vmem:[#allocation6 + $0x504] ss:$8 sps:$4 sm:$0xff]   ;;  %v1570_v23 = vpack.c.bf16 %v8029_v48, %v8028_v33 }
 0x1b9   : > { %1785 = vmatprep.subr.bf16.mxu0 %v7375_v10  ;;  %v7400_v10 = vld [vmem:[#allocation6 + $0x500] ss:$8 sps:$4 sm:$0xff]  }
 0x1ba   : > { %v8036_v33 = vld [vmem:[%s8532_s28 + $0x68] sm:$0xff] }
 0x1bb   : > { %v1577_v48 = vpack.c.bf16 %v8838_v61, %v8036_v33  ;;  %v7445_v33 = vld [vmem:[#allocation6 + $0x5f0] ss:$8 sps:$4 sm:$0xff]  }
 0x1bc   : > { %1786 = vmatpush1.bf16.msra.mxu0 %v7373_v6  ;;  %v8030_v6 = vld [vmem:[%s8532_s28 + $0x28] sm:$0xff] }
 0x1bd   : > { %1787 = vmatprep.subr.bf16.mxu0 %v7378_v43  ;;  %v8031_v43 = vld [vmem:[%s8532_s28 + $0x38] sm:$0xff] }
 0x1c0   : > { %1788 = vmatpush1.bf16.msra.mxu0 %v7376_v26  ;;  %v1573_v26 = vpack.c.bf16 %v8031_v43, %v8030_v6  ;;  %v7420_v6 = vld [vmem:[#allocation6 + $0x564] ss:$8 sps:$4 sm:$0xff]  }
 0x1c1   : > { %1789 = vmatprep.subr.bf16.mxu0 %v7381_v54  ;;  %v7405_v54 = vld [vmem:[#allocation6 + $0x514] ss:$8 sps:$4 sm:$0xff]   ;;  %v8037_v43 = vld [vmem:[%s8532_s28 + $0x60] sm:$0xff] }
 0x1c4   : > { %1790 = vmatpush1.bf16.msra.mxu0 %v7379_v35  ;;  %v7403_v35 = vld [vmem:[#allocation6 + $0x510] ss:$8 sps:$4 sm:$0xff]  }
 0x1c5   : > { %1791 = vmatprep.subr.bf16.mxu0 %v7384_v14  ;;  %v7408_v14 = vld [vmem:[#allocation6 + $0x524] ss:$8 sps:$4 sm:$0xff]  }
 0x1c8   : > { %1792 = vmatpush1.bf16.msra.mxu0 %v7382_v47  ;;  %v8032_v47 = vld [vmem:[%s8532_s28 + $0x20] sm:$0xff] }
 0x1c9   : > { %1793 = vmatprep.subr.bf16.mxu0 %v7387_v30  ;;  %v1572_v30 = vpack.c.bf16 %v8773_v25, %v8032_v47  ;;  %v7421_v47 = vld [vmem:[#allocation6 + $0x570] ss:$8 sps:$4 sm:$0xff]  }
 0x1cc   : > { %1794 = vmatpush1.bf16.msra.mxu0 %v7385_v18  ;;  %v7406_v18 = vld [vmem:[#allocation6 + $0x520] ss:$8 sps:$4 sm:$0xff]  }
 0x1cd   : > { %1795 = vmatprep.subr.bf16.mxu0 %v7390_v57  ;;  %v8033_v57 = vld [vmem:[%s8532_s28 + $0x48] sm:$0xff] }
 0x1d0   : > { %1796 = vmatpush1.bf16.msra.mxu0 %v7388_v2  ;;  %v8034_v2 = vld [vmem:[%s8532_s28 + $0x58] sm:$0xff] }
 0x1d1   : > { %1797 = vmatprep.subr.bf16.mxu0 %v7393_v17  ;;  %v1575_v17 = vpack.c.bf16 %v8034_v2, %v8033_v57  ;;  %v7429_v57 = vld [vmem:[#allocation6 + $0x594] ss:$8 sps:$4 sm:$0xff]   ;;  %v7427_v2 = vld [vmem:[#allocation6 + $0x590] ss:$8 sps:$4 sm:$0xff]  }
 0x1d4   : > { %1798 = vmatpush1.bf16.msra.mxu0 %v7391_v19  ;;  %v7411_v19 = vld [vmem:[#allocation6 + $0x534] ss:$8 sps:$4 sm:$0xff]  }
 0x1d5   : > { %1799 = vmatprep.subr.bf16.mxu0 %v7396_v31  ;;  %v7409_v31 = vld [vmem:[#allocation6 + $0x530] ss:$8 sps:$4 sm:$0xff]  }
 0x1d8   : > { %1800 = vmatpush1.bf16.msra.mxu0 %v7394_v28  ;;  %v7414_v28 = vld [vmem:[#allocation6 + $0x544] ss:$8 sps:$4 sm:$0xff]  }
 0x1d9   : > { %1801 = vmatprep.subr.bf16.mxu0 %v7399_v34  ;;  %v8035_v34 = vld [vmem:[%s8532_s28 + $0x50] sm:$0xff] }
 0x1dc   : > { %1802 = vmatpush1.bf16.msra.mxu0 %v7397_v20  ;;  %v1574_v20 = vpack.c.bf16 %v8035_v34, %v8777_v1  ;;  %v7444_v34 = vld [vmem:[#allocation6 + $0x5e4] ss:$8 sps:$4 sm:$0xff]  }
 0x1dd   : > { %2061 = vmatprep.subr.bf16.mxu0 %v7402_v12  ;;  %v7412_v12 = vld [vmem:[#allocation6 + $0x540] ss:$8 sps:$4 sm:$0xff]  }
 0x1df   : > { %1804 = vmatmul.mubr.bf16.vlgmr.msra.gmra.mrb[0].mxu0 %v1570_v23  ;;  %v7417_v23 = vld [vmem:[#allocation6 + $0x554] ss:$8 sps:$4 sm:$0xff]  }
 0x1e0   : > { %2062 = vmatpush1.bf16.msra.mxu0 %v7400_v10  ;;  %1813 = vmatprep.mubr.bf16.mxu0 %v1573_v26  ;;  %v7415_v10 = vld [vmem:[#allocation6 + $0x550] ss:$8 sps:$4 sm:$0xff]   ;;  %v1576_v26 = vpack.c.bf16 %v8854_v36, %v8037_v43 }
 0x1e1   : > { %2063 = vmatprep.subr.bf16.mxu0 %v7405_v54  ;;  %v7418_v54 = vld [vmem:[#allocation6 + $0x560] ss:$8 sps:$4 sm:$0xff]  }
 0x1e4   : > { %2064 = vmatpush1.bf16.msra.mxu0 %v7403_v35  ;;  %v6204_v35 = vpack.c.bf16 %v406_v27, %v404_v38  ;;  %v7435_v38 = vld [vmem:[#allocation6 + $0x5b4] ss:$8 sps:$4 sm:$0xff]   ;;  %v7433_v27 = vld [vmem:[#allocation6 + $0x5b0] ss:$8 sps:$4 sm:$0xff]  }
 0x1e5   : > { %2065 = vmatprep.subr.bf16.mxu0 %v7408_v14  ;;  %v7423_v14 = vld [vmem:[#allocation6 + $0x574] ss:$8 sps:$4 sm:$0xff]  }
 0x1e7   : > { %1814 = vmatmul.mubr.bf16.gmra.mrb[4].mxu0 %v1572_v30  ;;  %v7426_v30 = vld [vmem:[#allocation6 + $0x584] ss:$8 sps:$4 sm:$0xff]  }
 0x1e8   : > { %2066 = vmatpush1.bf16.msra.mxu0 %v7406_v18  ;;  %1823 = vmatprep.mubr.bf16.mxu0 %v1575_v17  ;;  %v7424_v18 = vld [vmem:[#allocation6 + $0x580] ss:$8 sps:$4 sm:$0xff]   ;;  %v7438_v17 = vld [vmem:[#allocation6 + $0x5c4] ss:$8 sps:$4 sm:$0xff]  }
 0x1e9   : > { %2067 = vmatprep.subr.bf16.mxu0 %v7411_v19  ;;  %v7436_v19 = vld [vmem:[#allocation6 + $0x5c0] ss:$8 sps:$4 sm:$0xff]  }
 0x1ec   : > { %2068 = vmatpush1.bf16.msra.mxu0 %v7409_v31  ;;  %v7441_v31 = vld [vmem:[#allocation6 + $0x5d4] ss:$8 sps:$4 sm:$0xff]  }
 0x1ed   : > { %2069 = vmatprep.subr.bf16.mxu0 %v7414_v28  ;;  %v7439_v28 = vld [vmem:[#allocation6 + $0x5d0] ss:$8 sps:$4 sm:$0xff]  }
 0x1ef   : > { %1824 = vmatmul.mubr.bf16.gmra.mrb[8].mxu0 %v1574_v20  ;;  %v7442_v20 = vld [vmem:[#allocation6 + $0x5e0] ss:$8 sps:$4 sm:$0xff]  }
 0x1f0   : > { %2070 = vmatpush1.bf16.msra.mxu0 %v7412_v12  ;;  %1833 = vmatprep.mubr.bf16.mxu0 %v1577_v48  ;;  %v7447_v12 = vld [vmem:[#allocation6 + $0x5f4] ss:$8 sps:$4 sm:$0xff]   ;;  %v7450_v48 = vld [vmem:[#allocation6 + $0x604] ss:$8 sps:$4 sm:$0xff]  }
 0x1f1   : > { %2071 = vmatprep.subr.bf16.mxu0 %v7417_v23  ;;  %v7448_v23 = vld [vmem:[#allocation6 + $0x600] ss:$8 sps:$4 sm:$0xff]  }
 0x1f4   : > { %2072 = vmatpush1.bf16.msra.mxu0 %v7415_v10  ;;  %v9568_v10 = vrot.slane %v8569_v42, 1  ;;  %v9571_v42 = vrot.slane %v8773_v25, 1  ;;  %v7462_v25 = vld [vmem:[#allocation6 + $0x644] ss:$8 sps:$4 sm:$0xff]  }
 0x1f5   : > { %2073 = vmatprep.subr.bf16.mxu0 %v7420_v6  ;;  %v9569_v6 = vrot.slane %v8582_v50, 1  ;;  %v7454_v50 = vld [vmem:[#allocation6 + $0x620] ss:$8 sps:$4 sm:$0xff]  }
 0x1f7   : > { %1834 = vmatmul.mubr.bf16.gmra.mrb[12].mxu0 %v1576_v26  ;;  %v6210_v43 = vpack.c.bf16 %v9569_v6, %v9568_v10  ;;  %v7453_v26 = vld [vmem:[#allocation6 + $0x614] ss:$8 sps:$4 sm:$0xff]   ;;  %v7478_v10 = vld [vmem:[#allocation6 + $0x6a0] ss:$8 sps:$4 sm:$0xff]  }
 0x1f8   : > { %2074 = vmatpush1.bf16.msra.mxu0 %v7418_v54  ;;  %6205 = vmatprep.mubr.msk.bf16.mxu0 %vm8726_vm3, %v6204_v35  ;;  %v7451_v54 = vld [vmem:[#allocation6 + $0x610] ss:$8 sps:$4 sm:$0xff]   ;;  %v7456_v35 = vld [vmem:[#allocation6 + $0x624] ss:$8 sps:$4 sm:$0xff]   ;;  %v7483_v6 = vld [vmem:[#allocation6 + $0x6b4] ss:$8 sps:$4 sm:$0xff]  }
 0x1f9   : > { %2075 = vmatprep.subr.bf16.mxu0 %v7423_v14  ;;  %v9570_v14 = vrot.slane %v8579_v49, 1  ;;  %v418_v49 = vrot.slane %v8838_v61, 1 }
 0x1fc   : > { %2076 = vmatpush1.bf16.msra.mxu0 %v7421_v47  ;;  %v6213_v47 = vpack.c.bf16 %v9571_v42, %v9570_v14  ;;  %v7492_v14 = vld [vmem:[#allocation6 + $0x6e4] ss:$8 sps:$4 sm:$0xff]   ;;  %v7490_v42 = vld [vmem:[#allocation6 + $0x6e0] ss:$8 sps:$4 sm:$0xff]  }
 0x1fd   : > { %2077 = vmatprep.subr.bf16.mxu0 %v7426_v30  ;;  %v9572_v30 = vrot.slane %v8585_v51, 1  ;;  %v9575_v51 = vrot.slane %v8627_v7, 1  ;;  %v7468_v7 = vld [vmem:[#allocation6 + $0x664] ss:$8 sps:$4 sm:$0xff]  }
 0x200   : > { %2078 = vmatpush1.bf16.msra.mxu0 %v7424_v18  ;;  %v9573_v18 = vrot.slane %v8606_v62, 1 }
 0x201   : > { %2079 = vmatprep.subr.bf16.mxu0 %v7429_v57 }
 0x202   : > { %v6216_v57 = vpack.c.bf16 %v9573_v18, %v9572_v30  ;;  %v7498_v30 = vld [vmem:[#allocation6 + $0x704] ss:$8 sps:$4 sm:$0xff]   ;;  %v7496_v18 = vld [vmem:[#allocation6 + $0x700] ss:$8 sps:$4 sm:$0xff]  }
 0x204   : > { %2080 = vmatpush1.bf16.msra.mxu0 %v7427_v2  ;;  %v7457_v2 = vld [vmem:[#allocation6 + $0x630] ss:$8 sps:$4 sm:$0xff]  }
 0x205   : > { %2081 = vmatprep.subr.bf16.mxu0 %v7432_v13  ;;  %v9574_v13 = vrot.slane %v8777_v1, 1  ;;  %v9577_v1 = vrot.slane %v8630_v8, 1  ;;  %v7472_v8 = vld [vmem:[#allocation6 + $0x680] ss:$8 sps:$4 sm:$0xff]  }
 0x207   : > { %v6219_v62 = vpack.c.bf16 %v9575_v51, %v9574_v13  ;;  %v7507_v13 = vld [vmem:[#allocation6 + $0x734] ss:$8 sps:$4 sm:$0xff]   ;;  %v7505_v51 = vld [vmem:[#allocation6 + $0x730] ss:$8 sps:$4 sm:$0xff]  }
 0x208   : > { %2082 = vmatpush1.bf16.msra.mxu0 %v7430_v41  ;;  %v7460_v41 = vld [vmem:[#allocation6 + $0x640] ss:$8 sps:$4 sm:$0xff]  }
 0x209   : > { %2083 = vmatprep.subr.bf16.mxu0 %v7435_v38  ;;  %v9576_v38 = vrot.slane %v8609_v63, 1 }
 0x20c   : > { %2084 = vmatpush1.bf16.msra.mxu0 %v7433_v27  ;;  %v6222_v27 = vpack.c.bf16 %v418_v49, %v9576_v38  ;;  %v6281_v38 = vpack.c.bf16 %v8633_v9, %v375_v59  ;;  %v7598_v59 = vld [vmem:[#allocation9 + $0x124] ss:$8 sps:$4 sm:$0xff]  }
 0x20d   : > { %2085 = vmatprep.subr.bf16.mxu0 %v7438_v17  ;;  %v7465_v17 = vld [vmem:[#allocation6 + $0x654] ss:$8 sps:$4 sm:$0xff]  }
 0x210   : > { %2086 = vmatpush1.bf16.msra.mxu0 %v7436_v19  ;;  %v417_v19 = vrot.slane %v8854_v36, 1 }
 0x211   : > { %2087 = vmatprep.subr.bf16.mxu0 %v7441_v31  ;;  %v7463_v31 = vld [vmem:[#allocation6 + $0x650] ss:$8 sps:$4 sm:$0xff]  }
 0x212   : > { %v6225_v63 = vpack.c.bf16 %v417_v19, %v9577_v1  ;;  %v7522_v1 = vld [vmem:[#allocation6 + $0x784] ss:$8 sps:$4 sm:$0xff]  }
 0x214   : > { %2088 = vmatpush1.bf16.msra.mxu0 %v7439_v28  ;;  %v7466_v28 = vld [vmem:[#allocation6 + $0x660] ss:$8 sps:$4 sm:$0xff]  }
 0x215   : > { %2089 = vmatprep.subr.bf16.mxu0 %v7444_v34  ;;  %v7471_v34 = vld [vmem:[#allocation6 + $0x674] ss:$8 sps:$4 sm:$0xff]  }
 0x218   : > { %2090 = vmatpush1.bf16.msra.mxu0 %v7442_v20  ;;  %v7469_v20 = vld [vmem:[#allocation6 + $0x670] ss:$8 sps:$4 sm:$0xff]  }
 0x219   : > { %2091 = vmatprep.subr.bf16.mxu0 %v7447_v12  ;;  %v7474_v12 = vld [vmem:[#allocation6 + $0x684] ss:$8 sps:$4 sm:$0xff]  }
 0x21c   : > { %2092 = vmatpush1.bf16.msra.mxu0 %v7445_v33  ;;  %v7477_v33 = vld [vmem:[#allocation6 + $0x694] ss:$8 sps:$4 sm:$0xff]  }
 0x21d   : > { %2345 = vmatprep.subr.bf16.mxu0 %v7450_v48  ;;  %v7475_v48 = vld [vmem:[#allocation6 + $0x690] ss:$8 sps:$4 sm:$0xff]  }
 0x21f   : > { %6208 = vmatmul.mubr.msk.bf16.vlgmr.msra.gmra.mrb[0].mxu0 %vm8726_vm3, %v8652_v32  ;;  %v7459_v32 = vld [vmem:[#allocation6 + $0x634] ss:$8 sps:$4 sm:$0xff]  }
 0x220   : > { %2346 = vmatpush1.bf16.msra.mxu0 %v7448_v23  ;;  %6211 = vmatprep.mubr.msk.bf16.mxu0 %vm8726_vm3, %v6210_v43  ;;  %v7480_v23 = vld [vmem:[#allocation6 + $0x6a4] ss:$8 sps:$4 sm:$0xff]   ;;  %v7481_v43 = vld [vmem:[#allocation6 + $0x6b0] ss:$8 sps:$4 sm:$0xff]  }
 0x221   : > { %2347 = vmatprep.subr.bf16.mxu0 %v7453_v26  ;;  %v7486_v26 = vld [vmem:[#allocation6 + $0x6c4] ss:$8 sps:$4 sm:$0xff]  }
 0x224   : > { %2348 = vmatpush1.bf16.msra.mxu0 %v7451_v54  ;;  %v7489_v54 = vld [vmem:[#allocation6 + $0x6d4] ss:$8 sps:$4 sm:$0xff]  }
 0x225   : > { %2349 = vmatprep.subr.bf16.mxu0 %v7456_v35  ;;  %v7487_v35 = vld [vmem:[#allocation6 + $0x6d0] ss:$8 sps:$4 sm:$0xff]  }
 0x227   : > { %6214 = vmatmul.mubr.msk.bf16.gmra.mrb[4].mxu0 %vm8726_vm3, %v6213_v47  ;;  %v7495_v47 = vld [vmem:[#allocation6 + $0x6f4] ss:$8 sps:$4 sm:$0xff]  }
 0x228   : > { %2350 = vmatpush1.bf16.msra.mxu0 %v7454_v50  ;;  %6217 = vmatprep.mubr.msk.bf16.mxu0 %vm8726_vm3, %v6216_v57  ;;  %v7493_v50 = vld [vmem:[#allocation6 + $0x6f0] ss:$8 sps:$4 sm:$0xff]   ;;  %v7501_v57 = vld [vmem:[#allocation6 + $0x714] ss:$8 sps:$4 sm:$0xff]  }
 0x229   : > { %2351 = vmatprep.subr.bf16.mxu0 %v7459_v32  ;;  %v7499_v32 = vld [vmem:[#allocation6 + $0x710] ss:$8 sps:$4 sm:$0xff]  }
 0x22c   : > { %2352 = vmatpush1.bf16.msra.mxu0 %v7457_v2  ;;  %v7504_v2 = vld [vmem:[#allocation6 + $0x724] ss:$8 sps:$4 sm:$0xff]  }
 0x22d   : > { %2353 = vmatprep.subr.bf16.mxu0 %v7462_v25  ;;  %v7502_v25 = vld [vmem:[#allocation6 + $0x720] ss:$8 sps:$4 sm:$0xff]  }
 0x22f   : > { %6220 = vmatmul.mubr.msk.bf16.gmra.mrb[8].mxu0 %vm8726_vm3, %v6219_v62  ;;  %v6278_v62 = vpack.c.bf16 %v8633_v9, %v376_v58  ;;  %v7519_v58 = vld [vmem:[#allocation6 + $0x774] ss:$8 sps:$4 sm:$0xff]  }
 0x230   : > { %2354 = vmatpush1.bf16.msra.mxu0 %v7460_v41  ;;  %6223 = vmatprep.mubr.msk.bf16.mxu0 %vm8726_vm3, %v6222_v27  ;;  %v7513_v41 = vld [vmem:[#allocation6 + $0x754] ss:$8 sps:$4 sm:$0xff]   ;;  %v7514_v27 = vld [vmem:[#allocation6 + $0x760] ss:$8 sps:$4 sm:$0xff]  }
 0x231   : > { %2355 = vmatprep.subr.bf16.mxu0 %v7465_v17  ;;  %v7592_v17 = vld [vmem:[#allocation9 + $0x104] ss:$8 sps:$4 sm:$0xff]  }
 0x232   : > { %3403 = vmatprep.subr.bf16.mxu1 %v7592_v17  ;;  %v7552_v17 = vld [vmem:[#allocation6 + $0x824] ss:$8 sps:$4 sm:$0xff]  }
 0x234   : > { %2356 = vmatpush1.bf16.msra.mxu0 %v7463_v31  ;;  %v7595_v31 = vld [vmem:[#allocation9 + $0x114] ss:$8 sps:$4 sm:$0xff]  }
 0x235   : > { %2357 = vmatprep.subr.bf16.mxu0 %v7468_v7  ;;  %v7517_v7 = vld [vmem:[#allocation6 + $0x770] ss:$8 sps:$4 sm:$0xff]  }
 0x237   : > { %6226 = vmatmul.mubr.msk.bf16.gmra.mrb[12].mxu0 %vm8726_vm3, %v6225_v63  ;;  %v7597_v63 = vld [vmem:[#allocation9 + $0x110] ss:$8 sps:$4 sm:$0xff]  }
 0x238   : > { %2358 = vmatpush1.bf16.msra.mxu0 %v7466_v28  ;;  %6261 = vmatprep.mubr.msk.bf16.mxu0 %vm8620_vm1, %v8663_v56  ;;  %v7484_v56 = vld [vmem:[#allocation6 + $0x6c0] ss:$8 sps:$4 sm:$0xff]  }
 0x239   : > { %2359 = vmatprep.subr.bf16.mxu0 %v7471_v34  ;;  %v7520_v28 = vld [vmem:[#allocation6 + $0x780] ss:$8 sps:$4 sm:$0xff]   ;;  %v7525_v34 = vld [vmem:[#allocation6 + $0x794] ss:$8 sps:$4 sm:$0xff]  }
 0x23c   : > { %2360 = vmatpush1.bf16.msra.mxu0 %v7469_v20  ;;  %v7600_v20 = vld [vmem:[#allocation9 + $0x120] ss:$8 sps:$4 sm:$0xff]  }
 0x23d   : > { %2361 = vmatprep.subr.bf16.mxu0 %v7474_v12  ;;  %v7601_v12 = vld [vmem:[#allocation9 + $0x134] ss:$8 sps:$4 sm:$0xff]  }
 0x240   : > { %2362 = vmatpush1.bf16.msra.mxu0 %v7472_v8  ;;  %v7523_v8 = vld [vmem:[#allocation6 + $0x790] ss:$8 sps:$4 sm:$0xff]  }
 0x241   : > { %2363 = vmatprep.subr.bf16.mxu0 %v7477_v33  ;;  %v7528_v33 = vld [vmem:[#allocation6 + $0x7a4] ss:$8 sps:$4 sm:$0xff]  }
 0x244   : > { %2364 = vmatpush1.bf16.msra.mxu0 %v7475_v48  ;;  %v7604_v48 = vld [vmem:[#allocation9 + $0x144] ss:$8 sps:$4 sm:$0xff]  }
 0x245   : > { %2365 = vmatprep.subr.bf16.mxu0 %v7480_v23  ;;  %v7526_v23 = vld [vmem:[#allocation6 + $0x7a0] ss:$8 sps:$4 sm:$0xff]  }
 0x248   : > { %2366 = vmatpush1.bf16.msra.mxu0 %v7478_v10  ;;  %v7531_v10 = vld [vmem:[#allocation6 + $0x7b4] ss:$8 sps:$4 sm:$0xff]  }
 0x249   : > { %2367 = vmatprep.subr.bf16.mxu0 %v7483_v6  ;;  %v7606_v6 = vld [vmem:[#allocation9 + $0x140] ss:$8 sps:$4 sm:$0xff]  }
 0x24c   : > { %2368 = vmatpush1.bf16.msra.mxu0 %v7481_v43  ;;  %v7607_v43 = vld [vmem:[#allocation9 + $0x154] ss:$8 sps:$4 sm:$0xff]  }
 0x24d   : > { %2369 = vmatprep.subr.bf16.mxu0 %v7486_v26  ;;  %v7529_v26 = vld [vmem:[#allocation6 + $0x7b0] ss:$8 sps:$4 sm:$0xff]  }
 0x250   : > { %2370 = vmatpush1.bf16.msra.mxu0 %v7484_v56  ;;  %v7534_v56 = vld [vmem:[#allocation6 + $0x7c4] ss:$8 sps:$4 sm:$0xff]  }
 0x251   : > { %2371 = vmatprep.subr.bf16.mxu0 %v7489_v54  ;;  %v7609_v54 = vld [vmem:[#allocation9 + $0x150] ss:$8 sps:$4 sm:$0xff]  }
 0x254   : > { %2372 = vmatpush1.bf16.msra.mxu0 %v7487_v35  ;;  %v7610_v35 = vld [vmem:[#allocation9 + $0x164] ss:$8 sps:$4 sm:$0xff]  }
 0x255   : > { %2373 = vmatprep.subr.bf16.mxu0 %v7492_v14  ;;  %v7532_v14 = vld [vmem:[#allocation6 + $0x7c0] ss:$8 sps:$4 sm:$0xff]  }
 0x258   : > { %2374 = vmatpush1.bf16.msra.mxu0 %v7490_v42  ;;  %v7537_v42 = vld [vmem:[#allocation6 + $0x7d4] ss:$8 sps:$4 sm:$0xff]  }
 0x259   : > { %2375 = vmatprep.subr.bf16.mxu0 %v7495_v47  ;;  %v7612_v47 = vld [vmem:[#allocation9 + $0x160] ss:$8 sps:$4 sm:$0xff]  }
 0x25c   : > { %2376 = vmatpush1.bf16.msra.mxu0 %v7493_v50  ;;  %v7613_v50 = vld [vmem:[#allocation9 + $0x174] ss:$8 sps:$4 sm:$0xff]  }
 0x25d   : > { %2629 = vmatprep.subr.bf16.mxu0 %v7498_v30  ;;  %v7535_v30 = vld [vmem:[#allocation6 + $0x7d0] ss:$8 sps:$4 sm:$0xff]  }
 0x25f   : > { %6264 = vmatmul.mubr.msk.bf16.vlgmr.msra.gmra.mrb[0].mxu0 %vm8620_vm1, %v8677_v5  ;;  %v7510_v5 = vld [vmem:[#allocation6 + $0x744] ss:$8 sps:$4 sm:$0xff]  }
 0x260   : > { %2630 = vmatpush1.bf16.msra.mxu0 %v7496_v18  ;;  %6267 = vmatprep.mubr.msk.bf16.mxu0 %vm8620_vm1, %v8683_v15  ;;  %v7508_v15 = vld [vmem:[#allocation6 + $0x740] ss:$8 sps:$4 sm:$0xff]   ;;  %v7540_v18 = vld [vmem:[#allocation6 + $0x7e4] ss:$8 sps:$4 sm:$0xff]  }
 0x261   : > { %2631 = vmatprep.subr.bf16.mxu0 %v7501_v57  ;;  %v7615_v57 = vld [vmem:[#allocation9 + $0x170] ss:$8 sps:$4 sm:$0xff]  }
 0x264   : > { %2632 = vmatpush1.bf16.msra.mxu0 %v7499_v32  ;;  %v7616_v32 = vld [vmem:[#allocation9 + $0x184] ss:$8 sps:$4 sm:$0xff]  }
 0x265   : > { %2633 = vmatprep.subr.bf16.mxu0 %v7504_v2  ;;  %v7538_v2 = vld [vmem:[#allocation6 + $0x7e0] ss:$8 sps:$4 sm:$0xff]  }
 0x267   : > { %6270 = vmatmul.mubr.msk.bf16.gmra.mrb[4].mxu0 %vm8620_vm1, %v8699_v21  ;;  %v7511_v21 = vld [vmem:[#allocation6 + $0x750] ss:$8 sps:$4 sm:$0xff]  }
 0x268   : > { %2634 = vmatpush1.bf16.msra.mxu0 %v7502_v25  ;;  %6273 = vmatprep.mubr.msk.bf16.mxu0 %vm8620_vm1, %v8705_v29  ;;  %v7516_v29 = vld [vmem:[#allocation6 + $0x764] ss:$8 sps:$4 sm:$0xff]   ;;  %v7543_v25 = vld [vmem:[#allocation6 + $0x7f4] ss:$8 sps:$4 sm:$0xff]  }
 0x269   : > { %2635 = vmatprep.subr.bf16.mxu0 %v7507_v13  ;;  %v7618_v13 = vld [vmem:[#allocation9 + $0x180] ss:$8 sps:$4 sm:$0xff]  }
 0x26c   : > { %2636 = vmatpush1.bf16.msra.mxu0 %v7505_v51  ;;  %v7619_v51 = vld [vmem:[#allocation9 + $0x194] ss:$8 sps:$4 sm:$0xff]  }
 0x26d   : > { %2637 = vmatprep.subr.bf16.mxu0 %v7510_v5  ;;  %v7541_v5 = vld [vmem:[#allocation6 + $0x7f0] ss:$8 sps:$4 sm:$0xff]  }
 0x26f   : > { %6276 = vmatmul.mubr.msk.bf16.gmra.mrb[8].mxu0 %vm8620_vm1, %v8724_v40  ;;  %v7594_v40 = vld [vmem:[#allocation9 + $0x100] ss:$8 sps:$4 sm:$0xff]  }
 0x270   : > { %2638 = vmatpush1.bf16.msra.mxu0 %v7508_v15  ;;  %6279 = vmatprep.mubr.msk.bf16.mxu0 %vm8620_vm1, %v6278_v62  ;;  %v7546_v15 = vld [vmem:[#allocation6 + $0x804] ss:$8 sps:$4 sm:$0xff]   ;;  %v7621_v62 = vld [vmem:[#allocation9 + $0x190] ss:$8 sps:$4 sm:$0xff]  }
 0x271   : > { %2639 = vmatprep.subr.bf16.mxu0 %v7513_v41  ;;  %3404 = vmatpush1.bf16.msra.mxu1 %v7594_v40  ;;  %v7622_v41 = vld [vmem:[#allocation9 + $0x1a4] ss:$8 sps:$4 sm:$0xff]   ;;  %v7627_v40 = vld [vmem:[#allocation9 + $0x1b0] ss:$8 sps:$4 sm:$0xff]  }
 0x272   : > { %3405 = vmatprep.subr.bf16.mxu1 %v7595_v31  ;;  %v7628_v31 = vld [vmem:[#allocation9 + $0x1c4] ss:$8 sps:$4 sm:$0xff]  }
 0x274   : > { %2640 = vmatpush1.bf16.msra.mxu0 %v7511_v21  ;;  %v7544_v21 = vld [vmem:[#allocation6 + $0x800] ss:$8 sps:$4 sm:$0xff]  }
 0x275   : > { %2641 = vmatprep.subr.bf16.mxu0 %v7516_v29  ;;  %3406 = vmatpush1.bf16.msra.mxu1 %v7597_v63  ;;  %v7549_v29 = vld [vmem:[#allocation6 + $0x814] ss:$8 sps:$4 sm:$0xff]   ;;  %v7630_v63 = vld [vmem:[#allocation9 + $0x1c0] ss:$8 sps:$4 sm:$0xff]  }
 0x276   : > { %3407 = vmatprep.subr.bf16.mxu1 %v7598_v59  ;;  %v7553_v59 = vld [vmem:[#allocation6 + $0x830] ss:$8 sps:$4 sm:$0xff]  }
 0x277   : > { %6282 = vmatmul.mubr.msk.bf16.gmra.mrb[12].mxu0 %vm8620_vm1, %v6281_v38  ;;  %v7624_v38 = vld [vmem:[#allocation9 + $0x1a0] ss:$8 sps:$4 sm:$0xff]  }
 0x278   : > { %2642 = vmatpush1.bf16.msra.mxu0 %v7514_v27  ;;  %2661 = vmatprep.mubr.bf16.mxu0 %v8575_v45  ;;  %v7603_v45 = vld [vmem:[#allocation9 + $0x130] ss:$8 sps:$4 sm:$0xff]   ;;  %v7625_v27 = vld [vmem:[#allocation9 + $0x1b4] ss:$8 sps:$4 sm:$0xff]  }
 0x279   : > { %2643 = vmatprep.subr.bf16.mxu0 %v7519_v58  ;;  %3408 = vmatpush1.bf16.msra.mxu1 %v7600_v20  ;;  %v7547_v58 = vld [vmem:[#allocation6 + $0x810] ss:$8 sps:$4 sm:$0xff]   ;;  %v9578_v20 = vmov 0.0  }
 0x27a   : > { %3409 = vmatprep.subr.bf16.mxu1 %v7601_v12  ;;  %v2435_v12 = vpack.c.bf16 %v9578_v20, %v8838_v61  ;;  %v7639_v61 = vld [vmem:[#allocation9 + $0x1f0] ss:$8 sps:$4 sm:$0xff]  }
 0x27c   : > { %2644 = vmatpush1.bf16.msra.mxu0 %v7517_v7  ;;  %v7550_v7 = vld [vmem:[#allocation6 + $0x820] ss:$8 sps:$4 sm:$0xff]  }
 0x27d   : > { %2645 = vmatprep.subr.bf16.mxu0 %v7522_v1  ;;  %3410 = vmatpush1.bf16.msra.mxu1 %v7603_v45  ;;  %v7555_v1 = vld [vmem:[#allocation6 + $0x834] ss:$8 sps:$4 sm:$0xff]   ;;  %v7562_v45 = vld [vmem:[#allocation6 + $0x860] ss:$8 sps:$4 sm:$0xff]  }
 0x27e   : > { %3411 = vmatprep.subr.bf16.mxu1 %v7604_v48  ;;  %v7567_v48 = vld [vmem:[#allocation6 + $0x874] ss:$8 sps:$4 sm:$0xff]  }
 0x280   : > { %2646 = vmatpush1.bf16.msra.mxu0 %v7520_v28  ;;  %v7633_v28 = vld [vmem:[#allocation9 + $0x1d0] ss:$8 sps:$4 sm:$0xff]  }
 0x281   : > { %2647 = vmatprep.subr.bf16.mxu0 %v7525_v34  ;;  %3412 = vmatpush1.bf16.msra.mxu1 %v7606_v6  ;;  %v7556_v34 = vld [vmem:[#allocation6 + $0x840] ss:$8 sps:$4 sm:$0xff]   ;;  %v7573_v6 = vld [vmem:[#allocation6 + $0x894] ss:$8 sps:$4 sm:$0xff]  }
 0x282   : > { %3413 = vmatprep.subr.bf16.mxu1 %v7607_v43  ;;  %v7571_v43 = vld [vmem:[#allocation6 + $0x890] ss:$8 sps:$4 sm:$0xff]  }
 0x284   : > { %2648 = vmatpush1.bf16.msra.mxu0 %v7523_v8  ;;  %v7561_v8 = vld [vmem:[#allocation6 + $0x854] ss:$8 sps:$4 sm:$0xff]  }
 0x285   : > { %2649 = vmatprep.subr.bf16.mxu0 %v7528_v33  ;;  %3414 = vmatpush1.bf16.msra.mxu1 %v7609_v54  ;;  %v2434_v33 = vpack.c.bf16 %v9578_v20, %v8854_v36  ;;  %v7579_v54 = vld [vmem:[#allocation6 + $0x8b4] ss:$8 sps:$4 sm:$0xff]   ;;  %v9534_v36 = vsub.s32 1, %v8601_v60 }
 0x286   : > { %3415 = vmatprep.subr.bf16.mxu1 %v7610_v35  ;;  %v7577_v35 = vld [vmem:[#allocation6 + $0x8b0] ss:$8 sps:$4 sm:$0xff]  }
 0x288   : > { %2650 = vmatpush1.bf16.msra.mxu0 %v7526_v23  ;;  %v7565_v23 = vld [vmem:[#allocation6 + $0x870] ss:$8 sps:$4 sm:$0xff]  }
 0x289   : > { %2651 = vmatprep.subr.bf16.mxu0 %v7531_v10  ;;  %3416 = vmatpush1.bf16.msra.mxu1 %v7612_v47  ;;  %v7568_v10 = vld [vmem:[#allocation6 + $0x880] ss:$8 sps:$4 sm:$0xff]   ;;  %v7583_v47 = vld [vmem:[#allocation6 + $0x8d0] ss:$8 sps:$4 sm:$0xff]  }
 0x28a   : > { %3417 = vmatprep.subr.bf16.mxu1 %v7613_v50  ;;  %v7588_v50 = vld [vmem:[#allocation6 + $0x8e4] ss:$8 sps:$4 sm:$0xff]  }
 0x28c   : > { %2652 = vmatpush1.bf16.msra.mxu0 %v7529_v26  ;;  %v7576_v26 = vld [vmem:[#allocation6 + $0x8a4] ss:$8 sps:$4 sm:$0xff]  }
 0x28d   : > { %2653 = vmatprep.subr.bf16.mxu0 %v7534_v56  ;;  %3418 = vmatpush1.bf16.msra.mxu1 %v7615_v57  ;;  %v7574_v56 = vld [vmem:[#allocation6 + $0x8a0] ss:$8 sps:$4 sm:$0xff]   ;;  %v7589_v57 = vld [vmem:[#allocation6 + $0x8f0] ss:$8 sps:$4 sm:$0xff]  }
 0x28e   : > { %3419 = vmatprep.subr.bf16.mxu1 %v7616_v32  ;;  %v6366_v32 = vpack.c.bf16 %v8716_v37, %v418_v49  ;;  %v7642_v49 = vld [vmem:[#allocation9 + $0x4] ss:$8 sps:$4 sm:$0xff]  }
 0x290   : > { %2654 = vmatpush1.bf16.msra.mxu0 %v7532_v14  ;;  %v7582_v14 = vld [vmem:[#allocation6 + $0x8c4] ss:$8 sps:$4 sm:$0xff]  }
 0x291   : > { %2655 = vmatprep.subr.bf16.mxu0 %v7537_v42  ;;  %3420 = vmatpush1.bf16.msra.mxu1 %v7618_v13  ;;  %v7585_v42 = vld [vmem:[#allocation6 + $0x8d4] ss:$8 sps:$4 sm:$0xff]  }
 0x292   : > { %3421 = vmatprep.subr.bf16.mxu1 %v7619_v51 }
 0x294   : > { %2656 = vmatpush1.bf16.msra.mxu0 %v7535_v30  ;;  %v7586_v30 = vld [vmem:[#allocation6 + $0x8e0] ss:$8 sps:$4 sm:$0xff]  }
 0x295   : > { %2657 = vmatprep.subr.bf16.mxu0 %v7540_v18  ;;  %3422 = vmatpush1.bf16.msra.mxu1 %v7621_v62  ;;  %v7591_v18 = vld [vmem:[#allocation6 + $0x8f4] ss:$8 sps:$4 sm:$0xff]  }
 0x296   : > { %3423 = vmatprep.subr.bf16.mxu1 %v7622_v41 }
 0x298   : > { %2658 = vmatpush1.bf16.msra.mxu0 %v7538_v2  ;;  %v3002_v2 = vld [vmem:[#allocation8] sm:$0x3] }
 0x299   : > { %2659 = vmatprep.subr.bf16.mxu0 %v7543_v25  ;;  %3424 = vmatpush1.bf16.msra.mxu1 %v7624_v38  ;;  %v9004_v25 = vrot.slane %v3002_v2, %v9534_v36 }
 0x29a   : > { %3425 = vmatprep.subr.bf16.mxu1 %v7625_v27 }
 0x29c   : > { %2660 = vmatpush1.bf16.msra.mxu0 %v7541_v5 }
 0x29d   : > { %2913 = vmatprep.subr.bf16.mxu0 %v7546_v15  ;;  %3426 = vmatpush1.bf16.msra.mxu1 %v7627_v40 }
 0x29e   : > { %3427 = vmatprep.subr.bf16.mxu1 %v7628_v31 }
 0x29f   : > { %2662 = vmatmul.mubr.bf16.vlgmr.msra.gmra.mrb[0].mxu0 %v8589_v53  ;;  %v7631_v53 = vld [vmem:[#allocation9 + $0x1d4] ss:$8 sps:$4 sm:$0xff]  }
 0x2a0   : > { %2914 = vmatpush1.bf16.msra.mxu0 %v7544_v21  ;;  %2671 = vmatprep.mubr.bf16.mxu0 %v8593_v55  ;;  %v7558_v55 = vld [vmem:[#allocation6 + $0x844] ss:$8 sps:$4 sm:$0xff]  }
 0x2a1   : > { %2915 = vmatprep.subr.bf16.mxu0 %v7549_v29  ;;  %3428 = vmatpush1.bf16.msra.mxu1 %v7630_v63 }
 0x2a2   : > { %3429 = vmatprep.subr.bf16.mxu1 %v7631_v53 }
 0x2a4   : > { %2916 = vmatpush1.bf16.msra.mxu0 %v7547_v58 }
 0x2a5   : > { %2917 = vmatprep.subr.bf16.mxu0 %v7552_v17  ;;  %3430 = vmatpush1.bf16.msra.mxu1 %v7633_v28  ;;  %v7645_v28 = vld [vmem:[#allocation9 + $0x14] ss:$8 sps:$4 sm:$0xff]  }
 0x2a7   : > { %2672 = vmatmul.mubr.bf16.gmra.mrb[4].mxu0 %v8614_v0  ;;  %v7559_v0 = vld [vmem:[#allocation6 + $0x850] ss:$8 sps:$4 sm:$0xff]  }
 0x2a8   : > { %2918 = vmatpush1.bf16.msra.mxu0 %v7550_v7  ;;  %2681 = vmatprep.mubr.bf16.mxu0 %v8618_v3  ;;  %v7564_v3 = vld [vmem:[#allocation6 + $0x864] ss:$8 sps:$4 sm:$0xff]  }
 0x2a9   : > { %2919 = vmatprep.subr.bf16.mxu0 %v7555_v1  ;;  %v7640_v1 = vld [vmem:[#allocation9] ss:$8 sps:$4 sm:$0xff]  }
 0x2ac   : > { %2920 = vmatpush1.bf16.msra.mxu0 %v7553_v59 }
 0x2ad   : > { %2921 = vmatprep.subr.bf16.mxu0 %v7558_v55 }
 0x2af   : > { %2682 = vmatmul.mubr.bf16.gmra.mrb[8].mxu0 %v8638_v11  ;;  %v7570_v11 = vld [vmem:[#allocation6 + $0x884] ss:$8 sps:$4 sm:$0xff]  }
 0x2b0   : > { %2922 = vmatpush1.bf16.msra.mxu0 %v7556_v34  ;;  %2691 = vmatprep.mubr.bf16.mxu0 %v2435_v12 }
 0x2b1   : > { %2923 = vmatprep.subr.bf16.mxu0 %v7561_v8 }
 0x2b4   : > { %2924 = vmatpush1.bf16.msra.mxu0 %v7559_v0 }
 0x2b5   : > { %2925 = vmatprep.subr.bf16.mxu0 %v7564_v3 }
 0x2b7   : > { %2692 = vmatmul.mubr.bf16.gmra.mrb[12].mxu0 %v2434_v33 }
 0x2b8   : > { %2926 = vmatpush1.bf16.msra.mxu0 %v7562_v45  ;;  %6349 = vmatprep.mubr.msk.bf16.mxu0 %vm8726_vm3, %v8747_v22  ;;  %v7580_v22 = vld [vmem:[#allocation6 + $0x8c0] ss:$8 sps:$4 sm:$0xff]  }
 0x2b9   : > { %2927 = vmatprep.subr.bf16.mxu0 %v7567_v48 }
 0x2bc   : > { %2928 = vmatpush1.bf16.msra.mxu0 %v7565_v23 }
 0x2bd   : > { %2929 = vmatprep.subr.bf16.mxu0 %v7570_v11 }
 0x2c0   : > { %2930 = vmatpush1.bf16.msra.mxu0 %v7568_v10 }
 0x2c1   : > { %2931 = vmatprep.subr.bf16.mxu0 %v7573_v6  ;;  %v7643_v6 = vld [vmem:[#allocation9 + $0x10] ss:$8 sps:$4 sm:$0xff]  }
 0x2c4   : > { %2932 = vmatpush1.bf16.msra.mxu0 %v7571_v43 }
 0x2c5   : > { %2933 = vmatprep.subr.bf16.mxu0 %v7576_v26  ;;  %v7655_v26 = vld [vmem:[#allocation9 + $0x50] ss:$8 sps:$4 sm:$0xff]  }
 0x2c8   : > { %2934 = vmatpush1.bf16.msra.mxu0 %v7574_v56 }
 0x2c9   : > { %2935 = vmatprep.subr.bf16.mxu0 %v7579_v54 }
 0x2cc   : > { %2936 = vmatpush1.bf16.msra.mxu0 %v7577_v35 }
 0x2cd   : > { %2937 = vmatprep.subr.bf16.mxu0 %v7582_v14 }
 0x2d0   : > { %2938 = vmatpush1.bf16.msra.mxu0 %v7580_v22  ;;  %v7648_v22 = vld [vmem:[#allocation9 + $0x24] ss:$8 sps:$4 sm:$0xff]  }
 0x2d1   : > { %2939 = vmatprep.subr.bf16.mxu0 %v7585_v42 }
 0x2d4   : > { %2940 = vmatpush1.bf16.msra.mxu0 %v7583_v47 }
 0x2d5   : > { %2941 = vmatprep.subr.bf16.mxu0 %v7588_v50 }
 0x2d8   : > { %2942 = vmatpush1.bf16.msra.mxu0 %v7586_v30 }
 0x2d9   : > { %2943 = vmatprep.subr.bf16.mxu0 %v7591_v18 }
 0x2dc   : > { %2944 = vmatpush1.bf16.msra.mxu0 %v7589_v57 }
 0x2df   : > { %6352 = vmatmul.mubr.msk.bf16.vlgmr.msra.gmra.mrb[0].mxu0 %vm8726_vm3, %v8761_v39  ;;  %v6369_v39 = vpack.c.bf16 %v8716_v37, %v417_v19 }
 0x2e0   : > { %6355 = vmatprep.mubr.msk.bf16.mxu0 %vm8726_vm3, %v8767_v52  ;;  %v7634_v52 = vld [vmem:[#allocation9 + $0x1e4] ss:$8 sps:$4 sm:$0xff]  }
 0x2e1   : > { %3431 = vmatprep.subr.bf16.mxu1 %v7634_v52 }
 0x2e7   : > { %6358 = vmatmul.mubr.msk.bf16.gmra.mrb[4].mxu0 %vm8726_vm3, %v8789_v24  ;;  %v7636_v24 = vld [vmem:[#allocation9 + $0x1e0] ss:$8 sps:$4 sm:$0xff]  }
 0x2e8   : > { %6361 = vmatprep.mubr.msk.bf16.mxu0 %vm8726_vm3, %v8795_v44  ;;  %3432 = vmatpush1.bf16.msra.mxu1 %v7636_v24  ;;  %v7637_v44 = vld [vmem:[#allocation9 + $0x1f4] ss:$8 sps:$4 sm:$0xff]  }
 0x2e9   : > { %3433 = vmatprep.subr.bf16.mxu1 %v7637_v44  ;;  %v7646_v44 = vld [vmem:[#allocation9 + $0x20] ss:$8 sps:$4 sm:$0xff]  }
 0x2ec   : > { %3434 = vmatpush1.bf16.msra.mxu1 %v7639_v61 }
 0x2ed   : > { %3636 = vmatprep.subr.bf16.mxu1 %v7642_v49 }
 0x2ef   : > { %6364 = vmatmul.mubr.msk.bf16.gmra.mrb[8].mxu0 %vm8726_vm3, %v8809_v16  ;;  %v9535_v16 = vsub.s32 0, %v8601_v60 }
 0x2f0   : > { %6367 = vmatprep.mubr.msk.bf16.mxu0 %vm8726_vm3, %v6366_v32 }
 0x2f1   : > { %v9000_v19 = vrot.slane %v3002_v2, %v9535_v16  ;;  %v7651_v2 = vld [vmem:[#allocation9 + $0x34] ss:$8 sps:$4 sm:$0xff]  }
 0x2f7   : > { %6370 = vmatmul.mubr.msk.bf16.gmra.mrb[12].mxu0 %vm8726_vm3, %v6369_v39 }
 0x3b2   : > { %v2947_v13 = vpop.f32.mrb[0].mxu0 }
 0x3b3   : > { %v3014_v51 = vadd.f32 %v9000_v19, %v2947_v13  ;;  %v2949_v5 = vpop.f32.mrb[1].mxu0 }
 0x3b4   : > { %v3015_v15 = vadd.f32 %v9004_v25, %v2949_v5  ;;  %v2951_v62 = vpop.f32.mrb[2].mxu0 }
 0x3b5   : > { %v9008_v41 = vmax.f32 %v3014_v51, 0.0  ;;  %v3016_v21 = vadd.f32 %v9000_v19, %v2951_v62  ;;  %v2953_v29 = vpop.f32.mrb[3].mxu0 }
 0x3b6   : > { %v9011_v38 = vmax.f32 %v3015_v15, 0.0  ;;  %v3017_v27 = vadd.f32 %v9004_v25, %v2953_v29 }
 0x3b7   : > { %v9014_v58 = vmax.f32 %v3016_v21, 0.0  ;;  %v9538_v17 = vrot.slane %v9008_v41, 7  ;;  %v9536_v40 = vrot.slane %v9008_v41, 1  ;;  %v3202_v55 = vpack.c.bf16 %v9008_v41, %v9578_v20 }
 0x3b8   : > { %v9018_v31 = vmax.f32 %v3017_v27, 0.0  ;;  %v3203_v7 = vpack.c.bf16 %v9011_v38, %v9578_v20  ;;  %v9539_v63 = vrot.slane %v9011_v38, 7  ;;  %v9537_v34 = vrot.slane %v9011_v38, 1 }
 0x3b9   : > { %v3086_v53 = vrot.slane %v9014_v58, 7  ;;  %v3126_v59 = vrot.slane %v9014_v58, 1 }
 0x3ba   : > { %v3087_v8 = vrot.slane %v9018_v31, 7  ;;  %v3127_v0 = vrot.slane %v9018_v31, 1  ;;  %v2957_v3 = vpop.f32.mrb[4].mxu0  ;;  %3435 = vmatprep.mubr.bf16.mxu1 %v3203_v7 }
 0x3bb   : > { %v9034_v33 = vpack.c.bf16 %v3086_v53, %v9538_v17  ;;  %v9038_v45 = vpack.c.bf16 %v3126_v59, %v9536_v40  ;;  %v3018_v48 = vadd.f32 %v9000_v19, %v2957_v3  ;;  %v2959_v23 = vpop.f32.mrb[5].mxu0  ;;  %3436 = vmatmul.mubr.bf16.vlgmr.msra.gmra.mrb[0].mxu1 %v3202_v55 }
 0x3bc   : > { %v3019_v11 = vadd.f32 %v9004_v25, %v2959_v23  ;;  %3637 = vmatpush1.bf16.msra.mxu1 %v7640_v1  ;;  %v2961_v10 = vpop.f32.mrb[6].mxu0  ;;  %v9044_v43 = vpack.c.bf16 %v3087_v8, %v9539_v63  ;;  %v9050_v56 = vpack.c.bf16 %v3127_v0, %v9537_v34 }
 0x3bd   : > { %v9052_v54 = vmax.f32 %v3018_v48, 0.0  ;;  %v3020_v35 = vadd.f32 %v9000_v19, %v2961_v10  ;;  %v2963_v14 = vpop.f32.mrb[7].mxu0  ;;  %3638 = vmatprep.subr.bf16.mxu1 %v7645_v28 }
 0x3be   : > { %v9055_v42 = vmax.f32 %v3019_v11, 0.0  ;;  %v3021_v47 = vadd.f32 %v9004_v25, %v2963_v14 }
 0x3bf   : > { %v3088_v50 = vrot.slane %v9052_v54, 7  ;;  %v3128_v30 = vrot.slane %v9052_v54, 1  ;;  %v9060_v18 = vmax.f32 %v3020_v35, 0.0  ;;  %v9064_v57 = vpack.c.bf16 %v9052_v54, %v9014_v58 }
 0x3c0   : > { %v3089_v32 = vrot.slane %v9055_v42, 7  ;;  %v3129_v39 = vrot.slane %v9055_v42, 1  ;;  %v9068_v52 = vmax.f32 %v3021_v47, 0.0  ;;  %3639 = vmatpush1.bf16.msra.mxu1 %v7643_v6  ;;  %v9072_v24 = vpack.c.bf16 %v9055_v42, %v9018_v31  ;;  %v7654_v6 = vld [vmem:[#allocation9 + $0x44] ss:$8 sps:$4 sm:$0xff]  }
 0x3c1   : > { %v3090_v61 = vrot.slane %v9060_v18, 7  ;;  %v3130_v49 = vrot.slane %v9060_v18, 1  ;;  %3640 = vmatprep.subr.bf16.mxu1 %v7648_v22  ;;  %v9076_v13 = vpack.c.bf16 %v3088_v50, %v3086_v53  ;;  %v9078_v51 = vpack.c.bf16 %v3128_v30, %v3126_v59 }
 0x3c2   : > { %v3091_v5 = vrot.slane %v9068_v52, 7  ;;  %v3131_v15 = vrot.slane %v9068_v52, 1  ;;  %v2967_v62 = vpop.f32.mrb[8].mxu0  ;;  %3445 = vmatprep.mubr.bf16.mxu1 %v9072_v24  ;;  %v9083_v21 = vpack.c.bf16 %v3089_v32, %v3087_v8  ;;  %v9085_v29 = vpack.c.bf16 %v3129_v39, %v3127_v0  ;;  %v7649_v8 = vld [vmem:[#allocation9 + $0x30] ss:$8 sps:$4 sm:$0xff]  }
 0x3c3   : > { %v3022_v27 = vadd.f32 %v9000_v19, %v2967_v62  ;;  %v2969_v7 = vpop.f32.mrb[9].mxu0  ;;  %3446 = vmatmul.mubr.bf16.gmra.mrb[4].mxu1 %v9064_v57  ;;  %v9089_v1 = vpack.c.bf16 %v3090_v61, %v3088_v50  ;;  %v9100_v48 = vpack.c.bf16 %v3130_v49, %v3128_v30  ;;  %v7652_v62 = vld [vmem:[#allocation9 + $0x40] ss:$8 sps:$4 sm:$0xff]  }
 0x3c4   : > { %v3023_v55 = vadd.f32 %v9004_v25, %v2969_v7  ;;  %3641 = vmatpush1.bf16.msra.mxu1 %v7646_v44  ;;  %v2971_v28 = vpop.f32.mrb[10].mxu0  ;;  %v9096_v0 = vpack.c.bf16 %v3091_v5, %v3089_v32  ;;  %v9098_v3 = vpack.c.bf16 %v3131_v15, %v3129_v39 }
 0x3c5   : > { %v9102_v23 = vmax.f32 %v3022_v27, 0.0  ;;  %v3024_v11 = vadd.f32 %v9000_v19, %v2971_v28  ;;  %v2973_v10 = vpop.f32.mrb[11].mxu0  ;;  %3642 = vmatprep.subr.bf16.mxu1 %v7651_v2 }
 0x3c6   : > { %v9105_v35 = vmax.f32 %v3023_v55, 0.0  ;;  %v3025_v14 = vadd.f32 %v9004_v25, %v2973_v10  ;;  %v7657_v55 = vld [vmem:[#allocation9 + $0x54] ss:$8 sps:$4 sm:$0xff]  }
 0x3c7   : > { %v3092_v22 = vrot.slane %v9102_v23, 7  ;;  %v3132_v47 = vrot.slane %v9102_v23, 1  ;;  %v9110_v50 = vmax.f32 %v3024_v11, 0.0  ;;  %v9114_v30 = vpack.c.bf16 %v9102_v23, %v9060_v18 }
 0x3c8   : > { %v3093_v32 = vrot.slane %v9105_v35, 7  ;;  %v3133_v39 = vrot.slane %v9105_v35, 1  ;;  %v9118_v44 = vmax.f32 %v3025_v14, 0.0  ;;  %3643 = vmatpush1.bf16.msra.mxu1 %v7649_v8  ;;  %v9122_v2 = vpack.c.bf16 %v9105_v35, %v9068_v52 }
 0x3c9   : > { %9579 = vst [vmem:[#allocation18_spill] sm:$0xff] %v9114_v30  ;;  %v3094_v27 = vrot.slane %v9110_v50, 7  ;;  %v3134_v7 = vrot.slane %v9110_v50, 1  ;;  %3644 = vmatprep.subr.bf16.mxu1 %v7654_v6  ;;  %v9126_v28 = vpack.c.bf16 %v3092_v22, %v3090_v61  ;;  %v9128_v11 = vpack.c.bf16 %v3132_v47, %v3130_v49  ;;  %v7660_v49 = vld [vmem:[#allocation9 + $0x64] ss:$8 sps:$4 sm:$0xff]  }
 0x3ca   : > { %9580 = vst [vmem:[#allocation19_spill] sm:$0xff] %v9122_v2  ;;  %v3095_v10 = vrot.slane %v9118_v44, 7  ;;  %v3135_v14 = vrot.slane %v9118_v44, 1  ;;  %v2977_v8 = vpop.f32.mrb[12].mxu0  ;;  %3455 = vmatprep.mubr.bf16.mxu1 %v9122_v2  ;;  %v9133_v36 = vpack.c.bf16 %v3093_v32, %v3091_v5  ;;  %v9135_v16 = vpack.c.bf16 %v3133_v39, %v3131_v15 }
 0x3cb   : > { %v3026_v59 = vadd.f32 %v9000_v19, %v2977_v8  ;;  %v2979_v53 = vpop.f32.mrb[13].mxu0  ;;  %3456 = vmatmul.mubr.bf16.gmra.mrb[8].mxu1 %v9114_v30  ;;  %v9139_v61 = vpack.c.bf16 %v3094_v27, %v3092_v22  ;;  %v9150_v8 = vpack.c.bf16 %v3134_v7, %v3132_v47 }
 0x3cc   : > { %v3027_v12 = vadd.f32 %v9004_v25, %v2979_v53  ;;  %3645 = vmatpush1.bf16.msra.mxu1 %v7652_v62  ;;  %v2981_v5 = vpop.f32.mrb[14].mxu0  ;;  %v9146_v15 = vpack.c.bf16 %v3095_v10, %v3093_v32  ;;  %v9148_v40 = vpack.c.bf16 %v3135_v14, %v3133_v39  ;;  %v9581_v62 = vrot.slane %v9011_v38, 7 }
 0x3cd   : > { %v9152_v34 = vmax.f32 %v3026_v59, 0.0  ;;  %v3028_v22 = vadd.f32 %v9000_v19, %v2981_v5  ;;  %v2983_v17 = vpop.f32.mrb[15].mxu0  ;;  %3646 = vmatprep.subr.bf16.mxu1 %v7657_v55 }
 0x3ce   : > { %v9155_v63 = vmax.f32 %v3027_v12, 0.0  ;;  %v3029_v53 = vadd.f32 %v9004_v25, %v2983_v17  ;;  %v6436_v32 = vpack.c.bf16 %v9581_v62, %v8633_v9  ;;  %v7658_v17 = vld [vmem:[#allocation9 + $0x60] ss:$8 sps:$4 sm:$0xff]   ;;  %v7663_v62 = vld [vmem:[#allocation9 + $0x74] ss:$8 sps:$4 sm:$0xff]  }
 0x3cf   : > { %v3096_v39 = vrot.slane %v9152_v34, 7  ;;  %v3136_v47 = vrot.slane %v9152_v34, 1  ;;  %v9163_v6 = vmax.f32 %v3028_v22, 0.0  ;;  %v9167_v19 = vpack.c.bf16 %v9152_v34, %v9110_v50 }
 0x3d0   : > { %v3097_v59 = vrot.slane %v9155_v63, 7  ;;  %v3137_v12 = vrot.slane %v9155_v63, 1  ;;  %v9171_v55 = vmax.f32 %v3029_v53, 0.0  ;;  %3647 = vmatpush1.bf16.msra.mxu1 %v7655_v26  ;;  %v9175_v25 = vpack.c.bf16 %v9155_v63, %v9118_v44 }
 0x3d1   : > { %9582 = vst [vmem:[#allocation20_spill] sm:$0xff] %v9167_v19  ;;  %v9545_v5 = vrot.slane %v9163_v6, 7  ;;  %v9546_v22 = vrot.slane %v9163_v6, 1  ;;  %3648 = vmatprep.subr.bf16.mxu1 %v7660_v49  ;;  %v9179_v60 = vpack.c.bf16 %v3096_v39, %v3094_v27  ;;  %v9181_v20 = vpack.c.bf16 %v3136_v47, %v3134_v7  ;;  %v7666_v27 = vld [vmem:[#allocation9 + $0x84] ss:$8 sps:$4 sm:$0xff]  }
 0x3d2   : > { %v9548_v30 = vrot.slane %v9171_v55, 7  ;;  %3465 = vmatprep.mubr.bf16.mxu1 %v9175_v25  ;;  %v9186_v26 = vpack.c.bf16 %v3097_v59, %v3095_v10  ;;  %v9188_v2 = vpack.c.bf16 %v3137_v12, %v3135_v14  ;;  %v7661_v10 = vld [vmem:[#allocation9 + $0x70] ss:$8 sps:$4 sm:$0xff]   ;;  %v7664_v7 = vld [vmem:[#allocation9 + $0x80] ss:$8 sps:$4 sm:$0xff]  }
 0x3d3   : > { %3466 = vmatmul.mubr.bf16.gmra.mrb[12].mxu1 %v9167_v19  ;;  %v9193_v49 = vpack.c.bf16 %v9545_v5, %v3096_v39  ;;  %v9201_v53 = vpack.c.bf16 %v9546_v22, %v3136_v47  ;;  %v9583_v39 = vrot.slane %v9171_v55, 1  ;;  %v7669_v47 = vld [vmem:[#allocation9 + $0x94] ss:$8 sps:$4 sm:$0xff]   ;;  %v7672_v22 = vld [vmem:[#allocation9 + $0xa4] ss:$8 sps:$4 sm:$0xff]  }
 0x3d4   : > { %3649 = vmatpush1.bf16.msra.mxu1 %v7658_v17  ;;  %6437 = vmatprep.mubr.msk.bf16.mxu1 %vm8620_vm1, %v6436_v32  ;;  %v9207_v14 = vpack.c.bf16 %v9548_v30, %v3097_v59  ;;  %v7667_v17 = vld [vmem:[#allocation9 + $0x90] ss:$8 sps:$4 sm:$0xff]   ;;  %v7670_v32 = vld [vmem:[#allocation9 + $0xa0] ss:$8 sps:$4 sm:$0xff]   ;;  %v7675_v19 = vld [vmem:[#allocation9 + $0xb4] ss:$8 sps:$4 sm:$0xff]  }
 0x3d5   : > { %v9211_v5 = vpack.c.bf16 %v9583_v39, %v3137_v12  ;;  %3650 = vmatprep.subr.bf16.mxu1 %v7663_v62  ;;  %v7673_v59 = vld [vmem:[#allocation9 + $0xb0] ss:$8 sps:$4 sm:$0xff]   ;;  %v7678_v30 = vld [vmem:[#allocation9 + $0xc4] ss:$8 sps:$4 sm:$0xff]   ;;  %v7676_v12 = vld [vmem:[#allocation9 + $0xc0] ss:$8 sps:$4 sm:$0xff]  }
 0x3d6   : > { %v7681_v62 = vld [vmem:[#allocation9 + $0xd4] ss:$8 sps:$4 sm:$0xff]  }
 0x3d7   : > { %v7687_v39 = vld [vmem:[#allocation9 + $0xf4] ss:$8 sps:$4 sm:$0xff]  }
 0x3d8   : > { %3651 = vmatpush1.bf16.msra.mxu1 %v7661_v10  ;;  %v7679_v10 = vld [vmem:[#allocation9 + $0xd0] ss:$8 sps:$4 sm:$0xff]  }
 0x3d9   : > { %3652 = vmatprep.subr.bf16.mxu1 %v7666_v27  ;;  %v7684_v27 = vld [vmem:[#allocation9 + $0xe4] ss:$8 sps:$4 sm:$0xff]  }
 0x3dc   : > { %3653 = vmatpush1.bf16.msra.mxu1 %v7664_v7  ;;  %v7682_v7 = vld [vmem:[#allocation9 + $0xe0] ss:$8 sps:$4 sm:$0xff]  }
 0x3dd   : > { %3654 = vmatprep.subr.bf16.mxu1 %v7669_v47  ;;  %v7685_v47 = vld [vmem:[#allocation9 + $0xf0] ss:$8 sps:$4 sm:$0xff]  }
 0x3e0   : > { %3655 = vmatpush1.bf16.msra.mxu1 %v7667_v17  ;;  %v7688_v17 = vld [vmem:[#allocation9 + $0x200] ss:$8 sps:$4 sm:$0xff]  }
 0x3e1   : > { %3656 = vmatprep.subr.bf16.mxu1 %v7672_v22  ;;  %v7690_v22 = vld [vmem:[#allocation9 + $0x204] ss:$8 sps:$4 sm:$0xff]  }
 0x3e4   : > { %3657 = vmatpush1.bf16.msra.mxu1 %v7670_v32 }
 0x3e5   : > { %3658 = vmatprep.subr.bf16.mxu1 %v7675_v19  ;;  %v9584_v19 = vrot.slane %v9008_v41, 7 }
 0x3e7   : > { %v6439_v32 = vpack.c.bf16 %v9584_v19, %v8633_v9  ;;  %v7706_v19 = vld [vmem:[#allocation9 + $0x260] ss:$8 sps:$4 sm:$0xff]  }
 0x3e8   : > { %3659 = vmatpush1.bf16.msra.mxu1 %v7673_v59  ;;  %v7691_v59 = vld [vmem:[#allocation9 + $0x210] ss:$8 sps:$4 sm:$0xff]  }
 0x3e9   : > { %3660 = vmatprep.subr.bf16.mxu1 %v7678_v30  ;;  %v7693_v30 = vld [vmem:[#allocation9 + $0x214] ss:$8 sps:$4 sm:$0xff]  }
 0x3ec   : > { %3661 = vmatpush1.bf16.msra.mxu1 %v7676_v12  ;;  %v7696_v12 = vld [vmem:[#allocation9 + $0x224] ss:$8 sps:$4 sm:$0xff]  }
 0x3ed   : > { %3662 = vmatprep.subr.bf16.mxu1 %v7681_v62  ;;  %v7694_v62 = vld [vmem:[#allocation9 + $0x220] ss:$8 sps:$4 sm:$0xff]  }
 0x3f0   : > { %3663 = vmatpush1.bf16.msra.mxu1 %v7679_v10  ;;  %v7699_v10 = vld [vmem:[#allocation9 + $0x234] ss:$8 sps:$4 sm:$0xff]  }
 0x3f1   : > { %3664 = vmatprep.subr.bf16.mxu1 %v7684_v27  ;;  %v7697_v27 = vld [vmem:[#allocation9 + $0x230] ss:$8 sps:$4 sm:$0xff]  }
 0x3f4   : > { %3665 = vmatpush1.bf16.msra.mxu1 %v7682_v7  ;;  %v7702_v7 = vld [vmem:[#allocation9 + $0x244] ss:$8 sps:$4 sm:$0xff]  }
 0x3f5   : > { %3666 = vmatprep.subr.bf16.mxu1 %v7687_v39  ;;  %v7700_v39 = vld [vmem:[#allocation9 + $0x240] ss:$8 sps:$4 sm:$0xff]  }
 0x3f8   : > { %3667 = vmatpush1.bf16.msra.mxu1 %v7685_v47  ;;  %v7705_v47 = vld [vmem:[#allocation9 + $0x254] ss:$8 sps:$4 sm:$0xff]  }
 0x3f9   : > { %3910 = vmatprep.subr.bf16.mxu1 %v7690_v22  ;;  %v7703_v22 = vld [vmem:[#allocation9 + $0x250] ss:$8 sps:$4 sm:$0xff]  }
 0x3fb   : > { %6440 = vmatmul.mubr.msk.bf16.vlgmr.msra.gmra.mrb[0].mxu1 %vm8620_vm1, %v6439_v32  ;;  %v7711_v32 = vld [vmem:[#allocation9 + $0x274] ss:$8 sps:$4 sm:$0xff]  }
 0x3fc   : > { %6443 = vmatprep.mubr.msk.bf16.mxu1 %vm8620_vm1, %v9083_v21  ;;  %3911 = vmatpush1.bf16.msra.mxu1 %v7688_v17  ;;  %v7708_v17 = vld [vmem:[#allocation9 + $0x264] ss:$8 sps:$4 sm:$0xff]  }
 0x3fd   : > { %3912 = vmatprep.subr.bf16.mxu1 %v7693_v30  ;;  %v9585_v30 = vrot.slane %v9011_v38, 1 }
 0x400   : > { %3913 = vmatpush1.bf16.msra.mxu1 %v7691_v59  ;;  %v6492_v59 = vpack.c.bf16 %v9585_v30, %v8716_v37  ;;  %v7724_v30 = vld [vmem:[#allocation9 + $0x2c0] ss:$8 sps:$4 sm:$0xff]  }
 0x401   : > { %3914 = vmatprep.subr.bf16.mxu1 %v7696_v12  ;;  %v7709_v12 = vld [vmem:[#allocation9 + $0x270] ss:$8 sps:$4 sm:$0xff]  }
 0x403   : > { %6446 = vmatmul.mubr.msk.bf16.gmra.mrb[4].mxu1 %vm8620_vm1, %v9076_v13 }
 0x404   : > { %6449 = vmatprep.mubr.msk.bf16.mxu1 %vm8620_vm1, %v9133_v36  ;;  %3915 = vmatpush1.bf16.msra.mxu1 %v7694_v62  ;;  %v7714_v62 = vld [vmem:[#allocation9 + $0x284] ss:$8 sps:$4 sm:$0xff]  }
 0x405   : > { %3916 = vmatprep.subr.bf16.mxu1 %v7699_v10  ;;  %v7712_v10 = vld [vmem:[#allocation9 + $0x280] ss:$8 sps:$4 sm:$0xff]  }
 0x408   : > { %3917 = vmatpush1.bf16.msra.mxu1 %v7697_v27  ;;  %v7717_v27 = vld [vmem:[#allocation9 + $0x294] ss:$8 sps:$4 sm:$0xff]  }
 0x409   : > { %3918 = vmatprep.subr.bf16.mxu1 %v7702_v7  ;;  %v7715_v7 = vld [vmem:[#allocation9 + $0x290] ss:$8 sps:$4 sm:$0xff]  }
 0x40b   : > { %6452 = vmatmul.mubr.msk.bf16.gmra.mrb[8].mxu1 %vm8620_vm1, %v9126_v28 }
 0x40c   : > { %6455 = vmatprep.mubr.msk.bf16.mxu1 %vm8620_vm1, %v9186_v26  ;;  %3919 = vmatpush1.bf16.msra.mxu1 %v7700_v39  ;;  %v7720_v39 = vld [vmem:[#allocation9 + $0x2a4] ss:$8 sps:$4 sm:$0xff]  }
 0x40d   : > { %3920 = vmatprep.subr.bf16.mxu1 %v7705_v47  ;;  %v7718_v47 = vld [vmem:[#allocation9 + $0x2a0] ss:$8 sps:$4 sm:$0xff]  }
 0x410   : > { %3921 = vmatpush1.bf16.msra.mxu1 %v7703_v22  ;;  %v7723_v22 = vld [vmem:[#allocation9 + $0x2b4] ss:$8 sps:$4 sm:$0xff]  }
 0x411   : > { %3922 = vmatprep.subr.bf16.mxu1 %v7708_v17  ;;  %v7721_v17 = vld [vmem:[#allocation9 + $0x2b0] ss:$8 sps:$4 sm:$0xff]  }
 0x413   : > { %6458 = vmatmul.mubr.msk.bf16.gmra.mrb[12].mxu1 %vm8620_vm1, %v9179_v60 }
 0x414   : > { %3923 = vmatpush1.bf16.msra.mxu1 %v7706_v19  ;;  %6493 = vmatprep.mubr.msk.bf16.mxu1 %vm8726_vm3, %v6492_v59  ;;  %v7726_v19 = vld [vmem:[#allocation9 + $0x2c4] ss:$8 sps:$4 sm:$0xff]   ;;  %v7727_v59 = vld [vmem:[#allocation9 + $0x2d0] ss:$8 sps:$4 sm:$0xff]  }
 0x415   : > { %3924 = vmatprep.subr.bf16.mxu1 %v7711_v32  ;;  %v7729_v32 = vld [vmem:[#allocation9 + $0x2d4] ss:$8 sps:$4 sm:$0xff]  }
 0x418   : > { %3925 = vmatpush1.bf16.msra.mxu1 %v7709_v12  ;;  %v7732_v12 = vld [vmem:[#allocation9 + $0x2e4] ss:$8 sps:$4 sm:$0xff]  }
 0x419   : > { %3926 = vmatprep.subr.bf16.mxu1 %v7714_v62  ;;  %v7730_v62 = vld [vmem:[#allocation9 + $0x2e0] ss:$8 sps:$4 sm:$0xff]  }
 0x41c   : > { %3927 = vmatpush1.bf16.msra.mxu1 %v7712_v10  ;;  %v7735_v10 = vld [vmem:[#allocation9 + $0x2f4] ss:$8 sps:$4 sm:$0xff]  }
 0x41d   : > { %3928 = vmatprep.subr.bf16.mxu1 %v7717_v27  ;;  %v7733_v27 = vld [vmem:[#allocation9 + $0x2f0] ss:$8 sps:$4 sm:$0xff]  }
 0x420   : > { %3929 = vmatpush1.bf16.msra.mxu1 %v7715_v7  ;;  %v7738_v7 = vld [vmem:[#allocation9 + $0x304] ss:$8 sps:$4 sm:$0xff]  }
 0x421   : > { %3930 = vmatprep.subr.bf16.mxu1 %v7720_v39  ;;  %v7736_v39 = vld [vmem:[#allocation9 + $0x300] ss:$8 sps:$4 sm:$0xff]  }
 0x424   : > { %3931 = vmatpush1.bf16.msra.mxu1 %v7718_v47  ;;  %v9586_v47 = vrot.slane %v9008_v41, 1 }
 0x425   : > { %3932 = vmatprep.subr.bf16.mxu1 %v7723_v22 }
 0x426   : > { %v6495_v22 = vpack.c.bf16 %v9586_v47, %v8716_v37  ;;  %v7754_v47 = vld [vmem:[#allocation9 + $0x360] ss:$8 sps:$4 sm:$0xff]  }
 0x428   : > { %3933 = vmatpush1.bf16.msra.mxu1 %v7721_v17  ;;  %v7741_v17 = vld [vmem:[#allocation9 + $0x314] ss:$8 sps:$4 sm:$0xff]  }
 0x429   : > { %3934 = vmatprep.subr.bf16.mxu1 %v7726_v19  ;;  %v7739_v19 = vld [vmem:[#allocation9 + $0x310] ss:$8 sps:$4 sm:$0xff]  }
 0x42c   : > { %3935 = vmatpush1.bf16.msra.mxu1 %v7724_v30  ;;  %v7744_v30 = vld [vmem:[#allocation9 + $0x324] ss:$8 sps:$4 sm:$0xff]  }
 0x42d   : > { %3936 = vmatprep.subr.bf16.mxu1 %v7729_v32  ;;  %v7742_v32 = vld [vmem:[#allocation9 + $0x320] ss:$8 sps:$4 sm:$0xff]  }
 0x430   : > { %3937 = vmatpush1.bf16.msra.mxu1 %v7727_v59  ;;  %v7747_v59 = vld [vmem:[#allocation9 + $0x334] ss:$8 sps:$4 sm:$0xff]  }
 0x431   : > { %3938 = vmatprep.subr.bf16.mxu1 %v7732_v12  ;;  %v7745_v12 = vld [vmem:[#allocation9 + $0x330] ss:$8 sps:$4 sm:$0xff]  }
 0x434   : > { %3939 = vmatpush1.bf16.msra.mxu1 %v7730_v62  ;;  %v7750_v62 = vld [vmem:[#allocation9 + $0x344] ss:$8 sps:$4 sm:$0xff]  }
 0x435   : > { %3940 = vmatprep.subr.bf16.mxu1 %v7735_v10  ;;  %v7748_v10 = vld [vmem:[#allocation9 + $0x340] ss:$8 sps:$4 sm:$0xff]  }
 0x438   : > { %3941 = vmatpush1.bf16.msra.mxu1 %v7733_v27  ;;  %v7753_v27 = vld [vmem:[#allocation9 + $0x354] ss:$8 sps:$4 sm:$0xff]  }
 0x439   : > { %4200 = vmatprep.subr.bf16.mxu1 %v7738_v7  ;;  %v7751_v7 = vld [vmem:[#allocation9 + $0x350] ss:$8 sps:$4 sm:$0xff]  }
 0x43b   : > { %6496 = vmatmul.mubr.msk.bf16.vlgmr.msra.gmra.mrb[0].mxu1 %vm8726_vm3, %v6495_v22  ;;  %v7759_v22 = vld [vmem:[#allocation9 + $0x374] ss:$8 sps:$4 sm:$0xff]  }
 0x43c   : > { %6499 = vmatprep.mubr.msk.bf16.mxu1 %vm8726_vm3, %v9085_v29  ;;  %4201 = vmatpush1.bf16.msra.mxu1 %v7736_v39  ;;  %v7756_v39 = vld [vmem:[#allocation9 + $0x364] ss:$8 sps:$4 sm:$0xff]  }
 0x43d   : > { %4202 = vmatprep.subr.bf16.mxu1 %v7741_v17  ;;  %v7757_v17 = vld [vmem:[#allocation9 + $0x370] ss:$8 sps:$4 sm:$0xff]  }
 0x440   : > { %4203 = vmatpush1.bf16.msra.mxu1 %v7739_v19  ;;  %v7762_v19 = vld [vmem:[#allocation9 + $0x384] ss:$8 sps:$4 sm:$0xff]  }
 0x441   : > { %4204 = vmatprep.subr.bf16.mxu1 %v7744_v30  ;;  %v7760_v30 = vld [vmem:[#allocation9 + $0x380] ss:$8 sps:$4 sm:$0xff]  }
 0x443   : > { %6502 = vmatmul.mubr.msk.bf16.gmra.mrb[4].mxu1 %vm8726_vm3, %v9078_v51 }
 0x444   : > { %6505 = vmatprep.mubr.msk.bf16.mxu1 %vm8726_vm3, %v9135_v16  ;;  %4205 = vmatpush1.bf16.msra.mxu1 %v7742_v32  ;;  %v7765_v32 = vld [vmem:[#allocation9 + $0x394] ss:$8 sps:$4 sm:$0xff]  }
 0x445   : > { %4206 = vmatprep.subr.bf16.mxu1 %v7747_v59  ;;  %v7763_v59 = vld [vmem:[#allocation9 + $0x390] ss:$8 sps:$4 sm:$0xff]  }
 0x448   : > { %4207 = vmatpush1.bf16.msra.mxu1 %v7745_v12  ;;  %v7768_v12 = vld [vmem:[#allocation9 + $0x3a4] ss:$8 sps:$4 sm:$0xff]  }
 0x449   : > { %4208 = vmatprep.subr.bf16.mxu1 %v7750_v62  ;;  %v7766_v62 = vld [vmem:[#allocation9 + $0x3a0] ss:$8 sps:$4 sm:$0xff]  }
 0x44b   : > { %6508 = vmatmul.mubr.msk.bf16.gmra.mrb[8].mxu1 %vm8726_vm3, %v9128_v11 }
 0x44c   : > { %6511 = vmatprep.mubr.msk.bf16.mxu1 %vm8726_vm3, %v9188_v2  ;;  %4209 = vmatpush1.bf16.msra.mxu1 %v7748_v10  ;;  %v7771_v10 = vld [vmem:[#allocation9 + $0x3b4] ss:$8 sps:$4 sm:$0xff]  }
 0x44d   : > { %4210 = vmatprep.subr.bf16.mxu1 %v7753_v27  ;;  %v7769_v27 = vld [vmem:[#allocation9 + $0x3b0] ss:$8 sps:$4 sm:$0xff]  }
 0x450   : > { %4211 = vmatpush1.bf16.msra.mxu1 %v7751_v7  ;;  %v7774_v7 = vld [vmem:[#allocation9 + $0x3c4] ss:$8 sps:$4 sm:$0xff]  }
 0x451   : > { %4212 = vmatprep.subr.bf16.mxu1 %v7756_v39  ;;  %v7777_v39 = vld [vmem:[#allocation9 + $0x3d4] ss:$8 sps:$4 sm:$0xff]  }
 0x453   : > { %6514 = vmatmul.mubr.msk.bf16.gmra.mrb[12].mxu1 %vm8726_vm3, %v9181_v20 }
 0x454   : > { %4213 = vmatpush1.bf16.msra.mxu1 %v7754_v47  ;;  %6549 = vmatprep.mubr.msk.bf16.mxu1 %vm8620_vm1, %v9044_v43  ;;  %v7772_v43 = vld [vmem:[#allocation9 + $0x3c0] ss:$8 sps:$4 sm:$0xff]   ;;  %v7775_v47 = vld [vmem:[#allocation9 + $0x3d0] ss:$8 sps:$4 sm:$0xff]  }
 0x455   : > { %4214 = vmatprep.subr.bf16.mxu1 %v7759_v22  ;;  %v7780_v22 = vld [vmem:[#allocation9 + $0x3e4] ss:$8 sps:$4 sm:$0xff]  }
 0x458   : > { %4215 = vmatpush1.bf16.msra.mxu1 %v7757_v17  ;;  %v7778_v17 = vld [vmem:[#allocation9 + $0x3e0] ss:$8 sps:$4 sm:$0xff]  }
 0x459   : > { %4216 = vmatprep.subr.bf16.mxu1 %v7762_v19  ;;  %v7783_v19 = vld [vmem:[#allocation9 + $0x3f4] ss:$8 sps:$4 sm:$0xff]  }
 0x45c   : > { %4217 = vmatpush1.bf16.msra.mxu1 %v7760_v30  ;;  %v7781_v30 = vld [vmem:[#allocation9 + $0x3f0] ss:$8 sps:$4 sm:$0xff]  }
 0x45d   : > { %4218 = vmatprep.subr.bf16.mxu1 %v7765_v32  ;;  %v7786_v32 = vld [vmem:[#allocation9 + $0x404] ss:$8 sps:$4 sm:$0xff]  }
 0x460   : > { %4219 = vmatpush1.bf16.msra.mxu1 %v7763_v59  ;;  %v7784_v59 = vld [vmem:[#allocation9 + $0x400] ss:$8 sps:$4 sm:$0xff]  }
 0x461   : > { %4220 = vmatprep.subr.bf16.mxu1 %v7768_v12  ;;  %v7789_v12 = vld [vmem:[#allocation9 + $0x414] ss:$8 sps:$4 sm:$0xff]  }
 0x464   : > { %4221 = vmatpush1.bf16.msra.mxu1 %v7766_v62  ;;  %v7787_v62 = vld [vmem:[#allocation9 + $0x410] ss:$8 sps:$4 sm:$0xff]  }
 0x465   : > { %4222 = vmatprep.subr.bf16.mxu1 %v7771_v10  ;;  %v7792_v10 = vld [vmem:[#allocation9 + $0x424] ss:$8 sps:$4 sm:$0xff]  }
 0x468   : > { %4223 = vmatpush1.bf16.msra.mxu1 %v7769_v27  ;;  %v7790_v27 = vld [vmem:[#allocation9 + $0x420] ss:$8 sps:$4 sm:$0xff]  }
 0x469   : > { %4224 = vmatprep.subr.bf16.mxu1 %v7774_v7  ;;  %v7795_v7 = vld [vmem:[#allocation9 + $0x434] ss:$8 sps:$4 sm:$0xff]  }
 0x46c   : > { %4225 = vmatpush1.bf16.msra.mxu1 %v7772_v43  ;;  %v7796_v43 = vld [vmem:[#allocation9 + $0x440] ss:$8 sps:$4 sm:$0xff]  }
 0x46d   : > { %4226 = vmatprep.subr.bf16.mxu1 %v7777_v39  ;;  %v7801_v39 = vld [vmem:[#allocation9 + $0x454] ss:$8 sps:$4 sm:$0xff]  }
 0x470   : > { %4227 = vmatpush1.bf16.msra.mxu1 %v7775_v47  ;;  %v7802_v47 = vld [vmem:[#allocation9 + $0x460] ss:$8 sps:$4 sm:$0xff]  }
 0x471   : > { %4228 = vmatprep.subr.bf16.mxu1 %v7780_v22  ;;  %v7807_v22 = vld [vmem:[#allocation9 + $0x474] ss:$8 sps:$4 sm:$0xff]  }
 0x474   : > { %4229 = vmatpush1.bf16.msra.mxu1 %v7778_v17  ;;  %v7805_v17 = vld [vmem:[#allocation9 + $0x470] ss:$8 sps:$4 sm:$0xff]  }
 0x475   : > { %4230 = vmatprep.subr.bf16.mxu1 %v7783_v19  ;;  %v7808_v19 = vld [vmem:[#allocation9 + $0x480] ss:$8 sps:$4 sm:$0xff]  }
 0x478   : > { %4231 = vmatpush1.bf16.msra.mxu1 %v7781_v30  ;;  %v7813_v30 = vld [vmem:[#allocation9 + $0x494] ss:$8 sps:$4 sm:$0xff]  }
 0x479   : > { %4490 = vmatprep.subr.bf16.mxu1 %v7786_v32  ;;  %v7811_v32 = vld [vmem:[#allocation9 + $0x490] ss:$8 sps:$4 sm:$0xff]  }
 0x47b   : > { %6552 = vmatmul.mubr.msk.bf16.vlgmr.msra.gmra.mrb[0].mxu1 %vm8620_vm1, %v9034_v33  ;;  %v7793_v33 = vld [vmem:[#allocation9 + $0x430] ss:$8 sps:$4 sm:$0xff]  }
 0x47c   : > { %6555 = vmatprep.mubr.msk.bf16.mxu1 %vm8620_vm1, %v9096_v0  ;;  %4491 = vmatpush1.bf16.msra.mxu1 %v7784_v59  ;;  %v7798_v0 = vld [vmem:[#allocation9 + $0x444] ss:$8 sps:$4 sm:$0xff]  }
 0x47d   : > { %4492 = vmatprep.subr.bf16.mxu1 %v7789_v12  ;;  %v7816_v59 = vld [vmem:[#allocation9 + $0x4a4] ss:$8 sps:$4 sm:$0xff]   ;;  %v7814_v12 = vld [vmem:[#allocation9 + $0x4a0] ss:$8 sps:$4 sm:$0xff]  }
 0x480   : > { %4493 = vmatpush1.bf16.msra.mxu1 %v7787_v62  ;;  %v7817_v62 = vld [vmem:[#allocation9 + $0x4b0] ss:$8 sps:$4 sm:$0xff]  }
 0x481   : > { %4494 = vmatprep.subr.bf16.mxu1 %v7792_v10  ;;  %v7825_v10 = vld [vmem:[#allocation9 + $0x4d4] ss:$8 sps:$4 sm:$0xff]  }
 0x483   : > { %6558 = vmatmul.mubr.msk.bf16.gmra.mrb[4].mxu1 %vm8620_vm1, %v9089_v1  ;;  %v7799_v1 = vld [vmem:[#allocation9 + $0x450] ss:$8 sps:$4 sm:$0xff]  }
 0x484   : > { %6561 = vmatprep.mubr.msk.bf16.mxu1 %vm8620_vm1, %v9146_v15  ;;  %4495 = vmatpush1.bf16.msra.mxu1 %v7790_v27  ;;  %v7804_v15 = vld [vmem:[#allocation9 + $0x464] ss:$8 sps:$4 sm:$0xff]   ;;  %v7823_v27 = vld [vmem:[#allocation9 + $0x4d0] ss:$8 sps:$4 sm:$0xff]  }
 0x485   : > { %4496 = vmatprep.subr.bf16.mxu1 %v7795_v7  ;;  %v7828_v7 = vld [vmem:[#allocation9 + $0x4e4] ss:$8 sps:$4 sm:$0xff]  }
 0x488   : > { %4497 = vmatpush1.bf16.msra.mxu1 %v7793_v33  ;;  %v7826_v33 = vld [vmem:[#allocation9 + $0x4e0] ss:$8 sps:$4 sm:$0xff]  }
 0x489   : > { %4498 = vmatprep.subr.bf16.mxu1 %v7798_v0  ;;  %v7831_v0 = vld [vmem:[#allocation9 + $0x4f4] ss:$8 sps:$4 sm:$0xff]  }
 0x48b   : > { %6564 = vmatmul.mubr.msk.bf16.gmra.mrb[8].mxu1 %vm8620_vm1, %v9139_v61  ;;  %v9587_v61 = vpack.c.bf16 %v9018_v31, %v9011_v38  ;;  %v7822_v38 = vld [vmem:[#allocation9 + $0x4c4] ss:$8 sps:$4 sm:$0xff]   ;;  %v7820_v31 = vld [vmem:[#allocation9 + $0x4c0] ss:$8 sps:$4 sm:$0xff]  }
 0x48c   : > { %6567 = vmatprep.mubr.msk.bf16.mxu1 %vm8620_vm1, %v9207_v14  ;;  %4499 = vmatpush1.bf16.msra.mxu1 %v7796_v43  ;;  %v7810_v14 = vld [vmem:[#allocation9 + $0x484] ss:$8 sps:$4 sm:$0xff]   ;;  %v7829_v43 = vld [vmem:[#allocation9 + $0x4f0] ss:$8 sps:$4 sm:$0xff]  }
 0x48d   : > { %4500 = vmatprep.subr.bf16.mxu1 %v7801_v39  ;;  %v7834_v39 = vld [vmem:[#allocation9 + $0x504] ss:$8 sps:$4 sm:$0xff]  }
 0x490   : > { %4501 = vmatpush1.bf16.msra.mxu1 %v7799_v1  ;;  %v7832_v1 = vld [vmem:[#allocation9 + $0x500] ss:$8 sps:$4 sm:$0xff]  }
 0x491   : > { %4502 = vmatprep.subr.bf16.mxu1 %v7804_v15  ;;  %v7837_v15 = vld [vmem:[#allocation9 + $0x514] ss:$8 sps:$4 sm:$0xff]  }
 0x493   : > { %6570 = vmatmul.mubr.msk.bf16.gmra.mrb[12].mxu1 %vm8620_vm1, %v9193_v49  ;;  %v7819_v49 = vld [vmem:[#allocation9 + $0x4b4] ss:$8 sps:$4 sm:$0xff]  }
 0x494   : > { %4503 = vmatpush1.bf16.msra.mxu1 %v7802_v47  ;;  %4522 = vmatprep.mubr.bf16.mxu1 %v9587_v61  ;;  %v9588_v47 = vpack.c.bf16 %v9014_v58, %v9008_v41  ;;  %v7835_v61 = vld [vmem:[#allocation9 + $0x510] ss:$8 sps:$4 sm:$0xff]   ;;  %v9591_v41 = vpack.c.bf16 %v9118_v44, %v9105_v35  ;;  %v7852_v35 = vld [vmem:[#allocation9 + $0x564] ss:$8 sps:$4 sm:$0xff]   ;;  %v7850_v44 = vld [vmem:[#allocation9 + $0x560] ss:$8 sps:$4 sm:$0xff]  }
 0x495   : > { %4504 = vmatprep.subr.bf16.mxu1 %v7807_v22  ;;  %v9589_v22 = vpack.c.bf16 %v9068_v52, %v9055_v42  ;;  %v7841_v58 = vld [vmem:[#allocation9 + $0x530] ss:$8 sps:$4 sm:$0xff]   ;;  %v7846_v42 = vld [vmem:[#allocation9 + $0x544] ss:$8 sps:$4 sm:$0xff]   ;;  %v7844_v52 = vld [vmem:[#allocation9 + $0x540] ss:$8 sps:$4 sm:$0xff]  }
 0x498   : > { %4505 = vmatpush1.bf16.msra.mxu1 %v7805_v17  ;;  %v7840_v17 = vld [vmem:[#allocation9 + $0x524] ss:$8 sps:$4 sm:$0xff]  }
 0x499   : > { %4506 = vmatprep.subr.bf16.mxu1 %v7810_v14  ;;  %v7838_v14 = vld [vmem:[#allocation9 + $0x520] ss:$8 sps:$4 sm:$0xff]  }
 0x49c   : > { %4507 = vmatpush1.bf16.msra.mxu1 %v7808_v19  ;;  %v7843_v19 = vld [vmem:[#allocation9 + $0x534] ss:$8 sps:$4 sm:$0xff]  }
 0x49d   : > { %4508 = vmatprep.subr.bf16.mxu1 %v7813_v30  ;;  %v9590_v30 = vpack.c.bf16 %v9060_v18, %v9052_v54  ;;  %v9593_v54 = vpack.c.bf16 %v9171_v55, %v9155_v63  ;;  %v7847_v18 = vld [vmem:[#allocation9 + $0x550] ss:$8 sps:$4 sm:$0xff]   ;;  %v7858_v63 = vld [vmem:[#allocation9 + $0x584] ss:$8 sps:$4 sm:$0xff]  }
 0x4a0   : > { %4509 = vmatpush1.bf16.msra.mxu1 %v7811_v32  ;;  %v7849_v32 = vld [vmem:[#allocation9 + $0x554] ss:$8 sps:$4 sm:$0xff]  }
 0x4a1   : > { %4510 = vmatprep.subr.bf16.mxu1 %v7816_v59  ;;  %v9592_v59 = vpack.c.bf16 %v9110_v50, %v9102_v23  ;;  %v7853_v23 = vld [vmem:[#allocation9 + $0x570] ss:$8 sps:$4 sm:$0xff]   ;;  %v7856_v50 = vld [vmem:[#allocation9 + $0x580] ss:$8 sps:$4 sm:$0xff]  }
 0x4a4   : > { %4511 = vmatpush1.bf16.msra.mxu1 %v7814_v12  ;;  %v7855_v12 = vld [vmem:[#allocation9 + $0x574] ss:$8 sps:$4 sm:$0xff]  }
 0x4a5   : > { %4512 = vmatprep.subr.bf16.mxu1 %v7819_v49  ;;  %v9594_v49 = vpack.c.bf16 %v9163_v6, %v9152_v34  ;;  %v7867_v34 = vld [vmem:[#allocation9 + $0x5b4] ss:$8 sps:$4 sm:$0xff]  }
 0x4a8   : > { %4513 = vmatpush1.bf16.msra.mxu1 %v7817_v62  ;;  %v7861_v62 = vld [vmem:[#allocation9 + $0x594] ss:$8 sps:$4 sm:$0xff]  }
 0x4a9   : > { %4514 = vmatprep.subr.bf16.mxu1 %v7822_v38  ;;  %v7859_v38 = vld [vmem:[#allocation9 + $0x590] ss:$8 sps:$4 sm:$0xff]  }
 0x4ac   : > { %4515 = vmatpush1.bf16.msra.mxu1 %v7820_v31  ;;  %v7864_v31 = vld [vmem:[#allocation9 + $0x5a4] ss:$8 sps:$4 sm:$0xff]  }
 0x4ad   : > { %4516 = vmatprep.subr.bf16.mxu1 %v7825_v10  ;;  %v7862_v10 = vld [vmem:[#allocation9 + $0x5a0] ss:$8 sps:$4 sm:$0xff]  }
 0x4b0   : > { %4517 = vmatpush1.bf16.msra.mxu1 %v7823_v27  ;;  %v7865_v27 = vld [vmem:[#allocation9 + $0x5b0] ss:$8 sps:$4 sm:$0xff]  }
 0x4b1   : > { %4518 = vmatprep.subr.bf16.mxu1 %v7828_v7  ;;  %v7870_v7 = vld [vmem:[#allocation9 + $0x5c4] ss:$8 sps:$4 sm:$0xff]  }
 0x4b4   : > { %4519 = vmatpush1.bf16.msra.mxu1 %v7826_v33  ;;  %v7873_v33 = vld [vmem:[#allocation9 + $0x5d4] ss:$8 sps:$4 sm:$0xff]  }
 0x4b5   : > { %4520 = vmatprep.subr.bf16.mxu1 %v7831_v0  ;;  %v7871_v0 = vld [vmem:[#allocation9 + $0x5d0] ss:$8 sps:$4 sm:$0xff]  }
 0x4b8   : > { %4521 = vmatpush1.bf16.msra.mxu1 %v7829_v43  ;;  %v7876_v43 = vld [vmem:[#allocation9 + $0x5e4] ss:$8 sps:$4 sm:$0xff]  }
 0x4b9   : > { %4780 = vmatprep.subr.bf16.mxu1 %v7834_v39  ;;  %v7874_v39 = vld [vmem:[#allocation9 + $0x5e0] ss:$8 sps:$4 sm:$0xff]  }
 0x4bb   : > { %4523 = vmatmul.mubr.bf16.vlgmr.msra.gmra.mrb[0].mxu1 %v9588_v47  ;;  %v7882_v47 = vld [vmem:[#allocation9 + $0x604] ss:$8 sps:$4 sm:$0xff]  }
 0x4bc   : > { %4532 = vmatprep.mubr.bf16.mxu1 %v9589_v22  ;;  %4781 = vmatpush1.bf16.msra.mxu1 %v7832_v1  ;;  %v7879_v1 = vld [vmem:[#allocation9 + $0x5f4] ss:$8 sps:$4 sm:$0xff]   ;;  %v7880_v22 = vld [vmem:[#allocation9 + $0x600] ss:$8 sps:$4 sm:$0xff]  }
 0x4bd   : > { %4782 = vmatprep.subr.bf16.mxu1 %v7837_v15  ;;  %v7877_v15 = vld [vmem:[#allocation9 + $0x5f0] ss:$8 sps:$4 sm:$0xff]  }
 0x4c0   : > { %4783 = vmatpush1.bf16.msra.mxu1 %v7835_v61  ;;  %v7885_v61 = vld [vmem:[#allocation9 + $0x614] ss:$8 sps:$4 sm:$0xff]  }
 0x4c1   : > { %4784 = vmatprep.subr.bf16.mxu1 %v7840_v17  ;;  %v7883_v17 = vld [vmem:[#allocation9 + $0x610] ss:$8 sps:$4 sm:$0xff]  }
 0x4c3   : > { %4533 = vmatmul.mubr.bf16.gmra.mrb[4].mxu1 %v9590_v30  ;;  %v7891_v30 = vld [vmem:[#allocation9 + $0x634] ss:$8 sps:$4 sm:$0xff]  }
 0x4c4   : > { %4542 = vmatprep.mubr.bf16.mxu1 %v9591_v41  ;;  %4785 = vmatpush1.bf16.msra.mxu1 %v7838_v14  ;;  %v7888_v14 = vld [vmem:[#allocation9 + $0x624] ss:$8 sps:$4 sm:$0xff]   ;;  %v7892_v41 = vld [vmem:[#allocation9 + $0x640] ss:$8 sps:$4 sm:$0xff]  }
 0x4c5   : > { %4786 = vmatprep.subr.bf16.mxu1 %v7843_v19  ;;  %v7886_v19 = vld [vmem:[#allocation9 + $0x620] ss:$8 sps:$4 sm:$0xff]  }
 0x4c8   : > { %4787 = vmatpush1.bf16.msra.mxu1 %v7841_v58  ;;  %v7897_v58 = vld [vmem:[#allocation9 + $0x654] ss:$8 sps:$4 sm:$0xff]  }
 0x4c9   : > { %4788 = vmatprep.subr.bf16.mxu1 %v7846_v42  ;;  %v7898_v42 = vld [vmem:[#allocation9 + $0x660] ss:$8 sps:$4 sm:$0xff]  }
 0x4cb   : > { %4543 = vmatmul.mubr.bf16.gmra.mrb[8].mxu1 %v9592_v59  ;;  %v7909_v59 = vld [vmem:[#allocation9 + $0x694] ss:$8 sps:$4 sm:$0xff]  }
 0x4cc   : > { %4552 = vmatprep.mubr.bf16.mxu1 %v9593_v54  ;;  %4789 = vmatpush1.bf16.msra.mxu1 %v7844_v52  ;;  %v7903_v52 = vld [vmem:[#allocation9 + $0x674] ss:$8 sps:$4 sm:$0xff]   ;;  %v7907_v54 = vld [vmem:[#allocation9 + $0x690] ss:$8 sps:$4 sm:$0xff]  }
 0x4cd   : > { %4790 = vmatprep.subr.bf16.mxu1 %v7849_v32  ;;  %v7904_v32 = vld [vmem:[#allocation9 + $0x680] ss:$8 sps:$4 sm:$0xff]  }
 0x4d0   : > { %4791 = vmatpush1.bf16.msra.mxu1 %v7847_v18  ;;  %v7912_v18 = vld [vmem:[#allocation9 + $0x6a4] ss:$8 sps:$4 sm:$0xff]  }
 0x4d1   : > { %4792 = vmatprep.subr.bf16.mxu1 %v7852_v35  ;;  %v7910_v35 = vld [vmem:[#allocation9 + $0x6a0] ss:$8 sps:$4 sm:$0xff]  }
 0x4d3   : > { %4553 = vmatmul.mubr.bf16.gmra.mrb[12].mxu1 %v9594_v49  ;;  %v7921_v49 = vld [vmem:[#allocation9 + $0x6d4] ss:$8 sps:$4 sm:$0xff]  }
 0x4d4   : > { %4793 = vmatpush1.bf16.msra.mxu1 %v7850_v44  ;;  %6637 = vmatprep.mubr.msk.bf16.mxu1 %vm8726_vm3, %v9050_v56  ;;  %v7868_v56 = vld [vmem:[#allocation9 + $0x5c0] ss:$8 sps:$4 sm:$0xff]   ;;  %v7913_v44 = vld [vmem:[#allocation9 + $0x6b0] ss:$8 sps:$4 sm:$0xff]  }
 0x4d5   : > { %4794 = vmatprep.subr.bf16.mxu1 %v7855_v12  ;;  %v7918_v12 = vld [vmem:[#allocation9 + $0x6c4] ss:$8 sps:$4 sm:$0xff]  }
 0x4d8   : > { %4795 = vmatpush1.bf16.msra.mxu1 %v7853_v23  ;;  %v7919_v23 = vld [vmem:[#allocation9 + $0x6d0] ss:$8 sps:$4 sm:$0xff]  }
 0x4d9   : > { %4796 = vmatprep.subr.bf16.mxu1 %v7858_v63  ;;  %v7924_v63 = vld [vmem:[#allocation9 + $0x6e4] ss:$8 sps:$4 sm:$0xff]  }
 0x4dc   : > { %4797 = vmatpush1.bf16.msra.mxu1 %v7856_v50  ;;  %v7922_v50 = vld [vmem:[#allocation9 + $0x6e0] ss:$8 sps:$4 sm:$0xff]  }
 0x4dd   : > { %4798 = vmatprep.subr.bf16.mxu1 %v7861_v62  ;;  %v7927_v62 = vld [vmem:[#allocation9 + $0x6f4] ss:$8 sps:$4 sm:$0xff]  }
 0x4e0   : > { %4799 = vmatpush1.bf16.msra.mxu1 %v7859_v38  ;;  %v7925_v38 = vld [vmem:[#allocation9 + $0x6f0] ss:$8 sps:$4 sm:$0xff]  }
 0x4e1   : > { %4800 = vmatprep.subr.bf16.mxu1 %v7864_v31  ;;  %v7930_v31 = vld [vmem:[#allocation9 + $0x704] ss:$8 sps:$4 sm:$0xff]  }
 0x4e4   : > { %4801 = vmatpush1.bf16.msra.mxu1 %v7862_v10  ;;  %v7928_v10 = vld [vmem:[#allocation9 + $0x700] ss:$8 sps:$4 sm:$0xff]  }
 0x4e5   : > { %4802 = vmatprep.subr.bf16.mxu1 %v7867_v34  ;;  %v7933_v34 = vld [vmem:[#allocation9 + $0x714] ss:$8 sps:$4 sm:$0xff]  }
 0x4e8   : > { %4803 = vmatpush1.bf16.msra.mxu1 %v7865_v27  ;;  %v7931_v27 = vld [vmem:[#allocation9 + $0x710] ss:$8 sps:$4 sm:$0xff]  }
 0x4e9   : > { %4804 = vmatprep.subr.bf16.mxu1 %v7870_v7  ;;  %v7936_v7 = vld [vmem:[#allocation9 + $0x724] ss:$8 sps:$4 sm:$0xff]  }
 0x4ec   : > { %4805 = vmatpush1.bf16.msra.mxu1 %v7868_v56  ;;  %v7934_v56 = vld [vmem:[#allocation9 + $0x720] ss:$8 sps:$4 sm:$0xff]  }
 0x4ed   : > { %4806 = vmatprep.subr.bf16.mxu1 %v7873_v33  ;;  %v7939_v33 = vld [vmem:[#allocation9 + $0x734] ss:$8 sps:$4 sm:$0xff]  }
 0x4f0   : > { %4807 = vmatpush1.bf16.msra.mxu1 %v7871_v0  ;;  %v7940_v0 = vld [vmem:[#allocation9 + $0x740] ss:$8 sps:$4 sm:$0xff]  }
 0x4f1   : > { %4808 = vmatprep.subr.bf16.mxu1 %v7876_v43  ;;  %v7945_v43 = vld [vmem:[#allocation9 + $0x754] ss:$8 sps:$4 sm:$0xff]  }
 0x4f4   : > { %4809 = vmatpush1.bf16.msra.mxu1 %v7874_v39  ;;  %v9595_v39 = vrot.slane %v9171_v55, 7 }
 0x4f5   : > { %4810 = vmatprep.subr.bf16.mxu1 %v7879_v1 }
 0x4f6   : > { %v6710_v1 = vpack.c.bf16 %v8633_v9, %v9595_v39  ;;  %v8009_v39 = vld [vmem:[#allocation9 + $0x8b0] ss:$8 sps:$4 sm:$0xff]  }
 0x4f8   : > { %4811 = vmatpush1.bf16.msra.mxu1 %v7877_v15  ;;  %v7946_v15 = vld [vmem:[#allocation9 + $0x760] ss:$8 sps:$4 sm:$0xff]  }
 0x4f9   : > { %5064 = vmatprep.subr.bf16.mxu1 %v7882_v47  ;;  %v9596_v47 = vrot.slane %v9163_v6, 7 }
 0x4fb   : > { %6640 = vmatmul.mubr.msk.bf16.vlgmr.msra.gmra.mrb[0].mxu1 %vm8726_vm3, %v9038_v45  ;;  %v7889_v45 = vld [vmem:[#allocation9 + $0x630] ss:$8 sps:$4 sm:$0xff]  }
 0x4fc   : > { %6643 = vmatprep.mubr.msk.bf16.mxu1 %vm8726_vm3, %v9098_v3  ;;  %5065 = vmatpush1.bf16.msra.mxu1 %v7880_v22  ;;  %v7894_v3 = vld [vmem:[#allocation9 + $0x644] ss:$8 sps:$4 sm:$0xff]   ;;  %v6713_v22 = vpack.c.bf16 %v8633_v9, %v9596_v47  ;;  %v7958_v9 = vld [vmem:[#allocation9 + $0x7a0] ss:$8 sps:$4 sm:$0xff]  }
 0x4fd   : > { %5066 = vmatprep.subr.bf16.mxu1 %v7885_v61  ;;  %v7951_v61 = vld [vmem:[#allocation9 + $0x774] ss:$8 sps:$4 sm:$0xff]   ;;  %v8018_v47 = vld [vmem:[#allocation9 + $0x8e0] ss:$8 sps:$4 sm:$0xff]  }
 0x500   : > { %5067 = vmatpush1.bf16.msra.mxu1 %v7883_v17  ;;  %v7954_v17 = vld [vmem:[#allocation9 + $0x784] ss:$8 sps:$4 sm:$0xff]  }
 0x501   : > { %5068 = vmatprep.subr.bf16.mxu1 %v7888_v14  ;;  %v7952_v14 = vld [vmem:[#allocation9 + $0x780] ss:$8 sps:$4 sm:$0xff]  }
 0x503   : > { %6646 = vmatmul.mubr.msk.bf16.gmra.mrb[4].mxu1 %vm8726_vm3, %v9100_v48  ;;  %v7895_v48 = vld [vmem:[#allocation9 + $0x650] ss:$8 sps:$4 sm:$0xff]  }
 0x504   : > { %6649 = vmatprep.mubr.msk.bf16.mxu1 %vm8726_vm3, %v9148_v40  ;;  %5069 = vmatpush1.bf16.msra.mxu1 %v7886_v19  ;;  %v7900_v40 = vld [vmem:[#allocation9 + $0x664] ss:$8 sps:$4 sm:$0xff]   ;;  %v7957_v19 = vld [vmem:[#allocation9 + $0x794] ss:$8 sps:$4 sm:$0xff]  }
 0x505   : > { %5070 = vmatprep.subr.bf16.mxu1 %v7891_v30  ;;  %v7955_v30 = vld [vmem:[#allocation9 + $0x790] ss:$8 sps:$4 sm:$0xff]  }
 0x508   : > { %5071 = vmatpush1.bf16.msra.mxu1 %v7889_v45  ;;  %v7960_v45 = vld [vmem:[#allocation9 + $0x7a4] ss:$8 sps:$4 sm:$0xff]  }
 0x509   : > { %5072 = vmatprep.subr.bf16.mxu1 %v7894_v3  ;;  %v7963_v3 = vld [vmem:[#allocation9 + $0x7b4] ss:$8 sps:$4 sm:$0xff]  }
 0x50b   : > { %6652 = vmatmul.mubr.msk.bf16.gmra.mrb[8].mxu1 %vm8726_vm3, %v9150_v8  ;;  %v7901_v8 = vld [vmem:[#allocation9 + $0x670] ss:$8 sps:$4 sm:$0xff]  }
 0x50c   : > { %6655 = vmatprep.mubr.msk.bf16.mxu1 %vm8726_vm3, %v9211_v5  ;;  %5073 = vmatpush1.bf16.msra.mxu1 %v7892_v41  ;;  %v7906_v5 = vld [vmem:[#allocation9 + $0x684] ss:$8 sps:$4 sm:$0xff]  }
 0x50d   : > { %5074 = vmatprep.subr.bf16.mxu1 %v7897_v58  ;;  %v7966_v41 = vld [vmem:[#allocation9 + $0x7c4] ss:$8 sps:$4 sm:$0xff]   ;;  %v7969_v58 = vld [vmem:[#allocation9 + $0x7d4] ss:$8 sps:$4 sm:$0xff]  }
 0x510   : > { %5075 = vmatpush1.bf16.msra.mxu1 %v7895_v48  ;;  %v7967_v48 = vld [vmem:[#allocation9 + $0x7d0] ss:$8 sps:$4 sm:$0xff]  }
 0x511   : > { %5076 = vmatprep.subr.bf16.mxu1 %v7900_v40  ;;  %v7972_v40 = vld [vmem:[#allocation9 + $0x7e4] ss:$8 sps:$4 sm:$0xff]  }
 0x513   : > { %6658 = vmatmul.mubr.msk.bf16.gmra.mrb[12].mxu1 %vm8726_vm3, %v9201_v53  ;;  %v7915_v53 = vld [vmem:[#allocation9 + $0x6b4] ss:$8 sps:$4 sm:$0xff]  }
 0x514   : > { %5077 = vmatpush1.bf16.msra.mxu1 %v7898_v42  ;;  %6693 = vmatprep.mubr.msk.bf16.mxu1 %vm8620_vm1, %v9083_v21  ;;  %v7916_v21 = vld [vmem:[#allocation9 + $0x6c0] ss:$8 sps:$4 sm:$0xff]  }
 0x515   : > { %5078 = vmatprep.subr.bf16.mxu1 %v7903_v52  ;;  %v7970_v42 = vld [vmem:[#allocation9 + $0x7e0] ss:$8 sps:$4 sm:$0xff]   ;;  %v7975_v52 = vld [vmem:[#allocation9 + $0x7f4] ss:$8 sps:$4 sm:$0xff]  }
 0x518   : > { %5079 = vmatpush1.bf16.msra.mxu1 %v7901_v8  ;;  %v7973_v8 = vld [vmem:[#allocation9 + $0x7f0] ss:$8 sps:$4 sm:$0xff]  }
 0x519   : > { %5080 = vmatprep.subr.bf16.mxu1 %v7906_v5  ;;  %v7978_v5 = vld [vmem:[#allocation9 + $0x804] ss:$8 sps:$4 sm:$0xff]  }
 0x51c   : > { %5081 = vmatpush1.bf16.msra.mxu1 %v7904_v32  ;;  %v7976_v32 = vld [vmem:[#allocation9 + $0x800] ss:$8 sps:$4 sm:$0xff]  }
 0x51d   : > { %5082 = vmatprep.subr.bf16.mxu1 %v7909_v59  ;;  %v7981_v59 = vld [vmem:[#allocation9 + $0x814] ss:$8 sps:$4 sm:$0xff]  }
 0x520   : > { %5083 = vmatpush1.bf16.msra.mxu1 %v7907_v54  ;;  %v9597_v54 = vld [vmem:[#allocation19_spill] sm:$0xff] }
 0x521   : > { %5084 = vmatprep.subr.bf16.mxu1 %v7912_v18  ;;  %v7979_v18 = vld [vmem:[#allocation9 + $0x810] ss:$8 sps:$4 sm:$0xff]  }
 0x524   : > { %5085 = vmatpush1.bf16.msra.mxu1 %v7910_v35  ;;  %v7984_v35 = vld [vmem:[#allocation9 + $0x824] ss:$8 sps:$4 sm:$0xff]  }
 0x525   : > { %5086 = vmatprep.subr.bf16.mxu1 %v7915_v53  ;;  %v7982_v53 = vld [vmem:[#allocation9 + $0x820] ss:$8 sps:$4 sm:$0xff]  }
 0x528   : > { %5087 = vmatpush1.bf16.msra.mxu1 %v7913_v44  ;;  %v7987_v44 = vld [vmem:[#allocation9 + $0x834] ss:$8 sps:$4 sm:$0xff]  }
 0x529   : > { %5088 = vmatprep.subr.bf16.mxu1 %v7918_v12  ;;  %v9598_v12 = vld [vmem:[#allocation18_spill] sm:$0xff] }
 0x52c   : > { %5089 = vmatpush1.bf16.msra.mxu1 %v7916_v21  ;;  %v7985_v21 = vld [vmem:[#allocation9 + $0x830] ss:$8 sps:$4 sm:$0xff]  }
 0x52d   : > { %5090 = vmatprep.subr.bf16.mxu1 %v7921_v49  ;;  %v7990_v49 = vld [vmem:[#allocation9 + $0x844] ss:$8 sps:$4 sm:$0xff]  }
 0x530   : > { %5091 = vmatpush1.bf16.msra.mxu1 %v7919_v23  ;;  %v7993_v23 = vld [vmem:[#allocation9 + $0x854] ss:$8 sps:$4 sm:$0xff]  }
 0x531   : > { %5092 = vmatprep.subr.bf16.mxu1 %v7924_v63  ;;  %v9599_v63 = vmov 0.0  }
 0x534   : > { %5093 = vmatpush1.bf16.msra.mxu1 %v7922_v50  ;;  %v5154_v50 = vpack.c.bf16 %v9599_v63, %v9171_v55 }
 0x535   : > { %5094 = vmatprep.subr.bf16.mxu1 %v7927_v62  ;;  %v9600_v62 = vld [vmem:[#allocation20_spill] sm:$0xff] }
 0x538   : > { %5095 = vmatpush1.bf16.msra.mxu1 %v7925_v38  ;;  %v7991_v38 = vld [vmem:[#allocation9 + $0x850] ss:$8 sps:$4 sm:$0xff]  }
 0x539   : > { %5348 = vmatprep.subr.bf16.mxu1 %v7930_v31  ;;  %v7996_v31 = vld [vmem:[#allocation9 + $0x864] ss:$8 sps:$4 sm:$0xff]  }
 0x53b   : > { %6696 = vmatmul.mubr.msk.bf16.vlgmr.msra.gmra.mrb[0].mxu1 %vm8620_vm1, %v9076_v13  ;;  %v7937_v13 = vld [vmem:[#allocation9 + $0x730] ss:$8 sps:$4 sm:$0xff]  }
 0x53c   : > { %6699 = vmatprep.mubr.msk.bf16.mxu1 %vm8620_vm1, %v9133_v36  ;;  %5349 = vmatpush1.bf16.msra.mxu1 %v7928_v10  ;;  %v7942_v36 = vld [vmem:[#allocation9 + $0x744] ss:$8 sps:$4 sm:$0xff]   ;;  %v5153_v10 = vpack.c.bf16 %v9599_v63, %v9163_v6 }
 0x53d   : > { %5350 = vmatprep.subr.bf16.mxu1 %v7933_v34  ;;  %v7999_v34 = vld [vmem:[#allocation9 + $0x874] ss:$8 sps:$4 sm:$0xff]  }
 0x540   : > { %5351 = vmatpush1.bf16.msra.mxu1 %v7931_v27  ;;  %v7997_v27 = vld [vmem:[#allocation9 + $0x870] ss:$8 sps:$4 sm:$0xff]  }
 0x541   : > { %5352 = vmatprep.subr.bf16.mxu1 %v7936_v7  ;;  %v8002_v7 = vld [vmem:[#allocation9 + $0x884] ss:$8 sps:$4 sm:$0xff]  }
 0x543   : > { %6702 = vmatmul.mubr.msk.bf16.gmra.mrb[4].mxu1 %vm8620_vm1, %v9126_v28  ;;  %v7943_v28 = vld [vmem:[#allocation9 + $0x750] ss:$8 sps:$4 sm:$0xff]  }
 0x544   : > { %6705 = vmatprep.mubr.msk.bf16.mxu1 %vm8620_vm1, %v9186_v26  ;;  %5353 = vmatpush1.bf16.msra.mxu1 %v7934_v56  ;;  %v7948_v26 = vld [vmem:[#allocation9 + $0x764] ss:$8 sps:$4 sm:$0xff]   ;;  %v8000_v56 = vld [vmem:[#allocation9 + $0x880] ss:$8 sps:$4 sm:$0xff]  }
 0x545   : > { %5354 = vmatprep.subr.bf16.mxu1 %v7939_v33  ;;  %v8005_v33 = vld [vmem:[#allocation9 + $0x894] ss:$8 sps:$4 sm:$0xff]  }
 0x548   : > { %5355 = vmatpush1.bf16.msra.mxu1 %v7937_v13  ;;  %v8003_v13 = vld [vmem:[#allocation9 + $0x890] ss:$8 sps:$4 sm:$0xff]  }
 0x549   : > { %5356 = vmatprep.subr.bf16.mxu1 %v7942_v36  ;;  %v8008_v36 = vld [vmem:[#allocation9 + $0x8a4] ss:$8 sps:$4 sm:$0xff]  }
 0x54b   : > { %6708 = vmatmul.mubr.msk.bf16.gmra.mrb[8].mxu1 %vm8620_vm1, %v9179_v60  ;;  %v7949_v60 = vld [vmem:[#allocation9 + $0x770] ss:$8 sps:$4 sm:$0xff]  }
 0x54c   : > { %6711 = vmatprep.mubr.msk.bf16.mxu1 %vm8620_vm1, %v6710_v1  ;;  %5357 = vmatpush1.bf16.msra.mxu1 %v7940_v0  ;;  %v8006_v0 = vld [vmem:[#allocation9 + $0x8a0] ss:$8 sps:$4 sm:$0xff]   ;;  %v8014_v1 = vld [vmem:[#allocation9 + $0x8c4] ss:$8 sps:$4 sm:$0xff]  }
 0x54d   : > { %5358 = vmatprep.subr.bf16.mxu1 %v7945_v43  ;;  %v8011_v43 = vld [vmem:[#allocation9 + $0x8b4] ss:$8 sps:$4 sm:$0xff]  }
 0x550   : > { %5359 = vmatpush1.bf16.msra.mxu1 %v7943_v28  ;;  %v8017_v28 = vld [vmem:[#allocation9 + $0x8d4] ss:$8 sps:$4 sm:$0xff]  }
 0x551   : > { %5360 = vmatprep.subr.bf16.mxu1 %v7948_v26  ;;  %v8015_v26 = vld [vmem:[#allocation9 + $0x8d0] ss:$8 sps:$4 sm:$0xff]  }
 0x553   : > { %6714 = vmatmul.mubr.msk.bf16.gmra.mrb[12].mxu1 %vm8620_vm1, %v6713_v22  ;;  %v8023_v22 = vld [vmem:[#allocation9 + $0x8f4] ss:$8 sps:$4 sm:$0xff]  }
 0x554   : > { %5361 = vmatpush1.bf16.msra.mxu1 %v7946_v15  ;;  %5380 = vmatprep.mubr.bf16.mxu1 %v9072_v24  ;;  %v7964_v24 = vld [vmem:[#allocation9 + $0x7c0] ss:$8 sps:$4 sm:$0xff]   ;;  %v8020_v15 = vld [vmem:[#allocation9 + $0x8e4] ss:$8 sps:$4 sm:$0xff]  }
 0x555   : > { %5362 = vmatprep.subr.bf16.mxu1 %v7951_v61  ;;  %v8021_v61 = vld [vmem:[#allocation9 + $0x8f0] ss:$8 sps:$4 sm:$0xff]  }
 0x558   : > { %5363 = vmatpush1.bf16.msra.mxu1 %v7949_v60  ;;  %v9601_v60 = vrot.slane %v9171_v55, 1 }
 0x559   : > { %5364 = vmatprep.subr.bf16.mxu1 %v7954_v17 }
 0x55a   : > { %v6798_v17 = vpack.c.bf16 %v8716_v37, %v9601_v60 }
 0x55c   : > { %5365 = vmatpush1.bf16.msra.mxu1 %v7952_v14 }
 0x55d   : > { %5366 = vmatprep.subr.bf16.mxu1 %v7957_v19 }
 0x560   : > { %5367 = vmatpush1.bf16.msra.mxu1 %v7955_v30 }
 0x561   : > { %5368 = vmatprep.subr.bf16.mxu1 %v7960_v45 }
 0x564   : > { %5369 = vmatpush1.bf16.msra.mxu1 %v7958_v9 }
 0x565   : > { %5370 = vmatprep.subr.bf16.mxu1 %v7963_v3 }
 0x568   : > { %5371 = vmatpush1.bf16.msra.mxu1 %v7961_v4 }
 0x569   : > { %5372 = vmatprep.subr.bf16.mxu1 %v7966_v41 }
 0x56c   : > { %5373 = vmatpush1.bf16.msra.mxu1 %v7964_v24 }
 0x56d   : > { %5374 = vmatprep.subr.bf16.mxu1 %v7969_v58  ;;  %v8038_v58 = vld [vmem:[%s8532_s28] sm:$0xff] }
 0x570   : > { %5375 = vmatpush1.bf16.msra.mxu1 %v7967_v48 }
 0x571   : > { %5376 = vmatprep.subr.bf16.mxu1 %v7972_v40 }
 0x574   : > { %5377 = vmatpush1.bf16.msra.mxu1 %v7970_v42  ;;  %v8039_v42 = vld [vmem:[%s8532_s28 + $0x8] sm:$0xff] }
 0x575   : > { %5378 = vmatprep.subr.bf16.mxu1 %v7975_v52 }
 0x578   : > { %5379 = vmatpush1.bf16.msra.mxu1 %v7973_v8 }
 0x579   : > { %5632 = vmatprep.subr.bf16.mxu1 %v7978_v5  ;;  %v8040_v5 = vld [vmem:[%s8532_s28 + $0x10] sm:$0xff] }
 0x57b   : > { %5381 = vmatmul.mubr.bf16.vlgmr.msra.gmra.mrb[0].mxu1 %v9064_v57  ;;  %v7988_v57 = vld [vmem:[#allocation9 + $0x840] ss:$8 sps:$4 sm:$0xff]  }
 0x57c   : > { %5390 = vmatprep.mubr.bf16.mxu1 %v9597_v54  ;;  %5633 = vmatpush1.bf16.msra.mxu1 %v7976_v32 }
 0x57d   : > { %5634 = vmatprep.subr.bf16.mxu1 %v7981_v59  ;;  %v8041_v59 = vld [vmem:[%s8532_s28 + $0x18] sm:$0xff] }
 0x580   : > { %5635 = vmatpush1.bf16.msra.mxu1 %v7979_v18 }
 0x581   : > { %5636 = vmatprep.subr.bf16.mxu1 %v7984_v35 }
 0x583   : > { %5391 = vmatmul.mubr.bf16.gmra.mrb[4].mxu1 %v9598_v12 }
 0x584   : > { %5400 = vmatprep.mubr.bf16.mxu1 %v9175_v25  ;;  %5637 = vmatpush1.bf16.msra.mxu1 %v7982_v53  ;;  %v7994_v25 = vld [vmem:[#allocation9 + $0x860] ss:$8 sps:$4 sm:$0xff]  }
 0x585   : > { %5638 = vmatprep.subr.bf16.mxu1 %v7987_v44 }
 0x588   : > { %5639 = vmatpush1.bf16.msra.mxu1 %v7985_v21 }
 0x589   : > { %5640 = vmatprep.subr.bf16.mxu1 %v7990_v49 }
 0x58b   : > { %5401 = vmatmul.mubr.bf16.gmra.mrb[8].mxu1 %v9600_v62 }
 0x58c   : > { %5410 = vmatprep.mubr.bf16.mxu1 %v5154_v50  ;;  %5641 = vmatpush1.bf16.msra.mxu1 %v7988_v57  ;;  %v8042_v50 = vld [vmem:[%s8532_s28 + $0x20] sm:$0xff] }
 0x58d   : > { %5642 = vmatprep.subr.bf16.mxu1 %v7993_v23 }
 0x590   : > { %5643 = vmatpush1.bf16.msra.mxu1 %v7991_v38 }
 0x591   : > { %5644 = vmatprep.subr.bf16.mxu1 %v7996_v31  ;;  %v8043_v31 = vld [vmem:[%s8532_s28 + $0x28] sm:$0xff] }
 0x593   : > { %5411 = vmatmul.mubr.bf16.gmra.mrb[12].mxu1 %v5153_v10 }
 0x594   : > { %5645 = vmatpush1.bf16.msra.mxu1 %v7994_v25  ;;  %6781 = vmatprep.mubr.msk.bf16.mxu1 %vm8726_vm3, %v9085_v29  ;;  %v8012_v29 = vld [vmem:[#allocation9 + $0x8c0] ss:$8 sps:$4 sm:$0xff]  }
 0x595   : > { %5646 = vmatprep.subr.bf16.mxu1 %v7999_v34  ;;  %v8044_v34 = vld [vmem:[%s8532_s28 + $0x30] sm:$0xff] }
 0x598   : > { %5647 = vmatpush1.bf16.msra.mxu1 %v7997_v27 }
 0x599   : > { %5648 = vmatprep.subr.bf16.mxu1 %v8002_v7  ;;  %v8045_v7 = vld [vmem:[%s8532_s28 + $0x38] sm:$0xff] }
 0x59c   : > { %5649 = vmatpush1.bf16.msra.mxu1 %v8000_v56 }
 0x59d   : > { %5650 = vmatprep.subr.bf16.mxu1 %v8005_v33 }
 0x5a0   : > { %5651 = vmatpush1.bf16.msra.mxu1 %v8003_v13 }
 0x5a1   : > { %5652 = vmatprep.subr.bf16.mxu1 %v8008_v36 }
 0x5a4   : > { %5653 = vmatpush1.bf16.msra.mxu1 %v8006_v0 }
 0x5a5   : > { %5654 = vmatprep.subr.bf16.mxu1 %v8011_v43 }
 0x5a8   : > { %5655 = vmatpush1.bf16.msra.mxu1 %v8009_v39 }
 0x5a9   : > { %5656 = vmatprep.subr.bf16.mxu1 %v8014_v1 }
 0x5ac   : > { %5657 = vmatpush1.bf16.msra.mxu1 %v8012_v29 }
 0x5ad   : > { %5658 = vmatprep.subr.bf16.mxu1 %v8017_v28 }
 0x5b0   : > { %5659 = vmatpush1.bf16.msra.mxu1 %v8015_v26 }
 0x5b1   : > { %5660 = vmatprep.subr.bf16.mxu1 %v8020_v15  ;;  %v8046_v15 = vld [vmem:[%s8532_s28 + $0x40] sm:$0xff] }
 0x5b4   : > { %5661 = vmatpush1.bf16.msra.mxu1 %v8018_v47 }
 0x5b5   : > { %5662 = vmatprep.subr.bf16.mxu1 %v8023_v22 }
 0x5b8   : > { %5663 = vmatpush1.bf16.msra.mxu1 %v8021_v61  ;;  %v8047_v61 = vld [vmem:[%s8532_s28 + $0x48] sm:$0xff] }
 0x5bb   : > { %6784 = vmatmul.mubr.msk.bf16.vlgmr.msra.gmra.mrb[0].mxu1 %vm8726_vm3, %v9078_v51 }
 0x5bc   : > { %6787 = vmatprep.mubr.msk.bf16.mxu1 %vm8726_vm3, %v9135_v16  ;;  %v9602_v16 = vrot.slane %v9163_v6, 1 }
 0x5be   : > { %v6801_v51 = vpack.c.bf16 %v8716_v37, %v9602_v16  ;;  %v8048_v16 = vld [vmem:[%s8532_s28 + $0x50] sm:$0xff] }
 0x5c3   : > { %6790 = vmatmul.mubr.msk.bf16.gmra.mrb[4].mxu1 %vm8726_vm3, %v9128_v11  ;;  %v9603_v11 = vld [vmem:[#allocation17_spill] sm:$0xff] }
 0x5c4   : > { %6793 = vmatprep.mubr.msk.bf16.mxu1 %vm8726_vm3, %v9188_v2  ;;  %v5721_v2 = vld [vmem:[#allocation11] sm:$0x3]  ;;  %v9604_v55 = vsub.s32 0, %v9603_v11  ;;  %v9605_v19 = vsub.s32 1, %v9603_v11 }
 0x5c6   : > { %v9404_v14 = vrot.slane %v5721_v2, %v9604_v55 }
 0x5cb   : > { %6796 = vmatmul.mubr.msk.bf16.gmra.mrb[8].mxu1 %vm8726_vm3, %v9181_v20  ;;  %v9408_v20 = vrot.slane %v5721_v2, %v9605_v19  ;;  %v8049_v2 = vld [vmem:[%s8532_s28 + $0x58] sm:$0xff] }
 0x5cc   : > { %6799 = vmatprep.mubr.msk.bf16.mxu1 %vm8726_vm3, %v6798_v17 }
 0x5d3   : > { %6802 = vmatmul.mubr.msk.bf16.gmra.mrb[12].mxu1 %vm8726_vm3, %v6801_v51 }
 0x68e   : > { %v5666_v30 = vpop.f32.mrb[0].mxu1 }
 0x68f   : > { %v5733_v6 = vadd.f32 %v9404_v14, %v5666_v30  ;;  %v5668_v45 = vpop.f32.mrb[1].mxu1 }
 0x690   : > { %v5734_v37 = vadd.f32 %v9408_v20, %v5668_v45  ;;  %v5670_v46 = vpop.f32.mrb[2].mxu1 }
 0x691   : > { %v5749_v9 = vmul.f32 0.1, %v5733_v6  ;;  %v5735_v3 = vadd.f32 %v9404_v14, %v5670_v46  ;;  %v5672_v4 = vpop.f32.mrb[3].mxu1 }
 0x692   : > { %v5750_v41 = vmul.f32 0.1, %v5734_v37  ;;  %v5736_v24 = vadd.f32 %v9408_v20, %v5672_v4 }
 0x693   : > { %v5765_v48 = vadd.f32 %v8038_v58, %v5749_v9  ;;  %v5751_v40 = vmul.f32 0.1, %v5735_v3 }
 0x694   : > { %v5766_v52 = vadd.f32 %v8039_v42, %v5750_v41  ;;  %v5752_v8 = vmul.f32 0.1, %v5736_v24  ;;  %v8050_v41 = vld [vmem:[%s8532_s28 + $0x60] sm:$0xff] }
 0x695   : > { %5781 = vst [vmem:[%s9418_s24] sm:$0xff] %v5765_v48  ;;  %v5767_v32 = vadd.f32 %v8040_v5, %v5751_v40  ;;  %v8051_v48 = vld [vmem:[%s8532_s28 + $0x68] sm:$0xff] }
 0x696   : > { %5782 = vst [vmem:[%s9418_s24 + $0x8] sm:$0xff] %v5766_v52  ;;  %v5768_v54 = vadd.f32 %v8041_v59, %v5752_v8  ;;  %v5676_v18 = vpop.f32.mrb[4].mxu1 }
 0x697   : > { %5783 = vst [vmem:[%s9418_s24 + $0x10] sm:$0xff] %v5767_v32  ;;  %v5737_v35 = vadd.f32 %v9404_v14, %v5676_v18  ;;  %v5678_v53 = vpop.f32.mrb[5].mxu1 }
 0x698   : > { %5784 = vst [vmem:[%s9418_s24 + $0x18] sm:$0xff] %v5768_v54  ;;  %v5738_v44 = vadd.f32 %v9408_v20, %v5678_v53  ;;  %v5680_v12 = vpop.f32.mrb[6].mxu1 }
 0x699   : > { %v5753_v21 = vmul.f32 0.1, %v5737_v35  ;;  %v5739_v49 = vadd.f32 %v9404_v14, %v5680_v12  ;;  %v5682_v57 = vpop.f32.mrb[7].mxu1 }
 0x69a   : > { %v5754_v23 = vmul.f32 0.1, %v5738_v44  ;;  %v5740_v63 = vadd.f32 %v9408_v20, %v5682_v57 }
 0x69b   : > { %v5769_v62 = vadd.f32 %v8042_v50, %v5753_v21  ;;  %v5755_v38 = vmul.f32 0.1, %v5739_v49 }
 0x69c   : > { %v5770_v25 = vadd.f32 %v8043_v31, %v5754_v23  ;;  %v5756_v10 = vmul.f32 0.1, %v5740_v63 }
 0x69d   : > { %5785 = vst [vmem:[%s9418_s24 + $0x20] sm:$0xff] %v5769_v62  ;;  %v5771_v27 = vadd.f32 %v8044_v34, %v5755_v38 }
 0x69e   : > { %5786 = vst [vmem:[%s9418_s24 + $0x28] sm:$0xff] %v5770_v25  ;;  %v5772_v56 = vadd.f32 %v8045_v7, %v5756_v10  ;;  %v5686_v33 = vpop.f32.mrb[8].mxu1 }
 0x69f   : > { %5787 = vst [vmem:[%s9418_s24 + $0x30] sm:$0xff] %v5771_v27  ;;  %v5741_v13 = vadd.f32 %v9404_v14, %v5686_v33  ;;  %v5688_v36 = vpop.f32.mrb[9].mxu1 }
 0x6a0   : > { %5788 = vst [vmem:[%s9418_s24 + $0x38] sm:$0xff] %v5772_v56  ;;  %v5742_v0 = vadd.f32 %v9408_v20, %v5688_v36  ;;  %v5690_v43 = vpop.f32.mrb[10].mxu1 }
 0x6a1   : > { %v5757_v39 = vmul.f32 0.1, %v5741_v13  ;;  %v5743_v1 = vadd.f32 %v9404_v14, %v5690_v43  ;;  %v5692_v29 = vpop.f32.mrb[11].mxu1 }
 0x6a2   : > { %v5758_v28 = vmul.f32 0.1, %v5742_v0  ;;  %v5744_v26 = vadd.f32 %v9408_v20, %v5692_v29 }
 0x6a3   : > { %v5773_v47 = vadd.f32 %v8046_v15, %v5757_v39  ;;  %v5759_v22 = vmul.f32 0.1, %v5743_v1 }
 0x6a4   : > { %v5774_v60 = vadd.f32 %v8047_v61, %v5758_v28  ;;  %v5760_v17 = vmul.f32 0.1, %v5744_v26 }
 0x6a5   : > { %5789 = vst [vmem:[%s9418_s24 + $0x40] sm:$0xff] %v5773_v47  ;;  %v5775_v51 = vadd.f32 %v8048_v16, %v5759_v22 }
 0x6a6   : > { %5790 = vst [vmem:[%s9418_s24 + $0x48] sm:$0xff] %v5774_v60  ;;  %v5776_v11 = vadd.f32 %v8049_v2, %v5760_v17  ;;  %v5696_v55 = vpop.f32.mrb[12].mxu1 }
 0x6a7   : > { %5791 = vst [vmem:[%s9418_s24 + $0x50] sm:$0xff] %v5775_v51  ;;  %v5745_v19 = vadd.f32 %v9404_v14, %v5696_v55  ;;  %v5698_v30 = vpop.f32.mrb[13].mxu1 }
 0x6a8   : > { %5792 = vst [vmem:[%s9418_s24 + $0x58] sm:$0xff] %v5776_v11  ;;  %v5746_v6 = vadd.f32 %v9408_v20, %v5698_v30  ;;  %v5700_v45 = vpop.f32.mrb[14].mxu1 }
 0x6a9   : > { %v5761_v37 = vmul.f32 0.1, %v5745_v19  ;;  %v5747_v46 = vadd.f32 %v9404_v14, %v5700_v45  ;;  %v5702_v9 = vpop.f32.mrb[15].mxu1  ;;  %v8052_v14 = vld [vmem:[%s8532_s28 + $0x70] sm:$0xff] }
 0x6aa   : > { %v5762_v3 = vmul.f32 0.1, %v5746_v6  ;;  %v5748_v4 = vadd.f32 %v9408_v20, %v5702_v9  ;;  %v8053_v20 = vld [vmem:[%s8532_s28 + $0x78] sm:$0xff] }
 0x6ab   : > { %v5777_v24 = vadd.f32 %v8050_v41, %v5761_v37  ;;  %v5763_v58 = vmul.f32 0.1, %v5747_v46 }
 0x6ac   : > { %v5778_v40 = vadd.f32 %v8051_v48, %v5762_v3  ;;  %v5764_v42 = vmul.f32 0.1, %v5748_v4 }
 0x6ad   : > { %5793 = vst [vmem:[%s9418_s24 + $0x60] sm:$0xff] %v5777_v24  ;;  %v5779_v52 = vadd.f32 %v8052_v14, %v5763_v58 }
 0x6ae   : > { %5794 = vst [vmem:[%s9418_s24 + $0x68] sm:$0xff] %v5778_v40  ;;  %v5780_v8 = vadd.f32 %v8053_v20, %v5764_v42 }
 0x6af   : > { %5795 = vst [vmem:[%s9418_s24 + $0x70] sm:$0xff] %v5779_v52 }
 0x6b0   : > { %5796 = vst [vmem:[%s9418_s24 + $0x78] sm:$0xff] %v5780_v8 }
 0x6b1   : > { %8209 = shalt.err (!%p8206_p13)
}
 0x6b2   : > { %s8210_s13 = scalar_lea.hbm %s9463_s8, 2048  ;;  %s8214_s17 = scalar_lea.hbm %s9518_s5, 4096 }
 0x6b3   : > { %p8211_p9 = scmp.ne.s32.totalorder %s9463_s8, %s8210_s13  ;;  %p8215_p6 = scmp.lt.u32.totalorder %s9463_s8, %s9518_s5 }
 0x6b4   : > { %p8216_p4 = scmp.lt.u32.totalorder %s8214_s17, %s8210_s13  ;;  %p8218_p3 = scmp.lt.u32.totalorder %s8210_s13, %s9463_s8 }
 0x6b5   : > { %p8212_p0 = pnand %p8211_p9, %p8474_p10 }
 0x6b6   : > { %p8217_p8 = por %p8216_p4, %p8215_p6 }
 0x6b7   : > { %p8213_p11 = pneg %p8212_p0 }
 0x6b8   : > { %p8219_p5 = por %p8218_p3, %p8217_p8 }
 0x6ba   : > { %p8220_p7 = pnand %p8219_p5, %p8213_p11 }
 0x6bc   : > { %8223 = shalt.err (!%p8220_p7)
}
 0x6bd   : > { %s8283_s26 = smov 256   ;;  %s8284_s11 = smov 16  }
 0x6be   : > { %7084 = dma.vmem_to_hbm [thread:$0]  (%p8474_p10), %s9465_s9, 2048, %s9463_s8, %s5798_s22, %s8283_s26, %s8283_s26, %s8284_s11  }
 0x6bf PF: > { %s5826_s12 = sand.u32 1, %s8258_s18   ;;  %p9606_p12 = scmp.ne.s32.totalorder %s9550_s25, 0 }
 0x6c0   : > { %p9607_p2 = scmp.ge.s32.totalorder %s8270_s21, 2  ;;  %s5827_s27 = scalar_lea.sflag [#allocation5], %s5826_s12 }
 0x6c2   : > { %p7104_p1 = pnand %p9607_p2, %p9606_p12 }
 0x6c4   : > { %8253 = dma.done.wait (!%p7104_p1), %s5827_s27, 2048  }
 0x6c5   : > { %8255 = vsyncadd (!%p7104_p1), %s5827_s27, 4294965248  ;;  %p20_p13 = scmp.ge.s32.totalorder %s8464_s14, 4   ;;  %s9608_s18 = smov %s8262_s19 }
 0x6c6   : > { %s9609_s19 = smov %s8266_s20  ;;  %s9610_s20 = smov %s8480_s23 }
 0x6c7   : > { %s9611_s21 = smov %s8464_s14  ;;  %22 = sbr.rel (!%p20_p13) target bundleno = 7 (0x7), region = 119 }
 0x6ce   :  { %5832 = vsyncpa [#allocation4], 1 }
 0x6cf   :  { %5834 = vsyncpa [#allocation4 + $0x1], 1 }
 0x6d0   :  { %5835 = vsyncpa [#allocation7], 1 }
 0x6d1   :  { %5836 = vsyncpa [#allocation10], 1 }
 0x6d2   :  { %5837 = vsyncpa [#allocation5], 1 }
 0x6d3   :  { %5839 = vsyncpa [#allocation5 + $0x1], 1 }

// kernel: tpu_custom_call.1
= control target key start
LH: loop header
LB: loop body
LE: loop exit
PB: predicated region body
PF: predicated region fallthrough
CT: control target
= control target key end

     0   :  { %10 = vsyncpa [#allocation4], 0  ;;  %s9513_s0 = inlined_call_operand.hbm [shape: f32[2,8,8,256], index: 0, kind: input, shape index: {}]   ;;  %s9514_s1 = inlined_call_operand.hbm [shape: bf16[3,3,256,256], index: 1, kind: input, shape index: {}]   ;;  %s9515_s2 = inlined_call_operand.hbm [shape: f32[1,256], index: 2, kind: input, shape index: {}]   ;;  %s9516_s3 = inlined_call_operand.hbm [shape: bf16[3,3,256,256], index: 3, kind: input, shape index: {}]   ;;  %s9517_s4 = inlined_call_operand.hbm [shape: f32[1,256], index: 4, kind: input, shape index: {}]   ;;  %s9518_s5 = inlined_call_operand.hbm [shape: f32[2,8,8,256], index: 5, kind: output, shape index: {}]  }
   0x1   :  { %12 = vsyncpa [#allocation4 + $0x1], 0 }
   0x2   :  { %13 = vsyncpa [#allocation7], 0 }
   0x3   :  { %14 = vsyncpa [#allocation10], 0 }
   0x4   :  { %15 = vsyncpa [#allocation5], 0 }
   0x5   :  { %17 = vsyncpa [#allocation5 + $0x1], 0  ;;  %s8315_s18 = smov 0   ;;  %s8317_s19 = smov 0  }
   0x6   :  { %s8319_s20 = smov 0   ;;  %s8321_s21 = smov 0  }
   0x7 LB: > { %s8336_s22 = sadd.s32 4294967295, %s8270_s21   ;;  %s5922_s23 = sadd.s32 4294967294, %s8270_s21   ;;  %s8270_s21 = sphi %s8321_s21, %s9611_s21   ;;  %s8266_s20 = sphi %s8319_s20, %s9610_s20   ;;  %s8262_s19 = sphi %s8317_s19, %s9609_s19   ;;  %s8258_s18 = sphi %s8315_s18, %s9608_s18  }
   0x8   : > { %p43_p0 = scmp.ne.s32.totalorder %s8262_s19, %s8258_s18  ;;  %p9519_p1 = scmp.eq.s32.totalorder %s8336_s22, 0 }
   0x9   : > { %p157_p3 = scmp.eq.s32.totalorder %s5922_s23, 1  ;;  %p5923_p5 = scmp.ge.s32.totalorder %s8270_s21, 1 }
   0xa   : > { %p8345_p4 = por %p9519_p1, %p43_p0  ;;  %p164_p7 = scmp.lt.s32.totalorder %s8270_s21, 3 }
   0xb   : > { %p8350_p6 = por %p157_p3, %p43_p0  ;;  %s8272_s27 = smov [#allocation6]  }
   0xc   : > { %s9549_s24 = scalar_select %p8345_p4, 1, 0 }
   0xd   : > { %s9550_s25 = scalar_select %p8350_p6, 1, 0 }
   0xe   : > { %p8355_p8 = pnand %p5923_p5, %p164_p7  ;;  %s176_s28 = sshll.u32 %s8272_s27, 4  ;;  %s8359_s28 = int_to_ptr.vmem [resolvable:$true] %s176_s28 }
   0xf   : > { %s8273_s30 = smov [#allocation9]   ;;  %s8274_s7 = smov [#allocation8]  }
  0x10   : > { %s9551_s26 = scalar_select %p8355_p8, 1, 0 }
  0x11   : > { %p7086_p9 = pneg %p8355_p8  ;;  %s200_s6 = sshll.u32 %s8273_s30, 4  ;;  %s8370_s6 = int_to_ptr.vmem [resolvable:$true] %s200_s6 }
  0x12   : > { %s8372_s8 = sshll.u32 %s8274_s7, 4  ;;  %s8054_s11 = scalar_lea.hbm %s9514_s1, 36864  ;;  %s191_s8 = int_to_ptr.vmem [resolvable:$true] %s8372_s8 }
  0x13   : > { %p8366_p11 = pnand %p7086_p9, %p9519_p1  ;;  %p8055_p12 = scmp.ne.s32.totalorder %s9514_s1, %s8054_s11 }
  0x14   : > { %p8061_p5 = scmp.lt.u32.totalorder %s8054_s11, %s9514_s1 }
  0x15   : > { %p8382_p13 = pneg %p8366_p11 }
  0x17   : > { %p8057_p0 = pnand %p8382_p13, %p8055_p12 }
  0x19   : > { %p8058_p3 = pneg %p8057_p0 }
  0x1b   : > { %p8063_p7 = pnand %p8061_p5, %p8058_p3 }
  0x1d   : > { %8066 = shalt.err (!%p8063_p7)
}
  0x1e   : > { %s8067_s17 = scalar_lea.vmem %s8359_s28, 36864  ;;  %p8075_p2 = scmp.lt.s32.totalorder %s8359_s28, %s8359_s28 }
  0x1f   : > { %p8068_p9 = scmp.ne.s32.totalorder %s8359_s28, %s8067_s17  ;;  %p8076_p6 = scmp.lt.s32.totalorder %s8067_s17, %s8067_s17 }
  0x21   : > { %p8070_p10 = pnand %p8068_p9, %p8382_p13  ;;  %p8077_p12 = por %p8076_p6, %p8075_p2 }
  0x23   : > { %p8071_p1 = pneg %p8070_p10 }
  0x25   : > { %p8078_p0 = pnand %p8077_p12, %p8071_p1 }
  0x27   : > { %8081 = shalt.err (!%p8078_p0)
}
  0x28   : > { %s8275_s23 = smov 128   ;;  %s8276_s27 = smov 8  }
  0x29   : > { %7089 = dma.hbm_to_vmem [thread:$0]  (!%p8366_p11), %s9514_s1, 36864, %s8359_s28, [#allocation7], %s8275_s23, %s8275_s23, %s8276_s27  }
  0x2a   : > { %s8082_s11 = scalar_lea.hbm %s9516_s3, 36864 }
  0x2b   : > { %p8083_p2 = scmp.ne.s32.totalorder %s9516_s3, %s8082_s11  ;;  %p8089_p10 = scmp.lt.u32.totalorder %s8082_s11, %s9516_s3 }
  0x2d   : > { %p8085_p1 = pnand %p8083_p2, %p8382_p13 }
  0x2f   : > { %p8086_p6 = pneg %p8085_p1 }
  0x31   : > { %p8091_p3 = pnand %p8089_p10, %p8086_p6 }
  0x33   : > { %8094 = shalt.err (!%p8091_p3)
}
  0x34   : > { %s8095_s28 = scalar_lea.vmem %s8370_s6, 36864  ;;  %p8103_p12 = scmp.lt.s32.totalorder %s8370_s6, %s8370_s6 }
  0x35   : > { %p8096_p5 = scmp.ne.s32.totalorder %s8370_s6, %s8095_s28  ;;  %p8104_p0 = scmp.lt.s32.totalorder %s8095_s28, %s8095_s28 }
  0x37   : > { %p8098_p7 = pnand %p8096_p5, %p8382_p13  ;;  %p8105_p2 = por %p8104_p0, %p8103_p12 }
  0x39   : > { %p8099_p9 = pneg %p8098_p7 }
  0x3b   : > { %p8106_p1 = pnand %p8105_p2, %p8099_p9 }
  0x3d   : > { %8109 = shalt.err (!%p8106_p1)
}
  0x3e   : > { %7095 = dma.hbm_to_vmem [thread:$0]  (!%p8366_p11), %s9516_s3, 36864, %s8370_s6, [#allocation10], %s8275_s23, %s8275_s23, %s8276_s27  }
  0x3f   : > { %s8110_s10 = scalar_lea.hbm %s9515_s2, 32 }
  0x40   : > { %p8111_p6 = scmp.ne.s32.totalorder %s9515_s2, %s8110_s10  ;;  %p8117_p5 = scmp.lt.u32.totalorder %s8110_s10, %s9515_s2 }
  0x42   : > { %p8113_p10 = pnand %p8111_p6, %p8382_p13 }
  0x44   : > { %p8114_p3 = pneg %p8113_p10 }
  0x46   : > { %p8119_p7 = pnand %p8117_p5, %p8114_p3 }
  0x48   : > { %8122 = shalt.err (!%p8119_p7)
}
  0x49   : > { %s8123_s16 = scalar_lea.vmem %s191_s8, 32  ;;  %p8131_p2 = scmp.lt.s32.totalorder %s191_s8, %s191_s8 }
  0x4a   : > { %p8124_p9 = scmp.ne.s32.totalorder %s191_s8, %s8123_s16  ;;  %p8132_p1 = scmp.lt.s32.totalorder %s8123_s16, %s8123_s16 }
  0x4c   : > { %p8126_p12 = pnand %p8124_p9, %p8382_p13  ;;  %p8133_p4 = por %p8132_p1, %p8131_p2 }
  0x4e   : > { %p8127_p0 = pneg %p8126_p12 }
  0x50   : > { %p8134_p8 = pnand %p8133_p4, %p8127_p0 }
  0x52   : > { %8137 = shalt.err (!%p8134_p8)
}
  0x53   : > { %7092 = dma.hbm_to_vmem [thread:$0]  (!%p8366_p11), %s9515_s2, 32, %s191_s8, [#allocation7]  }
  0x54   : > { %s8277_s27 = smov [#allocation11]   ;;  %s8138_s7 = scalar_lea.hbm %s9517_s4, 32 }
  0x55   : > { %s214_s28 = sshll.u32 %s8277_s27, 4  ;;  %p8139_p6 = scmp.ne.s32.totalorder %s9517_s4, %s8138_s7  ;;  %s215_s28 = int_to_ptr.vmem [resolvable:$true] %s214_s28 }
  0x56   : > { %p8145_p10 = scmp.lt.u32.totalorder %s8138_s7, %s9517_s4 }
  0x57   : > { %p8141_p4 = pnand %p8139_p6, %p8382_p13 }
  0x59   : > { %p8142_p8 = pneg %p8141_p4 }
  0x5b   : > { %p8147_p3 = pnand %p8145_p10, %p8142_p8 }
  0x5d   : > { %8150 = shalt.err (!%p8147_p3)
}
  0x5e   : > { %s8151_s8 = scalar_lea.vmem %s215_s28, 32  ;;  %p8159_p12 = scmp.lt.s32.totalorder %s215_s28, %s215_s28 }
  0x5f   : > { %p8152_p5 = scmp.ne.s32.totalorder %s215_s28, %s8151_s8  ;;  %p8160_p0 = scmp.lt.s32.totalorder %s8151_s8, %s8151_s8 }
  0x61   : > { %p8154_p7 = pnand %p8152_p5, %p8382_p13  ;;  %p8161_p2 = por %p8160_p0, %p8159_p12 }
  0x63   : > { %p8155_p9 = pneg %p8154_p7 }
  0x65   : > { %p8162_p1 = pnand %p8161_p2, %p8155_p9 }
  0x67   : > { %8165 = shalt.err (!%p8162_p1)
}
  0x68   : > { %7098 = dma.hbm_to_vmem [thread:$0]  (!%p8366_p11), %s9517_s4, 32, %s215_s28, [#allocation10]  }
  0x69   : > { %s8464_s14 = sadd.s32 1, %s8270_s21   ;;  %s30_s16 = sadd.s32 1, %s8266_s20 }
  0x6a   : > { %s27_s29 = ssub.s32 %s8270_s21, %s8464_s14  ;;  %p37_p13 = scmp.ne.s32.totalorder %s8266_s20, %s8262_s19 }
  0x6b   : > { %p28_p6 = scmp.eq.s32.totalorder %s27_s29, 0  ;;  %p38_p4 = scmp.eq.s32.totalorder %s8270_s21, 0 }
  0x6c   : > { %p9554_p8 = scmp.eq.s32.totalorder %s8336_s22, 1  ;;  %p7111_p3 = scmp.lt.s32.totalorder %s8270_s21, 2 }
  0x6d   : > { %s8480_s23 = scalar_select %p28_p6, %s8266_s20, %s30_s16  }
  0x6e   : > { %p8474_p10 = por %p9554_p8, %p37_p13  ;;  %p39_p5 = por %p38_p4, %p37_p13 }
  0x6f   : > { %s225_s27 = sand.u32 1, %s8266_s20   ;;  %s6808_s28 = sshll.u32 %s8270_s21, 11 }
  0x70   : > { %s5929_s17 = sshll.u32 %s225_s27, 7  ;;  %s8487_s9 = scalar_lea.hbm %s9513_s0, %s6808_s28 }
  0x71   : > { %s229_s10 = scalar_lea.vmem [#allocation3], %s5929_s17  ;;  %p8491_p11 = pnand %p7111_p3, %p39_p5 }
  0x72   : > { %s236_s11 = sshll.u32 %s229_s10, 4  ;;  %s8495_s8 = scalar_lea.sflag [#allocation4], %s225_s27  ;;  %s8489_s11 = int_to_ptr.vmem [resolvable:$true] %s236_s11 }
  0x73   : > { %s8166_s13 = scalar_lea.hbm %s8487_s9, 2048  ;;  %p8168_p9 = pneg %p8491_p11 }
  0x74   : > { %p8167_p7 = scmp.ne.s32.totalorder %s8487_s9, %s8166_s13  ;;  %s8171_s29 = scalar_lea.hbm %s9513_s0, 4096 }
  0x75   : > { %p8172_p2 = scmp.lt.u32.totalorder %s8487_s9, %s9513_s0  ;;  %p8173_p1 = scmp.lt.u32.totalorder %s8171_s29, %s8166_s13 }
  0x76   : > { %p8169_p12 = pnand %p8168_p9, %p8167_p7  ;;  %p8175_p6 = scmp.lt.u32.totalorder %s8166_s13, %s8487_s9 }
  0x77   : > { %p8174_p13 = por %p8173_p1, %p8172_p2 }
  0x78   : > { %p8170_p0 = pneg %p8169_p12 }
  0x79   : > { %p8176_p4 = por %p8175_p6, %p8174_p13 }
  0x7b   : > { %p8177_p8 = pnand %p8176_p4, %p8170_p0 }
  0x7d   : > { %8180 = shalt.err (!%p8177_p8)
}
  0x7e   : > { %s8181_s27 = scalar_lea.vmem %s8489_s11, 2048  ;;  %s8278_s30 = smov [#allocation3]  }
  0x7f   : > { %p8182_p3 = scmp.ne.s32.totalorder %s8489_s11, %s8181_s27  ;;  %s8186_s7 = sshll.u32 %s8278_s30, 4  ;;  %s8187_s7 = int_to_ptr.vmem [resolvable:$false] %s8186_s7 }
  0x80   : > { %s8188_s10 = scalar_lea.vmem %s8187_s7, 4096  ;;  %p8189_p12 = scmp.lt.s32.totalorder %s8489_s11, %s8187_s7 }
  0x81   : > { %p8184_p5 = pnand %p8182_p3, %p8168_p9  ;;  %p8190_p2 = scmp.lt.s32.totalorder %s8188_s10, %s8181_s27 }
  0x83   : > { %p8185_p7 = pneg %p8184_p5  ;;  %p8191_p1 = por %p8190_p2, %p8189_p12 }
  0x85   : > { %p8192_p13 = pnand %p8191_p1, %p8185_p7 }
  0x87   : > { %8195 = shalt.err (!%p8192_p13)
}
  0x88   : > { %s8279_s13 = smov 256   ;;  %s8280_s15 = smov 16  }
  0x89   : > { %7102 = dma.hbm_to_vmem [thread:$0]  (!%p8491_p11), %s8487_s9, 2048, %s8489_s11, %s8495_s8, %s8279_s13, %s8279_s13, %s8280_s15  }
  0x8a   : > { %p9557_p9 = scmp.ne.s32.totalorder %s9551_s26, 0 }
  0x8c   : > { %248 = sbr.rel (%p9557_p9) target bundleno = 1727 (0x6bf), region = 40 }
  0x93   : > { %s8526_s16 = sand.u32 1, %s8262_s19   ;;  %p9558_p0 = scmp.ne.s32.totalorder %s9549_s24, 0 }
  0x94   : > { %s5933_s29 = sshll.u32 %s8526_s16, 7  ;;  %s251_s17 = scalar_lea.sflag [#allocation4], %s8526_s16 }
  0x95   : > { %s8532_s28 = scalar_lea.vmem [#allocation3], %s5933_s29 }
  0x96   : > { %8241 = dma.done.wait (%p9558_p0), %s251_s17, 2048  }
  0x97   : > { %8243 = vsyncadd (%p9558_p0), %s251_s17, 4294965248  ;;  %p9559_p11 = scmp.eq.s32.totalorder %s8336_s22, 0 }
  0x99   : > { %8245 = dma.done.wait (%p9559_p11), [#allocation7], 36896   ;;  %p9560_p6 = pmov %p9559_p11 }
  0x9b   : > { %8247 = vsyncadd (%p9560_p6), [#allocation7], 4294930400  ;;  %p9561_p4 = pmov %p9560_p6 }
  0x9d   : > { %8249 = dma.done.wait (%p9561_p4), [#allocation10], 36896   ;;  %p9562_p8 = pmov %p9561_p4 }
  0x9e   : > { %v7160_v0 = vld [vmem:[#allocation6 + $0x104] ss:$8 sps:$4 sm:$0xff]   ;;  %v7162_v1 = vld [vmem:[#allocation6 + $0x100] ss:$8 sps:$4 sm:$0xff]   ;;  %v7163_v2 = vld [vmem:[#allocation6 + $0x114] ss:$8 sps:$4 sm:$0xff]   ;;  %v302_v52 = vlaneseq }
  0x9f   : > { %8251 = vsyncadd (%p9562_p8), [#allocation10], 4294930400  ;;  %684 = vmatprep.subr.bf16.mxu0 %v7160_v0  ;;  %v7165_v3 = vld [vmem:[#allocation6 + $0x110] ss:$8 sps:$4 sm:$0xff]   ;;  %v7166_v4 = vld [vmem:[#allocation6 + $0x124] ss:$8 sps:$4 sm:$0xff]  }
  0xa0   : > { %685 = vmatpush1.bf16.msra.mxu0 %v7162_v1  ;;  %v7168_v5 = vld [vmem:[#allocation6 + $0x120] ss:$8 sps:$4 sm:$0xff]   ;;  %v7169_v6 = vld [vmem:[#allocation6 + $0x134] ss:$8 sps:$4 sm:$0xff]   ;;  %v7171_v7 = vld [vmem:[#allocation6 + $0x130] ss:$8 sps:$4 sm:$0xff]  }
  0xa1   : > { %686 = vmatprep.subr.bf16.mxu0 %v7163_v2  ;;  %v7172_v8 = vld [vmem:[#allocation6 + $0x144] ss:$8 sps:$4 sm:$0xff]   ;;  %v7174_v9 = vld [vmem:[#allocation6 + $0x140] ss:$8 sps:$4 sm:$0xff]   ;;  %v7175_v10 = vld [vmem:[#allocation6 + $0x154] ss:$8 sps:$4 sm:$0xff]  }
  0xa2   : > { %v7177_v11 = vld [vmem:[#allocation6 + $0x150] ss:$8 sps:$4 sm:$0xff]   ;;  %v7178_v12 = vld [vmem:[#allocation6 + $0x164] ss:$8 sps:$4 sm:$0xff]   ;;  %v9522_v14 = vmov 0.0   ;;  %v8601_v60 = vshrl.u32 %v302_v52, 7 }
  0xa3   : > { %v8547_v13 = vld [vmem:[%s8532_s28 + $0x8] sm:$0xff]  ;;  %v7181_v17 = vld [vmem:[#allocation6 + $0x174] ss:$8 sps:$4 sm:$0xff]   ;;  %v7183_v18 = vld [vmem:[#allocation6 + $0x170] ss:$8 sps:$4 sm:$0xff]   ;;  %s9418_s24 = scalar_lea.vmem [#allocation12], %s5933_s29 }
  0xa4   : > { %687 = vmatpush1.bf16.msra.mxu0 %v7165_v3  ;;  %v484_v15 = vpack.c.bf16 %v8547_v13, %v9522_v14  ;;  %v7180_v16 = vld [vmem:[#allocation6 + $0x160] ss:$8 sps:$4 sm:$0xff]   ;;  %v7184_v19 = vld [vmem:[#allocation6 + $0x184] ss:$8 sps:$4 sm:$0xff]   ;;  %v7187_v21 = vld [vmem:[#allocation6 + $0x194] ss:$8 sps:$4 sm:$0xff]  }
  0xa5   : > { %688 = vmatprep.subr.bf16.mxu0 %v7166_v4  ;;  %v7186_v20 = vld [vmem:[#allocation6 + $0x180] ss:$8 sps:$4 sm:$0xff]   ;;  %v7189_v22 = vld [vmem:[#allocation6 + $0x190] ss:$8 sps:$4 sm:$0xff]   ;;  %v7190_v23 = vld [vmem:[#allocation6 + $0x1a4] ss:$8 sps:$4 sm:$0xff]  }
  0xa6   : > { %716 = vmatprep.mubr.bf16.mxu0 %v484_v15  ;;  %v8552_v24 = vld [vmem:[%s8532_s28] sm:$0xff]  ;;  %v8555_v25 = vld [vmem:[%s8532_s28 + $0x10] sm:$0xff]  ;;  %v8566_v41 = vld [vmem:[%s8532_s28 + $0x18] sm:$0xff]  ;;  %9563 = vst [vmem:[#allocation17_spill] sm:$0xff] %v8601_v60  ;;  %vm304_vm0 = vcmp.gt.s32.totalorder %v8601_v60, 0  ;;  %vm305_vm2 = vcmp.lt.s32.totalorder %v8601_v60, 7 }
  0xa7   : > { %v7192_v26 = vld [vmem:[#allocation6 + $0x1a0] ss:$8 sps:$4 sm:$0xff]   ;;  %v361_v27 = vrot.slane %v8552_v24, 7  ;;  %v363_v28 = vrot.slane %v8555_v25, 7  ;;  %v7193_v29 = vld [vmem:[#allocation6 + $0x1b4] ss:$8 sps:$4 sm:$0xff]   ;;  %v483_v43 = vpack.c.bf16 %v8552_v24, %v9522_v14  ;;  %vm8620_vm1 = vmpackc.low %vm304_vm0, %vm304_vm0 }
  0xa8   : > { %689 = vmatpush1.bf16.msra.mxu0 %v7168_v5  ;;  %v7195_v31 = vld [vmem:[#allocation6 + $0x1b0] ss:$8 sps:$4 sm:$0xff]   ;;  %v7196_v32 = vld [vmem:[#allocation6 + $0x1c4] ss:$8 sps:$4 sm:$0xff]   ;;  %v7198_v33 = vld [vmem:[#allocation6 + $0x1c0] ss:$8 sps:$4 sm:$0xff]  }
  0xa9   : > { %690 = vmatprep.subr.bf16.mxu0 %v7169_v6  ;;  %v8563_v30 = vpack.c.bf16 %v363_v28, %v361_v27  ;;  %v7199_v34 = vld [vmem:[#allocation6 + $0x1d4] ss:$8 sps:$4 sm:$0xff]   ;;  %v7201_v35 = vld [vmem:[#allocation6 + $0x1d0] ss:$8 sps:$4 sm:$0xff]   ;;  %v7202_v36 = vld [vmem:[#allocation6 + $0x1e4] ss:$8 sps:$4 sm:$0xff]  }
  0xaa   : > { %v7204_v37 = vld [vmem:[#allocation6 + $0x1e0] ss:$8 sps:$4 sm:$0xff]   ;;  %v7205_v38 = vld [vmem:[#allocation6 + $0x1f4] ss:$8 sps:$4 sm:$0xff]   ;;  %v7207_v39 = vld [vmem:[#allocation6 + $0x1f0] ss:$8 sps:$4 sm:$0xff]  }
  0xab   : > { %v7210_v40 = vld [vmem:[#allocation6 + $0x4] ss:$8 sps:$4 sm:$0xff]   ;;  %v7208_v44 = vld [vmem:[#allocation6] ss:$8 sps:$4 sm:$0xff]   ;;  %v7213_v46 = vld [vmem:[#allocation6 + $0x14] ss:$8 sps:$4 sm:$0xff]  }
  0xac   : > { %691 = vmatpush1.bf16.msra.mxu0 %v7171_v7  ;;  %v8569_v42 = vld [vmem:[%s8532_s28 + $0x28] sm:$0xff]  ;;  %v7211_v47 = vld [vmem:[#allocation6 + $0x10] ss:$8 sps:$4 sm:$0xff]   ;;  %v8579_v49 = vld [vmem:[%s8532_s28 + $0x20] sm:$0xff]  ;;  %s6809_s26 = sshll.u32 %s8336_s22, 11  ;;  %s5811_s9 = sshll.u32 %s9418_s24, 4  ;;  %s9465_s9 = int_to_ptr.vmem [resolvable:$true] %s5811_s9 }
  0xad   : > { %692 = vmatprep.subr.bf16.mxu0 %v7172_v8  ;;  %v8575_v45 = vpack.c.bf16 %v8569_v42, %v8566_v41  ;;  %v7216_v48 = vld [vmem:[#allocation6 + $0x24] ss:$8 sps:$4 sm:$0xff]   ;;  %v8582_v50 = vld [vmem:[%s8532_s28 + $0x38] sm:$0xff]  ;;  %v8589_v53 = vpack.c.bf16 %v8579_v49, %v8555_v25  ;;  %v7214_v54 = vld [vmem:[#allocation6 + $0x20] ss:$8 sps:$4 sm:$0xff]   ;;  %s9463_s8 = scalar_lea.hbm %s9518_s5, %s6809_s26  ;;  %s5798_s22 = scalar_lea.sflag [#allocation5], %s8526_s16 }
  0xae   : > { %v8585_v51 = vld [vmem:[%s8532_s28 + $0x48] sm:$0xff]  ;;  %v7219_v56 = vld [vmem:[#allocation6 + $0x34] ss:$8 sps:$4 sm:$0xff]   ;;  %v7217_v57 = vld [vmem:[#allocation6 + $0x30] ss:$8 sps:$4 sm:$0xff]   ;;  %s8196_s27 = scalar_lea.vmem %s9465_s9, 2048 }
  0xaf   : > { %v8593_v55 = vpack.c.bf16 %v8585_v51, %v8582_v50  ;;  %v8596_v58 = vld [vmem:[%s8532_s28 + $0x30] sm:$0xff]  ;;  %v8599_v59 = vld [vmem:[%s8532_s28 + $0x40] sm:$0xff]  ;;  %v8606_v62 = vld [vmem:[%s8532_s28 + $0x58] sm:$0xff]  ;;  %p8197_p3 = scmp.ne.s32.totalorder %s9465_s9, %s8196_s27  ;;  %s8282_s30 = smov [#allocation12]  }
  0xb0   : > { %693 = vmatpush1.bf16.msra.mxu0 %v7174_v9  ;;  %v7222_v61 = vld [vmem:[#allocation6 + $0x44] ss:$8 sps:$4 sm:$0xff]   ;;  %v8614_v0 = vpack.c.bf16 %v8599_v59, %v8596_v58  ;;  %v7220_v1 = vld [vmem:[#allocation6 + $0x40] ss:$8 sps:$4 sm:$0xff]   ;;  %v7225_v2 = vld [vmem:[#allocation6 + $0x54] ss:$8 sps:$4 sm:$0xff]  }
  0xb1   : > { %694 = vmatprep.subr.bf16.mxu0 %v7175_v10  ;;  %v8609_v63 = vld [vmem:[%s8532_s28 + $0x68] sm:$0xff]  ;;  %v7223_v5 = vld [vmem:[#allocation6 + $0x50] ss:$8 sps:$4 sm:$0xff]   ;;  %v8630_v8 = vld [vmem:[%s8532_s28 + $0x60] sm:$0xff]  ;;  %v8633_v9 = vrot.slane %v9522_v14, 7  ;;  %v362_v10 = vrot.slane %v8547_v13, 7  ;;  %p8198_p5 = pnand %p8197_p3, %p8474_p10 }
  0xb2   : > { %v8618_v3 = vpack.c.bf16 %v8609_v63, %v8606_v62  ;;  %v7228_v6 = vld [vmem:[#allocation6 + $0x64] ss:$8 sps:$4 sm:$0xff]   ;;  %v8627_v7 = vld [vmem:[%s8532_s28 + $0x50] sm:$0xff]  ;;  %v7256_v52 = vld [vmem:[#allocation6 + $0x200] ss:$8 sps:$4 sm:$0xff]   ;;  %s8200_s7 = sshll.u32 %s8282_s30, 4  ;;  %s8201_s7 = int_to_ptr.vmem [resolvable:$false] %s8200_s7 }
  0xb3   : > { %v7231_v15 = vld [vmem:[#allocation6 + $0x74] ss:$8 sps:$4 sm:$0xff]   ;;  %vm8726_vm3 = vmpackc.low %vm305_vm2, %vm305_vm2  ;;  %p8199_p7 = pneg %p8198_p5  ;;  %s8202_s10 = scalar_lea.vmem %s8201_s7, 4096 }
  0xb4   : > { %695 = vmatpush1.bf16.msra.mxu0 %v7177_v11  ;;  %v8638_v11 = vpack.c.bf16 %v8630_v8, %v8627_v7  ;;  %v7961_v4 = vld [vmem:[#allocation9 + $0x7b0] ss:$8 sps:$4 sm:$0xff]   ;;  %p8203_p12 = scmp.lt.s32.totalorder %s9465_s9, %s8201_s7  ;;  %p8204_p2 = scmp.lt.s32.totalorder %s8202_s10, %s8196_s27 }
  0xb5   : > { %696 = vmatprep.subr.bf16.mxu0 %v7178_v12  ;;  %v7226_v12 = vld [vmem:[#allocation6 + $0x60] ss:$8 sps:$4 sm:$0xff]  }
  0xb6   : > { %p8205_p1 = por %p8204_p2, %p8203_p12 }
  0xb8   : > { %697 = vmatpush1.bf16.msra.mxu0 %v7180_v16  ;;  %v6004_v16 = vpack.c.bf16 %v362_v10, %v8633_v9  ;;  %p8206_p13 = pnand %p8205_p1, %p8199_p7 }
  0xb9   : > { %698 = vmatprep.subr.bf16.mxu0 %v7181_v17  ;;  %v7229_v17 = vld [vmem:[#allocation6 + $0x70] ss:$8 sps:$4 sm:$0xff]  }
  0xbc   : > { %699 = vmatpush1.bf16.msra.mxu0 %v7183_v18  ;;  %v7234_v18 = vld [vmem:[#allocation6 + $0x84] ss:$8 sps:$4 sm:$0xff]  }
  0xbd   : > { %700 = vmatprep.subr.bf16.mxu0 %v7184_v19  ;;  %v7232_v19 = vld [vmem:[#allocation6 + $0x80] ss:$8 sps:$4 sm:$0xff]  }
  0xc0   : > { %701 = vmatpush1.bf16.msra.mxu0 %v7186_v20  ;;  %v7237_v20 = vld [vmem:[#allocation6 + $0x94] ss:$8 sps:$4 sm:$0xff]  }
  0xc1   : > { %702 = vmatprep.subr.bf16.mxu0 %v7187_v21  ;;  %v7235_v21 = vld [vmem:[#allocation6 + $0x90] ss:$8 sps:$4 sm:$0xff]  }
  0xc4   : > { %703 = vmatpush1.bf16.msra.mxu0 %v7189_v22  ;;  %v7240_v22 = vld [vmem:[#allocation6 + $0xa4] ss:$8 sps:$4 sm:$0xff]  }
  0xc5   : > { %704 = vmatprep.subr.bf16.mxu0 %v7190_v23  ;;  %v403_v23 = vrot.slane %v8552_v24, 1  ;;  %v7312_v24 = vld [vmem:[#allocation6 + $0x324] ss:$8 sps:$4 sm:$0xff]  }
  0xc8   : > { %705 = vmatpush1.bf16.msra.mxu0 %v7192_v26  ;;  %v7238_v26 = vld [vmem:[#allocation6 + $0xa0] ss:$8 sps:$4 sm:$0xff]  }
  0xc9   : > { %706 = vmatprep.subr.bf16.mxu0 %v7193_v29  ;;  %v7243_v29 = vld [vmem:[#allocation6 + $0xb4] ss:$8 sps:$4 sm:$0xff]  }
  0xcc   : > { %707 = vmatpush1.bf16.msra.mxu0 %v7195_v31  ;;  %v405_v31 = vrot.slane %v8555_v25, 1  ;;  %v8773_v25 = vld [vmem:[%s8532_s28 + $0x30] sm:$0xff] }
  0xcd   : > { %708 = vmatprep.subr.bf16.mxu0 %v7196_v32 }
  0xce   : > { %v8652_v32 = vpack.c.bf16 %v405_v31, %v403_v23 }
  0xd0   : > { %709 = vmatpush1.bf16.msra.mxu0 %v7198_v33  ;;  %v7241_v33 = vld [vmem:[#allocation6 + $0xb0] ss:$8 sps:$4 sm:$0xff]  }
  0xd1   : > { %710 = vmatprep.subr.bf16.mxu0 %v7199_v34  ;;  %v7246_v34 = vld [vmem:[#allocation6 + $0xc4] ss:$8 sps:$4 sm:$0xff]  }
  0xd4   : > { %711 = vmatpush1.bf16.msra.mxu0 %v7201_v35  ;;  %v7244_v35 = vld [vmem:[#allocation6 + $0xc0] ss:$8 sps:$4 sm:$0xff]  }
  0xd5   : > { %712 = vmatprep.subr.bf16.mxu0 %v7202_v36  ;;  %v7249_v36 = vld [vmem:[#allocation6 + $0xd4] ss:$8 sps:$4 sm:$0xff]  }
  0xd8   : > { %713 = vmatpush1.bf16.msra.mxu0 %v7204_v37  ;;  %v7247_v37 = vld [vmem:[#allocation6 + $0xd0] ss:$8 sps:$4 sm:$0xff]  }
  0xd9   : > { %714 = vmatprep.subr.bf16.mxu0 %v7205_v38  ;;  %v7252_v38 = vld [vmem:[#allocation6 + $0xe4] ss:$8 sps:$4 sm:$0xff]  }
  0xdc   : > { %715 = vmatpush1.bf16.msra.mxu0 %v7207_v39  ;;  %v7250_v39 = vld [vmem:[#allocation6 + $0xe0] ss:$8 sps:$4 sm:$0xff]  }
  0xdd   : > { %917 = vmatprep.subr.bf16.mxu0 %v7210_v40  ;;  %v7255_v40 = vld [vmem:[#allocation6 + $0xf4] ss:$8 sps:$4 sm:$0xff]  }
  0xdf   : > { %717 = vmatmul.mubr.bf16.vlgmr.msra.gmra.mrb[0].mxu0 %v483_v43  ;;  %v364_v43 = vrot.slane %v8566_v41, 7 }
  0xe0   : > { %918 = vmatpush1.bf16.msra.mxu0 %v7208_v44  ;;  %726 = vmatprep.mubr.bf16.mxu0 %v8575_v45  ;;  %v7253_v44 = vld [vmem:[#allocation6 + $0xf0] ss:$8 sps:$4 sm:$0xff]  }
  0xe1   : > { %919 = vmatprep.subr.bf16.mxu0 %v7213_v46  ;;  %v7258_v46 = vld [vmem:[#allocation6 + $0x204] ss:$8 sps:$4 sm:$0xff]  }
  0xe4   : > { %920 = vmatpush1.bf16.msra.mxu0 %v7211_v47  ;;  %v366_v47 = vrot.slane %v8569_v42, 7 }
  0xe5   : > { %921 = vmatprep.subr.bf16.mxu0 %v7216_v48  ;;  %v6007_v48 = vpack.c.bf16 %v361_v27, %v8633_v9  ;;  %v7264_v27 = vld [vmem:[#allocation6 + $0x224] ss:$8 sps:$4 sm:$0xff]  }
  0xe7   : > { %727 = vmatmul.mubr.bf16.gmra.mrb[4].mxu0 %v8589_v53 }
  0xe8   : > { %922 = vmatpush1.bf16.msra.mxu0 %v7214_v54  ;;  %736 = vmatprep.mubr.bf16.mxu0 %v8593_v55  ;;  %v7261_v54 = vld [vmem:[#allocation6 + $0x214] ss:$8 sps:$4 sm:$0xff]  }
  0xe9   : > { %923 = vmatprep.subr.bf16.mxu0 %v7219_v56  ;;  %v8663_v56 = vpack.c.bf16 %v366_v47, %v364_v43 }
  0xec   : > { %924 = vmatpush1.bf16.msra.mxu0 %v7217_v57  ;;  %v365_v57 = vrot.slane %v8579_v49, 7 }
  0xed   : > { %925 = vmatprep.subr.bf16.mxu0 %v7222_v61  ;;  %v368_v61 = vrot.slane %v8582_v50, 7 }
  0xef   : > { %737 = vmatmul.mubr.bf16.gmra.mrb[8].mxu0 %v8614_v0 }
  0xf0   : > { %926 = vmatpush1.bf16.msra.mxu0 %v7220_v1  ;;  %746 = vmatprep.mubr.bf16.mxu0 %v8618_v3  ;;  %v7259_v1 = vld [vmem:[#allocation6 + $0x210] ss:$8 sps:$4 sm:$0xff]  }
  0xf1   : > { %927 = vmatprep.subr.bf16.mxu0 %v7225_v2  ;;  %v370_v2 = vrot.slane %v8585_v51, 7 }
  0xf4   : > { %928 = vmatpush1.bf16.msra.mxu0 %v7223_v5  ;;  %v8677_v5 = vpack.c.bf16 %v365_v57, %v363_v28  ;;  %v369_v28 = vrot.slane %v8599_v59, 7 }
  0xf5   : > { %929 = vmatprep.subr.bf16.mxu0 %v7228_v6  ;;  %v7262_v6 = vld [vmem:[#allocation6 + $0x220] ss:$8 sps:$4 sm:$0xff]  }
  0xf7   : > { %747 = vmatmul.mubr.bf16.gmra.mrb[12].mxu0 %v8638_v11 }
  0xf8   : > { %930 = vmatpush1.bf16.msra.mxu0 %v7226_v12  ;;  %6005 = vmatprep.mubr.msk.bf16.mxu0 %vm8620_vm1, %v6004_v16  ;;  %v7267_v12 = vld [vmem:[#allocation6 + $0x234] ss:$8 sps:$4 sm:$0xff]   ;;  %v7265_v16 = vld [vmem:[#allocation6 + $0x230] ss:$8 sps:$4 sm:$0xff]  }
  0xf9   : > { %931 = vmatprep.subr.bf16.mxu0 %v7231_v15  ;;  %v8683_v15 = vpack.c.bf16 %v370_v2, %v368_v61 }
  0xfc   : > { %932 = vmatpush1.bf16.msra.mxu0 %v7229_v17  ;;  %v367_v17 = vrot.slane %v8596_v58, 7 }
  0xfd   : > { %933 = vmatprep.subr.bf16.mxu0 %v7234_v18  ;;  %v7270_v18 = vld [vmem:[#allocation6 + $0x244] ss:$8 sps:$4 sm:$0xff]  }
 0x100   : > { %934 = vmatpush1.bf16.msra.mxu0 %v7232_v19  ;;  %v372_v19 = vrot.slane %v8606_v62, 7 }
 0x101   : > { %935 = vmatprep.subr.bf16.mxu0 %v7237_v20  ;;  %v374_v20 = vrot.slane %v8609_v63, 7 }
 0x104   : > { %936 = vmatpush1.bf16.msra.mxu0 %v7235_v21  ;;  %v8699_v21 = vpack.c.bf16 %v369_v28, %v367_v17 }
 0x105   : > { %937 = vmatprep.subr.bf16.mxu0 %v7240_v22  ;;  %v7268_v22 = vld [vmem:[#allocation6 + $0x240] ss:$8 sps:$4 sm:$0xff]  }
 0x108   : > { %938 = vmatpush1.bf16.msra.mxu0 %v7238_v26  ;;  %v7273_v26 = vld [vmem:[#allocation6 + $0x254] ss:$8 sps:$4 sm:$0xff]  }
 0x109   : > { %939 = vmatprep.subr.bf16.mxu0 %v7243_v29  ;;  %v8705_v29 = vpack.c.bf16 %v374_v20, %v372_v19 }
 0x10c   : > { %940 = vmatpush1.bf16.msra.mxu0 %v7241_v33  ;;  %v7271_v33 = vld [vmem:[#allocation6 + $0x250] ss:$8 sps:$4 sm:$0xff]  }
 0x10d   : > { %941 = vmatprep.subr.bf16.mxu0 %v7246_v34  ;;  %v371_v34 = vrot.slane %v8627_v7, 7 }
 0x110   : > { %942 = vmatpush1.bf16.msra.mxu0 %v7244_v35  ;;  %v373_v35 = vrot.slane %v8630_v8, 7 }
 0x111   : > { %943 = vmatprep.subr.bf16.mxu0 %v7249_v36  ;;  %v7276_v36 = vld [vmem:[#allocation6 + $0x264] ss:$8 sps:$4 sm:$0xff]  }
 0x114   : > { %944 = vmatpush1.bf16.msra.mxu0 %v7247_v37  ;;  %v8716_v37 = vrot.slane %v9522_v14, 1  ;;  %v7316_v14 = vld [vmem:[#allocation6 + $0x340] ss:$8 sps:$4 sm:$0xff]  }
 0x115   : > { %945 = vmatprep.subr.bf16.mxu0 %v7252_v38  ;;  %v404_v38 = vrot.slane %v8547_v13, 1  ;;  %v7432_v13 = vld [vmem:[#allocation6 + $0x5a4] ss:$8 sps:$4 sm:$0xff]  }
 0x118   : > { %946 = vmatpush1.bf16.msra.mxu0 %v7250_v39  ;;  %v7274_v39 = vld [vmem:[#allocation6 + $0x260] ss:$8 sps:$4 sm:$0xff]  }
 0x119   : > { %947 = vmatprep.subr.bf16.mxu0 %v7255_v40  ;;  %v8724_v40 = vpack.c.bf16 %v373_v35, %v371_v34 }
 0x11c   : > { %948 = vmatpush1.bf16.msra.mxu0 %v7253_v44  ;;  %v7279_v44 = vld [vmem:[#allocation6 + $0x274] ss:$8 sps:$4 sm:$0xff]  }
 0x11d   : > { %1191 = vmatprep.subr.bf16.mxu0 %v7258_v46 }
 0x11f   : > { %6008 = vmatmul.mubr.msk.bf16.vlgmr.msra.gmra.mrb[0].mxu0 %vm8620_vm1, %v6007_v48  ;;  %v6060_v48 = vpack.c.bf16 %v404_v38, %v8716_v37 }
 0x120   : > { %1192 = vmatpush1.bf16.msra.mxu0 %v7256_v52  ;;  %6011 = vmatprep.mubr.msk.bf16.mxu0 %vm8620_vm1, %v8663_v56  ;;  %v7277_v52 = vld [vmem:[#allocation6 + $0x270] ss:$8 sps:$4 sm:$0xff]  }
 0x121   : > { %1193 = vmatprep.subr.bf16.mxu0 %v7261_v54  ;;  %v7282_v54 = vld [vmem:[#allocation6 + $0x284] ss:$8 sps:$4 sm:$0xff]  }
 0x124   : > { %1194 = vmatpush1.bf16.msra.mxu0 %v7259_v1  ;;  %v7280_v1 = vld [vmem:[#allocation6 + $0x280] ss:$8 sps:$4 sm:$0xff]  }
 0x125   : > { %1195 = vmatprep.subr.bf16.mxu0 %v7264_v27  ;;  %v7285_v27 = vld [vmem:[#allocation6 + $0x294] ss:$8 sps:$4 sm:$0xff]  }
 0x127   : > { %6014 = vmatmul.mubr.msk.bf16.gmra.mrb[4].mxu0 %vm8620_vm1, %v8677_v5 }
 0x128   : > { %1196 = vmatpush1.bf16.msra.mxu0 %v7262_v6  ;;  %6017 = vmatprep.mubr.msk.bf16.mxu0 %vm8620_vm1, %v8683_v15  ;;  %v7283_v6 = vld [vmem:[#allocation6 + $0x290] ss:$8 sps:$4 sm:$0xff]  }
 0x129   : > { %1197 = vmatprep.subr.bf16.mxu0 %v7267_v12  ;;  %v7288_v12 = vld [vmem:[#allocation6 + $0x2a4] ss:$8 sps:$4 sm:$0xff]  }
 0x12c   : > { %1198 = vmatpush1.bf16.msra.mxu0 %v7265_v16  ;;  %v7286_v16 = vld [vmem:[#allocation6 + $0x2a0] ss:$8 sps:$4 sm:$0xff]  }
 0x12d   : > { %1199 = vmatprep.subr.bf16.mxu0 %v7270_v18  ;;  %v7291_v18 = vld [vmem:[#allocation6 + $0x2b4] ss:$8 sps:$4 sm:$0xff]  }
 0x12f   : > { %6020 = vmatmul.mubr.msk.bf16.gmra.mrb[8].mxu0 %vm8620_vm1, %v8699_v21 }
 0x130   : > { %1200 = vmatpush1.bf16.msra.mxu0 %v7268_v22  ;;  %6023 = vmatprep.mubr.msk.bf16.mxu0 %vm8620_vm1, %v8705_v29  ;;  %v7289_v22 = vld [vmem:[#allocation6 + $0x2b0] ss:$8 sps:$4 sm:$0xff]  }
 0x131   : > { %1201 = vmatprep.subr.bf16.mxu0 %v7273_v26  ;;  %v7294_v26 = vld [vmem:[#allocation6 + $0x2c4] ss:$8 sps:$4 sm:$0xff]  }
 0x134   : > { %1202 = vmatpush1.bf16.msra.mxu0 %v7271_v33  ;;  %v7292_v33 = vld [vmem:[#allocation6 + $0x2c0] ss:$8 sps:$4 sm:$0xff]  }
 0x135   : > { %1203 = vmatprep.subr.bf16.mxu0 %v7276_v36  ;;  %v7297_v36 = vld [vmem:[#allocation6 + $0x2d4] ss:$8 sps:$4 sm:$0xff]  }
 0x137   : > { %6026 = vmatmul.mubr.msk.bf16.gmra.mrb[12].mxu0 %vm8620_vm1, %v8724_v40 }
 0x138   : > { %1204 = vmatpush1.bf16.msra.mxu0 %v7274_v39  ;;  %6061 = vmatprep.mubr.msk.bf16.mxu0 %vm8726_vm3, %v6060_v48  ;;  %v7295_v39 = vld [vmem:[#allocation6 + $0x2d0] ss:$8 sps:$4 sm:$0xff]   ;;  %v7298_v48 = vld [vmem:[#allocation6 + $0x2e0] ss:$8 sps:$4 sm:$0xff]  }
 0x139   : > { %1205 = vmatprep.subr.bf16.mxu0 %v7279_v44  ;;  %v7300_v44 = vld [vmem:[#allocation6 + $0x2e4] ss:$8 sps:$4 sm:$0xff]  }
 0x13c   : > { %1206 = vmatpush1.bf16.msra.mxu0 %v7277_v52  ;;  %v7303_v52 = vld [vmem:[#allocation6 + $0x2f4] ss:$8 sps:$4 sm:$0xff]  }
 0x13d   : > { %1207 = vmatprep.subr.bf16.mxu0 %v7282_v54  ;;  %v7301_v54 = vld [vmem:[#allocation6 + $0x2f0] ss:$8 sps:$4 sm:$0xff]  }
 0x140   : > { %1208 = vmatpush1.bf16.msra.mxu0 %v7280_v1  ;;  %v7306_v1 = vld [vmem:[#allocation6 + $0x304] ss:$8 sps:$4 sm:$0xff]  }
 0x141   : > { %1209 = vmatprep.subr.bf16.mxu0 %v7285_v27  ;;  %v406_v27 = vrot.slane %v8566_v41, 1  ;;  %v7430_v41 = vld [vmem:[#allocation6 + $0x5a0] ss:$8 sps:$4 sm:$0xff]  }
 0x144   : > { %1210 = vmatpush1.bf16.msra.mxu0 %v7283_v6  ;;  %v9533_v6 = vrot.slane %v8569_v42, 1 }
 0x145   : > { %1211 = vmatprep.subr.bf16.mxu0 %v7288_v12  ;;  %v6063_v12 = vpack.c.bf16 %v403_v23, %v8716_v37  ;;  %v9532_v23 = vrot.slane %v8582_v50, 1 }
 0x148   : > { %1212 = vmatpush1.bf16.msra.mxu0 %v7286_v16  ;;  %v7304_v16 = vld [vmem:[#allocation6 + $0x300] ss:$8 sps:$4 sm:$0xff]  }
 0x149   : > { %1213 = vmatprep.subr.bf16.mxu0 %v7291_v18  ;;  %v7309_v18 = vld [vmem:[#allocation6 + $0x314] ss:$8 sps:$4 sm:$0xff]  }
 0x14c   : > { %1214 = vmatpush1.bf16.msra.mxu0 %v7289_v22  ;;  %v8747_v22 = vpack.c.bf16 %v9533_v6, %v406_v27  ;;  %v7340_v6 = vld [vmem:[#allocation6 + $0x3c0] ss:$8 sps:$4 sm:$0xff]  }
 0x14d   : > { %1215 = vmatprep.subr.bf16.mxu0 %v7294_v26  ;;  %v7307_v26 = vld [vmem:[#allocation6 + $0x310] ss:$8 sps:$4 sm:$0xff]  }
 0x150   : > { %1216 = vmatpush1.bf16.msra.mxu0 %v7292_v33  ;;  %v9525_v33 = vrot.slane %v8579_v49, 1 }
 0x151   : > { %1217 = vmatprep.subr.bf16.mxu0 %v7297_v36  ;;  %v9524_v36 = vrot.slane %v8585_v51, 1 }
 0x154   : > { %1218 = vmatpush1.bf16.msra.mxu0 %v7295_v39  ;;  %v8761_v39 = vpack.c.bf16 %v9525_v33, %v405_v31  ;;  %v9529_v31 = vrot.slane %v8773_v25, 1  ;;  %v9530_v33 = vrot.slane %v8630_v8, 1 }
 0x155   : > { %1219 = vmatprep.subr.bf16.mxu0 %v7300_v44  ;;  %v7310_v44 = vld [vmem:[#allocation6 + $0x320] ss:$8 sps:$4 sm:$0xff]  }
 0x158   : > { %1220 = vmatpush1.bf16.msra.mxu0 %v7298_v48  ;;  %v7315_v48 = vld [vmem:[#allocation6 + $0x334] ss:$8 sps:$4 sm:$0xff]  }
 0x159   : > { %1221 = vmatprep.subr.bf16.mxu0 %v7303_v52  ;;  %v8767_v52 = vpack.c.bf16 %v9524_v36, %v9532_v23  ;;  %v7321_v36 = vld [vmem:[#allocation6 + $0x354] ss:$8 sps:$4 sm:$0xff]   ;;  %v7336_v23 = vld [vmem:[#allocation6 + $0x3a4] ss:$8 sps:$4 sm:$0xff]  }
 0x15c   : > { %1222 = vmatpush1.bf16.msra.mxu0 %v7301_v54  ;;  %v7313_v54 = vld [vmem:[#allocation6 + $0x330] ss:$8 sps:$4 sm:$0xff]  }
 0x15d   : > { %1481 = vmatprep.subr.bf16.mxu0 %v7306_v1  ;;  %v8777_v1 = vld [vmem:[%s8532_s28 + $0x40] sm:$0xff] }
 0x15f   : > { %6064 = vmatmul.mubr.msk.bf16.vlgmr.msra.gmra.mrb[0].mxu0 %vm8726_vm3, %v6063_v12  ;;  %v9526_v12 = vrot.slane %v8777_v1, 1 }
 0x160   : > { %1482 = vmatpush1.bf16.msra.mxu0 %v7304_v16  ;;  %6067 = vmatprep.mubr.msk.bf16.mxu0 %vm8726_vm3, %v8747_v22  ;;  %v7318_v16 = vld [vmem:[#allocation6 + $0x344] ss:$8 sps:$4 sm:$0xff]  }
 0x161   : > { %1483 = vmatprep.subr.bf16.mxu0 %v7309_v18  ;;  %v9528_v18 = vrot.slane %v8606_v62, 1 }
 0x164   : > { %1484 = vmatpush1.bf16.msra.mxu0 %v7307_v26  ;;  %v9527_v26 = vrot.slane %v8609_v63, 1 }
 0x165   : > { %1485 = vmatprep.subr.bf16.mxu0 %v7312_v24  ;;  %v8789_v24 = vpack.c.bf16 %v9526_v12, %v9529_v31  ;;  %v7319_v12 = vld [vmem:[#allocation6 + $0x350] ss:$8 sps:$4 sm:$0xff]   ;;  %v7330_v31 = vld [vmem:[#allocation6 + $0x384] ss:$8 sps:$4 sm:$0xff]  }
 0x167   : > { %6070 = vmatmul.mubr.msk.bf16.gmra.mrb[4].mxu0 %vm8726_vm3, %v8761_v39 }
 0x168   : > { %1486 = vmatpush1.bf16.msra.mxu0 %v7310_v44  ;;  %6073 = vmatprep.mubr.msk.bf16.mxu0 %vm8726_vm3, %v8767_v52  ;;  %v8795_v44 = vpack.c.bf16 %v9527_v26, %v9528_v18  ;;  %v7322_v26 = vld [vmem:[#allocation6 + $0x360] ss:$8 sps:$4 sm:$0xff]   ;;  %v7327_v18 = vld [vmem:[#allocation6 + $0x374] ss:$8 sps:$4 sm:$0xff]  }
 0x169   : > { %1487 = vmatprep.subr.bf16.mxu0 %v7315_v48  ;;  %v9531_v48 = vrot.slane %v8627_v7, 1 }
 0x16c   : > { %1488 = vmatpush1.bf16.msra.mxu0 %v7313_v54  ;;  %v7324_v54 = vld [vmem:[#allocation6 + $0x364] ss:$8 sps:$4 sm:$0xff]  }
 0x16d   : > { %1489 = vmatprep.subr.bf16.mxu0 %v7318_v16  ;;  %v8809_v16 = vpack.c.bf16 %v9530_v33, %v9531_v48  ;;  %v7333_v33 = vld [vmem:[#allocation6 + $0x394] ss:$8 sps:$4 sm:$0xff]   ;;  %v7331_v48 = vld [vmem:[#allocation6 + $0x390] ss:$8 sps:$4 sm:$0xff]  }
 0x16f   : > { %6076 = vmatmul.mubr.msk.bf16.gmra.mrb[8].mxu0 %vm8726_vm3, %v8789_v24 }
 0x170   : > { %1490 = vmatpush1.bf16.msra.mxu0 %v7316_v14  ;;  %6079 = vmatprep.mubr.msk.bf16.mxu0 %vm8726_vm3, %v8795_v44  ;;  %v6116_v14 = vpack.c.bf16 %v364_v43, %v362_v10  ;;  %v7334_v10 = vld [vmem:[#allocation6 + $0x3a0] ss:$8 sps:$4 sm:$0xff]   ;;  %v7339_v43 = vld [vmem:[#allocation6 + $0x3b4] ss:$8 sps:$4 sm:$0xff]  }
 0x171   : > { %1491 = vmatprep.subr.bf16.mxu0 %v7321_v36  ;;  %v7325_v36 = vld [vmem:[#allocation6 + $0x370] ss:$8 sps:$4 sm:$0xff]  }
 0x174   : > { %1492 = vmatpush1.bf16.msra.mxu0 %v7319_v12  ;;  %v7328_v12 = vld [vmem:[#allocation6 + $0x380] ss:$8 sps:$4 sm:$0xff]  }
 0x175   : > { %1493 = vmatprep.subr.bf16.mxu0 %v7324_v54  ;;  %v7342_v54 = vld [vmem:[#allocation6 + $0x3c4] ss:$8 sps:$4 sm:$0xff]  }
 0x177   : > { %6082 = vmatmul.mubr.msk.bf16.gmra.mrb[12].mxu0 %vm8726_vm3, %v8809_v16 }
 0x178   : > { %1494 = vmatpush1.bf16.msra.mxu0 %v7322_v26  ;;  %6117 = vmatprep.mubr.msk.bf16.mxu0 %vm8620_vm1, %v6116_v14  ;;  %v7337_v26 = vld [vmem:[#allocation6 + $0x3b0] ss:$8 sps:$4 sm:$0xff]   ;;  %v7345_v14 = vld [vmem:[#allocation6 + $0x3d4] ss:$8 sps:$4 sm:$0xff]  }
 0x179   : > { %1495 = vmatprep.subr.bf16.mxu0 %v7327_v18  ;;  %v7343_v18 = vld [vmem:[#allocation6 + $0x3d0] ss:$8 sps:$4 sm:$0xff]  }
 0x17c   : > { %1496 = vmatpush1.bf16.msra.mxu0 %v7325_v36  ;;  %v7348_v36 = vld [vmem:[#allocation6 + $0x3e4] ss:$8 sps:$4 sm:$0xff]  }
 0x17d   : > { %1497 = vmatprep.subr.bf16.mxu0 %v7330_v31  ;;  %v7346_v31 = vld [vmem:[#allocation6 + $0x3e0] ss:$8 sps:$4 sm:$0xff]  }
 0x180   : > { %1498 = vmatpush1.bf16.msra.mxu0 %v7328_v12  ;;  %v7351_v12 = vld [vmem:[#allocation6 + $0x3f4] ss:$8 sps:$4 sm:$0xff]  }
 0x181   : > { %1499 = vmatprep.subr.bf16.mxu0 %v7333_v33  ;;  %v7349_v33 = vld [vmem:[#allocation6 + $0x3f0] ss:$8 sps:$4 sm:$0xff]  }
 0x184   : > { %1500 = vmatpush1.bf16.msra.mxu0 %v7331_v48  ;;  %v7354_v48 = vld [vmem:[#allocation6 + $0x404] ss:$8 sps:$4 sm:$0xff]  }
 0x185   : > { %1501 = vmatprep.subr.bf16.mxu0 %v7336_v23  ;;  %v7352_v23 = vld [vmem:[#allocation6 + $0x400] ss:$8 sps:$4 sm:$0xff]  }
 0x188   : > { %1502 = vmatpush1.bf16.msra.mxu0 %v7334_v10  ;;  %v7357_v10 = vld [vmem:[#allocation6 + $0x414] ss:$8 sps:$4 sm:$0xff]  }
 0x189   : > { %1503 = vmatprep.subr.bf16.mxu0 %v7339_v43  ;;  %v7355_v43 = vld [vmem:[#allocation6 + $0x410] ss:$8 sps:$4 sm:$0xff]  }
 0x18c   : > { %1504 = vmatpush1.bf16.msra.mxu0 %v7337_v26  ;;  %v7360_v26 = vld [vmem:[#allocation6 + $0x424] ss:$8 sps:$4 sm:$0xff]  }
 0x18d   : > { %1505 = vmatprep.subr.bf16.mxu0 %v7342_v54  ;;  %v7358_v54 = vld [vmem:[#allocation6 + $0x420] ss:$8 sps:$4 sm:$0xff]  }
 0x190   : > { %1506 = vmatpush1.bf16.msra.mxu0 %v7340_v6  ;;  %v6122_v6 = vpack.c.bf16 %v368_v61, %v366_v47  ;;  %v7363_v47 = vld [vmem:[#allocation6 + $0x434] ss:$8 sps:$4 sm:$0xff]  }
 0x191   : > { %1507 = vmatprep.subr.bf16.mxu0 %v7345_v14  ;;  %v6125_v14 = vpack.c.bf16 %v367_v17, %v365_v57  ;;  %v8838_v61 = vld [vmem:[%s8532_s28 + $0x78] sm:$0xff]  ;;  %v7366_v57 = vld [vmem:[#allocation6 + $0x444] ss:$8 sps:$4 sm:$0xff]   ;;  %v7364_v17 = vld [vmem:[#allocation6 + $0x440] ss:$8 sps:$4 sm:$0xff]  }
 0x192   : > { %v376_v58 = vrot.slane %v8838_v61, 7 }
 0x194   : > { %1508 = vmatpush1.bf16.msra.mxu0 %v7343_v18  ;;  %v7361_v18 = vld [vmem:[#allocation6 + $0x430] ss:$8 sps:$4 sm:$0xff]  }
 0x195   : > { %1509 = vmatprep.subr.bf16.mxu0 %v7348_v36  ;;  %v8854_v36 = vld [vmem:[%s8532_s28 + $0x70] sm:$0xff] }
 0x196   : > { %v375_v59 = vrot.slane %v8854_v36, 7 }
 0x198   : > { %1510 = vmatpush1.bf16.msra.mxu0 %v7346_v31  ;;  %v7369_v31 = vld [vmem:[#allocation6 + $0x454] ss:$8 sps:$4 sm:$0xff]  }
 0x199   : > { %1511 = vmatprep.subr.bf16.mxu0 %v7351_v12  ;;  %v7370_v12 = vld [vmem:[#allocation6 + $0x460] ss:$8 sps:$4 sm:$0xff]  }
 0x19c   : > { %1512 = vmatpush1.bf16.msra.mxu0 %v7349_v33  ;;  %v8026_v33 = vld [vmem:[%s8532_s28 + $0x8] sm:$0xff] }
 0x19d   : > { %1771 = vmatprep.subr.bf16.mxu0 %v7354_v48  ;;  %v8027_v48 = vld [vmem:[%s8532_s28 + $0x18] sm:$0xff] }
 0x19f   : > { %6120 = vmatmul.mubr.msk.bf16.vlgmr.msra.gmra.mrb[0].mxu0 %vm8620_vm1, %v8563_v30  ;;  %v6128_v30 = vpack.c.bf16 %v372_v19, %v370_v2  ;;  %v6131_v2 = vpack.c.bf16 %v371_v34, %v369_v28  ;;  %v6134_v19 = vpack.c.bf16 %v376_v58, %v374_v20  ;;  %v7367_v28 = vld [vmem:[#allocation6 + $0x450] ss:$8 sps:$4 sm:$0xff]   ;;  %v7372_v34 = vld [vmem:[#allocation6 + $0x464] ss:$8 sps:$4 sm:$0xff]   ;;  %v6137_v20 = vpack.c.bf16 %v375_v59, %v373_v35 }
 0x1a0   : > { %1772 = vmatpush1.bf16.msra.mxu0 %v7352_v23  ;;  %6123 = vmatprep.mubr.msk.bf16.mxu0 %vm8620_vm1, %v6122_v6  ;;  %v1571_v23 = vpack.c.bf16 %v8027_v48, %v8026_v33  ;;  %v7373_v6 = vld [vmem:[#allocation6 + $0x470] ss:$8 sps:$4 sm:$0xff]   ;;  %v8028_v33 = vld [vmem:[%s8532_s28] sm:$0xff] }
 0x1a1   : > { %1773 = vmatprep.subr.bf16.mxu0 %v7357_v10  ;;  %v7375_v10 = vld [vmem:[#allocation6 + $0x474] ss:$8 sps:$4 sm:$0xff]   ;;  %v7379_v35 = vld [vmem:[#allocation6 + $0x490] ss:$8 sps:$4 sm:$0xff]  }
 0x1a2   : > { %v8029_v48 = vld [vmem:[%s8532_s28 + $0x10] sm:$0xff] }
 0x1a4   : > { %1774 = vmatpush1.bf16.msra.mxu0 %v7355_v43  ;;  %v7378_v43 = vld [vmem:[#allocation6 + $0x484] ss:$8 sps:$4 sm:$0xff]  }
 0x1a5   : > { %1775 = vmatprep.subr.bf16.mxu0 %v7360_v26  ;;  %v7376_v26 = vld [vmem:[#allocation6 + $0x480] ss:$8 sps:$4 sm:$0xff]  }
 0x1a7   : > { %6126 = vmatmul.mubr.msk.bf16.gmra.mrb[4].mxu0 %vm8620_vm1, %v6125_v14  ;;  %v7384_v14 = vld [vmem:[#allocation6 + $0x4a4] ss:$8 sps:$4 sm:$0xff]  }
 0x1a8   : > { %1776 = vmatpush1.bf16.msra.mxu0 %v7358_v54  ;;  %6129 = vmatprep.mubr.msk.bf16.mxu0 %vm8620_vm1, %v6128_v30  ;;  %v7381_v54 = vld [vmem:[#allocation6 + $0x494] ss:$8 sps:$4 sm:$0xff]  }
 0x1a9   : > { %1777 = vmatprep.subr.bf16.mxu0 %v7363_v47  ;;  %v7382_v47 = vld [vmem:[#allocation6 + $0x4a0] ss:$8 sps:$4 sm:$0xff]   ;;  %v7387_v30 = vld [vmem:[#allocation6 + $0x4b4] ss:$8 sps:$4 sm:$0xff]  }
 0x1ac   : > { %1778 = vmatpush1.bf16.msra.mxu0 %v7361_v18  ;;  %v7385_v18 = vld [vmem:[#allocation6 + $0x4b0] ss:$8 sps:$4 sm:$0xff]  }
 0x1ad   : > { %1779 = vmatprep.subr.bf16.mxu0 %v7366_v57  ;;  %v7390_v57 = vld [vmem:[#allocation6 + $0x4c4] ss:$8 sps:$4 sm:$0xff]  }
 0x1af   : > { %6132 = vmatmul.mubr.msk.bf16.gmra.mrb[8].mxu0 %vm8620_vm1, %v6131_v2  ;;  %v7388_v2 = vld [vmem:[#allocation6 + $0x4c0] ss:$8 sps:$4 sm:$0xff]  }
 0x1b0   : > { %1780 = vmatpush1.bf16.msra.mxu0 %v7364_v17  ;;  %6135 = vmatprep.mubr.msk.bf16.mxu0 %vm8620_vm1, %v6134_v19  ;;  %v7393_v17 = vld [vmem:[#allocation6 + $0x4d4] ss:$8 sps:$4 sm:$0xff]   ;;  %v7391_v19 = vld [vmem:[#allocation6 + $0x4d0] ss:$8 sps:$4 sm:$0xff]  }
 0x1b1   : > { %1781 = vmatprep.subr.bf16.mxu0 %v7369_v31  ;;  %v7396_v31 = vld [vmem:[#allocation6 + $0x4e4] ss:$8 sps:$4 sm:$0xff]  }
 0x1b4   : > { %1782 = vmatpush1.bf16.msra.mxu0 %v7367_v28  ;;  %v7394_v28 = vld [vmem:[#allocation6 + $0x4e0] ss:$8 sps:$4 sm:$0xff]  }
 0x1b5   : > { %1783 = vmatprep.subr.bf16.mxu0 %v7372_v34  ;;  %v7399_v34 = vld [vmem:[#allocation6 + $0x4f4] ss:$8 sps:$4 sm:$0xff]  }
 0x1b7   : > { %6138 = vmatmul.mubr.msk.bf16.gmra.mrb[12].mxu0 %vm8620_vm1, %v6137_v20  ;;  %v7397_v20 = vld [vmem:[#allocation6 + $0x4f0] ss:$8 sps:$4 sm:$0xff]  }
 0x1b8   : > { %1784 = vmatpush1.bf16.msra.mxu0 %v7370_v12  ;;  %1803 = vmatprep.mubr.bf16.mxu0 %v1571_v23  ;;  %v7402_v12 = vld [vmem:[#allocation6 + $0x504] ss:$8 sps:$4 sm:$0xff]   ;;  %v1570_v23 = vpack.c.bf16 %v8029_v48, %v8028_v33 }
 0x1b9   : > { %1785 = vmatprep.subr.bf16.mxu0 %v7375_v10  ;;  %v7400_v10 = vld [vmem:[#allocation6 + $0x500] ss:$8 sps:$4 sm:$0xff]  }
 0x1ba   : > { %v8036_v33 = vld [vmem:[%s8532_s28 + $0x68] sm:$0xff] }
 0x1bb   : > { %v1577_v48 = vpack.c.bf16 %v8838_v61, %v8036_v33  ;;  %v7445_v33 = vld [vmem:[#allocation6 + $0x5f0] ss:$8 sps:$4 sm:$0xff]  }
 0x1bc   : > { %1786 = vmatpush1.bf16.msra.mxu0 %v7373_v6  ;;  %v8030_v6 = vld [vmem:[%s8532_s28 + $0x28] sm:$0xff] }
 0x1bd   : > { %1787 = vmatprep.subr.bf16.mxu0 %v7378_v43  ;;  %v8031_v43 = vld [vmem:[%s8532_s28 + $0x38] sm:$0xff] }
 0x1c0   : > { %1788 = vmatpush1.bf16.msra.mxu0 %v7376_v26  ;;  %v1573_v26 = vpack.c.bf16 %v8031_v43, %v8030_v6  ;;  %v7420_v6 = vld [vmem:[#allocation6 + $0x564] ss:$8 sps:$4 sm:$0xff]  }
 0x1c1   : > { %1789 = vmatprep.subr.bf16.mxu0 %v7381_v54  ;;  %v7405_v54 = vld [vmem:[#allocation6 + $0x514] ss:$8 sps:$4 sm:$0xff]   ;;  %v8037_v43 = vld [vmem:[%s8532_s28 + $0x60] sm:$0xff] }
 0x1c4   : > { %1790 = vmatpush1.bf16.msra.mxu0 %v7379_v35  ;;  %v7403_v35 = vld [vmem:[#allocation6 + $0x510] ss:$8 sps:$4 sm:$0xff]  }
 0x1c5   : > { %1791 = vmatprep.subr.bf16.mxu0 %v7384_v14  ;;  %v7408_v14 = vld [vmem:[#allocation6 + $0x524] ss:$8 sps:$4 sm:$0xff]  }
 0x1c8   : > { %1792 = vmatpush1.bf16.msra.mxu0 %v7382_v47  ;;  %v8032_v47 = vld [vmem:[%s8532_s28 + $0x20] sm:$0xff] }
 0x1c9   : > { %1793 = vmatprep.subr.bf16.mxu0 %v7387_v30  ;;  %v1572_v30 = vpack.c.bf16 %v8773_v25, %v8032_v47  ;;  %v7421_v47 = vld [vmem:[#allocation6 + $0x570] ss:$8 sps:$4 sm:$0xff]  }
 0x1cc   : > { %1794 = vmatpush1.bf16.msra.mxu0 %v7385_v18  ;;  %v7406_v18 = vld [vmem:[#allocation6 + $0x520] ss:$8 sps:$4 sm:$0xff]  }
 0x1cd   : > { %1795 = vmatprep.subr.bf16.mxu0 %v7390_v57  ;;  %v8033_v57 = vld [vmem:[%s8532_s28 + $0x48] sm:$0xff] }
 0x1d0   : > { %1796 = vmatpush1.bf16.msra.mxu0 %v7388_v2  ;;  %v8034_v2 = vld [vmem:[%s8532_s28 + $0x58] sm:$0xff] }
 0x1d1   : > { %1797 = vmatprep.subr.bf16.mxu0 %v7393_v17  ;;  %v1575_v17 = vpack.c.bf16 %v8034_v2, %v8033_v57  ;;  %v7429_v57 = vld [vmem:[#allocation6 + $0x594] ss:$8 sps:$4 sm:$0xff]   ;;  %v7427_v2 = vld [vmem:[#allocation6 + $0x590] ss:$8 sps:$4 sm:$0xff]  }
 0x1d4   : > { %1798 = vmatpush1.bf16.msra.mxu0 %v7391_v19  ;;  %v7411_v19 = vld [vmem:[#allocation6 + $0x534] ss:$8 sps:$4 sm:$0xff]  }
 0x1d5   : > { %1799 = vmatprep.subr.bf16.mxu0 %v7396_v31  ;;  %v7409_v31 = vld [vmem:[#allocation6 + $0x530] ss:$8 sps:$4 sm:$0xff]  }
 0x1d8   : > { %1800 = vmatpush1.bf16.msra.mxu0 %v7394_v28  ;;  %v7414_v28 = vld [vmem:[#allocation6 + $0x544] ss:$8 sps:$4 sm:$0xff]  }
 0x1d9   : > { %1801 = vmatprep.subr.bf16.mxu0 %v7399_v34  ;;  %v8035_v34 = vld [vmem:[%s8532_s28 + $0x50] sm:$0xff] }
 0x1dc   : > { %1802 = vmatpush1.bf16.msra.mxu0 %v7397_v20  ;;  %v1574_v20 = vpack.c.bf16 %v8035_v34, %v8777_v1  ;;  %v7444_v34 = vld [vmem:[#allocation6 + $0x5e4] ss:$8 sps:$4 sm:$0xff]  }
 0x1dd   : > { %2061 = vmatprep.subr.bf16.mxu0 %v7402_v12  ;;  %v7412_v12 = vld [vmem:[#allocation6 + $0x540] ss:$8 sps:$4 sm:$0xff]  }
 0x1df   : > { %1804 = vmatmul.mubr.bf16.vlgmr.msra.gmra.mrb[0].mxu0 %v1570_v23  ;;  %v7417_v23 = vld [vmem:[#allocation6 + $0x554] ss:$8 sps:$4 sm:$0xff]  }
 0x1e0   : > { %2062 = vmatpush1.bf16.msra.mxu0 %v7400_v10  ;;  %1813 = vmatprep.mubr.bf16.mxu0 %v1573_v26  ;;  %v7415_v10 = vld [vmem:[#allocation6 + $0x550] ss:$8 sps:$4 sm:$0xff]   ;;  %v1576_v26 = vpack.c.bf16 %v8854_v36, %v8037_v43 }
 0x1e1   : > { %2063 = vmatprep.subr.bf16.mxu0 %v7405_v54  ;;  %v7418_v54 = vld [vmem:[#allocation6 + $0x560] ss:$8 sps:$4 sm:$0xff]  }
 0x1e4   : > { %2064 = vmatpush1.bf16.msra.mxu0 %v7403_v35  ;;  %v6204_v35 = vpack.c.bf16 %v406_v27, %v404_v38  ;;  %v7435_v38 = vld [vmem:[#allocation6 + $0x5b4] ss:$8 sps:$4 sm:$0xff]   ;;  %v7433_v27 = vld [vmem:[#allocation6 + $0x5b0] ss:$8 sps:$4 sm:$0xff]  }
 0x1e5   : > { %2065 = vmatprep.subr.bf16.mxu0 %v7408_v14  ;;  %v7423_v14 = vld [vmem:[#allocation6 + $0x574] ss:$8 sps:$4 sm:$0xff]  }
 0x1e7   : > { %1814 = vmatmul.mubr.bf16.gmra.mrb[4].mxu0 %v1572_v30  ;;  %v7426_v30 = vld [vmem:[#allocation6 + $0x584] ss:$8 sps:$4 sm:$0xff]  }
 0x1e8   : > { %2066 = vmatpush1.bf16.msra.mxu0 %v7406_v18  ;;  %1823 = vmatprep.mubr.bf16.mxu0 %v1575_v17  ;;  %v7424_v18 = vld [vmem:[#allocation6 + $0x580] ss:$8 sps:$4 sm:$0xff]   ;;  %v7438_v17 = vld [vmem:[#allocation6 + $0x5c4] ss:$8 sps:$4 sm:$0xff]  }
 0x1e9   : > { %2067 = vmatprep.subr.bf16.mxu0 %v7411_v19  ;;  %v7436_v19 = vld [vmem:[#allocation6 + $0x5c0] ss:$8 sps:$4 sm:$0xff]  }
 0x1ec   : > { %2068 = vmatpush1.bf16.msra.mxu0 %v7409_v31  ;;  %v7441_v31 = vld [vmem:[#allocation6 + $0x5d4] ss:$8 sps:$4 sm:$0xff]  }
 0x1ed   : > { %2069 = vmatprep.subr.bf16.mxu0 %v7414_v28  ;;  %v7439_v28 = vld [vmem:[#allocation6 + $0x5d0] ss:$8 sps:$4 sm:$0xff]  }
 0x1ef   : > { %1824 = vmatmul.mubr.bf16.gmra.mrb[8].mxu0 %v1574_v20  ;;  %v7442_v20 = vld [vmem:[#allocation6 + $0x5e0] ss:$8 sps:$4 sm:$0xff]  }
 0x1f0   : > { %2070 = vmatpush1.bf16.msra.mxu0 %v7412_v12  ;;  %1833 = vmatprep.mubr.bf16.mxu0 %v1577_v48  ;;  %v7447_v12 = vld [vmem:[#allocation6 + $0x5f4] ss:$8 sps:$4 sm:$0xff]   ;;  %v7450_v48 = vld [vmem:[#allocation6 + $0x604] ss:$8 sps:$4 sm:$0xff]  }
 0x1f1   : > { %2071 = vmatprep.subr.bf16.mxu0 %v7417_v23  ;;  %v7448_v23 = vld [vmem:[#allocation6 + $0x600] ss:$8 sps:$4 sm:$0xff]  }
 0x1f4   : > { %2072 = vmatpush1.bf16.msra.mxu0 %v7415_v10  ;;  %v9568_v10 = vrot.slane %v8569_v42, 1  ;;  %v9571_v42 = vrot.slane %v8773_v25, 1  ;;  %v7462_v25 = vld [vmem:[#allocation6 + $0x644] ss:$8 sps:$4 sm:$0xff]  }
 0x1f5   : > { %2073 = vmatprep.subr.bf16.mxu0 %v7420_v6  ;;  %v9569_v6 = vrot.slane %v8582_v50, 1  ;;  %v7454_v50 = vld [vmem:[#allocation6 + $0x620] ss:$8 sps:$4 sm:$0xff]  }
 0x1f7   : > { %1834 = vmatmul.mubr.bf16.gmra.mrb[12].mxu0 %v1576_v26  ;;  %v6210_v43 = vpack.c.bf16 %v9569_v6, %v9568_v10  ;;  %v7453_v26 = vld [vmem:[#allocation6 + $0x614] ss:$8 sps:$4 sm:$0xff]   ;;  %v7478_v10 = vld [vmem:[#allocation6 + $0x6a0] ss:$8 sps:$4 sm:$0xff]  }
 0x1f8   : > { %2074 = vmatpush1.bf16.msra.mxu0 %v7418_v54  ;;  %6205 = vmatprep.mubr.msk.bf16.mxu0 %vm8726_vm3, %v6204_v35  ;;  %v7451_v54 = vld [vmem:[#allocation6 + $0x610] ss:$8 sps:$4 sm:$0xff]   ;;  %v7456_v35 = vld [vmem:[#allocation6 + $0x624] ss:$8 sps:$4 sm:$0xff]   ;;  %v7483_v6 = vld [vmem:[#allocation6 + $0x6b4] ss:$8 sps:$4 sm:$0xff]  }
 0x1f9   : > { %2075 = vmatprep.subr.bf16.mxu0 %v7423_v14  ;;  %v9570_v14 = vrot.slane %v8579_v49, 1  ;;  %v418_v49 = vrot.slane %v8838_v61, 1 }
 0x1fc   : > { %2076 = vmatpush1.bf16.msra.mxu0 %v7421_v47  ;;  %v6213_v47 = vpack.c.bf16 %v9571_v42, %v9570_v14  ;;  %v7492_v14 = vld [vmem:[#allocation6 + $0x6e4] ss:$8 sps:$4 sm:$0xff]   ;;  %v7490_v42 = vld [vmem:[#allocation6 + $0x6e0] ss:$8 sps:$4 sm:$0xff]  }
 0x1fd   : > { %2077 = vmatprep.subr.bf16.mxu0 %v7426_v30  ;;  %v9572_v30 = vrot.slane %v8585_v51, 1  ;;  %v9575_v51 = vrot.slane %v8627_v7, 1  ;;  %v7468_v7 = vld [vmem:[#allocation6 + $0x664] ss:$8 sps:$4 sm:$0xff]  }
 0x200   : > { %2078 = vmatpush1.bf16.msra.mxu0 %v7424_v18  ;;  %v9573_v18 = vrot.slane %v8606_v62, 1 }
 0x201   : > { %2079 = vmatprep.subr.bf16.mxu0 %v7429_v57 }
 0x202   : > { %v6216_v57 = vpack.c.bf16 %v9573_v18, %v9572_v30  ;;  %v7498_v30 = vld [vmem:[#allocation6 + $0x704] ss:$8 sps:$4 sm:$0xff]   ;;  %v7496_v18 = vld [vmem:[#allocation6 + $0x700] ss:$8 sps:$4 sm:$0xff]  }
 0x204   : > { %2080 = vmatpush1.bf16.msra.mxu0 %v7427_v2  ;;  %v7457_v2 = vld [vmem:[#allocation6 + $0x630] ss:$8 sps:$4 sm:$0xff]  }
 0x205   : > { %2081 = vmatprep.subr.bf16.mxu0 %v7432_v13  ;;  %v9574_v13 = vrot.slane %v8777_v1, 1  ;;  %v9577_v1 = vrot.slane %v8630_v8, 1  ;;  %v7472_v8 = vld [vmem:[#allocation6 + $0x680] ss:$8 sps:$4 sm:$0xff]  }
 0x207   : > { %v6219_v62 = vpack.c.bf16 %v9575_v51, %v9574_v13  ;;  %v7507_v13 = vld [vmem:[#allocation6 + $0x734] ss:$8 sps:$4 sm:$0xff]   ;;  %v7505_v51 = vld [vmem:[#allocation6 + $0x730] ss:$8 sps:$4 sm:$0xff]  }
 0x208   : > { %2082 = vmatpush1.bf16.msra.mxu0 %v7430_v41  ;;  %v7460_v41 = vld [vmem:[#allocation6 + $0x640] ss:$8 sps:$4 sm:$0xff]  }
 0x209   : > { %2083 = vmatprep.subr.bf16.mxu0 %v7435_v38  ;;  %v9576_v38 = vrot.slane %v8609_v63, 1 }
 0x20c   : > { %2084 = vmatpush1.bf16.msra.mxu0 %v7433_v27  ;;  %v6222_v27 = vpack.c.bf16 %v418_v49, %v9576_v38  ;;  %v6281_v38 = vpack.c.bf16 %v8633_v9, %v375_v59  ;;  %v7598_v59 = vld [vmem:[#allocation9 + $0x124] ss:$8 sps:$4 sm:$0xff]  }
 0x20d   : > { %2085 = vmatprep.subr.bf16.mxu0 %v7438_v17  ;;  %v7465_v17 = vld [vmem:[#allocation6 + $0x654] ss:$8 sps:$4 sm:$0xff]  }
 0x210   : > { %2086 = vmatpush1.bf16.msra.mxu0 %v7436_v19  ;;  %v417_v19 = vrot.slane %v8854_v36, 1 }
 0x211   : > { %2087 = vmatprep.subr.bf16.mxu0 %v7441_v31  ;;  %v7463_v31 = vld [vmem:[#allocation6 + $0x650] ss:$8 sps:$4 sm:$0xff]  }
 0x212   : > { %v6225_v63 = vpack.c.bf16 %v417_v19, %v9577_v1  ;;  %v7522_v1 = vld [vmem:[#allocation6 + $0x784] ss:$8 sps:$4 sm:$0xff]  }
 0x214   : > { %2088 = vmatpush1.bf16.msra.mxu0 %v7439_v28  ;;  %v7466_v28 = vld [vmem:[#allocation6 + $0x660] ss:$8 sps:$4 sm:$0xff]  }
 0x215   : > { %2089 = vmatprep.subr.bf16.mxu0 %v7444_v34  ;;  %v7471_v34 = vld [vmem:[#allocation6 + $0x674] ss:$8 sps:$4 sm:$0xff]  }
 0x218   : > { %2090 = vmatpush1.bf16.msra.mxu0 %v7442_v20  ;;  %v7469_v20 = vld [vmem:[#allocation6 + $0x670] ss:$8 sps:$4 sm:$0xff]  }
 0x219   : > { %2091 = vmatprep.subr.bf16.mxu0 %v7447_v12  ;;  %v7474_v12 = vld [vmem:[#allocation6 + $0x684] ss:$8 sps:$4 sm:$0xff]  }
 0x21c   : > { %2092 = vmatpush1.bf16.msra.mxu0 %v7445_v33  ;;  %v7477_v33 = vld [vmem:[#allocation6 + $0x694] ss:$8 sps:$4 sm:$0xff]  }
 0x21d   : > { %2345 = vmatprep.subr.bf16.mxu0 %v7450_v48  ;;  %v7475_v48 = vld [vmem:[#allocation6 + $0x690] ss:$8 sps:$4 sm:$0xff]  }
 0x21f   : > { %6208 = vmatmul.mubr.msk.bf16.vlgmr.msra.gmra.mrb[0].mxu0 %vm8726_vm3, %v8652_v32  ;;  %v7459_v32 = vld [vmem:[#allocation6 + $0x634] ss:$8 sps:$4 sm:$0xff]  }
 0x220   : > { %2346 = vmatpush1.bf16.msra.mxu0 %v7448_v23  ;;  %6211 = vmatprep.mubr.msk.bf16.mxu0 %vm8726_vm3, %v6210_v43  ;;  %v7480_v23 = vld [vmem:[#allocation6 + $0x6a4] ss:$8 sps:$4 sm:$0xff]   ;;  %v7481_v43 = vld [vmem:[#allocation6 + $0x6b0] ss:$8 sps:$4 sm:$0xff]  }
 0x221   : > { %2347 = vmatprep.subr.bf16.mxu0 %v7453_v26  ;;  %v7486_v26 = vld [vmem:[#allocation6 + $0x6c4] ss:$8 sps:$4 sm:$0xff]  }
 0x224   : > { %2348 = vmatpush1.bf16.msra.mxu0 %v7451_v54  ;;  %v7489_v54 = vld [vmem:[#allocation6 + $0x6d4] ss:$8 sps:$4 sm:$0xff]  }
 0x225   : > { %2349 = vmatprep.subr.bf16.mxu0 %v7456_v35  ;;  %v7487_v35 = vld [vmem:[#allocation6 + $0x6d0] ss:$8 sps:$4 sm:$0xff]  }
 0x227   : > { %6214 = vmatmul.mubr.msk.bf16.gmra.mrb[4].mxu0 %vm8726_vm3, %v6213_v47  ;;  %v7495_v47 = vld [vmem:[#allocation6 + $0x6f4] ss:$8 sps:$4 sm:$0xff]  }
 0x228   : > { %2350 = vmatpush1.bf16.msra.mxu0 %v7454_v50  ;;  %6217 = vmatprep.mubr.msk.bf16.mxu0 %vm8726_vm3, %v6216_v57  ;;  %v7493_v50 = vld [vmem:[#allocation6 + $0x6f0] ss:$8 sps:$4 sm:$0xff]   ;;  %v7501_v57 = vld [vmem:[#allocation6 + $0x714] ss:$8 sps:$4 sm:$0xff]  }
 0x229   : > { %2351 = vmatprep.subr.bf16.mxu0 %v7459_v32  ;;  %v7499_v32 = vld [vmem:[#allocation6 + $0x710] ss:$8 sps:$4 sm:$0xff]  }
 0x22c   : > { %2352 = vmatpush1.bf16.msra.mxu0 %v7457_v2  ;;  %v7504_v2 = vld [vmem:[#allocation6 + $0x724] ss:$8 sps:$4 sm:$0xff]  }
 0x22d   : > { %2353 = vmatprep.subr.bf16.mxu0 %v7462_v25  ;;  %v7502_v25 = vld [vmem:[#allocation6 + $0x720] ss:$8 sps:$4 sm:$0xff]  }
 0x22f   : > { %6220 = vmatmul.mubr.msk.bf16.gmra.mrb[8].mxu0 %vm8726_vm3, %v6219_v62  ;;  %v6278_v62 = vpack.c.bf16 %v8633_v9, %v376_v58  ;;  %v7519_v58 = vld [vmem:[#allocation6 + $0x774] ss:$8 sps:$4 sm:$0xff]  }
 0x230   : > { %2354 = vmatpush1.bf16.msra.mxu0 %v7460_v41  ;;  %6223 = vmatprep.mubr.msk.bf16.mxu0 %vm8726_vm3, %v6222_v27  ;;  %v7513_v41 = vld [vmem:[#allocation6 + $0x754] ss:$8 sps:$4 sm:$0xff]   ;;  %v7514_v27 = vld [vmem:[#allocation6 + $0x760] ss:$8 sps:$4 sm:$0xff]  }
 0x231   : > { %2355 = vmatprep.subr.bf16.mxu0 %v7465_v17  ;;  %v7592_v17 = vld [vmem:[#allocation9 + $0x104] ss:$8 sps:$4 sm:$0xff]  }
 0x232   : > { %3403 = vmatprep.subr.bf16.mxu1 %v7592_v17  ;;  %v7552_v17 = vld [vmem:[#allocation6 + $0x824] ss:$8 sps:$4 sm:$0xff]  }
 0x234   : > { %2356 = vmatpush1.bf16.msra.mxu0 %v7463_v31  ;;  %v7595_v31 = vld [vmem:[#allocation9 + $0x114] ss:$8 sps:$4 sm:$0xff]  }
 0x235   : > { %2357 = vmatprep.subr.bf16.mxu0 %v7468_v7  ;;  %v7517_v7 = vld [vmem:[#allocation6 + $0x770] ss:$8 sps:$4 sm:$0xff]  }
 0x237   : > { %6226 = vmatmul.mubr.msk.bf16.gmra.mrb[12].mxu0 %vm8726_vm3, %v6225_v63  ;;  %v7597_v63 = vld [vmem:[#allocation9 + $0x110] ss:$8 sps:$4 sm:$0xff]  }
 0x238   : > { %2358 = vmatpush1.bf16.msra.mxu0 %v7466_v28  ;;  %6261 = vmatprep.mubr.msk.bf16.mxu0 %vm8620_vm1, %v8663_v56  ;;  %v7484_v56 = vld [vmem:[#allocation6 + $0x6c0] ss:$8 sps:$4 sm:$0xff]  }
 0x239   : > { %2359 = vmatprep.subr.bf16.mxu0 %v7471_v34  ;;  %v7520_v28 = vld [vmem:[#allocation6 + $0x780] ss:$8 sps:$4 sm:$0xff]   ;;  %v7525_v34 = vld [vmem:[#allocation6 + $0x794] ss:$8 sps:$4 sm:$0xff]  }
 0x23c   : > { %2360 = vmatpush1.bf16.msra.mxu0 %v7469_v20  ;;  %v7600_v20 = vld [vmem:[#allocation9 + $0x120] ss:$8 sps:$4 sm:$0xff]  }
 0x23d   : > { %2361 = vmatprep.subr.bf16.mxu0 %v7474_v12  ;;  %v7601_v12 = vld [vmem:[#allocation9 + $0x134] ss:$8 sps:$4 sm:$0xff]  }
 0x240   : > { %2362 = vmatpush1.bf16.msra.mxu0 %v7472_v8  ;;  %v7523_v8 = vld [vmem:[#allocation6 + $0x790] ss:$8 sps:$4 sm:$0xff]  }
 0x241   : > { %2363 = vmatprep.subr.bf16.mxu0 %v7477_v33  ;;  %v7528_v33 = vld [vmem:[#allocation6 + $0x7a4] ss:$8 sps:$4 sm:$0xff]  }
 0x244   : > { %2364 = vmatpush1.bf16.msra.mxu0 %v7475_v48  ;;  %v7604_v48 = vld [vmem:[#allocation9 + $0x144] ss:$8 sps:$4 sm:$0xff]  }
 0x245   : > { %2365 = vmatprep.subr.bf16.mxu0 %v7480_v23  ;;  %v7526_v23 = vld [vmem:[#allocation6 + $0x7a0] ss:$8 sps:$4 sm:$0xff]  }
 0x248   : > { %2366 = vmatpush1.bf16.msra.mxu0 %v7478_v10  ;;  %v7531_v10 = vld [vmem:[#allocation6 + $0x7b4] ss:$8 sps:$4 sm:$0xff]  }
 0x249   : > { %2367 = vmatprep.subr.bf16.mxu0 %v7483_v6  ;;  %v7606_v6 = vld [vmem:[#allocation9 + $0x140] ss:$8 sps:$4 sm:$0xff]  }
 0x24c   : > { %2368 = vmatpush1.bf16.msra.mxu0 %v7481_v43  ;;  %v7607_v43 = vld [vmem:[#allocation9 + $0x154] ss:$8 sps:$4 sm:$0xff]  }
 0x24d   : > { %2369 = vmatprep.subr.bf16.mxu0 %v7486_v26  ;;  %v7529_v26 = vld [vmem:[#allocation6 + $0x7b0] ss:$8 sps:$4 sm:$0xff]  }
 0x250   : > { %2370 = vmatpush1.bf16.msra.mxu0 %v7484_v56  ;;  %v7534_v56 = vld [vmem:[#allocation6 + $0x7c4] ss:$8 sps:$4 sm:$0xff]  }
 0x251   : > { %2371 = vmatprep.subr.bf16.mxu0 %v7489_v54  ;;  %v7609_v54 = vld [vmem:[#allocation9 + $0x150] ss:$8 sps:$4 sm:$0xff]  }
 0x254   : > { %2372 = vmatpush1.bf16.msra.mxu0 %v7487_v35  ;;  %v7610_v35 = vld [vmem:[#allocation9 + $0x164] ss:$8 sps:$4 sm:$0xff]  }
 0x255   : > { %2373 = vmatprep.subr.bf16.mxu0 %v7492_v14  ;;  %v7532_v14 = vld [vmem:[#allocation6 + $0x7c0] ss:$8 sps:$4 sm:$0xff]  }
 0x258   : > { %2374 = vmatpush1.bf16.msra.mxu0 %v7490_v42  ;;  %v7537_v42 = vld [vmem:[#allocation6 + $0x7d4] ss:$8 sps:$4 sm:$0xff]  }
 0x259   : > { %2375 = vmatprep.subr.bf16.mxu0 %v7495_v47  ;;  %v7612_v47 = vld [vmem:[#allocation9 + $0x160] ss:$8 sps:$4 sm:$0xff]  }
 0x25c   : > { %2376 = vmatpush1.bf16.msra.mxu0 %v7493_v50  ;;  %v7613_v50 = vld [vmem:[#allocation9 + $0x174] ss:$8 sps:$4 sm:$0xff]  }
 0x25d   : > { %2629 = vmatprep.subr.bf16.mxu0 %v7498_v30  ;;  %v7535_v30 = vld [vmem:[#allocation6 + $0x7d0] ss:$8 sps:$4 sm:$0xff]  }
 0x25f   : > { %6264 = vmatmul.mubr.msk.bf16.vlgmr.msra.gmra.mrb[0].mxu0 %vm8620_vm1, %v8677_v5  ;;  %v7510_v5 = vld [vmem:[#allocation6 + $0x744] ss:$8 sps:$4 sm:$0xff]  }
 0x260   : > { %2630 = vmatpush1.bf16.msra.mxu0 %v7496_v18  ;;  %6267 = vmatprep.mubr.msk.bf16.mxu0 %vm8620_vm1, %v8683_v15  ;;  %v7508_v15 = vld [vmem:[#allocation6 + $0x740] ss:$8 sps:$4 sm:$0xff]   ;;  %v7540_v18 = vld [vmem:[#allocation6 + $0x7e4] ss:$8 sps:$4 sm:$0xff]  }
 0x261   : > { %2631 = vmatprep.subr.bf16.mxu0 %v7501_v57  ;;  %v7615_v57 = vld [vmem:[#allocation9 + $0x170] ss:$8 sps:$4 sm:$0xff]  }
 0x264   : > { %2632 = vmatpush1.bf16.msra.mxu0 %v7499_v32  ;;  %v7616_v32 = vld [vmem:[#allocation9 + $0x184] ss:$8 sps:$4 sm:$0xff]  }
 0x265   : > { %2633 = vmatprep.subr.bf16.mxu0 %v7504_v2  ;;  %v7538_v2 = vld [vmem:[#allocation6 + $0x7e0] ss:$8 sps:$4 sm:$0xff]  }
 0x267   : > { %6270 = vmatmul.mubr.msk.bf16.gmra.mrb[4].mxu0 %vm8620_vm1, %v8699_v21  ;;  %v7511_v21 = vld [vmem:[#allocation6 + $0x750] ss:$8 sps:$4 sm:$0xff]  }
 0x268   : > { %2634 = vmatpush1.bf16.msra.mxu0 %v7502_v25  ;;  %6273 = vmatprep.mubr.msk.bf16.mxu0 %vm8620_vm1, %v8705_v29  ;;  %v7516_v29 = vld [vmem:[#allocation6 + $0x764] ss:$8 sps:$4 sm:$0xff]   ;;  %v7543_v25 = vld [vmem:[#allocation6 + $0x7f4] ss:$8 sps:$4 sm:$0xff]  }
 0x269   : > { %2635 = vmatprep.subr.bf16.mxu0 %v7507_v13  ;;  %v7618_v13 = vld [vmem:[#allocation9 + $0x180] ss:$8 sps:$4 sm:$0xff]  }
 0x26c   : > { %2636 = vmatpush1.bf16.msra.mxu0 %v7505_v51  ;;  %v7619_v51 = vld [vmem:[#allocation9 + $0x194] ss:$8 sps:$4 sm:$0xff]  }
 0x26d   : > { %2637 = vmatprep.subr.bf16.mxu0 %v7510_v5  ;;  %v7541_v5 = vld [vmem:[#allocation6 + $0x7f0] ss:$8 sps:$4 sm:$0xff]  }
 0x26f   : > { %6276 = vmatmul.mubr.msk.bf16.gmra.mrb[8].mxu0 %vm8620_vm1, %v8724_v40  ;;  %v7594_v40 = vld [vmem:[#allocation9 + $0x100] ss:$8 sps:$4 sm:$0xff]  }
 0x270   : > { %2638 = vmatpush1.bf16.msra.mxu0 %v7508_v15  ;;  %6279 = vmatprep.mubr.msk.bf16.mxu0 %vm8620_vm1, %v6278_v62  ;;  %v7546_v15 = vld [vmem:[#allocation6 + $0x804] ss:$8 sps:$4 sm:$0xff]   ;;  %v7621_v62 = vld [vmem:[#allocation9 + $0x190] ss:$8 sps:$4 sm:$0xff]  }
 0x271   : > { %2639 = vmatprep.subr.bf16.mxu0 %v7513_v41  ;;  %3404 = vmatpush1.bf16.msra.mxu1 %v7594_v40  ;;  %v7622_v41 = vld [vmem:[#allocation9 + $0x1a4] ss:$8 sps:$4 sm:$0xff]   ;;  %v7627_v40 = vld [vmem:[#allocation9 + $0x1b0] ss:$8 sps:$4 sm:$0xff]  }
 0x272   : > { %3405 = vmatprep.subr.bf16.mxu1 %v7595_v31  ;;  %v7628_v31 = vld [vmem:[#allocation9 + $0x1c4] ss:$8 sps:$4 sm:$0xff]  }
 0x274   : > { %2640 = vmatpush1.bf16.msra.mxu0 %v7511_v21  ;;  %v7544_v21 = vld [vmem:[#allocation6 + $0x800] ss:$8 sps:$4 sm:$0xff]  }
 0x275   : > { %2641 = vmatprep.subr.bf16.mxu0 %v7516_v29  ;;  %3406 = vmatpush1.bf16.msra.mxu1 %v7597_v63  ;;  %v7549_v29 = vld [vmem:[#allocation6 + $0x814] ss:$8 sps:$4 sm:$0xff]   ;;  %v7630_v63 = vld [vmem:[#allocation9 + $0x1c0] ss:$8 sps:$4 sm:$0xff]  }
 0x276   : > { %3407 = vmatprep.subr.bf16.mxu1 %v7598_v59  ;;  %v7553_v59 = vld [vmem:[#allocation6 + $0x830] ss:$8 sps:$4 sm:$0xff]  }
 0x277   : > { %6282 = vmatmul.mubr.msk.bf16.gmra.mrb[12].mxu0 %vm8620_vm1, %v6281_v38  ;;  %v7624_v38 = vld [vmem:[#allocation9 + $0x1a0] ss:$8 sps:$4 sm:$0xff]  }
 0x278   : > { %2642 = vmatpush1.bf16.msra.mxu0 %v7514_v27  ;;  %2661 = vmatprep.mubr.bf16.mxu0 %v8575_v45  ;;  %v7603_v45 = vld [vmem:[#allocation9 + $0x130] ss:$8 sps:$4 sm:$0xff]   ;;  %v7625_v27 = vld [vmem:[#allocation9 + $0x1b4] ss:$8 sps:$4 sm:$0xff]  }
 0x279   : > { %2643 = vmatprep.subr.bf16.mxu0 %v7519_v58  ;;  %3408 = vmatpush1.bf16.msra.mxu1 %v7600_v20  ;;  %v7547_v58 = vld [vmem:[#allocation6 + $0x810] ss:$8 sps:$4 sm:$0xff]   ;;  %v9578_v20 = vmov 0.0  }
 0x27a   : > { %3409 = vmatprep.subr.bf16.mxu1 %v7601_v12  ;;  %v2435_v12 = vpack.c.bf16 %v9578_v20, %v8838_v61  ;;  %v7639_v61 = vld [vmem:[#allocation9 + $0x1f0] ss:$8 sps:$4 sm:$0xff]  }
 0x27c   : > { %2644 = vmatpush1.bf16.msra.mxu0 %v7517_v7  ;;  %v7550_v7 = vld [vmem:[#allocation6 + $0x820] ss:$8 sps:$4 sm:$0xff]  }
 0x27d   : > { %2645 = vmatprep.subr.bf16.mxu0 %v7522_v1  ;;  %3410 = vmatpush1.bf16.msra.mxu1 %v7603_v45  ;;  %v7555_v1 = vld [vmem:[#allocation6 + $0x834] ss:$8 sps:$4 sm:$0xff]   ;;  %v7562_v45 = vld [vmem:[#allocation6 + $0x860] ss:$8 sps:$4 sm:$0xff]  }
 0x27e   : > { %3411 = vmatprep.subr.bf16.mxu1 %v7604_v48  ;;  %v7567_v48 = vld [vmem:[#allocation6 + $0x874] ss:$8 sps:$4 sm:$0xff]  }
 0x280   : > { %2646 = vmatpush1.bf16.msra.mxu0 %v7520_v28  ;;  %v7633_v28 = vld [vmem:[#allocation9 + $0x1d0] ss:$8 sps:$4 sm:$0xff]  }
 0x281   : > { %2647 = vmatprep.subr.bf16.mxu0 %v7525_v34  ;;  %3412 = vmatpush1.bf16.msra.mxu1 %v7606_v6  ;;  %v7556_v34 = vld [vmem:[#allocation6 + $0x840] ss:$8 sps:$4 sm:$0xff]   ;;  %v7573_v6 = vld [vmem:[#allocation6 + $0x894] ss:$8 sps:$4 sm:$0xff]  }
 0x282   : > { %3413 = vmatprep.subr.bf16.mxu1 %v7607_v43  ;;  %v7571_v43 = vld [vmem:[#allocation6 + $0x890] ss:$8 sps:$4 sm:$0xff]  }
 0x284   : > { %2648 = vmatpush1.bf16.msra.mxu0 %v7523_v8  ;;  %v7561_v8 = vld [vmem:[#allocation6 + $0x854] ss:$8 sps:$4 sm:$0xff]  }
 0x285   : > { %2649 = vmatprep.subr.bf16.mxu0 %v7528_v33  ;;  %3414 = vmatpush1.bf16.msra.mxu1 %v7609_v54  ;;  %v2434_v33 = vpack.c.bf16 %v9578_v20, %v8854_v36  ;;  %v7579_v54 = vld [vmem:[#allocation6 + $0x8b4] ss:$8 sps:$4 sm:$0xff]   ;;  %v9534_v36 = vsub.s32 1, %v8601_v60 }
 0x286   : > { %3415 = vmatprep.subr.bf16.mxu1 %v7610_v35  ;;  %v7577_v35 = vld [vmem:[#allocation6 + $0x8b0] ss:$8 sps:$4 sm:$0xff]  }
 0x288   : > { %2650 = vmatpush1.bf16.msra.mxu0 %v7526_v23  ;;  %v7565_v23 = vld [vmem:[#allocation6 + $0x870] ss:$8 sps:$4 sm:$0xff]  }
 0x289   : > { %2651 = vmatprep.subr.bf16.mxu0 %v7531_v10  ;;  %3416 = vmatpush1.bf16.msra.mxu1 %v7612_v47  ;;  %v7568_v10 = vld [vmem:[#allocation6 + $0x880] ss:$8 sps:$4 sm:$0xff]   ;;  %v7583_v47 = vld [vmem:[#allocation6 + $0x8d0] ss:$8 sps:$4 sm:$0xff]  }
 0x28a   : > { %3417 = vmatprep.subr.bf16.mxu1 %v7613_v50  ;;  %v7588_v50 = vld [vmem:[#allocation6 + $0x8e4] ss:$8 sps:$4 sm:$0xff]  }
 0x28c   : > { %2652 = vmatpush1.bf16.msra.mxu0 %v7529_v26  ;;  %v7576_v26 = vld [vmem:[#allocation6 + $0x8a4] ss:$8 sps:$4 sm:$0xff]  }
 0x28d   : > { %2653 = vmatprep.subr.bf16.mxu0 %v7534_v56  ;;  %3418 = vmatpush1.bf16.msra.mxu1 %v7615_v57  ;;  %v7574_v56 = vld [vmem:[#allocation6 + $0x8a0] ss:$8 sps:$4 sm:$0xff]   ;;  %v7589_v57 = vld [vmem:[#allocation6 + $0x8f0] ss:$8 sps:$4 sm:$0xff]  }
 0x28e   : > { %3419 = vmatprep.subr.bf16.mxu1 %v7616_v32  ;;  %v6366_v32 = vpack.c.bf16 %v8716_v37, %v418_v49  ;;  %v7642_v49 = vld [vmem:[#allocation9 + $0x4] ss:$8 sps:$4 sm:$0xff]  }
 0x290   : > { %2654 = vmatpush1.bf16.msra.mxu0 %v7532_v14  ;;  %v7582_v14 = vld [vmem:[#allocation6 + $0x8c4] ss:$8 sps:$4 sm:$0xff]  }
 0x291   : > { %2655 = vmatprep.subr.bf16.mxu0 %v7537_v42  ;;  %3420 = vmatpush1.bf16.msra.mxu1 %v7618_v13  ;;  %v7585_v42 = vld [vmem:[#allocation6 + $0x8d4] ss:$8 sps:$4 sm:$0xff]  }
 0x292   : > { %3421 = vmatprep.subr.bf16.mxu1 %v7619_v51 }
 0x294   : > { %2656 = vmatpush1.bf16.msra.mxu0 %v7535_v30  ;;  %v7586_v30 = vld [vmem:[#allocation6 + $0x8e0] ss:$8 sps:$4 sm:$0xff]  }
 0x295   : > { %2657 = vmatprep.subr.bf16.mxu0 %v7540_v18  ;;  %3422 = vmatpush1.bf16.msra.mxu1 %v7621_v62  ;;  %v7591_v18 = vld [vmem:[#allocation6 + $0x8f4] ss:$8 sps:$4 sm:$0xff]  }
 0x296   : > { %3423 = vmatprep.subr.bf16.mxu1 %v7622_v41 }
 0x298   : > { %2658 = vmatpush1.bf16.msra.mxu0 %v7538_v2  ;;  %v3002_v2 = vld [vmem:[#allocation8] sm:$0x3] }
 0x299   : > { %2659 = vmatprep.subr.bf16.mxu0 %v7543_v25  ;;  %3424 = vmatpush1.bf16.msra.mxu1 %v7624_v38  ;;  %v9004_v25 = vrot.slane %v3002_v2, %v9534_v36 }
 0x29a   : > { %3425 = vmatprep.subr.bf16.mxu1 %v7625_v27 }
 0x29c   : > { %2660 = vmatpush1.bf16.msra.mxu0 %v7541_v5 }
 0x29d   : > { %2913 = vmatprep.subr.bf16.mxu0 %v7546_v15  ;;  %3426 = vmatpush1.bf16.msra.mxu1 %v7627_v40 }
 0x29e   : > { %3427 = vmatprep.subr.bf16.mxu1 %v7628_v31 }
 0x29f   : > { %2662 = vmatmul.mubr.bf16.vlgmr.msra.gmra.mrb[0].mxu0 %v8589_v53  ;;  %v7631_v53 = vld [vmem:[#allocation9 + $0x1d4] ss:$8 sps:$4 sm:$0xff]  }
 0x2a0   : > { %2914 = vmatpush1.bf16.msra.mxu0 %v7544_v21  ;;  %2671 = vmatprep.mubr.bf16.mxu0 %v8593_v55  ;;  %v7558_v55 = vld [vmem:[#allocation6 + $0x844] ss:$8 sps:$4 sm:$0xff]  }
 0x2a1   : > { %2915 = vmatprep.subr.bf16.mxu0 %v7549_v29  ;;  %3428 = vmatpush1.bf16.msra.mxu1 %v7630_v63 }
 0x2a2   : > { %3429 = vmatprep.subr.bf16.mxu1 %v7631_v53 }
 0x2a4   : > { %2916 = vmatpush1.bf16.msra.mxu0 %v7547_v58 }
 0x2a5   : > { %2917 = vmatprep.subr.bf16.mxu0 %v7552_v17  ;;  %3430 = vmatpush1.bf16.msra.mxu1 %v7633_v28  ;;  %v7645_v28 = vld [vmem:[#allocation9 + $0x14] ss:$8 sps:$4 sm:$0xff]  }
 0x2a7   : > { %2672 = vmatmul.mubr.bf16.gmra.mrb[4].mxu0 %v8614_v0  ;;  %v7559_v0 = vld [vmem:[#allocation6 + $0x850] ss:$8 sps:$4 sm:$0xff]  }
 0x2a8   : > { %2918 = vmatpush1.bf16.msra.mxu0 %v7550_v7  ;;  %2681 = vmatprep.mubr.bf16.mxu0 %v8618_v3  ;;  %v7564_v3 = vld [vmem:[#allocation6 + $0x864] ss:$8 sps:$4 sm:$0xff]  }
 0x2a9   : > { %2919 = vmatprep.subr.bf16.mxu0 %v7555_v1  ;;  %v7640_v1 = vld [vmem:[#allocation9] ss:$8 sps:$4 sm:$0xff]  }
 0x2ac   : > { %2920 = vmatpush1.bf16.msra.mxu0 %v7553_v59 }
 0x2ad   : > { %2921 = vmatprep.subr.bf16.mxu0 %v7558_v55 }
 0x2af   : > { %2682 = vmatmul.mubr.bf16.gmra.mrb[8].mxu0 %v8638_v11  ;;  %v7570_v11 = vld [vmem:[#allocation6 + $0x884] ss:$8 sps:$4 sm:$0xff]  }
 0x2b0   : > { %2922 = vmatpush1.bf16.msra.mxu0 %v7556_v34  ;;  %2691 = vmatprep.mubr.bf16.mxu0 %v2435_v12 }
 0x2b1   : > { %2923 = vmatprep.subr.bf16.mxu0 %v7561_v8 }
 0x2b4   : > { %2924 = vmatpush1.bf16.msra.mxu0 %v7559_v0 }
 0x2b5   : > { %2925 = vmatprep.subr.bf16.mxu0 %v7564_v3 }
 0x2b7   : > { %2692 = vmatmul.mubr.bf16.gmra.mrb[12].mxu0 %v2434_v33 }
 0x2b8   : > { %2926 = vmatpush1.bf16.msra.mxu0 %v7562_v45  ;;  %6349 = vmatprep.mubr.msk.bf16.mxu0 %vm8726_vm3, %v8747_v22  ;;  %v7580_v22 = vld [vmem:[#allocation6 + $0x8c0] ss:$8 sps:$4 sm:$0xff]  }
 0x2b9   : > { %2927 = vmatprep.subr.bf16.mxu0 %v7567_v48 }
 0x2bc   : > { %2928 = vmatpush1.bf16.msra.mxu0 %v7565_v23 }
 0x2bd   : > { %2929 = vmatprep.subr.bf16.mxu0 %v7570_v11 }
 0x2c0   : > { %2930 = vmatpush1.bf16.msra.mxu0 %v7568_v10 }
 0x2c1   : > { %2931 = vmatprep.subr.bf16.mxu0 %v7573_v6  ;;  %v7643_v6 = vld [vmem:[#allocation9 + $0x10] ss:$8 sps:$4 sm:$0xff]  }
 0x2c4   : > { %2932 = vmatpush1.bf16.msra.mxu0 %v7571_v43 }
 0x2c5   : > { %2933 = vmatprep.subr.bf16.mxu0 %v7576_v26  ;;  %v7655_v26 = vld [vmem:[#allocation9 + $0x50] ss:$8 sps:$4 sm:$0xff]  }
 0x2c8   : > { %2934 = vmatpush1.bf16.msra.mxu0 %v7574_v56 }
 0x2c9   : > { %2935 = vmatprep.subr.bf16.mxu0 %v7579_v54 }
 0x2cc   : > { %2936 = vmatpush1.bf16.msra.mxu0 %v7577_v35 }
 0x2cd   : > { %2937 = vmatprep.subr.bf16.mxu0 %v7582_v14 }
 0x2d0   : > { %2938 = vmatpush1.bf16.msra.mxu0 %v7580_v22  ;;  %v7648_v22 = vld [vmem:[#allocation9 + $0x24] ss:$8 sps:$4 sm:$0xff]  }
 0x2d1   : > { %2939 = vmatprep.subr.bf16.mxu0 %v7585_v42 }
 0x2d4   : > { %2940 = vmatpush1.bf16.msra.mxu0 %v7583_v47 }
 0x2d5   : > { %2941 = vmatprep.subr.bf16.mxu0 %v7588_v50 }
 0x2d8   : > { %2942 = vmatpush1.bf16.msra.mxu0 %v7586_v30 }
 0x2d9   : > { %2943 = vmatprep.subr.bf16.mxu0 %v7591_v18 }
 0x2dc   : > { %2944 = vmatpush1.bf16.msra.mxu0 %v7589_v57 }
 0x2df   : > { %6352 = vmatmul.mubr.msk.bf16.vlgmr.msra.gmra.mrb[0].mxu0 %vm8726_vm3, %v8761_v39  ;;  %v6369_v39 = vpack.c.bf16 %v8716_v37, %v417_v19 }
 0x2e0   : > { %6355 = vmatprep.mubr.msk.bf16.mxu0 %vm8726_vm3, %v8767_v52  ;;  %v7634_v52 = vld [vmem:[#allocation9 + $0x1e4] ss:$8 sps:$4 sm:$0xff]  }
 0x2e1   : > { %3431 = vmatprep.subr.bf16.mxu1 %v7634_v52 }
 0x2e7   : > { %6358 = vmatmul.mubr.msk.bf16.gmra.mrb[4].mxu0 %vm8726_vm3, %v8789_v24  ;;  %v7636_v24 = vld [vmem:[#allocation9 + $0x1e0] ss:$8 sps:$4 sm:$0xff]  }
 0x2e8   : > { %6361 = vmatprep.mubr.msk.bf16.mxu0 %vm8726_vm3, %v8795_v44  ;;  %3432 = vmatpush1.bf16.msra.mxu1 %v7636_v24  ;;  %v7637_v44 = vld [vmem:[#allocation9 + $0x1f4] ss:$8 sps:$4 sm:$0xff]  }
 0x2e9   : > { %3433 = vmatprep.subr.bf16.mxu1 %v7637_v44  ;;  %v7646_v44 = vld [vmem:[#allocation9 + $0x20] ss:$8 sps:$4 sm:$0xff]  }
 0x2ec   : > { %3434 = vmatpush1.bf16.msra.mxu1 %v7639_v61 }
 0x2ed   : > { %3636 = vmatprep.subr.bf16.mxu1 %v7642_v49 }
 0x2ef   : > { %6364 = vmatmul.mubr.msk.bf16.gmra.mrb[8].mxu0 %vm8726_vm3, %v8809_v16  ;;  %v9535_v16 = vsub.s32 0, %v8601_v60 }
 0x2f0   : > { %6367 = vmatprep.mubr.msk.bf16.mxu0 %vm8726_vm3, %v6366_v32 }
 0x2f1   : > { %v9000_v19 = vrot.slane %v3002_v2, %v9535_v16  ;;  %v7651_v2 = vld [vmem:[#allocation9 + $0x34] ss:$8 sps:$4 sm:$0xff]  }
 0x2f7   : > { %6370 = vmatmul.mubr.msk.bf16.gmra.mrb[12].mxu0 %vm8726_vm3, %v6369_v39 }
 0x3b2   : > { %v2947_v13 = vpop.f32.mrb[0].mxu0 }
 0x3b3   : > { %v3014_v51 = vadd.f32 %v9000_v19, %v2947_v13  ;;  %v2949_v5 = vpop.f32.mrb[1].mxu0 }
 0x3b4   : > { %v3015_v15 = vadd.f32 %v9004_v25, %v2949_v5  ;;  %v2951_v62 = vpop.f32.mrb[2].mxu0 }
 0x3b5   : > { %v9008_v41 = vmax.f32 %v3014_v51, 0.0  ;;  %v3016_v21 = vadd.f32 %v9000_v19, %v2951_v62  ;;  %v2953_v29 = vpop.f32.mrb[3].mxu0 }
 0x3b6   : > { %v9011_v38 = vmax.f32 %v3015_v15, 0.0  ;;  %v3017_v27 = vadd.f32 %v9004_v25, %v2953_v29 }
 0x3b7   : > { %v9014_v58 = vmax.f32 %v3016_v21, 0.0  ;;  %v9538_v17 = vrot.slane %v9008_v41, 7  ;;  %v9536_v40 = vrot.slane %v9008_v41, 1  ;;  %v3202_v55 = vpack.c.bf16 %v9008_v41, %v9578_v20 }
 0x3b8   : > { %v9018_v31 = vmax.f32 %v3017_v27, 0.0  ;;  %v3203_v7 = vpack.c.bf16 %v9011_v38, %v9578_v20  ;;  %v9539_v63 = vrot.slane %v9011_v38, 7  ;;  %v9537_v34 = vrot.slane %v9011_v38, 1 }
 0x3b9   : > { %v3086_v53 = vrot.slane %v9014_v58, 7  ;;  %v3126_v59 = vrot.slane %v9014_v58, 1 }
 0x3ba   : > { %v3087_v8 = vrot.slane %v9018_v31, 7  ;;  %v3127_v0 = vrot.slane %v9018_v31, 1  ;;  %v2957_v3 = vpop.f32.mrb[4].mxu0  ;;  %3435 = vmatprep.mubr.bf16.mxu1 %v3203_v7 }
 0x3bb   : > { %v9034_v33 = vpack.c.bf16 %v3086_v53, %v9538_v17  ;;  %v9038_v45 = vpack.c.bf16 %v3126_v59, %v9536_v40  ;;  %v3018_v48 = vadd.f32 %v9000_v19, %v2957_v3  ;;  %v2959_v23 = vpop.f32.mrb[5].mxu0  ;;  %3436 = vmatmul.mubr.bf16.vlgmr.msra.gmra.mrb[0].mxu1 %v3202_v55 }
 0x3bc   : > { %v3019_v11 = vadd.f32 %v9004_v25, %v2959_v23  ;;  %3637 = vmatpush1.bf16.msra.mxu1 %v7640_v1  ;;  %v2961_v10 = vpop.f32.mrb[6].mxu0  ;;  %v9044_v43 = vpack.c.bf16 %v3087_v8, %v9539_v63  ;;  %v9050_v56 = vpack.c.bf16 %v3127_v0, %v9537_v34 }
 0x3bd   : > { %v9052_v54 = vmax.f32 %v3018_v48, 0.0  ;;  %v3020_v35 = vadd.f32 %v9000_v19, %v2961_v10  ;;  %v2963_v14 = vpop.f32.mrb[7].mxu0  ;;  %3638 = vmatprep.subr.bf16.mxu1 %v7645_v28 }
 0x3be   : > { %v9055_v42 = vmax.f32 %v3019_v11, 0.0  ;;  %v3021_v47 = vadd.f32 %v9004_v25, %v2963_v14 }
 0x3bf   : > { %v3088_v50 = vrot.slane %v9052_v54, 7  ;;  %v3128_v30 = vrot.slane %v9052_v54, 1  ;;  %v9060_v18 = vmax.f32 %v3020_v35, 0.0  ;;  %v9064_v57 = vpack.c.bf16 %v9052_v54, %v9014_v58 }
 0x3c0   : > { %v3089_v32 = vrot.slane %v9055_v42, 7  ;;  %v3129_v39 = vrot.slane %v9055_v42, 1  ;;  %v9068_v52 = vmax.f32 %v3021_v47, 0.0  ;;  %3639 = vmatpush1.bf16.msra.mxu1 %v7643_v6  ;;  %v9072_v24 = vpack.c.bf16 %v9055_v42, %v9018_v31  ;;  %v7654_v6 = vld [vmem:[#allocation9 + $0x44] ss:$8 sps:$4 sm:$0xff]  }
 0x3c1   : > { %v3090_v61 = vrot.slane %v9060_v18, 7  ;;  %v3130_v49 = vrot.slane %v9060_v18, 1  ;;  %3640 = vmatprep.subr.bf16.mxu1 %v7648_v22  ;;  %v9076_v13 = vpack.c.bf16 %v3088_v50, %v3086_v53  ;;  %v9078_v51 = vpack.c.bf16 %v3128_v30, %v3126_v59 }
 0x3c2   : > { %v3091_v5 = vrot.slane %v9068_v52, 7  ;;  %v3131_v15 = vrot.slane %v9068_v52, 1  ;;  %v2967_v62 = vpop.f32.mrb[8].mxu0  ;;  %3445 = vmatprep.mubr.bf16.mxu1 %v9072_v24  ;;  %v9083_v21 = vpack.c.bf16 %v3089_v32, %v3087_v8  ;;  %v9085_v29 = vpack.c.bf16 %v3129_v39, %v3127_v0  ;;  %v7649_v8 = vld [vmem:[#allocation9 + $0x30] ss:$8 sps:$4 sm:$0xff]  }
 0x3c3   : > { %v3022_v27 = vadd.f32 %v9000_v19, %v2967_v62  ;;  %v2969_v7 = vpop.f32.mrb[9].mxu0  ;;  %3446 = vmatmul.mubr.bf16.gmra.mrb[4].mxu1 %v9064_v57  ;;  %v9089_v1 = vpack.c.bf16 %v3090_v61, %v3088_v50  ;;  %v9100_v48 = vpack.c.bf16 %v3130_v49, %v3128_v30  ;;  %v7652_v62 = vld [vmem:[#allocation9 + $0x40] ss:$8 sps:$4 sm:$0xff]  }
 0x3c4   : > { %v3023_v55 = vadd.f32 %v9004_v25, %v2969_v7  ;;  %3641 = vmatpush1.bf16.msra.mxu1 %v7646_v44  ;;  %v2971_v28 = vpop.f32.mrb[10].mxu0  ;;  %v9096_v0 = vpack.c.bf16 %v3091_v5, %v3089_v32  ;;  %v9098_v3 = vpack.c.bf16 %v3131_v15, %v3129_v39 }
 0x3c5   : > { %v9102_v23 = vmax.f32 %v3022_v27, 0.0  ;;  %v3024_v11 = vadd.f32 %v9000_v19, %v2971_v28  ;;  %v2973_v10 = vpop.f32.mrb[11].mxu0  ;;  %3642 = vmatprep.subr.bf16.mxu1 %v7651_v2 }
 0x3c6   : > { %v9105_v35 = vmax.f32 %v3023_v55, 0.0  ;;  %v3025_v14 = vadd.f32 %v9004_v25, %v2973_v10  ;;  %v7657_v55 = vld [vmem:[#allocation9 + $0x54] ss:$8 sps:$4 sm:$0xff]  }
 0x3c7   : > { %v3092_v22 = vrot.slane %v9102_v23, 7  ;;  %v3132_v47 = vrot.slane %v9102_v23, 1  ;;  %v9110_v50 = vmax.f32 %v3024_v11, 0.0  ;;  %v9114_v30 = vpack.c.bf16 %v9102_v23, %v9060_v18 }
 0x3c8   : > { %v3093_v32 = vrot.slane %v9105_v35, 7  ;;  %v3133_v39 = vrot.slane %v9105_v35, 1  ;;  %v9118_v44 = vmax.f32 %v3025_v14, 0.0  ;;  %3643 = vmatpush1.bf16.msra.mxu1 %v7649_v8  ;;  %v9122_v2 = vpack.c.bf16 %v9105_v35, %v9068_v52 }
 0x3c9   : > { %9579 = vst [vmem:[#allocation18_spill] sm:$0xff] %v9114_v30  ;;  %v3094_v27 = vrot.slane %v9110_v50, 7  ;;  %v3134_v7 = vrot.slane %v9110_v50, 1  ;;  %3644 = vmatprep.subr.bf16.mxu1 %v7654_v6  ;;  %v9126_v28 = vpack.c.bf16 %v3092_v22, %v3090_v61  ;;  %v9128_v11 = vpack.c.bf16 %v3132_v47, %v3130_v49  ;;  %v7660_v49 = vld [vmem:[#allocation9 + $0x64] ss:$8 sps:$4 sm:$0xff]  }
 0x3ca   : > { %9580 = vst [vmem:[#allocation19_spill] sm:$0xff] %v9122_v2  ;;  %v3095_v10 = vrot.slane %v9118_v44, 7  ;;  %v3135_v14 = vrot.slane %v9118_v44, 1  ;;  %v2977_v8 = vpop.f32.mrb[12].mxu0  ;;  %3455 = vmatprep.mubr.bf16.mxu1 %v9122_v2  ;;  %v9133_v36 = vpack.c.bf16 %v3093_v32, %v3091_v5  ;;  %v9135_v16 = vpack.c.bf16 %v3133_v39, %v3131_v15 }
 0x3cb   : > { %v3026_v59 = vadd.f32 %v9000_v19, %v2977_v8  ;;  %v2979_v53 = vpop.f32.mrb[13].mxu0  ;;  %3456 = vmatmul.mubr.bf16.gmra.mrb[8].mxu1 %v9114_v30  ;;  %v9139_v61 = vpack.c.bf16 %v3094_v27, %v3092_v22  ;;  %v9150_v8 = vpack.c.bf16 %v3134_v7, %v3132_v47 }
 0x3cc   : > { %v3027_v12 = vadd.f32 %v9004_v25, %v2979_v53  ;;  %3645 = vmatpush1.bf16.msra.mxu1 %v7652_v62  ;;  %v2981_v5 = vpop.f32.mrb[14].mxu0  ;;  %v9146_v15 = vpack.c.bf16 %v3095_v10, %v3093_v32  ;;  %v9148_v40 = vpack.c.bf16 %v3135_v14, %v3133_v39  ;;  %v9581_v62 = vrot.slane %v9011_v38, 7 }
 0x3cd   : > { %v9152_v34 = vmax.f32 %v3026_v59, 0.0  ;;  %v3028_v22 = vadd.f32 %v9000_v19, %v2981_v5  ;;  %v2983_v17 = vpop.f32.mrb[15].mxu0  ;;  %3646 = vmatprep.subr.bf16.mxu1 %v7657_v55 }
 0x3ce   : > { %v9155_v63 = vmax.f32 %v3027_v12, 0.0  ;;  %v3029_v53 = vadd.f32 %v9004_v25, %v2983_v17  ;;  %v6436_v32 = vpack.c.bf16 %v9581_v62, %v8633_v9  ;;  %v7658_v17 = vld [vmem:[#allocation9 + $0x60] ss:$8 sps:$4 sm:$0xff]   ;;  %v7663_v62 = vld [vmem:[#allocation9 + $0x74] ss:$8 sps:$4 sm:$0xff]  }
 0x3cf   : > { %v3096_v39 = vrot.slane %v9152_v34, 7  ;;  %v3136_v47 = vrot.slane %v9152_v34, 1  ;;  %v9163_v6 = vmax.f32 %v3028_v22, 0.0  ;;  %v9167_v19 = vpack.c.bf16 %v9152_v34, %v9110_v50 }
 0x3d0   : > { %v3097_v59 = vrot.slane %v9155_v63, 7  ;;  %v3137_v12 = vrot.slane %v9155_v63, 1  ;;  %v9171_v55 = vmax.f32 %v3029_v53, 0.0  ;;  %3647 = vmatpush1.bf16.msra.mxu1 %v7655_v26  ;;  %v9175_v25 = vpack.c.bf16 %v9155_v63, %v9118_v44 }
 0x3d1   : > { %9582 = vst [vmem:[#allocation20_spill] sm:$0xff] %v9167_v19  ;;  %v9545_v5 = vrot.slane %v9163_v6, 7  ;;  %v9546_v22 = vrot.slane %v9163_v6, 1  ;;  %3648 = vmatprep.subr.bf16.mxu1 %v7660_v49  ;;  %v9179_v60 = vpack.c.bf16 %v3096_v39, %v3094_v27  ;;  %v9181_v20 = vpack.c.bf16 %v3136_v47, %v3134_v7  ;;  %v7666_v27 = vld [vmem:[#allocation9 + $0x84] ss:$8 sps:$4 sm:$0xff]  }
 0x3d2   : > { %v9548_v30 = vrot.slane %v9171_v55, 7  ;;  %3465 = vmatprep.mubr.bf16.mxu1 %v9175_v25  ;;  %v9186_v26 = vpack.c.bf16 %v3097_v59, %v3095_v10  ;;  %v9188_v2 = vpack.c.bf16 %v3137_v12, %v3135_v14  ;;  %v7661_v10 = vld [vmem:[#allocation9 + $0x70] ss:$8 sps:$4 sm:$0xff]   ;;  %v7664_v7 = vld [vmem:[#allocation9 + $0x80] ss:$8 sps:$4 sm:$0xff]  }
 0x3d3   : > { %3466 = vmatmul.mubr.bf16.gmra.mrb[12].mxu1 %v9167_v19  ;;  %v9193_v49 = vpack.c.bf16 %v9545_v5, %v3096_v39  ;;  %v9201_v53 = vpack.c.bf16 %v9546_v22, %v3136_v47  ;;  %v9583_v39 = vrot.slane %v9171_v55, 1  ;;  %v7669_v47 = vld [vmem:[#allocation9 + $0x94] ss:$8 sps:$4 sm:$0xff]   ;;  %v7672_v22 = vld [vmem:[#allocation9 + $0xa4] ss:$8 sps:$4 sm:$0xff]  }
 0x3d4   : > { %3649 = vmatpush1.bf16.msra.mxu1 %v7658_v17  ;;  %6437 = vmatprep.mubr.msk.bf16.mxu1 %vm8620_vm1, %v6436_v32  ;;  %v9207_v14 = vpack.c.bf16 %v9548_v30, %v3097_v59  ;;  %v7667_v17 = vld [vmem:[#allocation9 + $0x90] ss:$8 sps:$4 sm:$0xff]   ;;  %v7670_v32 = vld [vmem:[#allocation9 + $0xa0] ss:$8 sps:$4 sm:$0xff]   ;;  %v7675_v19 = vld [vmem:[#allocation9 + $0xb4] ss:$8 sps:$4 sm:$0xff]  }
 0x3d5   : > { %v9211_v5 = vpack.c.bf16 %v9583_v39, %v3137_v12  ;;  %3650 = vmatprep.subr.bf16.mxu1 %v7663_v62  ;;  %v7673_v59 = vld [vmem:[#allocation9 + $0xb0] ss:$8 sps:$4 sm:$0xff]   ;;  %v7678_v30 = vld [vmem:[#allocation9 + $0xc4] ss:$8 sps:$4 sm:$0xff]   ;;  %v7676_v12 = vld [vmem:[#allocation9 + $0xc0] ss:$8 sps:$4 sm:$0xff]  }
 0x3d6   : > { %v7681_v62 = vld [vmem:[#allocation9 + $0xd4] ss:$8 sps:$4 sm:$0xff]  }
 0x3d7   : > { %v7687_v39 = vld [vmem:[#allocation9 + $0xf4] ss:$8 sps:$4 sm:$0xff]  }
 0x3d8   : > { %3651 = vmatpush1.bf16.msra.mxu1 %v7661_v10  ;;  %v7679_v10 = vld [vmem:[#allocation9 + $0xd0] ss:$8 sps:$4 sm:$0xff]  }
 0x3d9   : > { %3652 = vmatprep.subr.bf16.mxu1 %v7666_v27  ;;  %v7684_v27 = vld [vmem:[#allocation9 + $0xe4] ss:$8 sps:$4 sm:$0xff]  }
 0x3dc   : > { %3653 = vmatpush1.bf16.msra.mxu1 %v7664_v7  ;;  %v7682_v7 = vld [vmem:[#allocation9 + $0xe0] ss:$8 sps:$4 sm:$0xff]  }
 0x3dd   : > { %3654 = vmatprep.subr.bf16.mxu1 %v7669_v47  ;;  %v7685_v47 = vld [vmem:[#allocation9 + $0xf0] ss:$8 sps:$4 sm:$0xff]  }
 0x3e0   : > { %3655 = vmatpush1.bf16.msra.mxu1 %v7667_v17  ;;  %v7688_v17 = vld [vmem:[#allocation9 + $0x200] ss:$8 sps:$4 sm:$0xff]  }
 0x3e1   : > { %3656 = vmatprep.subr.bf16.mxu1 %v7672_v22  ;;  %v7690_v22 = vld [vmem:[#allocation9 + $0x204] ss:$8 sps:$4 sm:$0xff]  }
 0x3e4   : > { %3657 = vmatpush1.bf16.msra.mxu1 %v7670_v32 }
 0x3e5   : > { %3658 = vmatprep.subr.bf16.mxu1 %v7675_v19  ;;  %v9584_v19 = vrot.slane %v9008_v41, 7 }
 0x3e7   : > { %v6439_v32 = vpack.c.bf16 %v9584_v19, %v8633_v9  ;;  %v7706_v19 = vld [vmem:[#allocation9 + $0x260] ss:$8 sps:$4 sm:$0xff]  }
 0x3e8   : > { %3659 = vmatpush1.bf16.msra.mxu1 %v7673_v59  ;;  %v7691_v59 = vld [vmem:[#allocation9 + $0x210] ss:$8 sps:$4 sm:$0xff]  }
 0x3e9   : > { %3660 = vmatprep.subr.bf16.mxu1 %v7678_v30  ;;  %v7693_v30 = vld [vmem:[#allocation9 + $0x214] ss:$8 sps:$4 sm:$0xff]  }
 0x3ec   : > { %3661 = vmatpush1.bf16.msra.mxu1 %v7676_v12  ;;  %v7696_v12 = vld [vmem:[#allocation9 + $0x224] ss:$8 sps:$4 sm:$0xff]  }
 0x3ed   : > { %3662 = vmatprep.subr.bf16.mxu1 %v7681_v62  ;;  %v7694_v62 = vld [vmem:[#allocation9 + $0x220] ss:$8 sps:$4 sm:$0xff]  }
 0x3f0   : > { %3663 = vmatpush1.bf16.msra.mxu1 %v7679_v10  ;;  %v7699_v10 = vld [vmem:[#allocation9 + $0x234] ss:$8 sps:$4 sm:$0xff]  }
 0x3f1   : > { %3664 = vmatprep.subr.bf16.mxu1 %v7684_v27  ;;  %v7697_v27 = vld [vmem:[#allocation9 + $0x230] ss:$8 sps:$4 sm:$0xff]  }
 0x3f4   : > { %3665 = vmatpush1.bf16.msra.mxu1 %v7682_v7  ;;  %v7702_v7 = vld [vmem:[#allocation9 + $0x244] ss:$8 sps:$4 sm:$0xff]  }
 0x3f5   : > { %3666 = vmatprep.subr.bf16.mxu1 %v7687_v39  ;;  %v7700_v39 = vld [vmem:[#allocation9 + $0x240] ss:$8 sps:$4 sm:$0xff]  }
 0x3f8   : > { %3667 = vmatpush1.bf16.msra.mxu1 %v7685_v47  ;;  %v7705_v47 = vld [vmem:[#allocation9 + $0x254] ss:$8 sps:$4 sm:$0xff]  }
 0x3f9   : > { %3910 = vmatprep.subr.bf16.mxu1 %v7690_v22  ;;  %v7703_v22 = vld [vmem:[#allocation9 + $0x250] ss:$8 sps:$4 sm:$0xff]  }
 0x3fb   : > { %6440 = vmatmul.mubr.msk.bf16.vlgmr.msra.gmra.mrb[0].mxu1 %vm8620_vm1, %v6439_v32  ;;  %v7711_v32 = vld [vmem:[#allocation9 + $0x274] ss:$8 sps:$4 sm:$0xff]  }
 0x3fc   : > { %6443 = vmatprep.mubr.msk.bf16.mxu1 %vm8620_vm1, %v9083_v21  ;;  %3911 = vmatpush1.bf16.msra.mxu1 %v7688_v17  ;;  %v7708_v17 = vld [vmem:[#allocation9 + $0x264] ss:$8 sps:$4 sm:$0xff]  }
 0x3fd   : > { %3912 = vmatprep.subr.bf16.mxu1 %v7693_v30  ;;  %v9585_v30 = vrot.slane %v9011_v38, 1 }
 0x400   : > { %3913 = vmatpush1.bf16.msra.mxu1 %v7691_v59  ;;  %v6492_v59 = vpack.c.bf16 %v9585_v30, %v8716_v37  ;;  %v7724_v30 = vld [vmem:[#allocation9 + $0x2c0] ss:$8 sps:$4 sm:$0xff]  }
 0x401   : > { %3914 = vmatprep.subr.bf16.mxu1 %v7696_v12  ;;  %v7709_v12 = vld [vmem:[#allocation9 + $0x270] ss:$8 sps:$4 sm:$0xff]  }
 0x403   : > { %6446 = vmatmul.mubr.msk.bf16.gmra.mrb[4].mxu1 %vm8620_vm1, %v9076_v13 }
 0x404   : > { %6449 = vmatprep.mubr.msk.bf16.mxu1 %vm8620_vm1, %v9133_v36  ;;  %3915 = vmatpush1.bf16.msra.mxu1 %v7694_v62  ;;  %v7714_v62 = vld [vmem:[#allocation9 + $0x284] ss:$8 sps:$4 sm:$0xff]  }
 0x405   : > { %3916 = vmatprep.subr.bf16.mxu1 %v7699_v10  ;;  %v7712_v10 = vld [vmem:[#allocation9 + $0x280] ss:$8 sps:$4 sm:$0xff]  }
 0x408   : > { %3917 = vmatpush1.bf16.msra.mxu1 %v7697_v27  ;;  %v7717_v27 = vld [vmem:[#allocation9 + $0x294] ss:$8 sps:$4 sm:$0xff]  }
 0x409   : > { %3918 = vmatprep.subr.bf16.mxu1 %v7702_v7  ;;  %v7715_v7 = vld [vmem:[#allocation9 + $0x290] ss:$8 sps:$4 sm:$0xff]  }
 0x40b   : > { %6452 = vmatmul.mubr.msk.bf16.gmra.mrb[8].mxu1 %vm8620_vm1, %v9126_v28 }
 0x40c   : > { %6455 = vmatprep.mubr.msk.bf16.mxu1 %vm8620_vm1, %v9186_v26  ;;  %3919 = vmatpush1.bf16.msra.mxu1 %v7700_v39  ;;  %v7720_v39 = vld [vmem:[#allocation9 + $0x2a4] ss:$8 sps:$4 sm:$0xff]  }
 0x40d   : > { %3920 = vmatprep.subr.bf16.mxu1 %v7705_v47  ;;  %v7718_v47 = vld [vmem:[#allocation9 + $0x2a0] ss:$8 sps:$4 sm:$0xff]  }
 0x410   : > { %3921 = vmatpush1.bf16.msra.mxu1 %v7703_v22  ;;  %v7723_v22 = vld [vmem:[#allocation9 + $0x2b4] ss:$8 sps:$4 sm:$0xff]  }
 0x411   : > { %3922 = vmatprep.subr.bf16.mxu1 %v7708_v17  ;;  %v7721_v17 = vld [vmem:[#allocation9 + $0x2b0] ss:$8 sps:$4 sm:$0xff]  }
 0x413   : > { %6458 = vmatmul.mubr.msk.bf16.gmra.mrb[12].mxu1 %vm8620_vm1, %v9179_v60 }
 0x414   : > { %3923 = vmatpush1.bf16.msra.mxu1 %v7706_v19  ;;  %6493 = vmatprep.mubr.msk.bf16.mxu1 %vm8726_vm3, %v6492_v59  ;;  %v7726_v19 = vld [vmem:[#allocation9 + $0x2c4] ss:$8 sps:$4 sm:$0xff]   ;;  %v7727_v59 = vld [vmem:[#allocation9 + $0x2d0] ss:$8 sps:$4 sm:$0xff]  }
 0x415   : > { %3924 = vmatprep.subr.bf16.mxu1 %v7711_v32  ;;  %v7729_v32 = vld [vmem:[#allocation9 + $0x2d4] ss:$8 sps:$4 sm:$0xff]  }
 0x418   : > { %3925 = vmatpush1.bf16.msra.mxu1 %v7709_v12  ;;  %v7732_v12 = vld [vmem:[#allocation9 + $0x2e4] ss:$8 sps:$4 sm:$0xff]  }
 0x419   : > { %3926 = vmatprep.subr.bf16.mxu1 %v7714_v62  ;;  %v7730_v62 = vld [vmem:[#allocation9 + $0x2e0] ss:$8 sps:$4 sm:$0xff]  }
 0x41c   : > { %3927 = vmatpush1.bf16.msra.mxu1 %v7712_v10  ;;  %v7735_v10 = vld [vmem:[#allocation9 + $0x2f4] ss:$8 sps:$4 sm:$0xff]  }
 0x41d   : > { %3928 = vmatprep.subr.bf16.mxu1 %v7717_v27  ;;  %v7733_v27 = vld [vmem:[#allocation9 + $0x2f0] ss:$8 sps:$4 sm:$0xff]  }
 0x420   : > { %3929 = vmatpush1.bf16.msra.mxu1 %v7715_v7  ;;  %v7738_v7 = vld [vmem:[#allocation9 + $0x304] ss:$8 sps:$4 sm:$0xff]  }
 0x421   : > { %3930 = vmatprep.subr.bf16.mxu1 %v7720_v39  ;;  %v7736_v39 = vld [vmem:[#allocation9 + $0x300] ss:$8 sps:$4 sm:$0xff]  }
 0x424   : > { %3931 = vmatpush1.bf16.msra.mxu1 %v7718_v47  ;;  %v9586_v47 = vrot.slane %v9008_v41, 1 }
 0x425   : > { %3932 = vmatprep.subr.bf16.mxu1 %v7723_v22 }
 0x426   : > { %v6495_v22 = vpack.c.bf16 %v9586_v47, %v8716_v37  ;;  %v7754_v47 = vld [vmem:[#allocation9 + $0x360] ss:$8 sps:$4 sm:$0xff]  }
 0x428   : > { %3933 = vmatpush1.bf16.msra.mxu1 %v7721_v17  ;;  %v7741_v17 = vld [vmem:[#allocation9 + $0x314] ss:$8 sps:$4 sm:$0xff]  }
 0x429   : > { %3934 = vmatprep.subr.bf16.mxu1 %v7726_v19  ;;  %v7739_v19 = vld [vmem:[#allocation9 + $0x310] ss:$8 sps:$4 sm:$0xff]  }
 0x42c   : > { %3935 = vmatpush1.bf16.msra.mxu1 %v7724_v30  ;;  %v7744_v30 = vld [vmem:[#allocation9 + $0x324] ss:$8 sps:$4 sm:$0xff]  }
 0x42d   : > { %3936 = vmatprep.subr.bf16.mxu1 %v7729_v32  ;;  %v7742_v32 = vld [vmem:[#allocation9 + $0x320] ss:$8 sps:$4 sm:$0xff]  }
 0x430   : > { %3937 = vmatpush1.bf16.msra.mxu1 %v7727_v59  ;;  %v7747_v59 = vld [vmem:[#allocation9 + $0x334] ss:$8 sps:$4 sm:$0xff]  }
 0x431   : > { %3938 = vmatprep.subr.bf16.mxu1 %v7732_v12  ;;  %v7745_v12 = vld [vmem:[#allocation9 + $0x330] ss:$8 sps:$4 sm:$0xff]  }
 0x434   : > { %3939 = vmatpush1.bf16.msra.mxu1 %v7730_v62  ;;  %v7750_v62 = vld [vmem:[#allocation9 + $0x344] ss:$8 sps:$4 sm:$0xff]  }
 0x435   : > { %3940 = vmatprep.subr.bf16.mxu1 %v7735_v10  ;;  %v7748_v10 = vld [vmem:[#allocation9 + $0x340] ss:$8 sps:$4 sm:$0xff]  }
 0x438   : > { %3941 = vmatpush1.bf16.msra.mxu1 %v7733_v27  ;;  %v7753_v27 = vld [vmem:[#allocation9 + $0x354] ss:$8 sps:$4 sm:$0xff]  }
 0x439   : > { %4200 = vmatprep.subr.bf16.mxu1 %v7738_v7  ;;  %v7751_v7 = vld [vmem:[#allocation9 + $0x350] ss:$8 sps:$4 sm:$0xff]  }
 0x43b   : > { %6496 = vmatmul.mubr.msk.bf16.vlgmr.msra.gmra.mrb[0].mxu1 %vm8726_vm3, %v6495_v22  ;;  %v7759_v22 = vld [vmem:[#allocation9 + $0x374] ss:$8 sps:$4 sm:$0xff]  }
 0x43c   : > { %6499 = vmatprep.mubr.msk.bf16.mxu1 %vm8726_vm3, %v9085_v29  ;;  %4201 = vmatpush1.bf16.msra.mxu1 %v7736_v39  ;;  %v7756_v39 = vld [vmem:[#allocation9 + $0x364] ss:$8 sps:$4 sm:$0xff]  }
 0x43d   : > { %4202 = vmatprep.subr.bf16.mxu1 %v7741_v17  ;;  %v7757_v17 = vld [vmem:[#allocation9 + $0x370] ss:$8 sps:$4 sm:$0xff]  }
 0x440   : > { %4203 = vmatpush1.bf16.msra.mxu1 %v7739_v19  ;;  %v7762_v19 = vld [vmem:[#allocation9 + $0x384] ss:$8 sps:$4 sm:$0xff]  }
 0x441   : > { %4204 = vmatprep.subr.bf16.mxu1 %v7744_v30  ;;  %v7760_v30 = vld [vmem:[#allocation9 + $0x380] ss:$8 sps:$4 sm:$0xff]  }
 0x443   : > { %6502 = vmatmul.mubr.msk.bf16.gmra.mrb[4].mxu1 %vm8726_vm3, %v9078_v51 }
 0x444   : > { %6505 = vmatprep.mubr.msk.bf16.mxu1 %vm8726_vm3, %v9135_v16  ;;  %4205 = vmatpush1.bf16.msra.mxu1 %v7742_v32  ;;  %v7765_v32 = vld [vmem:[#allocation9 + $0x394] ss:$8 sps:$4 sm:$0xff]  }
 0x445   : > { %4206 = vmatprep.subr.bf16.mxu1 %v7747_v59  ;;  %v7763_v59 = vld [vmem:[#allocation9 + $0x390] ss:$8 sps:$4 sm:$0xff]  }
 0x448   : > { %4207 = vmatpush1.bf16.msra.mxu1 %v7745_v12  ;;  %v7768_v12 = vld [vmem:[#allocation9 + $0x3a4] ss:$8 sps:$4 sm:$0xff]  }
 0x449   : > { %4208 = vmatprep.subr.bf16.mxu1 %v7750_v62  ;;  %v7766_v62 = vld [vmem:[#allocation9 + $0x3a0] ss:$8 sps:$4 sm:$0xff]  }
 0x44b   : > { %6508 = vmatmul.mubr.msk.bf16.gmra.mrb[8].mxu1 %vm8726_vm3, %v9128_v11 }
 0x44c   : > { %6511 = vmatprep.mubr.msk.bf16.mxu1 %vm8726_vm3, %v9188_v2  ;;  %4209 = vmatpush1.bf16.msra.mxu1 %v7748_v10  ;;  %v7771_v10 = vld [vmem:[#allocation9 + $0x3b4] ss:$8 sps:$4 sm:$0xff]  }
 0x44d   : > { %4210 = vmatprep.subr.bf16.mxu1 %v7753_v27  ;;  %v7769_v27 = vld [vmem:[#allocation9 + $0x3b0] ss:$8 sps:$4 sm:$0xff]  }
 0x450   : > { %4211 = vmatpush1.bf16.msra.mxu1 %v7751_v7  ;;  %v7774_v7 = vld [vmem:[#allocation9 + $0x3c4] ss:$8 sps:$4 sm:$0xff]  }
 0x451   : > { %4212 = vmatprep.subr.bf16.mxu1 %v7756_v39  ;;  %v7777_v39 = vld [vmem:[#allocation9 + $0x3d4] ss:$8 sps:$4 sm:$0xff]  }
 0x453   : > { %6514 = vmatmul.mubr.msk.bf16.gmra.mrb[12].mxu1 %vm8726_vm3, %v9181_v20 }
 0x454   : > { %4213 = vmatpush1.bf16.msra.mxu1 %v7754_v47  ;;  %6549 = vmatprep.mubr.msk.bf16.mxu1 %vm8620_vm1, %v9044_v43  ;;  %v7772_v43 = vld [vmem:[#allocation9 + $0x3c0] ss:$8 sps:$4 sm:$0xff]   ;;  %v7775_v47 = vld [vmem:[#allocation9 + $0x3d0] ss:$8 sps:$4 sm:$0xff]  }
 0x455   : > { %4214 = vmatprep.subr.bf16.mxu1 %v7759_v22  ;;  %v7780_v22 = vld [vmem:[#allocation9 + $0x3e4] ss:$8 sps:$4 sm:$0xff]  }
 0x458   : > { %4215 = vmatpush1.bf16.msra.mxu1 %v7757_v17  ;;  %v7778_v17 = vld [vmem:[#allocation9 + $0x3e0] ss:$8 sps:$4 sm:$0xff]  }
 0x459   : > { %4216 = vmatprep.subr.bf16.mxu1 %v7762_v19  ;;  %v7783_v19 = vld [vmem:[#allocation9 + $0x3f4] ss:$8 sps:$4 sm:$0xff]  }
 0x45c   : > { %4217 = vmatpush1.bf16.msra.mxu1 %v7760_v30  ;;  %v7781_v30 = vld [vmem:[#allocation9 + $0x3f0] ss:$8 sps:$4 sm:$0xff]  }
 0x45d   : > { %4218 = vmatprep.subr.bf16.mxu1 %v7765_v32  ;;  %v7786_v32 = vld [vmem:[#allocation9 + $0x404] ss:$8 sps:$4 sm:$0xff]  }
 0x460   : > { %4219 = vmatpush1.bf16.msra.mxu1 %v7763_v59  ;;  %v7784_v59 = vld [vmem:[#allocation9 + $0x400] ss:$8 sps:$4 sm:$0xff]  }
 0x461   : > { %4220 = vmatprep.subr.bf16.mxu1 %v7768_v12  ;;  %v7789_v12 = vld [vmem:[#allocation9 + $0x414] ss:$8 sps:$4 sm:$0xff]  }
 0x464   : > { %4221 = vmatpush1.bf16.msra.mxu1 %v7766_v62  ;;  %v7787_v62 = vld [vmem:[#allocation9 + $0x410] ss:$8 sps:$4 sm:$0xff]  }
 0x465   : > { %4222 = vmatprep.subr.bf16.mxu1 %v7771_v10  ;;  %v7792_v10 = vld [vmem:[#allocation9 + $0x424] ss:$8 sps:$4 sm:$0xff]  }
 0x468   : > { %4223 = vmatpush1.bf16.msra.mxu1 %v7769_v27  ;;  %v7790_v27 = vld [vmem:[#allocation9 + $0x420] ss:$8 sps:$4 sm:$0xff]  }
 0x469   : > { %4224 = vmatprep.subr.bf16.mxu1 %v7774_v7  ;;  %v7795_v7 = vld [vmem:[#allocation9 + $0x434] ss:$8 sps:$4 sm:$0xff]  }
 0x46c   : > { %4225 = vmatpush1.bf16.msra.mxu1 %v7772_v43  ;;  %v7796_v43 = vld [vmem:[#allocation9 + $0x440] ss:$8 sps:$4 sm:$0xff]  }
 0x46d   : > { %4226 = vmatprep.subr.bf16.mxu1 %v7777_v39  ;;  %v7801_v39 = vld [vmem:[#allocation9 + $0x454] ss:$8 sps:$4 sm:$0xff]  }
 0x470   : > { %4227 = vmatpush1.bf16.msra.mxu1 %v7775_v47  ;;  %v7802_v47 = vld [vmem:[#allocation9 + $0x460] ss:$8 sps:$4 sm:$0xff]  }
 0x471   : > { %4228 = vmatprep.subr.bf16.mxu1 %v7780_v22  ;;  %v7807_v22 = vld [vmem:[#allocation9 + $0x474] ss:$8 sps:$4 sm:$0xff]  }
 0x474   : > { %4229 = vmatpush1.bf16.msra.mxu1 %v7778_v17  ;;  %v7805_v17 = vld [vmem:[#allocation9 + $0x470] ss:$8 sps:$4 sm:$0xff]  }
 0x475   : > { %4230 = vmatprep.subr.bf16.mxu1 %v7783_v19  ;;  %v7808_v19 = vld [vmem:[#allocation9 + $0x480] ss:$8 sps:$4 sm:$0xff]  }
 0x478   : > { %4231 = vmatpush1.bf16.msra.mxu1 %v7781_v30  ;;  %v7813_v30 = vld [vmem:[#allocation9 + $0x494] ss:$8 sps:$4 sm:$0xff]  }
 0x479   : > { %4490 = vmatprep.subr.bf16.mxu1 %v7786_v32  ;;  %v7811_v32 = vld [vmem:[#allocation9 + $0x490] ss:$8 sps:$4 sm:$0xff]  }
 0x47b   : > { %6552 = vmatmul.mubr.msk.bf16.vlgmr.msra.gmra.mrb[0].mxu1 %vm8620_vm1, %v9034_v33  ;;  %v7793_v33 = vld [vmem:[#allocation9 + $0x430] ss:$8 sps:$4 sm:$0xff]  }
 0x47c   : > { %6555 = vmatprep.mubr.msk.bf16.mxu1 %vm8620_vm1, %v9096_v0  ;;  %4491 = vmatpush1.bf16.msra.mxu1 %v7784_v59  ;;  %v7798_v0 = vld [vmem:[#allocation9 + $0x444] ss:$8 sps:$4 sm:$0xff]  }
 0x47d   : > { %4492 = vmatprep.subr.bf16.mxu1 %v7789_v12  ;;  %v7816_v59 = vld [vmem:[#allocation9 + $0x4a4] ss:$8 sps:$4 sm:$0xff]   ;;  %v7814_v12 = vld [vmem:[#allocation9 + $0x4a0] ss:$8 sps:$4 sm:$0xff]  }
 0x480   : > { %4493 = vmatpush1.bf16.msra.mxu1 %v7787_v62  ;;  %v7817_v62 = vld [vmem:[#allocation9 + $0x4b0] ss:$8 sps:$4 sm:$0xff]  }
 0x481   : > { %4494 = vmatprep.subr.bf16.mxu1 %v7792_v10  ;;  %v7825_v10 = vld [vmem:[#allocation9 + $0x4d4] ss:$8 sps:$4 sm:$0xff]  }
 0x483   : > { %6558 = vmatmul.mubr.msk.bf16.gmra.mrb[4].mxu1 %vm8620_vm1, %v9089_v1  ;;  %v7799_v1 = vld [vmem:[#allocation9 + $0x450] ss:$8 sps:$4 sm:$0xff]  }
 0x484   : > { %6561 = vmatprep.mubr.msk.bf16.mxu1 %vm8620_vm1, %v9146_v15  ;;  %4495 = vmatpush1.bf16.msra.mxu1 %v7790_v27  ;;  %v7804_v15 = vld [vmem:[#allocation9 + $0x464] ss:$8 sps:$4 sm:$0xff]   ;;  %v7823_v27 = vld [vmem:[#allocation9 + $0x4d0] ss:$8 sps:$4 sm:$0xff]  }
 0x485   : > { %4496 = vmatprep.subr.bf16.mxu1 %v7795_v7  ;;  %v7828_v7 = vld [vmem:[#allocation9 + $0x4e4] ss:$8 sps:$4 sm:$0xff]  }
 0x488   : > { %4497 = vmatpush1.bf16.msra.mxu1 %v7793_v33  ;;  %v7826_v33 = vld [vmem:[#allocation9 + $0x4e0] ss:$8 sps:$4 sm:$0xff]  }
 0x489   : > { %4498 = vmatprep.subr.bf16.mxu1 %v7798_v0  ;;  %v7831_v0 = vld [vmem:[#allocation9 + $0x4f4] ss:$8 sps:$4 sm:$0xff]  }
 0x48b   : > { %6564 = vmatmul.mubr.msk.bf16.gmra.mrb[8].mxu1 %vm8620_vm1, %v9139_v61  ;;  %v9587_v61 = vpack.c.bf16 %v9018_v31, %v9011_v38  ;;  %v7822_v38 = vld [vmem:[#allocation9 + $0x4c4] ss:$8 sps:$4 sm:$0xff]   ;;  %v7820_v31 = vld [vmem:[#allocation9 + $0x4c0] ss:$8 sps:$4 sm:$0xff]  }
 0x48c   : > { %6567 = vmatprep.mubr.msk.bf16.mxu1 %vm8620_vm1, %v9207_v14  ;;  %4499 = vmatpush1.bf16.msra.mxu1 %v7796_v43  ;;  %v7810_v14 = vld [vmem:[#allocation9 + $0x484] ss:$8 sps:$4 sm:$0xff]   ;;  %v7829_v43 = vld [vmem:[#allocation9 + $0x4f0] ss:$8 sps:$4 sm:$0xff]  }
 0x48d   : > { %4500 = vmatprep.subr.bf16.mxu1 %v7801_v39  ;;  %v7834_v39 = vld [vmem:[#allocation9 + $0x504] ss:$8 sps:$4 sm:$0xff]  }
 0x490   : > { %4501 = vmatpush1.bf16.msra.mxu1 %v7799_v1  ;;  %v7832_v1 = vld [vmem:[#allocation9 + $0x500] ss:$8 sps:$4 sm:$0xff]  }
 0x491   : > { %4502 = vmatprep.subr.bf16.mxu1 %v7804_v15  ;;  %v7837_v15 = vld [vmem:[#allocation9 + $0x514] ss:$8 sps:$4 sm:$0xff]  }
 0x493   : > { %6570 = vmatmul.mubr.msk.bf16.gmra.mrb[12].mxu1 %vm8620_vm1, %v9193_v49  ;;  %v7819_v49 = vld [vmem:[#allocation9 + $0x4b4] ss:$8 sps:$4 sm:$0xff]  }
 0x494   : > { %4503 = vmatpush1.bf16.msra.mxu1 %v7802_v47  ;;  %4522 = vmatprep.mubr.bf16.mxu1 %v9587_v61  ;;  %v9588_v47 = vpack.c.bf16 %v9014_v58, %v9008_v41  ;;  %v7835_v61 = vld [vmem:[#allocation9 + $0x510] ss:$8 sps:$4 sm:$0xff]   ;;  %v9591_v41 = vpack.c.bf16 %v9118_v44, %v9105_v35  ;;  %v7852_v35 = vld [vmem:[#allocation9 + $0x564] ss:$8 sps:$4 sm:$0xff]   ;;  %v7850_v44 = vld [vmem:[#allocation9 + $0x560] ss:$8 sps:$4 sm:$0xff]  }
 0x495   : > { %4504 = vmatprep.subr.bf16.mxu1 %v7807_v22  ;;  %v9589_v22 = vpack.c.bf16 %v9068_v52, %v9055_v42  ;;  %v7841_v58 = vld [vmem:[#allocation9 + $0x530] ss:$8 sps:$4 sm:$0xff]   ;;  %v7846_v42 = vld [vmem:[#allocation9 + $0x544] ss:$8 sps:$4 sm:$0xff]   ;;  %v7844_v52 = vld [vmem:[#allocation9 + $0x540] ss:$8 sps:$4 sm:$0xff]  }
 0x498   : > { %4505 = vmatpush1.bf16.msra.mxu1 %v7805_v17  ;;  %v7840_v17 = vld [vmem:[#allocation9 + $0x524] ss:$8 sps:$4 sm:$0xff]  }
 0x499   : > { %4506 = vmatprep.subr.bf16.mxu1 %v7810_v14  ;;  %v7838_v14 = vld [vmem:[#allocation9 + $0x520] ss:$8 sps:$4 sm:$0xff]  }
 0x49c   : > { %4507 = vmatpush1.bf16.msra.mxu1 %v7808_v19  ;;  %v7843_v19 = vld [vmem:[#allocation9 + $0x534] ss:$8 sps:$4 sm:$0xff]  }
 0x49d   : > { %4508 = vmatprep.subr.bf16.mxu1 %v7813_v30  ;;  %v9590_v30 = vpack.c.bf16 %v9060_v18, %v9052_v54  ;;  %v9593_v54 = vpack.c.bf16 %v9171_v55, %v9155_v63  ;;  %v7847_v18 = vld [vmem:[#allocation9 + $0x550] ss:$8 sps:$4 sm:$0xff]   ;;  %v7858_v63 = vld [vmem:[#allocation9 + $0x584] ss:$8 sps:$4 sm:$0xff]  }
 0x4a0   : > { %4509 = vmatpush1.bf16.msra.mxu1 %v7811_v32  ;;  %v7849_v32 = vld [vmem:[#allocation9 + $0x554] ss:$8 sps:$4 sm:$0xff]  }
 0x4a1   : > { %4510 = vmatprep.subr.bf16.mxu1 %v7816_v59  ;;  %v9592_v59 = vpack.c.bf16 %v9110_v50, %v9102_v23  ;;  %v7853_v23 = vld [vmem:[#allocation9 + $0x570] ss:$8 sps:$4 sm:$0xff]   ;;  %v7856_v50 = vld [vmem:[#allocation9 + $0x580] ss:$8 sps:$4 sm:$0xff]  }
 0x4a4   : > { %4511 = vmatpush1.bf16.msra.mxu1 %v7814_v12  ;;  %v7855_v12 = vld [vmem:[#allocation9 + $0x574] ss:$8 sps:$4 sm:$0xff]  }
 0x4a5   : > { %4512 = vmatprep.subr.bf16.mxu1 %v7819_v49  ;;  %v9594_v49 = vpack.c.bf16 %v9163_v6, %v9152_v34  ;;  %v7867_v34 = vld [vmem:[#allocation9 + $0x5b4] ss:$8 sps:$4 sm:$0xff]  }
 0x4a8   : > { %4513 = vmatpush1.bf16.msra.mxu1 %v7817_v62  ;;  %v7861_v62 = vld [vmem:[#allocation9 + $0x594] ss:$8 sps:$4 sm:$0xff]  }
 0x4a9   : > { %4514 = vmatprep.subr.bf16.mxu1 %v7822_v38  ;;  %v7859_v38 = vld [vmem:[#allocation9 + $0x590] ss:$8 sps:$4 sm:$0xff]  }
 0x4ac   : > { %4515 = vmatpush1.bf16.msra.mxu1 %v7820_v31  ;;  %v7864_v31 = vld [vmem:[#allocation9 + $0x5a4] ss:$8 sps:$4 sm:$0xff]  }
 0x4ad   : > { %4516 = vmatprep.subr.bf16.mxu1 %v7825_v10  ;;  %v7862_v10 = vld [vmem:[#allocation9 + $0x5a0] ss:$8 sps:$4 sm:$0xff]  }
 0x4b0   : > { %4517 = vmatpush1.bf16.msra.mxu1 %v7823_v27  ;;  %v7865_v27 = vld [vmem:[#allocation9 + $0x5b0] ss:$8 sps:$4 sm:$0xff]  }
 0x4b1   : > { %4518 = vmatprep.subr.bf16.mxu1 %v7828_v7  ;;  %v7870_v7 = vld [vmem:[#allocation9 + $0x5c4] ss:$8 sps:$4 sm:$0xff]  }
 0x4b4   : > { %4519 = vmatpush1.bf16.msra.mxu1 %v7826_v33  ;;  %v7873_v33 = vld [vmem:[#allocation9 + $0x5d4] ss:$8 sps:$4 sm:$0xff]  }
 0x4b5   : > { %4520 = vmatprep.subr.bf16.mxu1 %v7831_v0  ;;  %v7871_v0 = vld [vmem:[#allocation9 + $0x5d0] ss:$8 sps:$4 sm:$0xff]  }
 0x4b8   : > { %4521 = vmatpush1.bf16.msra.mxu1 %v7829_v43  ;;  %v7876_v43 = vld [vmem:[#allocation9 + $0x5e4] ss:$8 sps:$4 sm:$0xff]  }
 0x4b9   : > { %4780 = vmatprep.subr.bf16.mxu1 %v7834_v39  ;;  %v7874_v39 = vld [vmem:[#allocation9 + $0x5e0] ss:$8 sps:$4 sm:$0xff]  }
 0x4bb   : > { %4523 = vmatmul.mubr.bf16.vlgmr.msra.gmra.mrb[0].mxu1 %v9588_v47  ;;  %v7882_v47 = vld [vmem:[#allocation9 + $0x604] ss:$8 sps:$4 sm:$0xff]  }
 0x4bc   : > { %4532 = vmatprep.mubr.bf16.mxu1 %v9589_v22  ;;  %4781 = vmatpush1.bf16.msra.mxu1 %v7832_v1  ;;  %v7879_v1 = vld [vmem:[#allocation9 + $0x5f4] ss:$8 sps:$4 sm:$0xff]   ;;  %v7880_v22 = vld [vmem:[#allocation9 + $0x600] ss:$8 sps:$4 sm:$0xff]  }
 0x4bd   : > { %4782 = vmatprep.subr.bf16.mxu1 %v7837_v15  ;;  %v7877_v15 = vld [vmem:[#allocation9 + $0x5f0] ss:$8 sps:$4 sm:$0xff]  }
 0x4c0   : > { %4783 = vmatpush1.bf16.msra.mxu1 %v7835_v61  ;;  %v7885_v61 = vld [vmem:[#allocation9 + $0x614] ss:$8 sps:$4 sm:$0xff]  }
 0x4c1   : > { %4784 = vmatprep.subr.bf16.mxu1 %v7840_v17  ;;  %v7883_v17 = vld [vmem:[#allocation9 + $0x610] ss:$8 sps:$4 sm:$0xff]  }
 0x4c3   : > { %4533 = vmatmul.mubr.bf16.gmra.mrb[4].mxu1 %v9590_v30  ;;  %v7891_v30 = vld [vmem:[#allocation9 + $0x634] ss:$8 sps:$4 sm:$0xff]  }
 0x4c4   : > { %4542 = vmatprep.mubr.bf16.mxu1 %v9591_v41  ;;  %4785 = vmatpush1.bf16.msra.mxu1 %v7838_v14  ;;  %v7888_v14 = vld [vmem:[#allocation9 + $0x624] ss:$8 sps:$4 sm:$0xff]   ;;  %v7892_v41 = vld [vmem:[#allocation9 + $0x640] ss:$8 sps:$4 sm:$0xff]  }
 0x4c5   : > { %4786 = vmatprep.subr.bf16.mxu1 %v7843_v19  ;;  %v7886_v19 = vld [vmem:[#allocation9 + $0x620] ss:$8 sps:$4 sm:$0xff]  }
 0x4c8   : > { %4787 = vmatpush1.bf16.msra.mxu1 %v7841_v58  ;;  %v7897_v58 = vld [vmem:[#allocation9 + $0x654] ss:$8 sps:$4 sm:$0xff]  }
 0x4c9   : > { %4788 = vmatprep.subr.bf16.mxu1 %v7846_v42  ;;  %v7898_v42 = vld [vmem:[#allocation9 + $0x660] ss:$8 sps:$4 sm:$0xff]  }
 0x4cb   : > { %4543 = vmatmul.mubr.bf16.gmra.mrb[8].mxu1 %v9592_v59  ;;  %v7909_v59 = vld [vmem:[#allocation9 + $0x694] ss:$8 sps:$4 sm:$0xff]  }
 0x4cc   : > { %4552 = vmatprep.mubr.bf16.mxu1 %v9593_v54  ;;  %4789 = vmatpush1.bf16.msra.mxu1 %v7844_v52  ;;  %v7903_v52 = vld [vmem:[#allocation9 + $0x674] ss:$8 sps:$4 sm:$0xff]   ;;  %v7907_v54 = vld [vmem:[#allocation9 + $0x690] ss:$8 sps:$4 sm:$0xff]  }
 0x4cd   : > { %4790 = vmatprep.subr.bf16.mxu1 %v7849_v32  ;;  %v7904_v32 = vld [vmem:[#allocation9 + $0x680] ss:$8 sps:$4 sm:$0xff]  }
 0x4d0   : > { %4791 = vmatpush1.bf16.msra.mxu1 %v7847_v18  ;;  %v7912_v18 = vld [vmem:[#allocation9 + $0x6a4] ss:$8 sps:$4 sm:$0xff]  }
 0x4d1   : > { %4792 = vmatprep.subr.bf16.mxu1 %v7852_v35  ;;  %v7910_v35 = vld [vmem:[#allocation9 + $0x6a0] ss:$8 sps:$4 sm:$0xff]  }
 0x4d3   : > { %4553 = vmatmul.mubr.bf16.gmra.mrb[12].mxu1 %v9594_v49  ;;  %v7921_v49 = vld [vmem:[#allocation9 + $0x6d4] ss:$8 sps:$4 sm:$0xff]  }
 0x4d4   : > { %4793 = vmatpush1.bf16.msra.mxu1 %v7850_v44  ;;  %6637 = vmatprep.mubr.msk.bf16.mxu1 %vm8726_vm3, %v9050_v56  ;;  %v7868_v56 = vld [vmem:[#allocation9 + $0x5c0] ss:$8 sps:$4 sm:$0xff]   ;;  %v7913_v44 = vld [vmem:[#allocation9 + $0x6b0] ss:$8 sps:$4 sm:$0xff]  }
 0x4d5   : > { %4794 = vmatprep.subr.bf16.mxu1 %v7855_v12  ;;  %v7918_v12 = vld [vmem:[#allocation9 + $0x6c4] ss:$8 sps:$4 sm:$0xff]  }
 0x4d8   : > { %4795 = vmatpush1.bf16.msra.mxu1 %v7853_v23  ;;  %v7919_v23 = vld [vmem:[#allocation9 + $0x6d0] ss:$8 sps:$4 sm:$0xff]  }
 0x4d9   : > { %4796 = vmatprep.subr.bf16.mxu1 %v7858_v63  ;;  %v7924_v63 = vld [vmem:[#allocation9 + $0x6e4] ss:$8 sps:$4 sm:$0xff]  }
 0x4dc   : > { %4797 = vmatpush1.bf16.msra.mxu1 %v7856_v50  ;;  %v7922_v50 = vld [vmem:[#allocation9 + $0x6e0] ss:$8 sps:$4 sm:$0xff]  }
 0x4dd   : > { %4798 = vmatprep.subr.bf16.mxu1 %v7861_v62  ;;  %v7927_v62 = vld [vmem:[#allocation9 + $0x6f4] ss:$8 sps:$4 sm:$0xff]  }
 0x4e0   : > { %4799 = vmatpush1.bf16.msra.mxu1 %v7859_v38  ;;  %v7925_v38 = vld [vmem:[#allocation9 + $0x6f0] ss:$8 sps:$4 sm:$0xff]  }
 0x4e1   : > { %4800 = vmatprep.subr.bf16.mxu1 %v7864_v31  ;;  %v7930_v31 = vld [vmem:[#allocation9 + $0x704] ss:$8 sps:$4 sm:$0xff]  }
 0x4e4   : > { %4801 = vmatpush1.bf16.msra.mxu1 %v7862_v10  ;;  %v7928_v10 = vld [vmem:[#allocation9 + $0x700] ss:$8 sps:$4 sm:$0xff]  }
 0x4e5   : > { %4802 = vmatprep.subr.bf16.mxu1 %v7867_v34  ;;  %v7933_v34 = vld [vmem:[#allocation9 + $0x714] ss:$8 sps:$4 sm:$0xff]  }
 0x4e8   : > { %4803 = vmatpush1.bf16.msra.mxu1 %v7865_v27  ;;  %v7931_v27 = vld [vmem:[#allocation9 + $0x710] ss:$8 sps:$4 sm:$0xff]  }
 0x4e9   : > { %4804 = vmatprep.subr.bf16.mxu1 %v7870_v7  ;;  %v7936_v7 = vld [vmem:[#allocation9 + $0x724] ss:$8 sps:$4 sm:$0xff]  }
 0x4ec   : > { %4805 = vmatpush1.bf16.msra.mxu1 %v7868_v56  ;;  %v7934_v56 = vld [vmem:[#allocation9 + $0x720] ss:$8 sps:$4 sm:$0xff]  }
 0x4ed   : > { %4806 = vmatprep.subr.bf16.mxu1 %v7873_v33  ;;  %v7939_v33 = vld [vmem:[#allocation9 + $0x734] ss:$8 sps:$4 sm:$0xff]  }
 0x4f0   : > { %4807 = vmatpush1.bf16.msra.mxu1 %v7871_v0  ;;  %v7940_v0 = vld [vmem:[#allocation9 + $0x740] ss:$8 sps:$4 sm:$0xff]  }
 0x4f1   : > { %4808 = vmatprep.subr.bf16.mxu1 %v7876_v43  ;;  %v7945_v43 = vld [vmem:[#allocation9 + $0x754] ss:$8 sps:$4 sm:$0xff]  }
 0x4f4   : > { %4809 = vmatpush1.bf16.msra.mxu1 %v7874_v39  ;;  %v9595_v39 = vrot.slane %v9171_v55, 7 }
 0x4f5   : > { %4810 = vmatprep.subr.bf16.mxu1 %v7879_v1 }
 0x4f6   : > { %v6710_v1 = vpack.c.bf16 %v8633_v9, %v9595_v39  ;;  %v8009_v39 = vld [vmem:[#allocation9 + $0x8b0] ss:$8 sps:$4 sm:$0xff]  }
 0x4f8   : > { %4811 = vmatpush1.bf16.msra.mxu1 %v7877_v15  ;;  %v7946_v15 = vld [vmem:[#allocation9 + $0x760] ss:$8 sps:$4 sm:$0xff]  }
 0x4f9   : > { %5064 = vmatprep.subr.bf16.mxu1 %v7882_v47  ;;  %v9596_v47 = vrot.slane %v9163_v6, 7 }
 0x4fb   : > { %6640 = vmatmul.mubr.msk.bf16.vlgmr.msra.gmra.mrb[0].mxu1 %vm8726_vm3, %v9038_v45  ;;  %v7889_v45 = vld [vmem:[#allocation9 + $0x630] ss:$8 sps:$4 sm:$0xff]  }
 0x4fc   : > { %6643 = vmatprep.mubr.msk.bf16.mxu1 %vm8726_vm3, %v9098_v3  ;;  %5065 = vmatpush1.bf16.msra.mxu1 %v7880_v22  ;;  %v7894_v3 = vld [vmem:[#allocation9 + $0x644] ss:$8 sps:$4 sm:$0xff]   ;;  %v6713_v22 = vpack.c.bf16 %v8633_v9, %v9596_v47  ;;  %v7958_v9 = vld [vmem:[#allocation9 + $0x7a0] ss:$8 sps:$4 sm:$0xff]  }
 0x4fd   : > { %5066 = vmatprep.subr.bf16.mxu1 %v7885_v61  ;;  %v7951_v61 = vld [vmem:[#allocation9 + $0x774] ss:$8 sps:$4 sm:$0xff]   ;;  %v8018_v47 = vld [vmem:[#allocation9 + $0x8e0] ss:$8 sps:$4 sm:$0xff]  }
 0x500   : > { %5067 = vmatpush1.bf16.msra.mxu1 %v7883_v17  ;;  %v7954_v17 = vld [vmem:[#allocation9 + $0x784] ss:$8 sps:$4 sm:$0xff]  }
 0x501   : > { %5068 = vmatprep.subr.bf16.mxu1 %v7888_v14  ;;  %v7952_v14 = vld [vmem:[#allocation9 + $0x780] ss:$8 sps:$4 sm:$0xff]  }
 0x503   : > { %6646 = vmatmul.mubr.msk.bf16.gmra.mrb[4].mxu1 %vm8726_vm3, %v9100_v48  ;;  %v7895_v48 = vld [vmem:[#allocation9 + $0x650] ss:$8 sps:$4 sm:$0xff]  }
 0x504   : > { %6649 = vmatprep.mubr.msk.bf16.mxu1 %vm8726_vm3, %v9148_v40  ;;  %5069 = vmatpush1.bf16.msra.mxu1 %v7886_v19  ;;  %v7900_v40 = vld [vmem:[#allocation9 + $0x664] ss:$8 sps:$4 sm:$0xff]   ;;  %v7957_v19 = vld [vmem:[#allocation9 + $0x794] ss:$8 sps:$4 sm:$0xff]  }
 0x505   : > { %5070 = vmatprep.subr.bf16.mxu1 %v7891_v30  ;;  %v7955_v30 = vld [vmem:[#allocation9 + $0x790] ss:$8 sps:$4 sm:$0xff]  }
 0x508   : > { %5071 = vmatpush1.bf16.msra.mxu1 %v7889_v45  ;;  %v7960_v45 = vld [vmem:[#allocation9 + $0x7a4] ss:$8 sps:$4 sm:$0xff]  }
 0x509   : > { %5072 = vmatprep.subr.bf16.mxu1 %v7894_v3  ;;  %v7963_v3 = vld [vmem:[#allocation9 + $0x7b4] ss:$8 sps:$4 sm:$0xff]  }
 0x50b   : > { %6652 = vmatmul.mubr.msk.bf16.gmra.mrb[8].mxu1 %vm8726_vm3, %v9150_v8  ;;  %v7901_v8 = vld [vmem:[#allocation9 + $0x670] ss:$8 sps:$4 sm:$0xff]  }
 0x50c   : > { %6655 = vmatprep.mubr.msk.bf16.mxu1 %vm8726_vm3, %v9211_v5  ;;  %5073 = vmatpush1.bf16.msra.mxu1 %v7892_v41  ;;  %v7906_v5 = vld [vmem:[#allocation9 + $0x684] ss:$8 sps:$4 sm:$0xff]  }
 0x50d   : > { %5074 = vmatprep.subr.bf16.mxu1 %v7897_v58  ;;  %v7966_v41 = vld [vmem:[#allocation9 + $0x7c4] ss:$8 sps:$4 sm:$0xff]   ;;  %v7969_v58 = vld [vmem:[#allocation9 + $0x7d4] ss:$8 sps:$4 sm:$0xff]  }
 0x510   : > { %5075 = vmatpush1.bf16.msra.mxu1 %v7895_v48  ;;  %v7967_v48 = vld [vmem:[#allocation9 + $0x7d0] ss:$8 sps:$4 sm:$0xff]  }
 0x511   : > { %5076 = vmatprep.subr.bf16.mxu1 %v7900_v40  ;;  %v7972_v40 = vld [vmem:[#allocation9 + $0x7e4] ss:$8 sps:$4 sm:$0xff]  }
 0x513   : > { %6658 = vmatmul.mubr.msk.bf16.gmra.mrb[12].mxu1 %vm8726_vm3, %v9201_v53  ;;  %v7915_v53 = vld [vmem:[#allocation9 + $0x6b4] ss:$8 sps:$4 sm:$0xff]  }
 0x514   : > { %5077 = vmatpush1.bf16.msra.mxu1 %v7898_v42  ;;  %6693 = vmatprep.mubr.msk.bf16.mxu1 %vm8620_vm1, %v9083_v21  ;;  %v7916_v21 = vld [vmem:[#allocation9 + $0x6c0] ss:$8 sps:$4 sm:$0xff]  }
 0x515   : > { %5078 = vmatprep.subr.bf16.mxu1 %v7903_v52  ;;  %v7970_v42 = vld [vmem:[#allocation9 + $0x7e0] ss:$8 sps:$4 sm:$0xff]   ;;  %v7975_v52 = vld [vmem:[#allocation9 + $0x7f4] ss:$8 sps:$4 sm:$0xff]  }
 0x518   : > { %5079 = vmatpush1.bf16.msra.mxu1 %v7901_v8  ;;  %v7973_v8 = vld [vmem:[#allocation9 + $0x7f0] ss:$8 sps:$4 sm:$0xff]  }
 0x519   : > { %5080 = vmatprep.subr.bf16.mxu1 %v7906_v5  ;;  %v7978_v5 = vld [vmem:[#allocation9 + $0x804] ss:$8 sps:$4 sm:$0xff]  }
 0x51c   : > { %5081 = vmatpush1.bf16.msra.mxu1 %v7904_v32  ;;  %v7976_v32 = vld [vmem:[#allocation9 + $0x800] ss:$8 sps:$4 sm:$0xff]  }
 0x51d   : > { %5082 = vmatprep.subr.bf16.mxu1 %v7909_v59  ;;  %v7981_v59 = vld [vmem:[#allocation9 + $0x814] ss:$8 sps:$4 sm:$0xff]  }
 0x520   : > { %5083 = vmatpush1.bf16.msra.mxu1 %v7907_v54  ;;  %v9597_v54 = vld [vmem:[#allocation19_spill] sm:$0xff] }
 0x521   : > { %5084 = vmatprep.subr.bf16.mxu1 %v7912_v18  ;;  %v7979_v18 = vld [vmem:[#allocation9 + $0x810] ss:$8 sps:$4 sm:$0xff]  }
 0x524   : > { %5085 = vmatpush1.bf16.msra.mxu1 %v7910_v35  ;;  %v7984_v35 = vld [vmem:[#allocation9 + $0x824] ss:$8 sps:$4 sm:$0xff]  }
 0x525   : > { %5086 = vmatprep.subr.bf16.mxu1 %v7915_v53  ;;  %v7982_v53 = vld [vmem:[#allocation9 + $0x820] ss:$8 sps:$4 sm:$0xff]  }
 0x528   : > { %5087 = vmatpush1.bf16.msra.mxu1 %v7913_v44  ;;  %v7987_v44 = vld [vmem:[#allocation9 + $0x834] ss:$8 sps:$4 sm:$0xff]  }
 0x529   : > { %5088 = vmatprep.subr.bf16.mxu1 %v7918_v12  ;;  %v9598_v12 = vld [vmem:[#allocation18_spill] sm:$0xff] }
 0x52c   : > { %5089 = vmatpush1.bf16.msra.mxu1 %v7916_v21  ;;  %v7985_v21 = vld [vmem:[#allocation9 + $0x830] ss:$8 sps:$4 sm:$0xff]  }
 0x52d   : > { %5090 = vmatprep.subr.bf16.mxu1 %v7921_v49  ;;  %v7990_v49 = vld [vmem:[#allocation9 + $0x844] ss:$8 sps:$4 sm:$0xff]  }
 0x530   : > { %5091 = vmatpush1.bf16.msra.mxu1 %v7919_v23  ;;  %v7993_v23 = vld [vmem:[#allocation9 + $0x854] ss:$8 sps:$4 sm:$0xff]  }
 0x531   : > { %5092 = vmatprep.subr.bf16.mxu1 %v7924_v63  ;;  %v9599_v63 = vmov 0.0  }
 0x534   : > { %5093 = vmatpush1.bf16.msra.mxu1 %v7922_v50  ;;  %v5154_v50 = vpack.c.bf16 %v9599_v63, %v9171_v55 }
 0x535   : > { %5094 = vmatprep.subr.bf16.mxu1 %v7927_v62  ;;  %v9600_v62 = vld [vmem:[#allocation20_spill] sm:$0xff] }
 0x538   : > { %5095 = vmatpush1.bf16.msra.mxu1 %v7925_v38  ;;  %v7991_v38 = vld [vmem:[#allocation9 + $0x850] ss:$8 sps:$4 sm:$0xff]  }
 0x539   : > { %5348 = vmatprep.subr.bf16.mxu1 %v7930_v31  ;;  %v7996_v31 = vld [vmem:[#allocation9 + $0x864] ss:$8 sps:$4 sm:$0xff]  }
 0x53b   : > { %6696 = vmatmul.mubr.msk.bf16.vlgmr.msra.gmra.mrb[0].mxu1 %vm8620_vm1, %v9076_v13  ;;  %v7937_v13 = vld [vmem:[#allocation9 + $0x730] ss:$8 sps:$4 sm:$0xff]  }
 0x53c   : > { %6699 = vmatprep.mubr.msk.bf16.mxu1 %vm8620_vm1, %v9133_v36  ;;  %5349 = vmatpush1.bf16.msra.mxu1 %v7928_v10  ;;  %v7942_v36 = vld [vmem:[#allocation9 + $0x744] ss:$8 sps:$4 sm:$0xff]   ;;  %v5153_v10 = vpack.c.bf16 %v9599_v63, %v9163_v6 }
 0x53d   : > { %5350 = vmatprep.subr.bf16.mxu1 %v7933_v34  ;;  %v7999_v34 = vld [vmem:[#allocation9 + $0x874] ss:$8 sps:$4 sm:$0xff]  }
 0x540   : > { %5351 = vmatpush1.bf16.msra.mxu1 %v7931_v27  ;;  %v7997_v27 = vld [vmem:[#allocation9 + $0x870] ss:$8 sps:$4 sm:$0xff]  }
 0x541   : > { %5352 = vmatprep.subr.bf16.mxu1 %v7936_v7  ;;  %v8002_v7 = vld [vmem:[#allocation9 + $0x884] ss:$8 sps:$4 sm:$0xff]  }
 0x543   : > { %6702 = vmatmul.mubr.msk.bf16.gmra.mrb[4].mxu1 %vm8620_vm1, %v9126_v28  ;;  %v7943_v28 = vld [vmem:[#allocation9 + $0x750] ss:$8 sps:$4 sm:$0xff]  }
 0x544   : > { %6705 = vmatprep.mubr.msk.bf16.mxu1 %vm8620_vm1, %v9186_v26  ;;  %5353 = vmatpush1.bf16.msra.mxu1 %v7934_v56  ;;  %v7948_v26 = vld [vmem:[#allocation9 + $0x764] ss:$8 sps:$4 sm:$0xff]   ;;  %v8000_v56 = vld [vmem:[#allocation9 + $0x880] ss:$8 sps:$4 sm:$0xff]  }
 0x545   : > { %5354 = vmatprep.subr.bf16.mxu1 %v7939_v33  ;;  %v8005_v33 = vld [vmem:[#allocation9 + $0x894] ss:$8 sps:$4 sm:$0xff]  }
 0x548   : > { %5355 = vmatpush1.bf16.msra.mxu1 %v7937_v13  ;;  %v8003_v13 = vld [vmem:[#allocation9 + $0x890] ss:$8 sps:$4 sm:$0xff]  }
 0x549   : > { %5356 = vmatprep.subr.bf16.mxu1 %v7942_v36  ;;  %v8008_v36 = vld [vmem:[#allocation9 + $0x8a4] ss:$8 sps:$4 sm:$0xff]  }
 0x54b   : > { %6708 = vmatmul.mubr.msk.bf16.gmra.mrb[8].mxu1 %vm8620_vm1, %v9179_v60  ;;  %v7949_v60 = vld [vmem:[#allocation9 + $0x770] ss:$8 sps:$4 sm:$0xff]  }
 0x54c   : > { %6711 = vmatprep.mubr.msk.bf16.mxu1 %vm8620_vm1, %v6710_v1  ;;  %5357 = vmatpush1.bf16.msra.mxu1 %v7940_v0  ;;  %v8006_v0 = vld [vmem:[#allocation9 + $0x8a0] ss:$8 sps:$4 sm:$0xff]   ;;  %v8014_v1 = vld [vmem:[#allocation9 + $0x8c4] ss:$8 sps:$4 sm:$0xff]  }
 0x54d   : > { %5358 = vmatprep.subr.bf16.mxu1 %v7945_v43  ;;  %v8011_v43 = vld [vmem:[#allocation9 + $0x8b4] ss:$8 sps:$4 sm:$0xff]  }
 0x550   : > { %5359 = vmatpush1.bf16.msra.mxu1 %v7943_v28  ;;  %v8017_v28 = vld [vmem:[#allocation9 + $0x8d4] ss:$8 sps:$4 sm:$0xff]  }
 0x551   : > { %5360 = vmatprep.subr.bf16.mxu1 %v7948_v26  ;;  %v8015_v26 = vld [vmem:[#allocation9 + $0x8d0] ss:$8 sps:$4 sm:$0xff]  }
 0x553   : > { %6714 = vmatmul.mubr.msk.bf16.gmra.mrb[12].mxu1 %vm8620_vm1, %v6713_v22  ;;  %v8023_v22 = vld [vmem:[#allocation9 + $0x8f4] ss:$8 sps:$4 sm:$0xff]  }
 0x554   : > { %5361 = vmatpush1.bf16.msra.mxu1 %v7946_v15  ;;  %5380 = vmatprep.mubr.bf16.mxu1 %v9072_v24  ;;  %v7964_v24 = vld [vmem:[#allocation9 + $0x7c0] ss:$8 sps:$4 sm:$0xff]   ;;  %v8020_v15 = vld [vmem:[#allocation9 + $0x8e4] ss:$8 sps:$4 sm:$0xff]  }
 0x555   : > { %5362 = vmatprep.subr.bf16.mxu1 %v7951_v61  ;;  %v8021_v61 = vld [vmem:[#allocation9 + $0x8f0] ss:$8 sps:$4 sm:$0xff]  }
 0x558   : > { %5363 = vmatpush1.bf16.msra.mxu1 %v7949_v60  ;;  %v9601_v60 = vrot.slane %v9171_v55, 1 }
 0x559   : > { %5364 = vmatprep.subr.bf16.mxu1 %v7954_v17 }
 0x55a   : > { %v6798_v17 = vpack.c.bf16 %v8716_v37, %v9601_v60 }
 0x55c   : > { %5365 = vmatpush1.bf16.msra.mxu1 %v7952_v14 }
 0x55d   : > { %5366 = vmatprep.subr.bf16.mxu1 %v7957_v19 }
 0x560   : > { %5367 = vmatpush1.bf16.msra.mxu1 %v7955_v30 }
 0x561   : > { %5368 = vmatprep.subr.bf16.mxu1 %v7960_v45 }
 0x564   : > { %5369 = vmatpush1.bf16.msra.mxu1 %v7958_v9 }
 0x565   : > { %5370 = vmatprep.subr.bf16.mxu1 %v7963_v3 }
 0x568   : > { %5371 = vmatpush1.bf16.msra.mxu1 %v7961_v4 }
 0x569   : > { %5372 = vmatprep.subr.bf16.mxu1 %v7966_v41 }
 0x56c   : > { %5373 = vmatpush1.bf16.msra.mxu1 %v7964_v24 }
 0x56d   : > { %5374 = vmatprep.subr.bf16.mxu1 %v7969_v58  ;;  %v8038_v58 = vld [vmem:[%s8532_s28] sm:$0xff] }
 0x570   : > { %5375 = vmatpush1.bf16.msra.mxu1 %v7967_v48 }
 0x571   : > { %5376 = vmatprep.subr.bf16.mxu1 %v7972_v40 }
 0x574   : > { %5377 = vmatpush1.bf16.msra.mxu1 %v7970_v42  ;;  %v8039_v42 = vld [vmem:[%s8532_s28 + $0x8] sm:$0xff] }
 0x575   : > { %5378 = vmatprep.subr.bf16.mxu1 %v7975_v52 }
 0x578   : > { %5379 = vmatpush1.bf16.msra.mxu1 %v7973_v8 }
 0x579   : > { %5632 = vmatprep.subr.bf16.mxu1 %v7978_v5  ;;  %v8040_v5 = vld [vmem:[%s8532_s28 + $0x10] sm:$0xff] }
 0x57b   : > { %5381 = vmatmul.mubr.bf16.vlgmr.msra.gmra.mrb[0].mxu1 %v9064_v57  ;;  %v7988_v57 = vld [vmem:[#allocation9 + $0x840] ss:$8 sps:$4 sm:$0xff]  }
 0x57c   : > { %5390 = vmatprep.mubr.bf16.mxu1 %v9597_v54  ;;  %5633 = vmatpush1.bf16.msra.mxu1 %v7976_v32 }
 0x57d   : > { %5634 = vmatprep.subr.bf16.mxu1 %v7981_v59  ;;  %v8041_v59 = vld [vmem:[%s8532_s28 + $0x18] sm:$0xff] }
 0x580   : > { %5635 = vmatpush1.bf16.msra.mxu1 %v7979_v18 }
 0x581   : > { %5636 = vmatprep.subr.bf16.mxu1 %v7984_v35 }
 0x583   : > { %5391 = vmatmul.mubr.bf16.gmra.mrb[4].mxu1 %v9598_v12 }
 0x584   : > { %5400 = vmatprep.mubr.bf16.mxu1 %v9175_v25  ;;  %5637 = vmatpush1.bf16.msra.mxu1 %v7982_v53  ;;  %v7994_v25 = vld [vmem:[#allocation9 + $0x860] ss:$8 sps:$4 sm:$0xff]  }
 0x585   : > { %5638 = vmatprep.subr.bf16.mxu1 %v7987_v44 }
 0x588   : > { %5639 = vmatpush1.bf16.msra.mxu1 %v7985_v21 }
 0x589   : > { %5640 = vmatprep.subr.bf16.mxu1 %v7990_v49 }
 0x58b   : > { %5401 = vmatmul.mubr.bf16.gmra.mrb[8].mxu1 %v9600_v62 }
 0x58c   : > { %5410 = vmatprep.mubr.bf16.mxu1 %v5154_v50  ;;  %5641 = vmatpush1.bf16.msra.mxu1 %v7988_v57  ;;  %v8042_v50 = vld [vmem:[%s8532_s28 + $0x20] sm:$0xff] }
 0x58d   : > { %5642 = vmatprep.subr.bf16.mxu1 %v7993_v23 }
 0x590   : > { %5643 = vmatpush1.bf16.msra.mxu1 %v7991_v38 }
 0x591   : > { %5644 = vmatprep.subr.bf16.mxu1 %v7996_v31  ;;  %v8043_v31 = vld [vmem:[%s8532_s28 + $0x28] sm:$0xff] }
 0x593   : > { %5411 = vmatmul.mubr.bf16.gmra.mrb[12].mxu1 %v5153_v10 }
 0x594   : > { %5645 = vmatpush1.bf16.msra.mxu1 %v7994_v25  ;;  %6781 = vmatprep.mubr.msk.bf16.mxu1 %vm8726_vm3, %v9085_v29  ;;  %v8012_v29 = vld [vmem:[#allocation9 + $0x8c0] ss:$8 sps:$4 sm:$0xff]  }
 0x595   : > { %5646 = vmatprep.subr.bf16.mxu1 %v7999_v34  ;;  %v8044_v34 = vld [vmem:[%s8532_s28 + $0x30] sm:$0xff] }
 0x598   : > { %5647 = vmatpush1.bf16.msra.mxu1 %v7997_v27 }
 0x599   : > { %5648 = vmatprep.subr.bf16.mxu1 %v8002_v7  ;;  %v8045_v7 = vld [vmem:[%s8532_s28 + $0x38] sm:$0xff] }
 0x59c   : > { %5649 = vmatpush1.bf16.msra.mxu1 %v8000_v56 }
 0x59d   : > { %5650 = vmatprep.subr.bf16.mxu1 %v8005_v33 }
 0x5a0   : > { %5651 = vmatpush1.bf16.msra.mxu1 %v8003_v13 }
 0x5a1   : > { %5652 = vmatprep.subr.bf16.mxu1 %v8008_v36 }
 0x5a4   : > { %5653 = vmatpush1.bf16.msra.mxu1 %v8006_v0 }
 0x5a5   : > { %5654 = vmatprep.subr.bf16.mxu1 %v8011_v43 }
 0x5a8   : > { %5655 = vmatpush1.bf16.msra.mxu1 %v8009_v39 }
 0x5a9   : > { %5656 = vmatprep.subr.bf16.mxu1 %v8014_v1 }
 0x5ac   : > { %5657 = vmatpush1.bf16.msra.mxu1 %v8012_v29 }
 0x5ad   : > { %5658 = vmatprep.subr.bf16.mxu1 %v8017_v28 }
 0x5b0   : > { %5659 = vmatpush1.bf16.msra.mxu1 %v8015_v26 }
 0x5b1   : > { %5660 = vmatprep.subr.bf16.mxu1 %v8020_v15  ;;  %v8046_v15 = vld [vmem:[%s8532_s28 + $0x40] sm:$0xff] }
 0x5b4   : > { %5661 = vmatpush1.bf16.msra.mxu1 %v8018_v47 }
 0x5b5   : > { %5662 = vmatprep.subr.bf16.mxu1 %v8023_v22 }
 0x5b8   : > { %5663 = vmatpush1.bf16.msra.mxu1 %v8021_v61  ;;  %v8047_v61 = vld [vmem:[%s8532_s28 + $0x48] sm:$0xff] }
 0x5bb   : > { %6784 = vmatmul.mubr.msk.bf16.vlgmr.msra.gmra.mrb[0].mxu1 %vm8726_vm3, %v9078_v51 }
 0x5bc   : > { %6787 = vmatprep.mubr.msk.bf16.mxu1 %vm8726_vm3, %v9135_v16  ;;  %v9602_v16 = vrot.slane %v9163_v6, 1 }
 0x5be   : > { %v6801_v51 = vpack.c.bf16 %v8716_v37, %v9602_v16  ;;  %v8048_v16 = vld [vmem:[%s8532_s28 + $0x50] sm:$0xff] }
 0x5c3   : > { %6790 = vmatmul.mubr.msk.bf16.gmra.mrb[4].mxu1 %vm8726_vm3, %v9128_v11  ;;  %v9603_v11 = vld [vmem:[#allocation17_spill] sm:$0xff] }
 0x5c4   : > { %6793 = vmatprep.mubr.msk.bf16.mxu1 %vm8726_vm3, %v9188_v2  ;;  %v5721_v2 = vld [vmem:[#allocation11] sm:$0x3]  ;;  %v9604_v55 = vsub.s32 0, %v9603_v11  ;;  %v9605_v19 = vsub.s32 1, %v9603_v11 }
 0x5c6   : > { %v9404_v14 = vrot.slane %v5721_v2, %v9604_v55 }
 0x5cb   : > { %6796 = vmatmul.mubr.msk.bf16.gmra.mrb[8].mxu1 %vm8726_vm3, %v9181_v20  ;;  %v9408_v20 = vrot.slane %v5721_v2, %v9605_v19  ;;  %v8049_v2 = vld [vmem:[%s8532_s28 + $0x58] sm:$0xff] }
 0x5cc   : > { %6799 = vmatprep.mubr.msk.bf16.mxu1 %vm8726_vm3, %v6798_v17 }
 0x5d3   : > { %6802 = vmatmul.mubr.msk.bf16.gmra.mrb[12].mxu1 %vm8726_vm3, %v6801_v51 }
 0x68e   : > { %v5666_v30 = vpop.f32.mrb[0].mxu1 }
 0x68f   : > { %v5733_v6 = vadd.f32 %v9404_v14, %v5666_v30  ;;  %v5668_v45 = vpop.f32.mrb[1].mxu1 }
 0x690   : > { %v5734_v37 = vadd.f32 %v9408_v20, %v5668_v45  ;;  %v5670_v46 = vpop.f32.mrb[2].mxu1 }
 0x691   : > { %v5749_v9 = vmul.f32 0.1, %v5733_v6  ;;  %v5735_v3 = vadd.f32 %v9404_v14, %v5670_v46  ;;  %v5672_v4 = vpop.f32.mrb[3].mxu1 }
 0x692   : > { %v5750_v41 = vmul.f32 0.1, %v5734_v37  ;;  %v5736_v24 = vadd.f32 %v9408_v20, %v5672_v4 }
 0x693   : > { %v5765_v48 = vadd.f32 %v8038_v58, %v5749_v9  ;;  %v5751_v40 = vmul.f32 0.1, %v5735_v3 }
 0x694   : > { %v5766_v52 = vadd.f32 %v8039_v42, %v5750_v41  ;;  %v5752_v8 = vmul.f32 0.1, %v5736_v24  ;;  %v8050_v41 = vld [vmem:[%s8532_s28 + $0x60] sm:$0xff] }
 0x695   : > { %5781 = vst [vmem:[%s9418_s24] sm:$0xff] %v5765_v48  ;;  %v5767_v32 = vadd.f32 %v8040_v5, %v5751_v40  ;;  %v8051_v48 = vld [vmem:[%s8532_s28 + $0x68] sm:$0xff] }
 0x696   : > { %5782 = vst [vmem:[%s9418_s24 + $0x8] sm:$0xff] %v5766_v52  ;;  %v5768_v54 = vadd.f32 %v8041_v59, %v5752_v8  ;;  %v5676_v18 = vpop.f32.mrb[4].mxu1 }
 0x697   : > { %5783 = vst [vmem:[%s9418_s24 + $0x10] sm:$0xff] %v5767_v32  ;;  %v5737_v35 = vadd.f32 %v9404_v14, %v5676_v18  ;;  %v5678_v53 = vpop.f32.mrb[5].mxu1 }
 0x698   : > { %5784 = vst [vmem:[%s9418_s24 + $0x18] sm:$0xff] %v5768_v54  ;;  %v5738_v44 = vadd.f32 %v9408_v20, %v5678_v53  ;;  %v5680_v12 = vpop.f32.mrb[6].mxu1 }
 0x699   : > { %v5753_v21 = vmul.f32 0.1, %v5737_v35  ;;  %v5739_v49 = vadd.f32 %v9404_v14, %v5680_v12  ;;  %v5682_v57 = vpop.f32.mrb[7].mxu1 }
 0x69a   : > { %v5754_v23 = vmul.f32 0.1, %v5738_v44  ;;  %v5740_v63 = vadd.f32 %v9408_v20, %v5682_v57 }
 0x69b   : > { %v5769_v62 = vadd.f32 %v8042_v50, %v5753_v21  ;;  %v5755_v38 = vmul.f32 0.1, %v5739_v49 }
 0x69c   : > { %v5770_v25 = vadd.f32 %v8043_v31, %v5754_v23  ;;  %v5756_v10 = vmul.f32 0.1, %v5740_v63 }
 0x69d   : > { %5785 = vst [vmem:[%s9418_s24 + $0x20] sm:$0xff] %v5769_v62  ;;  %v5771_v27 = vadd.f32 %v8044_v34, %v5755_v38 }
 0x69e   : > { %5786 = vst [vmem:[%s9418_s24 + $0x28] sm:$0xff] %v5770_v25  ;;  %v5772_v56 = vadd.f32 %v8045_v7, %v5756_v10  ;;  %v5686_v33 = vpop.f32.mrb[8].mxu1 }
 0x69f   : > { %5787 = vst [vmem:[%s9418_s24 + $0x30] sm:$0xff] %v5771_v27  ;;  %v5741_v13 = vadd.f32 %v9404_v14, %v5686_v33  ;;  %v5688_v36 = vpop.f32.mrb[9].mxu1 }
 0x6a0   : > { %5788 = vst [vmem:[%s9418_s24 + $0x38] sm:$0xff] %v5772_v56  ;;  %v5742_v0 = vadd.f32 %v9408_v20, %v5688_v36  ;;  %v5690_v43 = vpop.f32.mrb[10].mxu1 }
 0x6a1   : > { %v5757_v39 = vmul.f32 0.1, %v5741_v13  ;;  %v5743_v1 = vadd.f32 %v9404_v14, %v5690_v43  ;;  %v5692_v29 = vpop.f32.mrb[11].mxu1 }
 0x6a2   : > { %v5758_v28 = vmul.f32 0.1, %v5742_v0  ;;  %v5744_v26 = vadd.f32 %v9408_v20, %v5692_v29 }
 0x6a3   : > { %v5773_v47 = vadd.f32 %v8046_v15, %v5757_v39  ;;  %v5759_v22 = vmul.f32 0.1, %v5743_v1 }
 0x6a4   : > { %v5774_v60 = vadd.f32 %v8047_v61, %v5758_v28  ;;  %v5760_v17 = vmul.f32 0.1, %v5744_v26 }
 0x6a5   : > { %5789 = vst [vmem:[%s9418_s24 + $0x40] sm:$0xff] %v5773_v47  ;;  %v5775_v51 = vadd.f32 %v8048_v16, %v5759_v22 }
 0x6a6   : > { %5790 = vst [vmem:[%s9418_s24 + $0x48] sm:$0xff] %v5774_v60  ;;  %v5776_v11 = vadd.f32 %v8049_v2, %v5760_v17  ;;  %v5696_v55 = vpop.f32.mrb[12].mxu1 }
 0x6a7   : > { %5791 = vst [vmem:[%s9418_s24 + $0x50] sm:$0xff] %v5775_v51  ;;  %v5745_v19 = vadd.f32 %v9404_v14, %v5696_v55  ;;  %v5698_v30 = vpop.f32.mrb[13].mxu1 }
 0x6a8   : > { %5792 = vst [vmem:[%s9418_s24 + $0x58] sm:$0xff] %v5776_v11  ;;  %v5746_v6 = vadd.f32 %v9408_v20, %v5698_v30  ;;  %v5700_v45 = vpop.f32.mrb[14].mxu1 }
 0x6a9   : > { %v5761_v37 = vmul.f32 0.1, %v5745_v19  ;;  %v5747_v46 = vadd.f32 %v9404_v14, %v5700_v45  ;;  %v5702_v9 = vpop.f32.mrb[15].mxu1  ;;  %v8052_v14 = vld [vmem:[%s8532_s28 + $0x70] sm:$0xff] }
 0x6aa   : > { %v5762_v3 = vmul.f32 0.1, %v5746_v6  ;;  %v5748_v4 = vadd.f32 %v9408_v20, %v5702_v9  ;;  %v8053_v20 = vld [vmem:[%s8532_s28 + $0x78] sm:$0xff] }
 0x6ab   : > { %v5777_v24 = vadd.f32 %v8050_v41, %v5761_v37  ;;  %v5763_v58 = vmul.f32 0.1, %v5747_v46 }
 0x6ac   : > { %v5778_v40 = vadd.f32 %v8051_v48, %v5762_v3  ;;  %v5764_v42 = vmul.f32 0.1, %v5748_v4 }
 0x6ad   : > { %5793 = vst [vmem:[%s9418_s24 + $0x60] sm:$0xff] %v5777_v24  ;;  %v5779_v52 = vadd.f32 %v8052_v14, %v5763_v58 }
 0x6ae   : > { %5794 = vst [vmem:[%s9418_s24 + $0x68] sm:$0xff] %v5778_v40  ;;  %v5780_v8 = vadd.f32 %v8053_v20, %v5764_v42 }
 0x6af   : > { %5795 = vst [vmem:[%s9418_s24 + $0x70] sm:$0xff] %v5779_v52 }
 0x6b0   : > { %5796 = vst [vmem:[%s9418_s24 + $0x78] sm:$0xff] %v5780_v8 }
 0x6b1   : > { %8209 = shalt.err (!%p8206_p13)
}
 0x6b2   : > { %s8210_s13 = scalar_lea.hbm %s9463_s8, 2048  ;;  %s8214_s17 = scalar_lea.hbm %s9518_s5, 4096 }
 0x6b3   : > { %p8211_p9 = scmp.ne.s32.totalorder %s9463_s8, %s8210_s13  ;;  %p8215_p6 = scmp.lt.u32.totalorder %s9463_s8, %s9518_s5 }
 0x6b4   : > { %p8216_p4 = scmp.lt.u32.totalorder %s8214_s17, %s8210_s13  ;;  %p8218_p3 = scmp.lt.u32.totalorder %s8210_s13, %s9463_s8 }
 0x6b5   : > { %p8212_p0 = pnand %p8211_p9, %p8474_p10 }
 0x6b6   : > { %p8217_p8 = por %p8216_p4, %p8215_p6 }
 0x6b7   : > { %p8213_p11 = pneg %p8212_p0 }
 0x6b8   : > { %p8219_p5 = por %p8218_p3, %p8217_p8 }
 0x6ba   : > { %p8220_p7 = pnand %p8219_p5, %p8213_p11 }
 0x6bc   : > { %8223 = shalt.err (!%p8220_p7)
}
 0x6bd   : > { %s8283_s26 = smov 256   ;;  %s8284_s11 = smov 16  }
 0x6be   : > { %7084 = dma.vmem_to_hbm [thread:$0]  (%p8474_p10), %s9465_s9, 2048, %s9463_s8, %s5798_s22, %s8283_s26, %s8283_s26, %s8284_s11  }
 0x6bf PF: > { %s5826_s12 = sand.u32 1, %s8258_s18   ;;  %p9606_p12 = scmp.ne.s32.totalorder %s9550_s25, 0 }
 0x6c0   : > { %p9607_p2 = scmp.ge.s32.totalorder %s8270_s21, 2  ;;  %s5827_s27 = scalar_lea.sflag [#allocation5], %s5826_s12 }
 0x6c2   : > { %p7104_p1 = pnand %p9607_p2, %p9606_p12 }
 0x6c4   : > { %8253 = dma.done.wait (!%p7104_p1), %s5827_s27, 2048  }
 0x6c5   : > { %8255 = vsyncadd (!%p7104_p1), %s5827_s27, 4294965248  ;;  %p20_p13 = scmp.ge.s32.totalorder %s8464_s14, 4   ;;  %s9608_s18 = smov %s8262_s19 }
 0x6c6   : > { %s9609_s19 = smov %s8266_s20  ;;  %s9610_s20 = smov %s8480_s23 }
 0x6c7   : > { %s9611_s21 = smov %s8464_s14  ;;  %22 = sbr.rel (!%p20_p13) target bundleno = 7 (0x7), region = 119 }
 0x6ce   :  { %5832 = vsyncpa [#allocation4], 1 }
 0x6cf   :  { %5834 = vsyncpa [#allocation4 + $0x1], 1 }
 0x6d0   :  { %5835 = vsyncpa [#allocation7], 1 }
 0x6d1   :  { %5836 = vsyncpa [#allocation10], 1 }
 0x6d2   :  { %5837 = vsyncpa [#allocation5], 1 }
 0x6d3   :  { %5839 = vsyncpa [#allocation5 + $0x1], 1 }

</bundles_post_ra>
